<compile_context>
chip_gen: v5e
topology: v5e:2x2
jax: 0.10.0
libtpu: 0.0.40
codegen_flags: <defaults>
</compile_context>

<pallas_src>
import jax
import jax.numpy as jnp
from jax.experimental import pallas as pl
from jax.experimental.pallas import tpu as pltpu

IN_FEATURES = 12288   # 3 * 64 * 64
H1 = 256              # fc_1 out
H2 = 256              # fc_2 out
OUT = 96              # classifier out
OUT_PAD = 128         # lane-pad 96 -> 128 for unmasked full-lane stores


def _nn8_kernel(x_ref, w1_ref, b1_ref, w2_ref, b2_ref, w3_ref, b3_ref, o_ref):
    """Fused forward: relu(x@W1+b1) -> relu(@W2+b2) -> @W3+b3 (dropout = identity)."""
    # fc_1: bf16 inputs on the MXU, f32 accumulate (K = 12288 in one pass over the
    # VMEM-resident bf16 W1).
    x_bf = x_ref[...].astype(jnp.bfloat16)
    h = jnp.dot(x_bf, w1_ref[...], preferred_element_type=jnp.float32)
    h = jnp.maximum(h + b1_ref[...], 0.0)
    # TODO(synk): dropout(p=0.25) skipped (inference mode identity).
    # fc_2 + bias + ReLU
    h = jnp.dot(h.astype(jnp.bfloat16), w2_ref[...], preferred_element_type=jnp.float32)
    h = jnp.maximum(h + b2_ref[...], 0.0)
    # classifier (lane-padded to 128 columns)
    o = jnp.dot(h.astype(jnp.bfloat16), w3_ref[...], preferred_element_type=jnp.float32)
    o_ref[...] = (o + b3_ref[...]).astype(o_ref.dtype)


def prepare_params(w1, b1, w2, b2, w3, b3):
    """One-time parameter prep, hoisted out of the jitted forward.

    Casts weights to bf16 and zero-pads the classifier to a 128-lane-dense slab.
    Biases stay f32 (added to the f32 accumulator).
    """
    w1_bf = w1.astype(jnp.bfloat16)
    w2_bf = w2.astype(jnp.bfloat16)
    w3p_bf = jnp.pad(w3, ((0, 0), (0, OUT_PAD - OUT))).astype(jnp.bfloat16)
    b3p = jnp.pad(b3, ((0, 0), (0, OUT_PAD - OUT)))
    return w1_bf, b1, w2_bf, b2, w3p_bf, b3p


def nn8_forward(x_nchw, w1_bf, b1, w2_bf, b2, w3p_bf, b3p):
    """x_nchw: (B, 3, 64, 64) float32.  Params from prepare_params().  Returns (B, 96) f32."""
    B = x_nchw.shape[0]
    x = x_nchw.reshape(B, -1)                       # nn.Flatten()
    assert x.shape[1] == IN_FEATURES

    vmem = pl.BlockSpec(memory_space=pltpu.MemorySpace.VMEM)   # whole array in VMEM

    bytes_accessed = (
        x.size * x.dtype.itemsize
        + w1_bf.size * 2 + w2_bf.size * 2 + w3p_bf.size * 2
        + b1.size * 4 + b2.size * 4 + b3p.size * 4
        + B * OUT_PAD * 4)
    flops = 2 * B * (IN_FEATURES * H1 + H1 * H2 + H2 * OUT_PAD)

    out_pad = pl.pallas_call(
        _nn8_kernel,
        out_shape=jax.ShapeDtypeStruct((B, OUT_PAD), jnp.float32),
        in_specs=[vmem, vmem, vmem, vmem, vmem, vmem, vmem],
        out_specs=vmem,
        compiler_params=pltpu.CompilerParams(
            vmem_limit_bytes=20 * 1024 * 1024,      # ~7 MB resident; v7x-safe headroom
        ),
        cost_estimate=pl.CostEstimate(
            flops=flops, transcendentals=0, bytes_accessed=bytes_accessed),
    )(x, w1_bf, b1, w2_bf, b2, w3p_bf, b3p)

    return out_pad[:, :OUT]


nn8_forward_jit = jax.jit(nn8_forward)


def init_params(key):
    """Deterministic init mirroring torch.nn.Linear (uniform +-1/sqrt(fan_in)), f32."""
    ks = jax.random.split(key, 6)
    bound1 = 1.0 / jnp.sqrt(IN_FEATURES)
    bound2 = 1.0 / jnp.sqrt(H1)
    bound3 = 1.0 / jnp.sqrt(H2)
    w1 = jax.random.uniform(ks[0], (IN_FEATURES, H1), jnp.float32, -bound1, bound1)
    b1 = jax.random.uniform(ks[1], (1, H1), jnp.float32, -bound1, bound1)
    w2 = jax.random.uniform(ks[2], (H1, H2), jnp.float32, -bound2, bound2)
    b2 = jax.random.uniform(ks[3], (1, H2), jnp.float32, -bound2, bound2)
    w3 = jax.random.uniform(ks[4], (H2, OUT), jnp.float32, -bound3, bound3)
    b3 = jax.random.uniform(ks[5], (1, OUT), jnp.float32, -bound3, bound3)
    return w1, b1, w2, b2, w3, b3


if __name__ == "__main__":
    key = jax.random.PRNGKey(0)
    k_x, k_p = jax.random.split(key)

    # Small batch; spatial/channel shape is fixed by fc_1 in_features = 3*64*64.
    x = jax.random.normal(k_x, (2, 3, 64, 64), jnp.float32)
    w1, b1, w2, b2, w3, b3 = init_params(k_p)

    # One-time parameter prep (bf16 casts + classifier lane-pad), outside the jit.
    params = prepare_params(w1, b1, w2, b2, w3, b3)

    out = nn8_forward_jit(x, *params)
    out = jax.block_until_ready(out)
    assert out.shape == (2, OUT)

    # Reference 1: matched precision (bf16 weights/activations into each dot,
    # f32 accumulate) — should agree with the kernel to ~1e-3.
    w1_bf, _, w2_bf, _, w3p_bf, b3p = params
    xf = x.reshape(x.shape[0], -1)
    xbf = xf.astype(jnp.bfloat16).astype(jnp.float32)
    h = jnp.maximum(xbf @ w1_bf.astype(jnp.float32) + b1, 0.0)
    h = jnp.maximum(
        h.astype(jnp.bfloat16).astype(jnp.float32) @ w2_bf.astype(jnp.float32) + b2, 0.0)
    ref_bf = (h.astype(jnp.bfloat16).astype(jnp.float32) @ w3p_bf.astype(jnp.float32)
              + b3p)[:, :OUT]
    assert jnp.allclose(out, ref_bf, atol=1e-2, rtol=1e-2)

    # Reference 2: original full-f32 PyTorch semantics (dropout = identity), loose
    # tolerance to account for bf16 weight compression.
    h32 = jnp.maximum(xf @ w1 + b1, 0.0)
    h32 = jnp.maximum(h32 @ w2 + b2, 0.0)
    ref_f32 = h32 @ w3 + b3
    assert jnp.allclose(out, ref_f32, atol=5e-2, rtol=5e-2)

    print("KERNEL_OK")
</pallas_src>

<mosaic_0001>
module attributes {stable_mosaic.version = 11 : i64} {
  func.func @_nn8_kernel(%arg0: memref<2x12288xf32, #tpu.memory_space<vmem>>, %arg1: memref<12288x256xbf16, #tpu.memory_space<vmem>>, %arg2: memref<1x256xf32, #tpu.memory_space<vmem>>, %arg3: memref<256x256xbf16, #tpu.memory_space<vmem>>, %arg4: memref<1x256xf32, #tpu.memory_space<vmem>>, %arg5: memref<256x128xbf16, #tpu.memory_space<vmem>>, %arg6: memref<1x128xf32, #tpu.memory_space<vmem>>, %arg7: memref<2x128xf32, #tpu.memory_space<vmem>>) attributes {dimension_semantics = [], scalar_prefetch = 0 : i64, scratch_operands = 0 : i64, tpu.core_type = #tpu.core_type<tc>} {
    %c0 = arith.constant 0 : index
    %c0_0 = arith.constant 0 : index
    %0 = vector.load %arg0[%c0, %c0_0] : memref<2x12288xf32, #tpu.memory_space<vmem>>, vector<2x12288xf32>
    %1 = arith.truncf %0 : vector<2x12288xf32> to vector<2x12288xbf16>
    %c0_1 = arith.constant 0 : index
    %c0_2 = arith.constant 0 : index
    %2 = vector.load %arg1[%c0_1, %c0_2] : memref<12288x256xbf16, #tpu.memory_space<vmem>>, vector<12288x256xbf16>
    %cst = arith.constant dense<0.000000e+00> : vector<2x256xf32>
    %3 = tpu.matmul %1, %2, %cst {dimension_numbers = #tpu.dot_dimension_numbers<[1], [0], [0], [1], [0, 0, 1, 1], [], []>} : vector<2x12288xbf16>, vector<12288x256xbf16>, vector<2x256xf32> -> vector<2x256xf32>
    %c0_3 = arith.constant 0 : index
    %c0_4 = arith.constant 0 : index
    %4 = vector.load %arg2[%c0_3, %c0_4] : memref<1x256xf32, #tpu.memory_space<vmem>>, vector<1x256xf32>
    %5 = vector.broadcast %4 : vector<1x256xf32> to vector<2x256xf32>
    %6 = arith.addf %3, %5 : vector<2x256xf32>
    %cst_5 = arith.constant 0.000000e+00 : f32
    %7 = vector.broadcast %cst_5 : f32 to vector<2x256xf32>
    %8 = arith.maximumf %6, %7 : vector<2x256xf32>
    %9 = arith.truncf %8 : vector<2x256xf32> to vector<2x256xbf16>
    %c0_6 = arith.constant 0 : index
    %c0_7 = arith.constant 0 : index
    %10 = vector.load %arg3[%c0_6, %c0_7] : memref<256x256xbf16, #tpu.memory_space<vmem>>, vector<256x256xbf16>
    %cst_8 = arith.constant dense<0.000000e+00> : vector<2x256xf32>
    %11 = tpu.matmul %9, %10, %cst_8 {dimension_numbers = #tpu.dot_dimension_numbers<[1], [0], [0], [1], [0, 0, 1, 1], [], []>} : vector<2x256xbf16>, vector<256x256xbf16>, vector<2x256xf32> -> vector<2x256xf32>
    %c0_9 = arith.constant 0 : index
    %c0_10 = arith.constant 0 : index
    %12 = vector.load %arg4[%c0_9, %c0_10] : memref<1x256xf32, #tpu.memory_space<vmem>>, vector<1x256xf32>
    %13 = vector.broadcast %12 : vector<1x256xf32> to vector<2x256xf32>
    %14 = arith.addf %11, %13 : vector<2x256xf32>
    %cst_11 = arith.constant 0.000000e+00 : f32
    %15 = vector.broadcast %cst_11 : f32 to vector<2x256xf32>
    %16 = arith.maximumf %14, %15 : vector<2x256xf32>
    %17 = arith.truncf %16 : vector<2x256xf32> to vector<2x256xbf16>
    %c0_12 = arith.constant 0 : index
    %c0_13 = arith.constant 0 : index
    %18 = vector.load %arg5[%c0_12, %c0_13] : memref<256x128xbf16, #tpu.memory_space<vmem>>, vector<256x128xbf16>
    %cst_14 = arith.constant dense<0.000000e+00> : vector<2x128xf32>
    %19 = tpu.matmul %17, %18, %cst_14 {dimension_numbers = #tpu.dot_dimension_numbers<[1], [0], [0], [1], [0, 0, 1, 1], [], []>} : vector<2x256xbf16>, vector<256x128xbf16>, vector<2x128xf32> -> vector<2x128xf32>
    %c0_15 = arith.constant 0 : index
    %c0_16 = arith.constant 0 : index
    %20 = vector.load %arg6[%c0_15, %c0_16] : memref<1x128xf32, #tpu.memory_space<vmem>>, vector<1x128xf32>
    %21 = vector.broadcast %20 : vector<1x128xf32> to vector<2x128xf32>
    %22 = arith.addf %19, %21 : vector<2x128xf32>
    %c0_17 = arith.constant 0 : index
    %c0_18 = arith.constant 0 : index
    %23 = vector.load %arg7[%c0_17, %c0_18] : memref<2x128xf32, #tpu.memory_space<vmem>>, vector<2x128xf32>
    tpu.vector_store %arg7[%c0_17, %c0_18], %22 {strides = array<i32>} : memref<2x128xf32, #tpu.memory_space<vmem>>, vector<2x128xf32>,
    return
  }
}

</mosaic_0001>

<bundles_post_ra>
// kernel: nn8_forward.1
= control target key start
LH: loop header
LB: loop body
LE: loop exit
PB: predicated region body
PF: predicated region fallthrough
CT: control target
= control target key end

     0   :  { %12 = vsyncpa [#allocation3], 0  ;;  %s21411_s0 = inlined_call_operand.vmem [shape: f32[2,12288], index: 0, kind: input, shape index: {}]   ;;  %s21412_s1 = inlined_call_operand.hbm [shape: bf16[12288,256], index: 1, kind: input, shape index: {}]   ;;  %s21413_s2 = inlined_call_operand.hbm [shape: f32[1,256], index: 2, kind: input, shape index: {}]   ;;  %s21414_s3 = inlined_call_operand.hbm [shape: bf16[256,256], index: 3, kind: input, shape index: {}]   ;;  %s21415_s4 = inlined_call_operand.hbm [shape: f32[1,256], index: 4, kind: input, shape index: {}]   ;;  %s21416_s5 = inlined_call_operand.hbm [shape: bf16[256,128], index: 5, kind: input, shape index: {}]   ;;  %s21417_s6 = inlined_call_operand.hbm [shape: f32[1,128], index: 6, kind: input, shape index: {}]   ;;  %s21418_s7 = inlined_call_operand.hbm [shape: f32[2,128], index: 7, kind: output, shape index: {}]  }
   0x1   :  { %13 = vsyncpa [#allocation6], 0 }
   0x2   :  { %14 = vsyncpa [#allocation9], 0 }
   0x3   :  { %15 = vsyncpa [#allocation12], 0  ;;  %s37_s26 = sshll.u32 %s21413_s2, 4  ;;  %s38_s26 = int_to_ptr.hbm [resolvable:$true] %s37_s26 }
   0x4   :  { %16 = vsyncpa [#allocation4], 0  ;;  %s20742_s27 = smov [#allocation5]   ;;  %s61_s8 = sshll.u32 %s21415_s4, 4  ;;  %s62_s8 = int_to_ptr.hbm [resolvable:$true] %s61_s8 }
   0x5   :  { %s39_s28 = sshll.u32 %s20742_s27, 4  ;;  %s20743_s9 = smov [#allocation8]   ;;  %s40_s28 = int_to_ptr.vmem [resolvable:$true] %s39_s28 }
   0x6   :  { %42 = dma.hbm_to_vmem [thread:$0]  %s38_s26, 32, %s40_s28, [#allocation6]  }
   0x7   :  { %s63_s10 = sshll.u32 %s20743_s9, 4  ;;  %s23_s13 = sshll.u32 %s21412_s1, 4  ;;  %s64_s10 = int_to_ptr.vmem [resolvable:$true] %s63_s10  ;;  %s24_s13 = int_to_ptr.hbm [resolvable:$true] %s23_s13 }
   0x8   :  { %66 = dma.hbm_to_vmem [thread:$0]  %s62_s8, 32, %s64_s10, [#allocation9]  }
   0x9   :  { %s20744_s2 = smov [#allocation2]   ;;  %s47_s17 = sshll.u32 %s21414_s3, 4  ;;  %s48_s17 = int_to_ptr.hbm [resolvable:$true] %s47_s17 }
   0xa   :  { %s25_s14 = sshll.u32 %s20744_s2, 4  ;;  %s20745_s18 = smov 128   ;;  %s26_s14 = int_to_ptr.vmem [resolvable:$true] %s25_s14 }
   0xb   :  { %s20746_s4 = smov 8   ;;  %s20747_s19 = smov [#allocation7]  }
   0xc   :  { %31 = dma.hbm_to_vmem [thread:$0]  %s24_s13, 196608, %s26_s14, [#allocation3], %s20745_s18, %s20745_s18, %s20746_s4  }
   0xd   :  { %s49_s20 = sshll.u32 %s20747_s19, 4  ;;  %s71_s1 = sshll.u32 %s21416_s5, 4  ;;  %s50_s20 = int_to_ptr.vmem [resolvable:$true] %s49_s20  ;;  %s72_s1 = int_to_ptr.hbm [resolvable:$true] %s71_s1 }
   0xe   :  { %55 = dma.hbm_to_vmem [thread:$0]  %s48_s17, 4096, %s50_s20, [#allocation6], %s20745_s18, %s20745_s18, %s20746_s4  }
   0xf   :  { %s20748_s23 = smov [#allocation10]   ;;  %s85_s3 = sshll.u32 %s21417_s6, 4  ;;  %s86_s3 = int_to_ptr.hbm [resolvable:$true] %s85_s3 }
  0x10   :  { %s73_s24 = sshll.u32 %s20748_s23, 4  ;;  %s20749_s27 = smov 64   ;;  %s74_s24 = int_to_ptr.vmem [resolvable:$true] %s73_s24 }
  0x11   :  { %s20750_s28 = smov 4   ;;  %s20751_s29 = smov [#allocation11]  }
  0x12   :  { %79 = dma.hbm_to_vmem [thread:$0]  %s72_s1, 2048, %s74_s24, [#allocation9], %s20749_s27, %s20749_s27, %s20750_s28  }
  0x13   :  { %s87_s30 = sshll.u32 %s20751_s29, 4  ;;  %s88_s30 = int_to_ptr.vmem [resolvable:$true] %s87_s30 }
  0x14   :  { %90 = dma.hbm_to_vmem [thread:$0]  %s86_s3, 16, %s88_s30, [#allocation12]  }
  0x15   :  { %20732 = dma.done.wait [#allocation3], 196608  }
  0x16   :  { %20733 = vsyncadd [#allocation3], 4294770688 }
  0x17   :  { %20734 = dma.done.wait [#allocation6], 4128  }
  0x18   :  { %20735 = vsyncadd [#allocation6], 4294963168 }
  0x19   :  { %20736 = dma.done.wait [#allocation9], 2080  }
  0x1a   :  { %20737 = vsyncadd [#allocation9], 4294965216 }
  0x1b   :  { %20738 = dma.done.wait [#allocation12], 16  }
  0x1c   :  { %20739 = vsyncadd [#allocation12], 4294967280  ;;  %v12689_v0 = vld [vmem:[#allocation2 + $0x70] sm:$0xf]  ;;  %v18982_v1 = vld [vmem:[#allocation2 + $0x74] sm:$0xf0] }
  0x1d   :  { %v12753_v2 = vld [vmem:[#allocation2 + $0xf0] sm:$0xf]  ;;  %v12690_v3 = vor.u32 %v18982_v1, %v12689_v0  ;;  %v18998_v4 = vld [vmem:[#allocation2 + $0xf4] sm:$0xf0]  ;;  %v12681_v11 = vld [vmem:[#allocation2 + $0x60] sm:$0xf] }
  0x1e   :  { %v12817_v5 = vld [vmem:[#allocation2 + $0x170] sm:$0xf]  ;;  %v19014_v6 = vld [vmem:[#allocation2 + $0x174] sm:$0xf0]  ;;  %v12754_v7 = vor.u32 %v18998_v4, %v12753_v2  ;;  %v18980_v13 = vld [vmem:[#allocation2 + $0x64] sm:$0xf0] }
  0x1f   :  { %v12818_v8 = vor.u32 %v19014_v6, %v12817_v5  ;;  %v12881_v9 = vld [vmem:[#allocation2 + $0x1f0] sm:$0xf]  ;;  %v19030_v10 = vld [vmem:[#allocation2 + $0x1f4] sm:$0xf0]  ;;  %9698 = vmatpush.bf16.msra.mxu0 %v12690_v3  ;;  %v12745_v14 = vld [vmem:[#allocation2 + $0xe0] sm:$0xf]  ;;  %v12682_v16 = vor.u32 %v18980_v13, %v12681_v11 }
  0x20   :  { %v12882_v12 = vor.u32 %v19030_v10, %v12881_v9  ;;  %v18996_v15 = vld [vmem:[#allocation2 + $0xe4] sm:$0xf0]  ;;  %9711 = vmatpush.bf16.msra.mxu1 %v12754_v7  ;;  %v12809_v18 = vld [vmem:[#allocation2 + $0x160] sm:$0xf]  ;;  %v12673_v23 = vld [vmem:[#allocation2 + $0x50] sm:$0xf] }
  0x21   :  { %9724 = vmatpush.bf16.msra.mxu2 %v12818_v8  ;;  %v12746_v17 = vor.u32 %v18996_v15, %v12745_v14  ;;  %v19012_v19 = vld [vmem:[#allocation2 + $0x164] sm:$0xf0]  ;;  %v12873_v20 = vld [vmem:[#allocation2 + $0x1e0] sm:$0xf]  ;;  %v18978_v24 = vld [vmem:[#allocation2 + $0x54] sm:$0xf0] }
  0x22   :  { %9737 = vmatpush.bf16.msra.mxu3 %v12882_v12  ;;  %v12810_v21 = vor.u32 %v19012_v19, %v12809_v18  ;;  %v19028_v22 = vld [vmem:[#allocation2 + $0x1e4] sm:$0xf0]  ;;  %v12737_v26 = vld [vmem:[#allocation2 + $0xd0] sm:$0xf]  ;;  %v18994_v27 = vld [vmem:[#allocation2 + $0xd4] sm:$0xf0]  ;;  %v12674_v29 = vor.u32 %v18978_v24, %v12673_v23 }
  0x23   :  { %v12874_v25 = vor.u32 %v19028_v22, %v12873_v20  ;;  %v12801_v28 = vld [vmem:[#allocation2 + $0x150] sm:$0xf]  ;;  %9699 = vmatpush.bf16.msra.mxu0 %v12682_v16  ;;  %v19010_v30 = vld [vmem:[#allocation2 + $0x154] sm:$0xf0]  ;;  %v12738_v33 = vor.u32 %v18994_v27, %v12737_v26  ;;  %v12665_v35 = vld [vmem:[#allocation2 + $0x40] sm:$0xf] }
  0x24   :  { %v12865_v31 = vld [vmem:[#allocation2 + $0x1d0] sm:$0xf]  ;;  %v19026_v32 = vld [vmem:[#allocation2 + $0x1d4] sm:$0xf0]  ;;  %9712 = vmatpush.bf16.msra.mxu1 %v12746_v17  ;;  %v12802_v34 = vor.u32 %v19010_v30, %v12801_v28  ;;  %v18976_v36 = vld [vmem:[#allocation2 + $0x44] sm:$0xf0] }
  0x25   :  { %9725 = vmatpush.bf16.msra.mxu2 %v12810_v21  ;;  %v12729_v37 = vld [vmem:[#allocation2 + $0xc0] sm:$0xf]  ;;  %v12866_v38 = vor.u32 %v19026_v32, %v12865_v31  ;;  %v18992_v39 = vld [vmem:[#allocation2 + $0xc4] sm:$0xf0]  ;;  %v12666_v44 = vor.u32 %v18976_v36, %v12665_v35  ;;  %v12657_v47 = vld [vmem:[#allocation2 + $0x30] sm:$0xf] }
  0x26   :  { %9738 = vmatpush.bf16.msra.mxu3 %v12874_v25  ;;  %v12793_v40 = vld [vmem:[#allocation2 + $0x140] sm:$0xf]  ;;  %v19008_v41 = vld [vmem:[#allocation2 + $0x144] sm:$0xf0]  ;;  %v12730_v45 = vor.u32 %v18992_v39, %v12729_v37  ;;  %v18974_v48 = vld [vmem:[#allocation2 + $0x34] sm:$0xf0] }
  0x27   :  { %v12857_v42 = vld [vmem:[#allocation2 + $0x1c0] sm:$0xf]  ;;  %v19024_v43 = vld [vmem:[#allocation2 + $0x1c4] sm:$0xf0]  ;;  %9700 = vmatpush.bf16.msra.mxu0 %v12674_v29  ;;  %v12794_v46 = vor.u32 %v19008_v41, %v12793_v40  ;;  %v12721_v49 = vld [vmem:[#allocation2 + $0xb0] sm:$0xf]  ;;  %v12658_v56 = vor.u32 %v18974_v48, %v12657_v47 }
  0x28   :  { %9713 = vmatpush.bf16.msra.mxu1 %v12738_v33  ;;  %v12858_v50 = vor.u32 %v19024_v43, %v12857_v42  ;;  %v18990_v51 = vld [vmem:[#allocation2 + $0xb4] sm:$0xf0]  ;;  %v12785_v52 = vld [vmem:[#allocation2 + $0x130] sm:$0xf]  ;;  %v12649_v59 = vld [vmem:[#allocation2 + $0x20] sm:$0xf] }
  0x29   :  { %9726 = vmatpush.bf16.msra.mxu2 %v12802_v34  ;;  %v19006_v53 = vld [vmem:[#allocation2 + $0x134] sm:$0xf0]  ;;  %v12849_v54 = vld [vmem:[#allocation2 + $0x1b0] sm:$0xf]  ;;  %v12722_v57 = vor.u32 %v18990_v51, %v12721_v49  ;;  %v18972_v60 = vld [vmem:[#allocation2 + $0x24] sm:$0xf0] }
  0x2a   :  { %9739 = vmatpush.bf16.msra.mxu3 %v12866_v38  ;;  %v19022_v55 = vld [vmem:[#allocation2 + $0x1b4] sm:$0xf0]  ;;  %v12786_v58 = vor.u32 %v19006_v53, %v12785_v52  ;;  %v12713_v61 = vld [vmem:[#allocation2 + $0xa0] sm:$0xf]  ;;  %v18988_v63 = vld [vmem:[#allocation2 + $0xa4] sm:$0xf0]  ;;  %v12650_v4 = vor.u32 %v18972_v60, %v12649_v59 }
  0x2b   :  { %9701 = vmatpush.bf16.msra.mxu0 %v12666_v44  ;;  %v12850_v62 = vor.u32 %v19022_v55, %v12849_v54  ;;  %v12777_v0 = vld [vmem:[#allocation2 + $0x120] sm:$0xf]  ;;  %v19004_v1 = vld [vmem:[#allocation2 + $0x124] sm:$0xf0]  ;;  %v12714_v5 = vor.u32 %v18988_v63, %v12713_v61  ;;  %v12641_v7 = vld [vmem:[#allocation2 + $0x10] sm:$0xf] }
  0x2c   :  { %9714 = vmatpush.bf16.msra.mxu1 %v12730_v45  ;;  %v12841_v2 = vld [vmem:[#allocation2 + $0x1a0] sm:$0xf]  ;;  %v19020_v3 = vld [vmem:[#allocation2 + $0x1a4] sm:$0xf0]  ;;  %v12778_v6 = vor.u32 %v19004_v1, %v12777_v0  ;;  %v18970_v8 = vld [vmem:[#allocation2 + $0x14] sm:$0xf0] }
  0x2d   :  { %9727 = vmatpush.bf16.msra.mxu2 %v12794_v46  ;;  %v12705_v9 = vld [vmem:[#allocation2 + $0x90] sm:$0xf]  ;;  %v12842_v10 = vor.u32 %v19020_v3, %v12841_v2  ;;  %v18986_v11 = vld [vmem:[#allocation2 + $0x94] sm:$0xf0]  ;;  %v12642_v16 = vor.u32 %v18970_v8, %v12641_v7  ;;  %v12633_v17 = vld [vmem:[#allocation2] sm:$0xf] }
  0x2e   :  { %9740 = vmatpush.bf16.msra.mxu3 %v12858_v50  ;;  %v12769_v12 = vld [vmem:[#allocation2 + $0x110] sm:$0xf]  ;;  %v19002_v13 = vld [vmem:[#allocation2 + $0x114] sm:$0xf0]  ;;  %v18968_v18 = vld [vmem:[#allocation2 + $0x4] sm:$0xf0]  ;;  %v12706_v19 = vor.u32 %v18986_v11, %v12705_v9 }
  0x2f   :  { %9702 = vmatpush.bf16.msra.mxu0 %v12658_v56  ;;  %v12833_v14 = vld [vmem:[#allocation2 + $0x190] sm:$0xf]  ;;  %v19018_v15 = vld [vmem:[#allocation2 + $0x194] sm:$0xf0]  ;;  %v12770_v20 = vor.u32 %v19002_v13, %v12769_v12  ;;  %v12697_v21 = vld [vmem:[#allocation2 + $0x80] sm:$0xf]  ;;  %v12634_v31 = vor.u32 %v18968_v18, %v12633_v17 }
  0x30   :  { %9715 = vmatpush.bf16.msra.mxu1 %v12722_v57  ;;  %v18984_v22 = vld [vmem:[#allocation2 + $0x84] sm:$0xf0]  ;;  %v12761_v23 = vld [vmem:[#allocation2 + $0x100] sm:$0xf]  ;;  %v12834_v24 = vor.u32 %v19018_v15, %v12833_v14  ;;  %v12945_v28 = vld [vmem:[#allocation2 + $0x270] sm:$0xf] }
  0x31   :  { %9728 = vmatpush.bf16.msra.mxu2 %v12786_v58  ;;  %v19000_v25 = vld [vmem:[#allocation2 + $0x104] sm:$0xf0]  ;;  %v12825_v26 = vld [vmem:[#allocation2 + $0x180] sm:$0xf]  ;;  %v19046_v29 = vld [vmem:[#allocation2 + $0x274] sm:$0xf0]  ;;  %v12698_v35 = vor.u32 %v18984_v22, %v12697_v21 }
  0x32   :  { %9741 = vmatpush.bf16.msra.mxu3 %v12850_v62  ;;  %v19016_v27 = vld [vmem:[#allocation2 + $0x184] sm:$0xf0]  ;;  %v13009_v30 = vld [vmem:[#allocation2 + $0x2f0] sm:$0xf]  ;;  %v19062_v32 = vld [vmem:[#allocation2 + $0x2f4] sm:$0xf0]  ;;  %v12762_v36 = vor.u32 %v19000_v25, %v12761_v23  ;;  %v12946_v40 = vor.u32 %v19046_v29, %v12945_v28 }
  0x33   :  { %9703 = vmatpush.bf16.msra.mxu0 %v12650_v4  ;;  %v13073_v33 = vld [vmem:[#allocation2 + $0x370] sm:$0xf]  ;;  %v19078_v34 = vld [vmem:[#allocation2 + $0x374] sm:$0xf0]  ;;  %v12826_v39 = vor.u32 %v19016_v27, %v12825_v26  ;;  %v13010_v41 = vor.u32 %v19062_v32, %v13009_v30  ;;  %v12937_v43 = vld [vmem:[#allocation2 + $0x260] sm:$0xf] }
  0x34   :  { %9716 = vmatpush.bf16.msra.mxu1 %v12714_v5  ;;  %v13137_v37 = vld [vmem:[#allocation2 + $0x3f0] sm:$0xf]  ;;  %v19094_v38 = vld [vmem:[#allocation2 + $0x3f4] sm:$0xf0]  ;;  %v13074_v42 = vor.u32 %v19078_v34, %v13073_v33  ;;  %v19044_v44 = vld [vmem:[#allocation2 + $0x264] sm:$0xf0] }
  0x35   :  { %9729 = vmatpush.bf16.msra.mxu2 %v12778_v6  ;;  %v13001_v45 = vld [vmem:[#allocation2 + $0x2e0] sm:$0xf]  ;;  %v13138_v46 = vor.u32 %v19094_v38, %v13137_v37  ;;  %v19060_v47 = vld [vmem:[#allocation2 + $0x2e4] sm:$0xf0]  ;;  %v12938_v52 = vor.u32 %v19044_v44, %v12937_v43  ;;  %v12929_v55 = vld [vmem:[#allocation2 + $0x250] sm:$0xf] }
  0x36   :  { %9742 = vmatpush.bf16.msra.mxu3 %v12842_v10  ;;  %v13065_v48 = vld [vmem:[#allocation2 + $0x360] sm:$0xf]  ;;  %v19076_v49 = vld [vmem:[#allocation2 + $0x364] sm:$0xf0]  ;;  %v13002_v53 = vor.u32 %v19060_v47, %v13001_v45  ;;  %v19042_v56 = vld [vmem:[#allocation2 + $0x254] sm:$0xf0] }
  0x37   :  { %9704 = vmatpush.bf16.msra.mxu0 %v12642_v16  ;;  %v13129_v50 = vld [vmem:[#allocation2 + $0x3e0] sm:$0xf]  ;;  %v19092_v51 = vld [vmem:[#allocation2 + $0x3e4] sm:$0xf0]  ;;  %v13066_v54 = vor.u32 %v19076_v49, %v13065_v48  ;;  %v12993_v57 = vld [vmem:[#allocation2 + $0x2d0] sm:$0xf]  ;;  %v12930_v0 = vor.u32 %v19042_v56, %v12929_v55 }
  0x38   :  { %9717 = vmatpush.bf16.msra.mxu1 %v12706_v19  ;;  %v13130_v58 = vor.u32 %v19092_v51, %v13129_v50  ;;  %v19058_v59 = vld [vmem:[#allocation2 + $0x2d4] sm:$0xf0]  ;;  %v13057_v60 = vld [vmem:[#allocation2 + $0x350] sm:$0xf]  ;;  %v12921_v1 = vld [vmem:[#allocation2 + $0x240] sm:$0xf] }
  0x39   :  { %9730 = vmatpush.bf16.msra.mxu2 %v12770_v20  ;;  %v19074_v61 = vld [vmem:[#allocation2 + $0x354] sm:$0xf0]  ;;  %v13121_v62 = vld [vmem:[#allocation2 + $0x3d0] sm:$0xf]  ;;  %v12994_v3 = vor.u32 %v19058_v59, %v12993_v57  ;;  %v19040_v5 = vld [vmem:[#allocation2 + $0x244] sm:$0xf0] }
  0x3a   :  { %9743 = vmatpush.bf16.msra.mxu3 %v12834_v24  ;;  %v19090_v63 = vld [vmem:[#allocation2 + $0x3d4] sm:$0xf0]  ;;  %v13058_v4 = vor.u32 %v19074_v61, %v13057_v60  ;;  %v12985_v6 = vld [vmem:[#allocation2 + $0x2c0] sm:$0xf]  ;;  %v19056_v8 = vld [vmem:[#allocation2 + $0x2c4] sm:$0xf0]  ;;  %v12922_v13 = vor.u32 %v19040_v5, %v12921_v1 }
  0x3b   :  { %9705 = vmatpush.bf16.msra.mxu0 %v12634_v31  ;;  %v115_v2 = vld [vmem:[%s21411_s0] sm:$0xff]  ;;  %v13122_v7 = vor.u32 %v19090_v63, %v13121_v62  ;;  %v13049_v9 = vld [vmem:[#allocation2 + $0x340] sm:$0xf]  ;;  %v19072_v10 = vld [vmem:[#allocation2 + $0x344] sm:$0xf0]  ;;  %v12986_v15 = vor.u32 %v19056_v8, %v12985_v6  ;;  %s12618_s25 = sshll.u32 %s21418_s7, 4  ;;  %s12619_s25 = int_to_ptr.hbm [resolvable:$true] %s12618_s25 }
  0x3c   :  { %9718 = vmatpush.bf16.msra.mxu1 %v12698_v35  ;;  %163 = vst [vmem:[#allocation1] ss:$4 sm:$0xff] %v115_v2  ;;  %v13113_v11 = vld [vmem:[#allocation2 + $0x3c0] sm:$0xf]  ;;  %v19088_v12 = vld [vmem:[#allocation2 + $0x3c4] sm:$0xf0]  ;;  %v13050_v16 = vor.u32 %v19072_v10, %v13049_v9 }
  0x3d   :  { %9731 = vmatpush.bf16.msra.mxu2 %v12762_v36  ;;  %v12913_v14 = vld [vmem:[#allocation2 + $0x230] sm:$0xf]  ;;  %v19038_v17 = vld [vmem:[#allocation2 + $0x234] sm:$0xf0]  ;;  %v13114_v20 = vor.u32 %v19088_v12, %v13113_v11  ;;  %v12905_v25 = vld [vmem:[#allocation2 + $0x220] sm:$0xf] }
  0x3e   :  { %9744 = vmatpush.bf16.msra.mxu3 %v12826_v39  ;;  %v12977_v18 = vld [vmem:[#allocation2 + $0x2b0] sm:$0xf]  ;;  %v19054_v19 = vld [vmem:[#allocation2 + $0x2b4] sm:$0xf0]  ;;  %v19036_v26 = vld [vmem:[#allocation2 + $0x224] sm:$0xf0]  ;;  %v12914_v27 = vor.u32 %v19038_v17, %v12913_v14 }
  0x3f   :  { %9750 = vmatpush.bf16.msrb.mxu0 %v12946_v40  ;;  %v13041_v21 = vld [vmem:[#allocation2 + $0x330] sm:$0xf]  ;;  %v19070_v22 = vld [vmem:[#allocation2 + $0x334] sm:$0xf0]  ;;  %v12978_v28 = vor.u32 %v19054_v19, %v12977_v18  ;;  %v12969_v29 = vld [vmem:[#allocation2 + $0x2a0] sm:$0xf]  ;;  %v12906_v45 = vor.u32 %v19036_v26, %v12905_v25 }
  0x40   :  { %9763 = vmatpush.bf16.msrb.mxu1 %v13010_v41  ;;  %v13105_v23 = vld [vmem:[#allocation2 + $0x3b0] sm:$0xf]  ;;  %v19086_v24 = vld [vmem:[#allocation2 + $0x3b4] sm:$0xf0]  ;;  %v13042_v32 = vor.u32 %v19070_v22, %v13041_v21  ;;  %v19052_v38 = vld [vmem:[#allocation2 + $0x2a4] sm:$0xf0] }
  0x41   :  { %9776 = vmatpush.bf16.msrb.mxu2 %v13074_v42  ;;  %v13106_v37 = vor.u32 %v19086_v24, %v13105_v23  ;;  %v13033_v39 = vld [vmem:[#allocation2 + $0x320] sm:$0xf]  ;;  %v19068_v40 = vld [vmem:[#allocation2 + $0x324] sm:$0xf0]  ;;  %v19034_v47 = vld [vmem:[#allocation2 + $0x214] sm:$0xf0]  ;;  %v12970_v48 = vor.u32 %v19052_v38, %v12969_v29 }
  0x42   :  { %9789 = vmatpush.bf16.msrb.mxu3 %v13138_v46  ;;  %v13097_v43 = vld [vmem:[#allocation2 + $0x3a0] sm:$0xf]  ;;  %v19084_v44 = vld [vmem:[#allocation2 + $0x3a4] sm:$0xf0]  ;;  %v12897_v46 = vld [vmem:[#allocation2 + $0x210] sm:$0xf]  ;;  %v13034_v49 = vor.u32 %v19068_v40, %v13033_v39 }
  0x43   :  { %9751 = vmatpush.bf16.msrb.mxu0 %v12938_v52  ;;  %v168_v30 = vld.sshfl [vmem:[#allocation1 + $0x10] sm:$0xff pattern:$0x73625140]  ;;  %v166_v31 = vld.sshfl [vmem:[#allocation1] sm:$0xff pattern:$0x73625140]  ;;  %v12898_v59 = vor.u32 %v19034_v47, %v12897_v46 }
  0x44   :  { %9764 = vmatpush.bf16.msrb.mxu1 %v13002_v53  ;;  %v20814_v33 = vpack.c.bf16 %v168_v30, %v168_v30  ;;  %v20816_v34 = vpack.c.bf16 %v166_v31, %v166_v31  ;;  %v169_v35 = vld.sshfl [vmem:[#allocation1 + $0x18] sm:$0xff pattern:$0x73625140]  ;;  %v167_v36 = vld.sshfl [vmem:[#allocation1 + $0x8] sm:$0xff pattern:$0x73625140]  ;;  %v13098_v53 = vor.u32 %v19084_v44, %v13097_v43 }
  0x45   :  { %9777 = vmatpush.bf16.msrb.mxu2 %v13066_v54  ;;  %v20818_v41 = vpack.c.bf16 %v169_v35, %v169_v35  ;;  %v20820_v42 = vpack.c.bf16 %v167_v36, %v167_v36  ;;  %v12961_v50 = vld [vmem:[#allocation2 + $0x290] sm:$0xf]  ;;  %v19050_v51 = vld [vmem:[#allocation2 + $0x294] sm:$0xf0]  ;;  %v116_v52 = vld [vmem:[%s21411_s0 + $0x8] sm:$0xff] }
  0x46   :  { %9790 = vmatpush.bf16.msrb.mxu3 %v13130_v58  ;;  %9732 = vmatmul.bf16.vlgmr.msra.gmra.mxu2 %v20814_v33  ;;  %v13025_v54 = vld [vmem:[#allocation2 + $0x310] sm:$0xf]  ;;  %v19066_v55 = vld [vmem:[#allocation2 + $0x314] sm:$0xf0]  ;;  %165 = vst [vmem:[#allocation1 + $0x20] ss:$4 sm:$0xff] %v116_v52  ;;  %v12962_v63 = vor.u32 %v19050_v51, %v12961_v50 }
  0x47   :  { %9752 = vmatpush.bf16.msrb.mxu0 %v12930_v0  ;;  %9745 = vmatmul.bf16.vlgmr.msra.gmra.mxu3 %v20818_v41  ;;  %v13089_v56 = vld [vmem:[#allocation2 + $0x390] sm:$0xf]  ;;  %v19082_v57 = vld [vmem:[#allocation2 + $0x394] sm:$0xf0]  ;;  %v12889_v58 = vld [vmem:[#allocation2 + $0x200] sm:$0xf]  ;;  %v13026_v0 = vor.u32 %v19066_v55, %v13025_v54 }
  0x48   :  { %9765 = vmatpush.bf16.msrb.mxu1 %v12994_v3  ;;  %9706 = vmatmul.bf16.vlgmr.msra.gmra.mxu0 %v20816_v34  ;;  %v19032_v60 = vld [vmem:[#allocation2 + $0x204] sm:$0xf0]  ;;  %v12953_v61 = vld [vmem:[#allocation2 + $0x280] sm:$0xf]  ;;  %v13201_v6 = vld [vmem:[#allocation2 + $0x470] sm:$0xf] }
  0x49   :  { %9778 = vmatpush.bf16.msrb.mxu2 %v13058_v4  ;;  %9719 = vmatmul.bf16.vlgmr.msra.gmra.mxu1 %v20820_v42  ;;  %v19048_v62 = vld [vmem:[#allocation2 + $0x284] sm:$0xf0]  ;;  %v13017_v1 = vld [vmem:[#allocation2 + $0x300] sm:$0xf]  ;;  %v13090_v4 = vor.u32 %v19082_v57, %v13089_v56  ;;  %v13265_v8 = vld [vmem:[#allocation2 + $0x4f0] sm:$0xf]  ;;  %v12890_v11 = vor.u32 %v19032_v60, %v12889_v58 }
  0x4a   :  { %9791 = vmatpush.bf16.msrb.mxu3 %v13122_v7  ;;  %v19064_v2 = vld [vmem:[#allocation2 + $0x304] sm:$0xf0]  ;;  %v13081_v3 = vld [vmem:[#allocation2 + $0x380] sm:$0xf]  ;;  %v19110_v7 = vld [vmem:[#allocation2 + $0x474] sm:$0xf0] }
  0x4b   :  { %9753 = vmatpush.bf16.msrb.mxu0 %v12922_v13  ;;  %v19080_v5 = vld [vmem:[#allocation2 + $0x384] sm:$0xf0]  ;;  %v19126_v9 = vld [vmem:[#allocation2 + $0x4f4] sm:$0xf0]  ;;  %v13329_v10 = vld [vmem:[#allocation2 + $0x570] sm:$0xf]  ;;  %v13202_v21 = vor.u32 %v19110_v7, %v13201_v6 }
  0x4c   :  { %9766 = vmatpush.bf16.msrb.mxu1 %v12986_v15  ;;  %v19142_v12 = vld [vmem:[#allocation2 + $0x574] sm:$0xf0]  ;;  %v13393_v13 = vld [vmem:[#allocation2 + $0x5f0] sm:$0xf]  ;;  %v12954_v15 = vor.u32 %v19048_v62, %v12953_v61  ;;  %v13193_v17 = vld [vmem:[#allocation2 + $0x460] sm:$0xf]  ;;  %v13266_v24 = vor.u32 %v19126_v9, %v13265_v8 }
  0x4d   :  { %9779 = vmatpush.bf16.msrb.mxu2 %v13050_v16  ;;  %v19158_v14 = vld [vmem:[#allocation2 + $0x5f4] sm:$0xf0]  ;;  %v13018_v16 = vor.u32 %v19064_v2, %v13017_v1  ;;  %v19108_v18 = vld [vmem:[#allocation2 + $0x464] sm:$0xf0]  ;;  %v13330_v25 = vor.u32 %v19142_v12, %v13329_v10  ;;  %v13257_v26 = vld [vmem:[#allocation2 + $0x4e0] sm:$0xf] }
  0x4e   :  { %9792 = vmatpush.bf16.msrb.mxu3 %v13114_v20  ;;  %v172_v19 = vld.sshfl [vmem:[#allocation1 + $0x30] sm:$0xff pattern:$0x73625140]  ;;  %v13082_v20 = vor.u32 %v19080_v5, %v13081_v3  ;;  %v170_v22 = vld.sshfl [vmem:[#allocation1 + $0x20] sm:$0xff pattern:$0x73625140]  ;;  %v13194_v39 = vor.u32 %v19108_v18, %v13193_v17 }
  0x4f   :  { %9754 = vmatpush.bf16.msrb.mxu0 %v12914_v27  ;;  %v173_v23 = vld.sshfl [vmem:[#allocation1 + $0x38] sm:$0xff pattern:$0x73625140]  ;;  %v171_v27 = vld.sshfl [vmem:[#allocation1 + $0x28] sm:$0xff pattern:$0x73625140] }
  0x50   :  { %9767 = vmatpush.bf16.msrb.mxu1 %v12978_v28  ;;  %v13394_v28 = vor.u32 %v19158_v14, %v13393_v13  ;;  %v19124_v29 = vld [vmem:[#allocation2 + $0x4e4] sm:$0xf0]  ;;  %v13321_v30 = vld [vmem:[#allocation2 + $0x560] sm:$0xf]  ;;  %v20833_v38 = vpack.c.bf16 %v173_v23, %v173_v23  ;;  %v20835_v40 = vpack.c.bf16 %v171_v27, %v171_v27  ;;  %v19106_v46 = vld [vmem:[#allocation2 + $0x454] sm:$0xf0] }
  0x51   :  { %9780 = vmatpush.bf16.msrb.mxu2 %v13042_v32  ;;  %v19140_v31 = vld [vmem:[#allocation2 + $0x564] sm:$0xf0]  ;;  %v20829_v32 = vpack.c.bf16 %v172_v19, %v172_v19  ;;  %v13385_v35 = vld [vmem:[#allocation2 + $0x5e0] sm:$0xf]  ;;  %v13258_v43 = vor.u32 %v19124_v29, %v13257_v26  ;;  %v13249_v47 = vld [vmem:[#allocation2 + $0x4d0] sm:$0xf] }
  0x52   :  { %9793 = vmatpush.bf16.msrb.mxu3 %v13106_v37  ;;  %v19156_v36 = vld [vmem:[#allocation2 + $0x5e4] sm:$0xf0]  ;;  %v20831_v37 = vpack.c.bf16 %v170_v22, %v170_v22  ;;  %v13322_v44 = vor.u32 %v19140_v31, %v13321_v30  ;;  %v13313_v50 = vld [vmem:[#allocation2 + $0x550] sm:$0xf]  ;;  %v19138_v51 = vld [vmem:[#allocation2 + $0x554] sm:$0xf0] }
  0x53   :  { %9755 = vmatpush.bf16.msrb.mxu0 %v12906_v45  ;;  %v13185_v45 = vld [vmem:[#allocation2 + $0x450] sm:$0xf]  ;;  %v13314_v56 = vor.u32 %v19138_v51, %v13313_v50  ;;  %v13177_v57 = vld [vmem:[#allocation2 + $0x440] sm:$0xf]  ;;  %v19104_v58 = vld [vmem:[#allocation2 + $0x444] sm:$0xf0] }
  0x54   :  { %9768 = vmatpush.bf16.msrb.mxu1 %v12970_v48  ;;  %v13386_v48 = vor.u32 %v19156_v36, %v13385_v35  ;;  %v13377_v52 = vld [vmem:[#allocation2 + $0x5d0] sm:$0xf]  ;;  %v13186_v54 = vor.u32 %v19106_v46, %v13185_v45  ;;  %v19120_v61 = vld [vmem:[#allocation2 + $0x4c4] sm:$0xf0]  ;;  %v13305_v62 = vld [vmem:[#allocation2 + $0x540] sm:$0xf]  ;;  %v13178_v2 = vor.u32 %v19104_v58, %v13177_v57 }
  0x55   :  { %9781 = vmatpush.bf16.msrb.mxu2 %v13034_v49  ;;  %v19122_v49 = vld [vmem:[#allocation2 + $0x4d4] sm:$0xf0]  ;;  %v19152_v1 = vld [vmem:[#allocation2 + $0x5c4] sm:$0xf0]  ;;  %v13169_v3 = vld [vmem:[#allocation2 + $0x430] sm:$0xf] }
  0x56   :  { %9794 = vmatpush.bf16.msrb.mxu3 %v13098_v53  ;;  %v19154_v53 = vld [vmem:[#allocation2 + $0x5d4] sm:$0xf0]  ;;  %v13250_v55 = vor.u32 %v19122_v49, %v13249_v47  ;;  %v13233_v7 = vld [vmem:[#allocation2 + $0x4b0] sm:$0xf]  ;;  %v117_v9 = vld [vmem:[%s21411_s0 + $0x10] sm:$0xff] }
  0x57   :  { %9756 = vmatpush.bf16.msrb.mxu0 %v12898_v59  ;;  %v13241_v59 = vld [vmem:[#allocation2 + $0x4c0] sm:$0xf]  ;;  %v13378_v60 = vor.u32 %v19154_v53, %v13377_v52  ;;  %v19118_v8 = vld [vmem:[#allocation2 + $0x4b4] sm:$0xf0]  ;;  %174 = vst [vmem:[#allocation1] ss:$4 sm:$0xff] %v117_v9 }
  0x58   :  { %9769 = vmatpush.bf16.msrb.mxu1 %v12962_v63  ;;  %v19136_v63 = vld [vmem:[#allocation2 + $0x544] sm:$0xf0]  ;;  %v13242_v5 = vor.u32 %v19120_v61, %v13241_v59  ;;  %v19134_v12 = vld [vmem:[#allocation2 + $0x534] sm:$0xf0]  ;;  %v13361_v13 = vld [vmem:[#allocation2 + $0x5b0] sm:$0xf] }
  0x59   :  { %9782 = vmatpush.bf16.msrb.mxu2 %v13026_v0  ;;  %v13369_v0 = vld [vmem:[#allocation2 + $0x5c0] sm:$0xf]  ;;  %v13306_v6 = vor.u32 %v19136_v63, %v13305_v62  ;;  %v19150_v14 = vld [vmem:[#allocation2 + $0x5b4] sm:$0xf0]  ;;  %v19100_v19 = vld [vmem:[#allocation2 + $0x424] sm:$0xf0] }
  0x5a   :  { %9795 = vmatpush.bf16.msrb.mxu3 %v13090_v4  ;;  %v19102_v4 = vld [vmem:[#allocation2 + $0x434] sm:$0xf0]  ;;  %v13370_v10 = vor.u32 %v19152_v1, %v13369_v0  ;;  %v13161_v18 = vld [vmem:[#allocation2 + $0x420] sm:$0xf]  ;;  %v19116_v22 = vld [vmem:[#allocation2 + $0x4a4] sm:$0xf0] }
  0x5b   :  { %9757 = vmatpush.bf16.msrb.mxu0 %v12890_v11  ;;  %v13297_v11 = vld [vmem:[#allocation2 + $0x530] sm:$0xf]  ;;  %v13289_v23 = vld [vmem:[#allocation2 + $0x520] sm:$0xf]  ;;  %v19148_v26 = vld [vmem:[#allocation2 + $0x5a4] sm:$0xf0]  ;;  %v13162_v27 = vor.u32 %v19100_v19, %v13161_v18 }
  0x5c   :  { %9770 = vmatpush.bf16.msrb.mxu1 %v12954_v15  ;;  %v13170_v15 = vor.u32 %v19102_v4, %v13169_v3  ;;  %v13298_v17 = vor.u32 %v19134_v12, %v13297_v11  ;;  %v13153_v30 = vld [vmem:[#allocation2 + $0x410] sm:$0xf]  ;;  %v19098_v31 = vld [vmem:[#allocation2 + $0x414] sm:$0xf0]  ;;  %v13145_v47 = vld [vmem:[#allocation2 + $0x400] sm:$0xf] }
  0x5d   :  { %9783 = vmatpush.bf16.msrb.mxu2 %v13018_v16  ;;  %v13234_v16 = vor.u32 %v19118_v8, %v13233_v7  ;;  %v13217_v35 = vld [vmem:[#allocation2 + $0x490] sm:$0xf]  ;;  %v19146_v46 = vld [vmem:[#allocation2 + $0x594] sm:$0xf0]  ;;  %v19096_v49 = vld [vmem:[#allocation2 + $0x404] sm:$0xf0] }
  0x5e   :  { %9796 = vmatpush.bf16.msrb.mxu3 %v13082_v20  ;;  %9758 = vmatmul.bf16.vlgmr.msrb.gmra.mxu0 %v20831_v37  ;;  %v13225_v20 = vld [vmem:[#allocation2 + $0x4a0] sm:$0xf]  ;;  %v13345_v45 = vld [vmem:[#allocation2 + $0x590] sm:$0xf]  ;;  %v19112_v51 = vld [vmem:[#allocation2 + $0x484] sm:$0xf0]  ;;  %v13146_v0 = vor.u32 %v19096_v49, %v13145_v47 }
  0x5f   :  { %9802 = vmatpush.bf16.msra.mxu0 %v13202_v21  ;;  %9771 = vmatmul.bf16.vlgmr.msrb.gmra.mxu1 %v20835_v40  ;;  %v13362_v21 = vor.u32 %v19150_v14, %v13361_v13  ;;  %v13209_v50 = vld [vmem:[#allocation2 + $0x480] sm:$0xf]  ;;  %v13346_v57 = vor.u32 %v19146_v46, %v13345_v45  ;;  %v19144_v58 = vld [vmem:[#allocation2 + $0x584] sm:$0xf0]  ;;  %v13457_v59 = vld [vmem:[#allocation2 + $0x670] sm:$0xf] }
  0x60   :  { %9815 = vmatpush.bf16.msra.mxu1 %v13266_v24  ;;  %9784 = vmatmul.bf16.vlgmr.msrb.gmra.mxu2 %v20829_v32  ;;  %v19132_v24 = vld [vmem:[#allocation2 + $0x524] sm:$0xf0]  ;;  %v13521_v61 = vld [vmem:[#allocation2 + $0x6f0] sm:$0xf]  ;;  %v19190_v62 = vld [vmem:[#allocation2 + $0x6f4] sm:$0xf0]  ;;  %v13210_v4 = vor.u32 %v19112_v51, %v13209_v50 }
  0x61   :  { %9828 = vmatpush.bf16.msra.mxu2 %v13330_v25  ;;  %9797 = vmatmul.bf16.vlgmr.msrb.gmra.mxu3 %v20833_v38  ;;  %v13353_v25 = vld [vmem:[#allocation2 + $0x5a0] sm:$0xf]  ;;  %v13290_v29 = vor.u32 %v19132_v24, %v13289_v23  ;;  %v13585_v63 = vld [vmem:[#allocation2 + $0x770] sm:$0xf]  ;;  %v19206_v1 = vld [vmem:[#allocation2 + $0x774] sm:$0xf0]  ;;  %v13522_v13 = vor.u32 %v19190_v62, %v13521_v61 }
  0x62   :  { %9841 = vmatpush.bf16.msra.mxu3 %v13394_v28  ;;  %v13226_v28 = vor.u32 %v19116_v22, %v13225_v20  ;;  %v13354_v36 = vor.u32 %v19148_v26, %v13353_v25  ;;  %v19222_v3 = vld [vmem:[#allocation2 + $0x7f4] sm:$0xf0]  ;;  %v13449_v7 = vld [vmem:[#allocation2 + $0x660] sm:$0xf]  ;;  %v19172_v8 = vld [vmem:[#allocation2 + $0x664] sm:$0xf0]  ;;  %v13586_v14 = vor.u32 %v19206_v1, %v13585_v63 }
  0x63   :  { %9803 = vmatpush.bf16.msra.mxu0 %v13194_v39  ;;  %v19114_v39 = vld [vmem:[#allocation2 + $0x494] sm:$0xf0]  ;;  %v178_v11 = vld.sshfl [vmem:[#allocation1 + $0x10] sm:$0xff pattern:$0x73625140]  ;;  %v118_v47 = vld [vmem:[%s21411_s0 + $0x18] sm:$0xff] }
  0x64   :  { %9816 = vmatpush.bf16.msra.mxu1 %v13258_v43  ;;  %v13281_v43 = vld [vmem:[#allocation2 + $0x510] sm:$0xf]  ;;  %v13218_v52 = vor.u32 %v19114_v39, %v13217_v35  ;;  %v177_v12 = vld.sshfl [vmem:[#allocation1 + $0x8] sm:$0xff pattern:$0x73625140]  ;;  %v20846_v22 = vpack.c.bf16 %v178_v11, %v178_v11 }
  0x65   :  { %9829 = vmatpush.bf16.msra.mxu2 %v13322_v44  ;;  %v19130_v44 = vld [vmem:[#allocation2 + $0x514] sm:$0xf0]  ;;  %v19188_v19 = vld [vmem:[#allocation2 + $0x6e4] sm:$0xf0]  ;;  %v13577_v20 = vld [vmem:[#allocation2 + $0x760] sm:$0xf]  ;;  %v20848_v23 = vpack.c.bf16 %v177_v12, %v177_v12 }
  0x66   :  { %9842 = vmatpush.bf16.msra.mxu3 %v13386_v48  ;;  %v13154_v48 = vor.u32 %v19098_v31, %v13153_v30  ;;  %v13282_v53 = vor.u32 %v19130_v44, %v13281_v43  ;;  %v13641_v24 = vld [vmem:[#allocation2 + $0x7e0] sm:$0xf]  ;;  %v19220_v25 = vld [vmem:[#allocation2 + $0x7e4] sm:$0xf0]  ;;  %v13441_v30 = vld [vmem:[#allocation2 + $0x650] sm:$0xf] }
  0x67   :  { %9804 = vmatpush.bf16.msra.mxu0 %v13186_v54  ;;  %v13273_v54 = vld [vmem:[#allocation2 + $0x500] sm:$0xf]  ;;  %v19170_v31 = vld [vmem:[#allocation2 + $0x654] sm:$0xf0]  ;;  %v13505_v35 = vld [vmem:[#allocation2 + $0x6d0] sm:$0xf] }
  0x68   :  { %9817 = vmatpush.bf16.msra.mxu1 %v13250_v55  ;;  %v19128_v55 = vld [vmem:[#allocation2 + $0x504] sm:$0xf0]  ;;  %v19186_v39 = vld [vmem:[#allocation2 + $0x6d4] sm:$0xf0]  ;;  %v13569_v43 = vld [vmem:[#allocation2 + $0x750] sm:$0xf] }
  0x69   :  { %9830 = vmatpush.bf16.msra.mxu2 %v13314_v56  ;;  %v13337_v56 = vld [vmem:[#allocation2 + $0x580] sm:$0xf]  ;;  %v19202_v44 = vld [vmem:[#allocation2 + $0x754] sm:$0xf0]  ;;  %v13633_v45 = vld [vmem:[#allocation2 + $0x7d0] sm:$0xf]  ;;  %v13506_v49 = vor.u32 %v19186_v39, %v13505_v35 }
  0x6a   :  { %9843 = vmatpush.bf16.msra.mxu3 %v13378_v60  ;;  %v19174_v60 = vld [vmem:[#allocation2 + $0x674] sm:$0xf0]  ;;  %v13338_v9 = vor.u32 %v19144_v58, %v13337_v56  ;;  %175 = vst [vmem:[#allocation1 + $0x20] ss:$4 sm:$0xff] %v118_v47  ;;  %v13570_v50 = vor.u32 %v19202_v44, %v13569_v43  ;;  %v13433_v51 = vld [vmem:[#allocation2 + $0x640] sm:$0xf] }
  0x6b   :  { %9805 = vmatpush.bf16.msra.mxu0 %v13178_v2  ;;  %v13649_v2 = vld [vmem:[#allocation2 + $0x7f0] sm:$0xf]  ;;  %v19218_v46 = vld [vmem:[#allocation2 + $0x7d4] sm:$0xf0]  ;;  %v13561_v56 = vld [vmem:[#allocation2 + $0x740] sm:$0xf] }
  0x6c   :  { %9818 = vmatpush.bf16.msra.mxu1 %v13242_v5  ;;  %v13274_v5 = vor.u32 %v19128_v55, %v13273_v54  ;;  %v13634_v54 = vor.u32 %v19218_v46, %v13633_v45  ;;  %v19184_v55 = vld [vmem:[#allocation2 + $0x6c4] sm:$0xf0]  ;;  %v13625_v58 = vld [vmem:[#allocation2 + $0x7c0] sm:$0xf]  ;;  %v13425_v63 = vld [vmem:[#allocation2 + $0x630] sm:$0xf] }
  0x6d   :  { %9831 = vmatpush.bf16.msra.mxu2 %v13306_v6  ;;  %v176_v6 = vld.sshfl [vmem:[#allocation1] sm:$0xff pattern:$0x73625140]  ;;  %v13489_v1 = vld [vmem:[#allocation2 + $0x6b0] sm:$0xf] }
  0x6e   :  { %9844 = vmatpush.bf16.msra.mxu3 %v13370_v10  ;;  %v13458_v10 = vor.u32 %v19174_v60, %v13457_v59  ;;  %v20844_v18 = vpack.c.bf16 %v176_v6, %v176_v6  ;;  %v19216_v59 = vld [vmem:[#allocation2 + $0x7c4] sm:$0xf0]  ;;  %v13617_v6 = vld [vmem:[#allocation2 + $0x7b0] sm:$0xf]  ;;  %v13417_v11 = vld [vmem:[#allocation2 + $0x620] sm:$0xf] }
  0x6f   :  { %9806 = vmatpush.bf16.msra.mxu0 %v13170_v15  ;;  %v179_v15 = vld.sshfl [vmem:[#allocation1 + $0x18] sm:$0xff pattern:$0x73625140]  ;;  %v19164_v12 = vld [vmem:[#allocation2 + $0x624] sm:$0xf0] }
  0x70   :  { %9819 = vmatpush.bf16.msra.mxu1 %v13234_v16  ;;  %v13513_v16 = vld [vmem:[#allocation2 + $0x6e0] sm:$0xf]  ;;  %v20850_v26 = vpack.c.bf16 %v179_v15, %v179_v15  ;;  %v19180_v15 = vld [vmem:[#allocation2 + $0x6a4] sm:$0xf0]  ;;  %v13601_v39 = vld [vmem:[#allocation2 + $0x790] sm:$0xf] }
  0x71   :  { %9832 = vmatpush.bf16.msra.mxu2 %v13298_v17  ;;  %v13650_v17 = vor.u32 %v19222_v3, %v13649_v2  ;;  %v13626_v2 = vor.u32 %v19216_v59, %v13625_v58  ;;  %v19182_v3 = vld [vmem:[#allocation2 + $0x6b4] sm:$0xf0]  ;;  %v13401_v44 = vld [vmem:[#allocation2 + $0x600] sm:$0xf]  ;;  %v19160_v45 = vld [vmem:[#allocation2 + $0x604] sm:$0xf0] }
  0x72   :  { %9845 = vmatpush.bf16.msra.mxu3 %v13362_v21  ;;  %v19204_v21 = vld [vmem:[#allocation2 + $0x764] sm:$0xf0]  ;;  %v19210_v43 = vld [vmem:[#allocation2 + $0x794] sm:$0xf0]  ;;  %v13465_v47 = vld [vmem:[#allocation2 + $0x680] sm:$0xf] }
  0x73   :  { %9807 = vmatpush.bf16.msra.mxu0 %v13162_v27  ;;  %v13450_v27 = vor.u32 %v19172_v8, %v13449_v7  ;;  %v19214_v7 = vld [vmem:[#allocation2 + $0x7b4] sm:$0xf0]  ;;  %v13777_v58 = vld [vmem:[#allocation2 + $0x8f0] sm:$0xf] }
  0x74   :  { %9820 = vmatpush.bf16.msra.mxu1 %v13226_v28  ;;  %v13514_v28 = vor.u32 %v19188_v19, %v13513_v16  ;;  %v13545_v16 = vld [vmem:[#allocation2 + $0x720] sm:$0xf]  ;;  %v19254_v59 = vld [vmem:[#allocation2 + $0x8f4] sm:$0xf0] }
  0x75   :  { %9833 = vmatpush.bf16.msra.mxu2 %v13290_v29  ;;  %v13578_v29 = vor.u32 %v19204_v21, %v13577_v20  ;;  %v13609_v19 = vld [vmem:[#allocation2 + $0x7a0] sm:$0xf]  ;;  %v19212_v20 = vld [vmem:[#allocation2 + $0x7a4] sm:$0xf0]  ;;  %v13418_v21 = vor.u32 %v19164_v12, %v13417_v11  ;;  %v13778_v11 = vor.u32 %v19254_v59, %v13777_v58 }
  0x76   :  { %9846 = vmatpush.bf16.msra.mxu3 %v13354_v36  ;;  %v13642_v36 = vor.u32 %v19220_v25, %v13641_v24  ;;  %v13409_v24 = vld [vmem:[#allocation2 + $0x610] sm:$0xf]  ;;  %v19162_v25 = vld [vmem:[#allocation2 + $0x614] sm:$0xf0]  ;;  %v13610_v35 = vor.u32 %v19212_v20, %v13609_v19  ;;  %v13833_v19 = vld [vmem:[#allocation2 + $0x960] sm:$0xf] }
  0x77   :  { %9808 = vmatpush.bf16.msra.mxu0 %v13154_v48  ;;  %v13442_v48 = vor.u32 %v19170_v31, %v13441_v30  ;;  %v19178_v30 = vld [vmem:[#allocation2 + $0x694] sm:$0xf0]  ;;  %v13537_v31 = vld [vmem:[#allocation2 + $0x710] sm:$0xf]  ;;  %v13410_v46 = vor.u32 %v19162_v25, %v13409_v24  ;;  %v19268_v20 = vld [vmem:[#allocation2 + $0x964] sm:$0xf0] }
  0x78   :  { %9821 = vmatpush.bf16.msra.mxu1 %v13218_v52  ;;  %v19168_v52 = vld [vmem:[#allocation2 + $0x644] sm:$0xf0]  ;;  %v13897_v25 = vld [vmem:[#allocation2 + $0x9e0] sm:$0xf] }
  0x79   :  { %9834 = vmatpush.bf16.msra.mxu2 %v13282_v53  ;;  %v13497_v53 = vld [vmem:[#allocation2 + $0x6c0] sm:$0xf]  ;;  %v13434_v60 = vor.u32 %v19168_v52, %v13433_v51  ;;  %v19264_v58 = vld [vmem:[#allocation2 + $0x944] sm:$0xf0] }
  0x7a   :  { %9847 = vmatpush.bf16.msra.mxu3 %v13346_v57  ;;  %v19200_v57 = vld [vmem:[#allocation2 + $0x744] sm:$0xf0]  ;;  %v13498_v61 = vor.u32 %v19184_v55, %v13497_v53  ;;  %v13593_v53 = vld [vmem:[#allocation2 + $0x780] sm:$0xf]  ;;  %v13713_v55 = vld [vmem:[#allocation2 + $0x870] sm:$0xf] }
  0x7b   :  { %9809 = vmatpush.bf16.msra.mxu0 %v13146_v0  ;;  %v13562_v62 = vor.u32 %v19200_v57, %v13561_v56  ;;  %v19166_v0 = vld [vmem:[#allocation2 + $0x634] sm:$0xf0]  ;;  %v13602_v56 = vor.u32 %v19210_v43, %v13601_v39  ;;  %v13761_v39 = vld [vmem:[#allocation2 + $0x8d0] sm:$0xf]  ;;  %v13881_v59 = vld [vmem:[#allocation2 + $0x9c0] sm:$0xf] }
  0x7c   :  { %9822 = vmatpush.bf16.msra.mxu1 %v13210_v4  ;;  %v13553_v4 = vld [vmem:[#allocation2 + $0x730] sm:$0xf]  ;;  %v13426_v8 = vor.u32 %v19166_v0, %v13425_v63  ;;  %v19238_v57 = vld [vmem:[#allocation2 + $0x874] sm:$0xf0]  ;;  %v13402_v63 = vor.u32 %v19160_v45, %v13401_v44 }
  0x7d   :  { %9835 = vmatpush.bf16.msra.mxu2 %v13274_v5  ;;  %v19198_v5 = vld [vmem:[#allocation2 + $0x734] sm:$0xf0]  ;;  %v13905_v0 = vld [vmem:[#allocation2 + $0x9f0] sm:$0xf] }
  0x7e   :  { %9848 = vmatpush.bf16.msra.mxu3 %v13338_v9  ;;  %9810 = vmatmul.bf16.vlgmr.msra.gmra.mxu0 %v20844_v18  ;;  %v13490_v9 = vor.u32 %v19182_v3, %v13489_v1  ;;  %v19286_v1 = vld [vmem:[#allocation2 + $0x9f4] sm:$0xf0]  ;;  %v13825_v45 = vld [vmem:[#allocation2 + $0x950] sm:$0xf] }
  0x7f   :  { %9854 = vmatpush.bf16.msrb.mxu0 %v13458_v10  ;;  %9823 = vmatmul.bf16.vlgmr.msra.gmra.mxu1 %v20848_v23  ;;  %v13554_v10 = vor.u32 %v19198_v5, %v13553_v4  ;;  %v180_v4 = vld.sshfl [vmem:[#allocation1 + $0x20] sm:$0xff pattern:$0x73625140]  ;;  %v13705_v5 = vld [vmem:[#allocation2 + $0x860] sm:$0xf] }
  0x80   :  { %9867 = vmatpush.bf16.msrb.mxu1 %v13522_v13  ;;  %9836 = vmatmul.bf16.vlgmr.msra.gmra.mxu2 %v20846_v22  ;;  %v13481_v13 = vld [vmem:[#allocation2 + $0x6a0] sm:$0xf]  ;;  %v19250_v44 = vld [vmem:[#allocation2 + $0x8d4] sm:$0xf0] }
  0x81   :  { %9880 = vmatpush.bf16.msrb.mxu2 %v13586_v14  ;;  %9849 = vmatmul.bf16.vlgmr.msra.gmra.mxu3 %v20850_v26  ;;  %v13618_v14 = vor.u32 %v19214_v7, %v13617_v6  ;;  %v19236_v6 = vld [vmem:[#allocation2 + $0x864] sm:$0xf0] }
  0x82   :  { %9893 = vmatpush.bf16.msrb.mxu3 %v13650_v17  ;;  %v19196_v17 = vld [vmem:[#allocation2 + $0x724] sm:$0xf0] }
  0x83   :  { %9855 = vmatpush.bf16.msrb.mxu0 %v13450_v27  ;;  %v13482_v27 = vor.u32 %v19180_v15, %v13481_v13  ;;  %v183_v13 = vld.sshfl [vmem:[#allocation1 + $0x38] sm:$0xff pattern:$0x73625140]  ;;  %v13906_v15 = vor.u32 %v19286_v1, %v13905_v0  ;;  %v19230_v1 = vld [vmem:[#allocation2 + $0x834] sm:$0xf0] }
  0x84   :  { %9868 = vmatpush.bf16.msrb.mxu1 %v13514_v28  ;;  %v13546_v28 = vor.u32 %v19196_v17, %v13545_v16  ;;  %v20862_v16 = vpack.c.bf16 %v180_v4, %v180_v4  ;;  %v19252_v17 = vld [vmem:[#allocation2 + $0x8e4] sm:$0xf0]  ;;  %v13681_v0 = vld [vmem:[#allocation2 + $0x830] sm:$0xf]  ;;  %v19246_v4 = vld [vmem:[#allocation2 + $0x8b4] sm:$0xf0] }
  0x85   :  { %9881 = vmatpush.bf16.msrb.mxu2 %v13578_v29  ;;  %v13473_v29 = vld [vmem:[#allocation2 + $0x690] sm:$0xf] }
  0x86   :  { %9894 = vmatpush.bf16.msrb.mxu3 %v13642_v36  ;;  %v19194_v36 = vld [vmem:[#allocation2 + $0x714] sm:$0xf0]  ;;  %v13474_v51 = vor.u32 %v19178_v30, %v13473_v29  ;;  %v13706_v29 = vor.u32 %v19236_v6, %v13705_v5  ;;  %v13809_v5 = vld [vmem:[#allocation2 + $0x930] sm:$0xf] }
  0x87   :  { %9856 = vmatpush.bf16.msrb.mxu0 %v13442_v48  ;;  %v19176_v48 = vld [vmem:[#allocation2 + $0x684] sm:$0xf0]  ;;  %v13538_v52 = vor.u32 %v19194_v36, %v13537_v31  ;;  %v13834_v31 = vor.u32 %v19268_v20, %v13833_v19  ;;  %v19234_v36 = vld [vmem:[#allocation2 + $0x854] sm:$0xf0]  ;;  %v13801_v19 = vld [vmem:[#allocation2 + $0x920] sm:$0xf] }
  0x88   :  { %9869 = vmatpush.bf16.msrb.mxu1 %v13506_v49  ;;  %v13529_v49 = vld [vmem:[#allocation2 + $0x700] sm:$0xf]  ;;  %v19262_v6 = vld [vmem:[#allocation2 + $0x934] sm:$0xf0]  ;;  %v19260_v20 = vld [vmem:[#allocation2 + $0x924] sm:$0xf0] }
  0x89   :  { %9882 = vmatpush.bf16.msrb.mxu2 %v13570_v50  ;;  %v19192_v50 = vld [vmem:[#allocation2 + $0x704] sm:$0xf0] }
  0x8a   :  { %9895 = vmatpush.bf16.msrb.mxu3 %v13634_v54  ;;  %v19208_v54 = vld [vmem:[#allocation2 + $0x784] sm:$0xf0]  ;;  %v13530_v3 = vor.u32 %v19192_v50, %v13529_v49  ;;  %v13762_v50 = vor.u32 %v19250_v44, %v13761_v39  ;;  %v13729_v39 = vld [vmem:[#allocation2 + $0x890] sm:$0xf] }
  0x8b   :  { %9857 = vmatpush.bf16.msrb.mxu0 %v13434_v60  ;;  %v13841_v60 = vld [vmem:[#allocation2 + $0x970] sm:$0xf]  ;;  %v13594_v7 = vor.u32 %v19208_v54, %v13593_v53  ;;  %v19232_v53 = vld [vmem:[#allocation2 + $0x844] sm:$0xf0]  ;;  %v13753_v54 = vld [vmem:[#allocation2 + $0x8c0] sm:$0xf] }
  0x8c   :  { %9870 = vmatpush.bf16.msrb.mxu1 %v13498_v61  ;;  %v19270_v61 = vld [vmem:[#allocation2 + $0x974] sm:$0xf0] }
  0x8d   :  { %9883 = vmatpush.bf16.msrb.mxu2 %v13562_v62  ;;  %v119_v62 = vld [vmem:[%s21411_s0 + $0x20] sm:$0xff]  ;;  %v13842_v12 = vor.u32 %v19270_v61, %v13841_v60  ;;  %v19280_v60 = vld [vmem:[#allocation2 + $0x9c4] sm:$0xf0] }
  0x8e   :  { %9896 = vmatpush.bf16.msrb.mxu3 %v13626_v2  ;;  %184 = vst [vmem:[#allocation1] ss:$4 sm:$0xff] %v119_v62  ;;  %v13466_v2 = vor.u32 %v19176_v48, %v13465_v47  ;;  %v13889_v47 = vld [vmem:[#allocation2 + $0x9d0] sm:$0xf]  ;;  %v19282_v48 = vld [vmem:[#allocation2 + $0x9d4] sm:$0xf0] }
  0x8f   :  { %9858 = vmatpush.bf16.msrb.mxu0 %v13426_v8  ;;  %v13714_v8 = vor.u32 %v19238_v57, %v13713_v55  ;;  %v13890_v55 = vor.u32 %v19282_v48, %v13889_v47  ;;  %v13817_v57 = vld [vmem:[#allocation2 + $0x940] sm:$0xf]  ;;  %v13857_v47 = vld [vmem:[#allocation2 + $0x990] sm:$0xf]  ;;  %v19274_v48 = vld [vmem:[#allocation2 + $0x994] sm:$0xf0] }
  0x90   :  { %9871 = vmatpush.bf16.msrb.mxu1 %v13490_v9  ;;  %v182_v9 = vld.sshfl [vmem:[#allocation1 + $0x30] sm:$0xff pattern:$0x73625140] }
  0x91   :  { %9884 = vmatpush.bf16.msrb.mxu2 %v13554_v10  ;;  %v181_v10 = vld.sshfl [vmem:[#allocation1 + $0x28] sm:$0xff pattern:$0x73625140] }
  0x92   :  { %9897 = vmatpush.bf16.msrb.mxu3 %v13618_v14  ;;  %v13769_v14 = vld [vmem:[#allocation2 + $0x8e0] sm:$0xf]  ;;  %v20866_v24 = vpack.c.bf16 %v181_v10, %v181_v10 }
  0x93   :  { %9859 = vmatpush.bf16.msrb.mxu0 %v13418_v21  ;;  %v20864_v21 = vpack.c.bf16 %v182_v9, %v182_v9  ;;  %v13770_v30 = vor.u32 %v19252_v17, %v13769_v14  ;;  %v13682_v9 = vor.u32 %v19230_v1, %v13681_v0  ;;  %v13737_v14 = vld [vmem:[#allocation2 + $0x8a0] sm:$0xf]  ;;  %v19244_v17 = vld [vmem:[#allocation2 + $0x8a4] sm:$0xf0]  ;;  %v19318_v0 = vld [vmem:[#allocation2 + $0xaf4] sm:$0xf0] }
  0x94   :  { %9872 = vmatpush.bf16.msrb.mxu1 %v13482_v27  ;;  %v19284_v27 = vld [vmem:[#allocation2 + $0x9e4] sm:$0xf0]  ;;  %v14097_v1 = vld [vmem:[#allocation2 + $0xb70] sm:$0xf] }
  0x95   :  { %9885 = vmatpush.bf16.msrb.mxu2 %v13546_v28  ;;  %v20868_v28 = vpack.c.bf16 %v183_v13, %v183_v13  ;;  %v13898_v43 = vor.u32 %v19284_v27, %v13897_v25  ;;  %v19228_v13 = vld [vmem:[#allocation2 + $0x824] sm:$0xf0]  ;;  %v13865_v25 = vld [vmem:[#allocation2 + $0x9a0] sm:$0xf] }
  0x96   :  { %9898 = vmatpush.bf16.msrb.mxu3 %v13610_v35  ;;  %v13697_v35 = vld [vmem:[#allocation2 + $0x850] sm:$0xf]  ;;  %v19276_v27 = vld [vmem:[#allocation2 + $0x9a4] sm:$0xf0] }
  0x97   :  { %9860 = vmatpush.bf16.msrb.mxu0 %v13410_v46  ;;  %v19266_v46 = vld [vmem:[#allocation2 + $0x954] sm:$0xf0]  ;;  %v13698_v49 = vor.u32 %v19234_v36, %v13697_v35  ;;  %v13802_v35 = vor.u32 %v19260_v20, %v13801_v19  ;;  %v13866_v44 = vor.u32 %v19276_v27, %v13865_v25  ;;  %v13961_v19 = vld [vmem:[#allocation2 + $0xa60] sm:$0xf]  ;;  %v19300_v20 = vld [vmem:[#allocation2 + $0xa64] sm:$0xf0] }
  0x98   :  { %9873 = vmatpush.bf16.msrb.mxu1 %v13474_v51  ;;  %v13826_v51 = vor.u32 %v19266_v46, %v13825_v45  ;;  %v19226_v36 = vld [vmem:[#allocation2 + $0x814] sm:$0xf0]  ;;  %v13793_v45 = vld [vmem:[#allocation2 + $0x910] sm:$0xf]  ;;  %v14025_v25 = vld [vmem:[#allocation2 + $0xae0] sm:$0xf] }
  0x99   :  { %9886 = vmatpush.bf16.msrb.mxu2 %v13538_v52  ;;  %v13689_v52 = vld [vmem:[#allocation2 + $0x840] sm:$0xf]  ;;  %v19258_v46 = vld [vmem:[#allocation2 + $0x914] sm:$0xf0] }
  0x9a   :  { %9899 = vmatpush.bf16.msrb.mxu3 %v13602_v56  ;;  %v19248_v56 = vld [vmem:[#allocation2 + $0x8c4] sm:$0xf0]  ;;  %v13690_v61 = vor.u32 %v19232_v53, %v13689_v52  ;;  %v13721_v52 = vld [vmem:[#allocation2 + $0x880] sm:$0xf] }
  0x9b   :  { %9861 = vmatpush.bf16.msrb.mxu0 %v13402_v63  ;;  %v13754_v62 = vor.u32 %v19248_v56, %v13753_v54  ;;  %v13818_v63 = vor.u32 %v19264_v58, %v13817_v57  ;;  %v19240_v53 = vld [vmem:[#allocation2 + $0x884] sm:$0xf0]  ;;  %v13785_v54 = vld [vmem:[#allocation2 + $0x900] sm:$0xf]  ;;  %v13794_v57 = vor.u32 %v19258_v46, %v13793_v45  ;;  %v13962_v46 = vor.u32 %v19300_v20, %v13961_v19  ;;  %v19342_v19 = vld [vmem:[#allocation2 + $0xbb4] sm:$0xf0] }
  0x9c   :  { %9874 = vmatpush.bf16.msrb.mxu1 %v13466_v2  ;;  %v13745_v2 = vld [vmem:[#allocation2 + $0x8b0] sm:$0xf]  ;;  %v13849_v58 = vld [vmem:[#allocation2 + $0x980] sm:$0xf] }
  0x9d   :  { %9887 = vmatpush.bf16.msrb.mxu2 %v13530_v3  ;;  %v13882_v3 = vor.u32 %v19280_v60, %v13881_v59  ;;  %v13746_v10 = vor.u32 %v19246_v4, %v13745_v2  ;;  %v19272_v59 = vld [vmem:[#allocation2 + $0x984] sm:$0xf0]  ;;  %v13969_v60 = vld [vmem:[#allocation2 + $0xa70] sm:$0xf]  ;;  %v19334_v2 = vld [vmem:[#allocation2 + $0xb74] sm:$0xf0] }
  0x9e   :  { %9900 = vmatpush.bf16.msrb.mxu3 %v13594_v7  ;;  %9862 = vmatmul.bf16.vlgmr.msrb.gmra.mxu0 %v20862_v16  ;;  %v13873_v7 = vld [vmem:[#allocation2 + $0x9b0] sm:$0xf] }
  0x9f   :  { %9906 = vmatpush.bf16.msra.mxu0 %v13714_v8  ;;  %9875 = vmatmul.bf16.vlgmr.msrb.gmra.mxu1 %v20866_v24  ;;  %v19278_v8 = vld [vmem:[#allocation2 + $0x9b4] sm:$0xf0] }
  0xa0   :  { %9919 = vmatpush.bf16.msra.mxu1 %v13778_v11  ;;  %9888 = vmatmul.bf16.vlgmr.msrb.gmra.mxu2 %v20864_v21  ;;  %v13810_v11 = vor.u32 %v19262_v6, %v13809_v5  ;;  %v14161_v5 = vld [vmem:[#allocation2 + $0xbf0] sm:$0xf]  ;;  %v19350_v6 = vld [vmem:[#allocation2 + $0xbf4] sm:$0xf0] }
  0xa1   :  { %9932 = vmatpush.bf16.msra.mxu2 %v13842_v12  ;;  %9901 = vmatmul.bf16.vlgmr.msrb.gmra.mxu3 %v20868_v28  ;;  %v13673_v12 = vld [vmem:[#allocation2 + $0x820] sm:$0xf]  ;;  %v14162_v27 = vor.u32 %v19350_v6, %v14161_v5  ;;  %v19344_v5 = vld [vmem:[#allocation2 + $0xbc4] sm:$0xf0] }
  0xa2   :  { %9945 = vmatpush.bf16.msra.mxu3 %v13906_v15  ;;  %v13874_v15 = vor.u32 %v19278_v8, %v13873_v7  ;;  %v13722_v7 = vor.u32 %v19240_v53, %v13721_v52  ;;  %v19314_v53 = vld [vmem:[#allocation2 + $0xad4] sm:$0xf0] }
  0xa3   :  { %9907 = vmatpush.bf16.msra.mxu0 %v13706_v29  ;;  %v13674_v29 = vor.u32 %v19228_v13, %v13673_v12  ;;  %v187_v13 = vld.sshfl [vmem:[#allocation1 + $0x8] sm:$0xff pattern:$0x73625140] }
  0xa4   :  { %9920 = vmatpush.bf16.msra.mxu1 %v13770_v30  ;;  %v13665_v30 = vld [vmem:[#allocation2 + $0x810] sm:$0xf] }
  0xa5   :  { %9933 = vmatpush.bf16.msra.mxu2 %v13834_v31  ;;  %v13738_v31 = vor.u32 %v19244_v17, %v13737_v14  ;;  %v189_v14 = vld.sshfl [vmem:[#allocation1 + $0x18] sm:$0xff pattern:$0x73625140]  ;;  %v14098_v17 = vor.u32 %v19334_v2, %v14097_v1  ;;  %v19312_v1 = vld [vmem:[#allocation2 + $0xac4] sm:$0xf0] }
  0xa6   :  { %9946 = vmatpush.bf16.msra.mxu3 %v13898_v43  ;;  %v19242_v43 = vld [vmem:[#allocation2 + $0x894] sm:$0xf0]  ;;  %v20883_v45 = vpack.c.bf16 %v189_v14, %v189_v14  ;;  %v14073_v2 = vld [vmem:[#allocation2 + $0xb40] sm:$0xf]  ;;  %v14065_v14 = vld [vmem:[#allocation2 + $0xb30] sm:$0xf] }
  0xa7   :  { %9908 = vmatpush.bf16.msra.mxu0 %v13698_v49  ;;  %v13657_v49 = vld [vmem:[#allocation2 + $0x800] sm:$0xf]  ;;  %v13730_v56 = vor.u32 %v19242_v43, %v13729_v39  ;;  %v20881_v39 = vpack.c.bf16 %v187_v13, %v187_v13  ;;  %v19310_v13 = vld [vmem:[#allocation2 + $0xab4] sm:$0xf0] }
  0xa8   :  { %9921 = vmatpush.bf16.msra.mxu1 %v13762_v50  ;;  %v19224_v50 = vld [vmem:[#allocation2 + $0x804] sm:$0xf0]  ;;  %v14153_v43 = vld [vmem:[#allocation2 + $0xbe0] sm:$0xf] }
  0xa9   :  { %9934 = vmatpush.bf16.msra.mxu2 %v13826_v51  ;;  %v13666_v51 = vor.u32 %v19226_v36, %v13665_v30  ;;  %v13658_v4 = vor.u32 %v19224_v50, %v13657_v49  ;;  %v19316_v30 = vld [vmem:[#allocation2 + $0xae4] sm:$0xf0]  ;;  %v13953_v49 = vld [vmem:[#allocation2 + $0xa50] sm:$0xf]  ;;  %v19298_v50 = vld [vmem:[#allocation2 + $0xa54] sm:$0xf0] }
  0xaa   :  { %9947 = vmatpush.bf16.msra.mxu3 %v13890_v55  ;;  %v19256_v55 = vld [vmem:[#allocation2 + $0x904] sm:$0xf0] }
  0xab   :  { %9909 = vmatpush.bf16.msra.mxu0 %v13690_v61  ;;  %v13858_v61 = vor.u32 %v19274_v48, %v13857_v47  ;;  %v13786_v8 = vor.u32 %v19256_v55, %v13785_v54  ;;  %v14026_v47 = vor.u32 %v19316_v30, %v14025_v25  ;;  %v14081_v54 = vld [vmem:[#allocation2 + $0xb50] sm:$0xf]  ;;  %v19330_v55 = vld [vmem:[#allocation2 + $0xb54] sm:$0xf0]  ;;  %v13929_v25 = vld [vmem:[#allocation2 + $0xa20] sm:$0xf] }
  0xac   :  { %9922 = vmatpush.bf16.msra.mxu1 %v13754_v62  ;;  %v19302_v62 = vld [vmem:[#allocation2 + $0xa74] sm:$0xf0] }
  0xad   :  { %9935 = vmatpush.bf16.msra.mxu2 %v13818_v63  ;;  %v14033_v63 = vld [vmem:[#allocation2 + $0xaf0] sm:$0xf]  ;;  %v13970_v12 = vor.u32 %v19302_v62, %v13969_v60  ;;  %v14082_v60 = vor.u32 %v19330_v55, %v14081_v54  ;;  %v19296_v62 = vld [vmem:[#allocation2 + $0xa44] sm:$0xf0] }
  0xae   :  { %9948 = vmatpush.bf16.msra.mxu3 %v13882_v3  ;;  %v120_v3 = vld [vmem:[%s21411_s0 + $0x28] sm:$0xff] }
  0xaf   :  { %9910 = vmatpush.bf16.msra.mxu0 %v13682_v9  ;;  %185 = vst [vmem:[#allocation1 + $0x20] ss:$4 sm:$0xff] %v120_v3  ;;  %v186_v9 = vld.sshfl [vmem:[#allocation1] sm:$0xff pattern:$0x73625140] }
  0xb0   :  { %9923 = vmatpush.bf16.msra.mxu1 %v13746_v10  ;;  %v188_v10 = vld.sshfl [vmem:[#allocation1 + $0x10] sm:$0xff pattern:$0x73625140] }
  0xb1   :  { %9936 = vmatpush.bf16.msra.mxu2 %v13810_v11  ;;  %v13850_v11 = vor.u32 %v19272_v59, %v13849_v58  ;;  %v20879_v36 = vpack.c.bf16 %v188_v10, %v188_v10  ;;  %v13954_v58 = vor.u32 %v19298_v50, %v13953_v49  ;;  %v19328_v3 = vld [vmem:[#allocation2 + $0xb44] sm:$0xf0]  ;;  %v19294_v10 = vld [vmem:[#allocation2 + $0xa34] sm:$0xf0]  ;;  %v14121_v49 = vld [vmem:[#allocation2 + $0xba0] sm:$0xf] }
  0xb2   :  { %9949 = vmatpush.bf16.msra.mxu3 %v13874_v15  ;;  %v14034_v15 = vor.u32 %v19318_v0, %v14033_v63  ;;  %v14009_v63 = vld [vmem:[#allocation2 + $0xac0] sm:$0xf]  ;;  %v19340_v50 = vld [vmem:[#allocation2 + $0xba4] sm:$0xf0] }
  0xb3   :  { %9911 = vmatpush.bf16.msra.mxu0 %v13674_v29  ;;  %v20877_v29 = vpack.c.bf16 %v186_v9, %v186_v9  ;;  %v13937_v9 = vld [vmem:[#allocation2 + $0xa30] sm:$0xf] }
  0xb4   :  { %9924 = vmatpush.bf16.msra.mxu1 %v13738_v31  ;;  %v14089_v31 = vld [vmem:[#allocation2 + $0xb60] sm:$0xf]  ;;  %v13938_v20 = vor.u32 %v19294_v10, %v13937_v9 }
  0xb5   :  { %9937 = vmatpush.bf16.msra.mxu2 %v13802_v35  ;;  %v19332_v35 = vld [vmem:[#allocation2 + $0xb64] sm:$0xf0]  ;;  %v14105_v10 = vld [vmem:[#allocation2 + $0xb80] sm:$0xf] }
  0xb6   :  { %9950 = vmatpush.bf16.msra.mxu3 %v13866_v44  ;;  %v19348_v44 = vld [vmem:[#allocation2 + $0xbe4] sm:$0xf0]  ;;  %v14090_v48 = vor.u32 %v19332_v35, %v14089_v31  ;;  %v13993_v35 = vld [vmem:[#allocation2 + $0xaa0] sm:$0xf] }
  0xb7   :  { %9912 = vmatpush.bf16.msra.mxu0 %v13666_v51  ;;  %v14017_v51 = vld [vmem:[#allocation2 + $0xad0] sm:$0xf]  ;;  %v14154_v52 = vor.u32 %v19348_v44, %v14153_v43  ;;  %v19292_v31 = vld [vmem:[#allocation2 + $0xa24] sm:$0xf0] }
  0xb8   :  { %9925 = vmatpush.bf16.msra.mxu1 %v13730_v56  ;;  %v14145_v56 = vld [vmem:[#allocation2 + $0xbd0] sm:$0xf]  ;;  %v14018_v59 = vor.u32 %v19314_v53, %v14017_v51  ;;  %v19308_v43 = vld [vmem:[#allocation2 + $0xaa4] sm:$0xf0]  ;;  %v13930_v51 = vor.u32 %v19292_v31, %v13929_v25  ;;  %v19290_v53 = vld [vmem:[#allocation2 + $0xa14] sm:$0xf0] }
  0xb9   :  { %9938 = vmatpush.bf16.msra.mxu2 %v13794_v57  ;;  %v19346_v57 = vld [vmem:[#allocation2 + $0xbd4] sm:$0xf0]  ;;  %v13994_v54 = vor.u32 %v19308_v43, %v13993_v35  ;;  %v14417_v35 = vld [vmem:[#allocation2 + $0xdf0] sm:$0xf] }
  0xba   :  { %9951 = vmatpush.bf16.msra.mxu3 %v13858_v61  ;;  %v13945_v61 = vld [vmem:[#allocation2 + $0xa40] sm:$0xf]  ;;  %v14146_v0 = vor.u32 %v19346_v57, %v14145_v56  ;;  %v13985_v56 = vld [vmem:[#allocation2 + $0xa90] sm:$0xf]  ;;  %v19306_v57 = vld [vmem:[#allocation2 + $0xa94] sm:$0xf0] }
  0xbb   :  { %9913 = vmatpush.bf16.msra.mxu0 %v13658_v4  ;;  %v14137_v4 = vld [vmem:[#allocation2 + $0xbc0] sm:$0xf]  ;;  %v13946_v6 = vor.u32 %v19296_v62, %v13945_v61  ;;  %v19322_v61 = vld [vmem:[#allocation2 + $0xb14] sm:$0xf0]  ;;  %v14113_v62 = vld [vmem:[#allocation2 + $0xb90] sm:$0xf] }
  0xbc   :  { %9926 = vmatpush.bf16.msra.mxu1 %v13722_v7  ;;  %v14010_v7 = vor.u32 %v19312_v1, %v14009_v63  ;;  %v19338_v63 = vld [vmem:[#allocation2 + $0xb94] sm:$0xf0]  ;;  %v19288_v1 = vld [vmem:[#allocation2 + $0xa04] sm:$0xf0] }
  0xbd   :  { %9939 = vmatpush.bf16.msra.mxu2 %v13786_v8  ;;  %v14074_v8 = vor.u32 %v19328_v3, %v14073_v2  ;;  %v13977_v3 = vld [vmem:[#allocation2 + $0xa80] sm:$0xf]  ;;  %v19398_v25 = vld [vmem:[#allocation2 + $0xd74] sm:$0xf0] }
  0xbe   :  { %9952 = vmatpush.bf16.msra.mxu3 %v13850_v11  ;;  %9914 = vmatmul.bf16.vlgmr.msra.gmra.mxu0 %v20877_v29  ;;  %v14001_v11 = vld [vmem:[#allocation2 + $0xab0] sm:$0xf]  ;;  %v19414_v43 = vld [vmem:[#allocation2 + $0xdf4] sm:$0xf0] }
  0xbf   :  { %9958 = vmatpush.bf16.msrb.mxu0 %v13970_v12  ;;  %9927 = vmatmul.bf16.vlgmr.msra.gmra.mxu1 %v20881_v39  ;;  %v14138_v12 = vor.u32 %v19344_v5, %v14137_v4  ;;  %v19304_v4 = vld [vmem:[#allocation2 + $0xa84] sm:$0xf0]  ;;  %v14041_v5 = vld [vmem:[#allocation2 + $0xb00] sm:$0xf] }
  0xc0   :  { %9971 = vmatpush.bf16.msrb.mxu1 %v14034_v15  ;;  %9940 = vmatmul.bf16.vlgmr.msra.gmra.mxu2 %v20879_v36  ;;  %v19326_v15 = vld [vmem:[#allocation2 + $0xb34] sm:$0xf0] }
  0xc1   :  { %9984 = vmatpush.bf16.msrb.mxu2 %v14098_v17  ;;  %9953 = vmatmul.bf16.vlgmr.msra.gmra.mxu3 %v20883_v45  ;;  %v14129_v17 = vld [vmem:[#allocation2 + $0xbb0] sm:$0xf]  ;;  %v14066_v30 = vor.u32 %v19326_v15, %v14065_v14  ;;  %v14114_v14 = vor.u32 %v19338_v63, %v14113_v62  ;;  %v19366_v15 = vld [vmem:[#allocation2 + $0xc74] sm:$0xf0]  ;;  %v14418_v62 = vor.u32 %v19414_v43, %v14417_v35 }
  0xc2   :  { %9997 = vmatpush.bf16.msrb.mxu3 %v14162_v27  ;;  %v14002_v27 = vor.u32 %v19310_v13, %v14001_v11  ;;  %v14130_v44 = vor.u32 %v19342_v19, %v14129_v17  ;;  %v19336_v11 = vld [vmem:[#allocation2 + $0xb84] sm:$0xf0]  ;;  %v14289_v17 = vld [vmem:[#allocation2 + $0xcf0] sm:$0xf]  ;;  %v19382_v19 = vld [vmem:[#allocation2 + $0xcf4] sm:$0xf0] }
  0xc3   :  { %9959 = vmatpush.bf16.msrb.mxu0 %v13962_v46  ;;  %v14057_v46 = vld [vmem:[#allocation2 + $0xb20] sm:$0xf] }
  0xc4   :  { %9972 = vmatpush.bf16.msrb.mxu1 %v14026_v47  ;;  %v19324_v47 = vld [vmem:[#allocation2 + $0xb24] sm:$0xf0] }
  0xc5   :  { %9985 = vmatpush.bf16.msrb.mxu2 %v14090_v48  ;;  %v2012_v48 = vld [vmem:[#allocation5] sm:$0x3]  ;;  %v14058_v55 = vor.u32 %v19324_v47, %v14057_v46  ;;  %v13978_v46 = vor.u32 %v19304_v4, %v13977_v3 }
  0xc6   :  { %9998 = vmatpush.bf16.msrb.mxu3 %v14154_v52  ;;  %v13921_v52 = vld [vmem:[#allocation2 + $0xa10] sm:$0xf] }
  0xc7   :  { %9960 = vmatpush.bf16.msrb.mxu0 %v13954_v58  ;;  %v2014_v58 = vperm.slane %v2012_v48, 0  ;;  %v13922_v2 = vor.u32 %v19290_v53, %v13921_v52  ;;  %v190_v48 = vld.sshfl [vmem:[#allocation1 + $0x20] sm:$0xff pattern:$0x73625140] }
  0xc8   :  { %9973 = vmatpush.bf16.msrb.mxu1 %v14018_v59  ;;  %v14122_v59 = vor.u32 %v19340_v50, %v14121_v49  ;;  %v192_v49 = vld.sshfl [vmem:[#allocation1 + $0x30] sm:$0xff pattern:$0x73625140]  ;;  %v14106_v50 = vor.u32 %v19336_v11, %v14105_v10  ;;  %v191_v52 = vld.sshfl [vmem:[#allocation1 + $0x28] sm:$0xff pattern:$0x73625140]  ;;  %v20892_v63 = vpack.c.bf16 %v190_v48, %v190_v48 }
  0xc9   :  { %9986 = vmatpush.bf16.msrb.mxu2 %v14082_v60  ;;  %v14049_v60 = vld [vmem:[#allocation2 + $0xb10] sm:$0xf]  ;;  %v20894_v4 = vpack.c.bf16 %v192_v49, %v192_v49  ;;  %v19360_v48 = vld [vmem:[#allocation2 + $0xc44] sm:$0xf0]  ;;  %v14265_v49 = vld [vmem:[#allocation2 + $0xcc0] sm:$0xf] }
  0xca   :  { %9999 = vmatpush.bf16.msrb.mxu3 %v14146_v0  ;;  %v13913_v0 = vld [vmem:[#allocation2 + $0xa00] sm:$0xf]  ;;  %v14050_v9 = vor.u32 %v19322_v61, %v14049_v60  ;;  %v193_v53 = vld.sshfl [vmem:[#allocation1 + $0x38] sm:$0xff pattern:$0x73625140]  ;;  %v9746_v61 = vpop.f32.mrf.mxu3 }
  0xcb   :  { %9961 = vmatpush.bf16.msrb.mxu0 %v13946_v6  ;;  %v19320_v6 = vld [vmem:[#allocation2 + $0xb04] sm:$0xf0]  ;;  %v13914_v31 = vor.u32 %v19288_v1, %v13913_v0  ;;  %v14345_v1 = vld [vmem:[#allocation2 + $0xd60] sm:$0xf] }
  0xcc   :  { %9974 = vmatpush.bf16.msrb.mxu1 %v14010_v7  ;;  %v9707_v7 = vpop.f32.mrf.mxu0  ;;  %v14042_v47 = vor.u32 %v19320_v6, %v14041_v5  ;;  %v19380_v0 = vld [vmem:[#allocation2 + $0xce4] sm:$0xf0]  ;;  %v20896_v5 = vpack.c.bf16 %v191_v52, %v191_v52  ;;  %v14409_v6 = vld [vmem:[#allocation2 + $0xde0] sm:$0xf] }
  0xcd   :  { %9987 = vmatpush.bf16.msrb.mxu2 %v14074_v8  ;;  %v13986_v8 = vor.u32 %v19306_v57, %v13985_v56  ;;  %v9708_v13 = vadd.f32 %v9707_v7, %v2014_v58  ;;  %v14217_v57 = vld [vmem:[#allocation2 + $0xc60] sm:$0xf]  ;;  %v19364_v58 = vld [vmem:[#allocation2 + $0xc64] sm:$0xf0] }
  0xce   :  { %10000 = vmatpush.bf16.msrb.mxu3 %v14138_v12  ;;  %v14225_v12 = vld [vmem:[#allocation2 + $0xc70] sm:$0xf]  ;;  %v19412_v7 = vld [vmem:[#allocation2 + $0xde4] sm:$0xf0]  ;;  %v14218_v10 = vor.u32 %v19364_v58, %v14217_v57 }
  0xcf   :  { %9962 = vmatpush.bf16.msrb.mxu0 %v13938_v20  ;;  %v14353_v20 = vld [vmem:[#allocation2 + $0xd70] sm:$0xf]  ;;  %v19376_v52 = vld [vmem:[#allocation2 + $0xcc4] sm:$0xf0] }
  0xd0   :  { %9975 = vmatpush.bf16.msrb.mxu1 %v14002_v27  ;;  %v9720_v27 = vpop.f32.mrf.mxu1  ;;  %v14354_v56 = vor.u32 %v19398_v25, %v14353_v20  ;;  %v19378_v20 = vld [vmem:[#allocation2 + $0xcd4] sm:$0xf0]  ;;  %v14337_v25 = vld [vmem:[#allocation2 + $0xd50] sm:$0xf] }
  0xd1   :  { %9988 = vmatpush.bf16.msrb.mxu2 %v14066_v30  ;;  %v121_v30 = vld [vmem:[%s21411_s0 + $0x30] sm:$0xff] }
  0xd2   :  { %10001 = vmatpush.bf16.msrb.mxu3 %v14130_v44  ;;  %v9721_v44 = vadd.f32 %v9720_v27, %v9708_v13  ;;  %194 = vst [vmem:[#allocation1] ss:$4 sm:$0xff] %v121_v30  ;;  %v14209_v13 = vld [vmem:[#allocation2 + $0xc50] sm:$0xf]  ;;  %v19394_v27 = vld [vmem:[#allocation2 + $0xd54] sm:$0xf0] }
  0xd3   :  { %9963 = vmatpush.bf16.msrb.mxu0 %v13930_v51  ;;  %v14226_v51 = vor.u32 %v19366_v15, %v14225_v12  ;;  %v14273_v15 = vld [vmem:[#allocation2 + $0xcd0] sm:$0xf] }
  0xd4   :  { %9976 = vmatpush.bf16.msrb.mxu1 %v13994_v54  ;;  %v9733_v54 = vpop.f32.mrf.mxu2  ;;  %v9709_v3 = vpop.f32.mrf.mxu0  ;;  %v14401_v30 = vld [vmem:[#allocation2 + $0xdd0] sm:$0xf] }
  0xd5   :  { %9989 = vmatpush.bf16.msrb.mxu2 %v14058_v55  ;;  %v14290_v55 = vor.u32 %v19382_v19, %v14289_v17  ;;  %v9734_v60 = vadd.f32 %v9733_v54, %v9721_v44  ;;  %v14410_v19 = vor.u32 %v19412_v7, %v14409_v6  ;;  %v14274_v44 = vor.u32 %v19378_v20, %v14273_v15  ;;  %v19392_v54 = vld [vmem:[#allocation2 + $0xd44] sm:$0xf0]  ;;  %v19374_v6 = vld [vmem:[#allocation2 + $0xcb4] sm:$0xf0]  ;;  %v14321_v7 = vld [vmem:[#allocation2 + $0xd30] sm:$0xf] }
  0xd6   :  { %10002 = vmatpush.bf16.msrb.mxu3 %v14122_v59  ;;  %v14281_v59 = vld [vmem:[#allocation2 + $0xce0] sm:$0xf]  ;;  %v19356_v20 = vld [vmem:[#allocation2 + $0xc24] sm:$0xf0] }
  0xd7   :  { %9964 = vmatpush.bf16.msrb.mxu0 %v13922_v2  ;;  %v19396_v2 = vld [vmem:[#allocation2 + $0xd64] sm:$0xf0]  ;;  %v14282_v11 = vor.u32 %v19380_v0, %v14281_v59  ;;  %v14266_v59 = vor.u32 %v19376_v52, %v14265_v49  ;;  %v14257_v0 = vld [vmem:[#allocation2 + $0xcb0] sm:$0xf] }
  0xd8   :  { %9977 = vmatpush.bf16.msrb.mxu1 %v13986_v8  ;;  %v9747_v8 = vadd.f32 %v9746_v61, %v9734_v60  ;;  %v14346_v12 = vor.u32 %v19396_v2, %v14345_v1  ;;  %v9722_v17 = vpop.f32.mrf.mxu1  ;;  %v14193_v61 = vld [vmem:[#allocation2 + $0xc30] sm:$0xf]  ;;  %v14258_v15 = vor.u32 %v19374_v6, %v14257_v0  ;;  %v14169_v0 = vld [vmem:[#allocation2 + $0xc00] sm:$0xf]  ;;  %v19368_v6 = vld [vmem:[#allocation2 + $0xc84] sm:$0xf0] }
  0xd9   :  { %9990 = vmatpush.bf16.msrb.mxu2 %v14050_v9  ;;  %v20898_v9 = vpack.c.bf16 %v193_v53, %v193_v53  ;;  %v14329_v53 = vld [vmem:[#allocation2 + $0xd40] sm:$0xf]  ;;  %v14177_v49 = vld [vmem:[#allocation2 + $0xc10] sm:$0xf] }
  0xda   :  { %10003 = vmatpush.bf16.msrb.mxu3 %v14114_v14  ;;  %v19362_v14 = vld [vmem:[#allocation2 + $0xc54] sm:$0xf0]  ;;  %v14330_v60 = vor.u32 %v19392_v54, %v14329_v53 }
  0xdb   :  { %9965 = vmatpush.bf16.msrb.mxu0 %v13914_v31  ;;  %v19410_v31 = vld [vmem:[#allocation2 + $0xdd4] sm:$0xf0]  ;;  %v14210_v35 = vor.u32 %v19362_v14, %v14209_v13 }
  0xdc   :  { %9978 = vmatpush.bf16.msrb.mxu1 %v13978_v46  ;;  %v9735_v43 = vpop.f32.mrf.mxu2  ;;  %v14338_v46 = vor.u32 %v19394_v27, %v14337_v25  ;;  %v9759_v58 = vpop.f32.mrf.mxu0  ;;  %v14249_v25 = vld [vmem:[#allocation2 + $0xca0] sm:$0xf]  ;;  %v19354_v54 = vld [vmem:[#allocation2 + $0xc14] sm:$0xf0] }
  0xdd   :  { %9991 = vmatpush.bf16.msrb.mxu2 %v14042_v47  ;;  %v14201_v47 = vld [vmem:[#allocation2 + $0xc40] sm:$0xf]  ;;  %v9760_v1 = vadd.f32 %v9759_v58, %v9747_v8 }
  0xde   :  { %10004 = vmatpush.bf16.msrb.mxu3 %v14106_v50  ;;  %9966 = vmatmul.bf16.vlgmr.msrb.gmra.mxu0 %v20892_v63  ;;  %v9748_v50 = vpop.f32.mrf.mxu3  ;;  %v14202_v57 = vor.u32 %v19360_v48, %v14201_v47  ;;  %v19404_v47 = vld [vmem:[#allocation2 + $0xda4] sm:$0xf0] }
  0xdf   :  { %10010 = vmatpush.bf16.msra.mxu0 %v14226_v51  ;;  %9979 = vmatmul.bf16.vlgmr.msrb.gmra.mxu1 %v20896_v5  ;;  %v14402_v51 = vor.u32 %v19410_v31, %v14401_v30  ;;  %v19372_v30 = vld [vmem:[#allocation2 + $0xca4] sm:$0xf0]  ;;  %v14313_v31 = vld [vmem:[#allocation2 + $0xd20] sm:$0xf] }
  0xe0   :  { %10023 = vmatpush.bf16.msra.mxu1 %v14290_v55  ;;  %9992 = vmatmul.bf16.vlgmr.msrb.gmra.mxu2 %v20894_v4  ;;  %v14393_v55 = vld [vmem:[#allocation2 + $0xdc0] sm:$0xf]  ;;  %v9772_v2 = vpop.f32.mrf.mxu1  ;;  %v14250_v52 = vor.u32 %v19372_v30, %v14249_v25  ;;  %v14545_v25 = vld [vmem:[#allocation2 + $0xef0] sm:$0xf] }
  0xe1   :  { %10036 = vmatpush.bf16.msra.mxu2 %v14354_v56  ;;  %10005 = vmatmul.bf16.vlgmr.msrb.gmra.mxu3 %v20898_v9  ;;  %v19408_v56 = vld [vmem:[#allocation2 + $0xdc4] sm:$0xf0]  ;;  %v9773_v13 = vadd.f32 %v9772_v2, %v9760_v1  ;;  %v14178_v2 = vor.u32 %v19354_v54, %v14177_v49  ;;  %v14609_v30 = vld [vmem:[#allocation2 + $0xf70] sm:$0xf] }
  0xe2   :  { %10049 = vmatpush.bf16.msra.mxu3 %v14418_v62  ;;  %v19358_v62 = vld [vmem:[#allocation2 + $0xc34] sm:$0xf0]  ;;  %v14394_v3 = vor.u32 %v19408_v56, %v14393_v55  ;;  %v14241_v55 = vld [vmem:[#allocation2 + $0xc90] sm:$0xf]  ;;  %v19352_v1 = vld [vmem:[#allocation2 + $0xc04] sm:$0xf0] }
  0xe3   :  { %10011 = vmatpush.bf16.msra.mxu0 %v14218_v10  ;;  %v19390_v10 = vld [vmem:[#allocation2 + $0xd34] sm:$0xf0]  ;;  %v14194_v14 = vor.u32 %v19358_v62, %v14193_v61  ;;  %v14369_v61 = vld [vmem:[#allocation2 + $0xd90] sm:$0xf] }
  0xe4   :  { %10024 = vmatpush.bf16.msra.mxu1 %v14282_v11  ;;  %v14385_v11 = vld [vmem:[#allocation2 + $0xdb0] sm:$0xf]  ;;  %v14322_v17 = vor.u32 %v19390_v10, %v14321_v7  ;;  %v9785_v27 = vpop.f32.mrf.mxu2  ;;  %v19370_v56 = vld [vmem:[#allocation2 + $0xc94] sm:$0xf0]  ;;  %v14297_v7 = vld [vmem:[#allocation2 + $0xd00] sm:$0xf] }
  0xe5   :  { %10037 = vmatpush.bf16.msra.mxu2 %v14346_v12  ;;  %v19406_v12 = vld [vmem:[#allocation2 + $0xdb4] sm:$0xf0]  ;;  %v9786_v43 = vadd.f32 %v9785_v27, %v9773_v13  ;;  %v19384_v10 = vld [vmem:[#allocation2 + $0xd04] sm:$0xf0]  ;;  %v14361_v13 = vld [vmem:[#allocation2 + $0xd80] sm:$0xf] }
  0xe6   :  { %10050 = vmatpush.bf16.msra.mxu3 %v14410_v19  ;;  %v14185_v19 = vld [vmem:[#allocation2 + $0xc20] sm:$0xf]  ;;  %v14386_v8 = vor.u32 %v19406_v12, %v14385_v11  ;;  %v19402_v62 = vld [vmem:[#allocation2 + $0xd94] sm:$0xf0]  ;;  %v14242_v11 = vor.u32 %v19370_v56, %v14241_v55 }
  0xe7   :  { %10012 = vmatpush.bf16.msra.mxu0 %v14210_v35  ;;  %v19388_v35 = vld [vmem:[#allocation2 + $0xd24] sm:$0xf0]  ;;  %v14186_v48 = vor.u32 %v19356_v20, %v14185_v19  ;;  %v14370_v19 = vor.u32 %v19402_v62, %v14369_v61  ;;  %v19430_v20 = vld [vmem:[#allocation2 + $0xe74] sm:$0xf0] }
  0xe8   :  { %10025 = vmatpush.bf16.msra.mxu1 %v14274_v44  ;;  %v9798_v44 = vpop.f32.mrf.mxu3  ;;  %v14314_v53 = vor.u32 %v19388_v35, %v14313_v31  ;;  %v19446_v27 = vld [vmem:[#allocation2 + $0xef4] sm:$0xf0]  ;;  %v122_v35 = vld [vmem:[%s21411_s0 + $0x38] sm:$0xff]  ;;  %v197_v54 = vld.sshfl [vmem:[#allocation1 + $0x8] sm:$0xff pattern:$0x73625140] }
  0xe9   :  { %10038 = vmatpush.bf16.msra.mxu2 %v14338_v46  ;;  %v14377_v46 = vld [vmem:[#allocation2 + $0xda0] sm:$0xf]  ;;  %v20904_v50 = vadd.f32 %v9798_v44, %v9786_v43  ;;  %v19462_v31 = vld [vmem:[#allocation2 + $0xf74] sm:$0xf0]  ;;  %v14170_v43 = vor.u32 %v19352_v1, %v14169_v0  ;;  %v14673_v44 = vld [vmem:[#allocation2 + $0xff0] sm:$0xf]  ;;  %v14546_v56 = vor.u32 %v19446_v27, %v14545_v25 }
  0xea   :  { %10051 = vmatpush.bf16.msra.mxu3 %v14402_v51  ;;  %v9761_v51 = vpop.f32.mrf.mxu0  ;;  %v14378_v58 = vor.u32 %v19404_v47, %v14377_v46  ;;  %v19478_v46 = vld [vmem:[#allocation2 + $0xff4] sm:$0xf0]  ;;  %195 = vst [vmem:[#allocation1 + $0x20] ss:$4 sm:$0xff] %v122_v35  ;;  %v19444_v0 = vld [vmem:[#allocation2 + $0xee4] sm:$0xf0] }
  0xeb   :  { %10013 = vmatpush.bf16.msra.mxu0 %v14202_v57  ;;  %v9774_v57 = vpop.f32.mrf.mxu1  ;;  %v196_v49 = vld.sshfl [vmem:[#allocation1] sm:$0xff pattern:$0x73625140]  ;;  %v198_v51 = vld.sshfl [vmem:[#allocation1 + $0x10] sm:$0xff pattern:$0x73625140]  ;;  %v14674_v61 = vor.u32 %v19478_v46, %v14673_v44 }
  0xec   :  { %10026 = vmatpush.bf16.msra.mxu1 %v14266_v59  ;;  %v14305_v59 = vld [vmem:[#allocation2 + $0xd10] sm:$0xf]  ;;  %v14610_v57 = vor.u32 %v19462_v31, %v14609_v30  ;;  %v20909_v62 = vpack.c.bf16 %v196_v49, %v196_v49  ;;  %v14601_v1 = vld [vmem:[#allocation2 + $0xf60] sm:$0xf]  ;;  %v19442_v25 = vld [vmem:[#allocation2 + $0xed4] sm:$0xf0] }
  0xed   :  { %10039 = vmatpush.bf16.msra.mxu2 %v14330_v60  ;;  %v19386_v60 = vld [vmem:[#allocation2 + $0xd14] sm:$0xf0]  ;;  %v199_v55 = vld.sshfl [vmem:[#allocation1 + $0x18] sm:$0xff pattern:$0x73625140] }
  0xee   :  { %10052 = vmatpush.bf16.msra.mxu3 %v14394_v3  ;;  %v14233_v3 = vld [vmem:[#allocation2 + $0xc80] sm:$0xf]  ;;  %v14306_v12 = vor.u32 %v19386_v60, %v14305_v59  ;;  %v19428_v59 = vld [vmem:[#allocation2 + $0xe64] sm:$0xf0]  ;;  %v14593_v27 = vld [vmem:[#allocation2 + $0xf50] sm:$0xf] }
  0xef   :  { %10014 = vmatpush.bf16.msra.mxu0 %v14194_v14  ;;  %v19400_v14 = vld [vmem:[#allocation2 + $0xd84] sm:$0xf0]  ;;  %v14234_v47 = vor.u32 %v19368_v6, %v14233_v3  ;;  %v14537_v60 = vld [vmem:[#allocation2 + $0xee0] sm:$0xf]  ;;  %v20911_v3 = vpack.c.bf16 %v198_v51, %v198_v51  ;;  %v20913_v6 = vpack.c.bf16 %v197_v54, %v197_v54  ;;  %v14657_v30 = vld [vmem:[#allocation2 + $0xfd0] sm:$0xf] }
  0xf0   :  { %10027 = vmatpush.bf16.msra.mxu1 %v14258_v15  ;;  %v14481_v15 = vld [vmem:[#allocation2 + $0xe70] sm:$0xf]  ;;  %v19474_v31 = vld [vmem:[#allocation2 + $0xfd4] sm:$0xf0]  ;;  %v14457_v46 = vld [vmem:[#allocation2 + $0xe40] sm:$0xf] }
  0xf1   :  { %10040 = vmatpush.bf16.msra.mxu2 %v14322_v17  ;;  %v9787_v17 = vpop.f32.mrf.mxu2  ;;  %v14658_v49 = vor.u32 %v19474_v31, %v14657_v30  ;;  %v19440_v51 = vld [vmem:[#allocation2 + $0xec4] sm:$0xf0] }
  0xf2   :  { %10053 = vmatpush.bf16.msra.mxu3 %v14386_v8  ;;  %v9800_v8 = vpop.f32.mrf.mxu3  ;;  %v19426_v17 = vld [vmem:[#allocation2 + $0xe54] sm:$0xf0] }
  0xf3   :  { %10015 = vmatpush.bf16.msra.mxu0 %v14186_v48  ;;  %v14298_v48 = vor.u32 %v19384_v10, %v14297_v7  ;;  %v14665_v7 = vld [vmem:[#allocation2 + $0xfe0] sm:$0xf]  ;;  %v19476_v10 = vld [vmem:[#allocation2 + $0xfe4] sm:$0xf0]  ;;  %v19458_v8 = vld [vmem:[#allocation2 + $0xf54] sm:$0xf0] }
  0xf4   :  { %10028 = vmatpush.bf16.msra.mxu1 %v14250_v52  ;;  %v14362_v52 = vor.u32 %v19400_v14, %v14361_v13  ;;  %v14538_v13 = vor.u32 %v19444_v0, %v14537_v60  ;;  %v14594_v44 = vor.u32 %v19458_v8, %v14593_v27  ;;  %v14449_v0 = vld [vmem:[#allocation2 + $0xe30] sm:$0xf]  ;;  %v19420_v27 = vld [vmem:[#allocation2 + $0xe24] sm:$0xf0]  ;;  %v14505_v8 = vld [vmem:[#allocation2 + $0xea0] sm:$0xf] }
  0xf5   :  { %10041 = vmatpush.bf16.msra.mxu2 %v14314_v53  ;;  %v14482_v53 = vor.u32 %v19430_v20, %v14481_v15  ;;  %v14465_v15 = vld [vmem:[#allocation2 + $0xe50] sm:$0xf]  ;;  %v14666_v20 = vor.u32 %v19476_v10, %v14665_v7 }
  0xf6   :  { %10054 = vmatpush.bf16.msra.mxu3 %v14378_v58  ;;  %v14473_v58 = vld [vmem:[#allocation2 + $0xe60] sm:$0xf]  ;;  %v14466_v35 = vor.u32 %v19426_v17, %v14465_v15  ;;  %v14641_v15 = vld [vmem:[#allocation2 + $0xfb0] sm:$0xf]  ;;  %v19470_v17 = vld [vmem:[#allocation2 + $0xfb4] sm:$0xf0] }
  0xf7   :  { %10016 = vmatpush.bf16.msra.mxu0 %v14178_v2  ;;  %v19460_v2 = vld [vmem:[#allocation2 + $0xf64] sm:$0xf0]  ;;  %v14642_v30 = vor.u32 %v19470_v17, %v14641_v15  ;;  %v14553_v17 = vld [vmem:[#allocation2 + $0xf00] sm:$0xf] }
  0xf8   :  { %10029 = vmatpush.bf16.msra.mxu1 %v14242_v11  ;;  %v20915_v11 = vpack.c.bf16 %v199_v55, %v199_v55  ;;  %v14602_v14 = vor.u32 %v19460_v2, %v14601_v1  ;;  %v14649_v55 = vld [vmem:[#allocation2 + $0xfc0] sm:$0xf]  ;;  %v19422_v1 = vld [vmem:[#allocation2 + $0xe34] sm:$0xf0]  ;;  %v14513_v2 = vld [vmem:[#allocation2 + $0xeb0] sm:$0xf] }
  0xf9   :  { %10042 = vmatpush.bf16.msra.mxu2 %v14306_v12  ;;  %v14474_v12 = vor.u32 %v19428_v59, %v14473_v58  ;;  %v19432_v15 = vld [vmem:[#allocation2 + $0xe84] sm:$0xf0] }
  0xfa   :  { %10055 = vmatpush.bf16.msra.mxu3 %v14370_v19  ;;  %v14529_v19 = vld [vmem:[#allocation2 + $0xed0] sm:$0xf] }
  0xfb   :  { %10017 = vmatpush.bf16.msra.mxu0 %v14170_v43  ;;  %v14530_v43 = vor.u32 %v19442_v25, %v14529_v19  ;;  %v9811_v54 = vpop.f32.mrf.mxu0  ;;  %v14450_v19 = vor.u32 %v19422_v1, %v14449_v0  ;;  %v14441_v25 = vld [vmem:[#allocation2 + $0xe20] sm:$0xf]  ;;  %v14561_v0 = vld [vmem:[#allocation2 + $0xf10] sm:$0xf]  ;;  %v19450_v1 = vld [vmem:[#allocation2 + $0xf14] sm:$0xf0] }
  0xfc   :  { %10030 = vmatpush.bf16.msra.mxu1 %v14234_v47  ;;  %v19424_v47 = vld [vmem:[#allocation2 + $0xe44] sm:$0xf0]  ;;  %v9824_v59 = vpop.f32.mrf.mxu1 }
  0xfd   :  { %10043 = vmatpush.bf16.msra.mxu2 %v14298_v48  ;;  %v14521_v48 = vld [vmem:[#allocation2 + $0xec0] sm:$0xf]  ;;  %v14458_v58 = vor.u32 %v19424_v47, %v14457_v46 }
  0xfe   :  { %10056 = vmatpush.bf16.msra.mxu3 %v14362_v52  ;;  %10018 = vmatmul.bf16.vlgmr.msra.gmra.mxu0 %v20909_v62  ;;  %v14585_v52 = vld [vmem:[#allocation2 + $0xf40] sm:$0xf]  ;;  %v14522_v60 = vor.u32 %v19440_v51, %v14521_v48 }
  0xff   :  { %10062 = vmatpush.bf16.msrb.mxu0 %v14482_v53  ;;  %10031 = vmatmul.bf16.vlgmr.msra.gmra.mxu1 %v20913_v6  ;;  %v19456_v53 = vld [vmem:[#allocation2 + $0xf44] sm:$0xf0]  ;;  %v14633_v48 = vld [vmem:[#allocation2 + $0xfa0] sm:$0xf] }
 0x100   :  { %10075 = vmatpush.bf16.msrb.mxu1 %v14546_v56  ;;  %10044 = vmatmul.bf16.vlgmr.msra.gmra.mxu2 %v20911_v3  ;;  %v19472_v56 = vld [vmem:[#allocation2 + $0xfc4] sm:$0xf0] }
 0x101   :  { %10088 = vmatpush.bf16.msrb.mxu2 %v14610_v57  ;;  %10057 = vmatmul.bf16.vlgmr.msra.gmra.mxu3 %v20915_v11  ;;  %v9812_v57 = vadd.f32 %v9811_v54, %v20904_v50  ;;  %v14650_v7 = vor.u32 %v19472_v56, %v14649_v55 }
 0x102   :  { %10101 = vmatpush.bf16.msrb.mxu3 %v14674_v61  ;;  %v14586_v61 = vor.u32 %v19456_v53, %v14585_v52  ;;  %v14442_v52 = vor.u32 %v19420_v27, %v14441_v25  ;;  %v14433_v53 = vld [vmem:[#allocation2 + $0xe10] sm:$0xf]  ;;  %v14617_v25 = vld [vmem:[#allocation2 + $0xf80] sm:$0xf]  ;;  %v19464_v27 = vld [vmem:[#allocation2 + $0xf84] sm:$0xf0] }
 0x103   :  { %10063 = vmatpush.bf16.msrb.mxu0 %v14474_v12  ;;  %v9825_v10 = vadd.f32 %v9824_v59, %v9812_v57  ;;  %v19438_v12 = vld [vmem:[#allocation2 + $0xeb4] sm:$0xf0]  ;;  %v9837_v31 = vpop.f32.mrf.mxu2  ;;  %v9813_v51 = vpop.f32.mrf.mxu0  ;;  %v14497_v59 = vld [vmem:[#allocation2 + $0xe90] sm:$0xf] }
 0x104   :  { %10076 = vmatpush.bf16.msrb.mxu1 %v14538_v13  ;;  %v14577_v13 = vld [vmem:[#allocation2 + $0xf30] sm:$0xf]  ;;  %v14514_v50 = vor.u32 %v19438_v12, %v14513_v2  ;;  %v9850_v47 = vpop.f32.mrf.mxu3  ;;  %v9826_v54 = vpop.f32.mrf.mxu1  ;;  %v19416_v12 = vld [vmem:[#allocation2 + $0xe04] sm:$0xf0] }
 0x105   :  { %10089 = vmatpush.bf16.msrb.mxu2 %v14602_v14  ;;  %v19454_v14 = vld [vmem:[#allocation2 + $0xf34] sm:$0xf0]  ;;  %v9838_v46 = vadd.f32 %v9837_v31, %v9825_v10  ;;  %v14625_v2 = vld [vmem:[#allocation2 + $0xf90] sm:$0xf]  ;;  %v14425_v10 = vld [vmem:[#allocation2 + $0xe00] sm:$0xf] }
 0x106   :  { %10102 = vmatpush.bf16.msrb.mxu3 %v14666_v20  ;;  %v14578_v20 = vor.u32 %v19454_v14, %v14577_v13  ;;  %v14489_v14 = vld [vmem:[#allocation2 + $0xe80] sm:$0xf]  ;;  %v19494_v31 = vld [vmem:[#allocation2 + $0x1074] sm:$0xf0]  ;;  %v14426_v51 = vor.u32 %v19416_v12, %v14425_v10 }
 0x107   :  { %10064 = vmatpush.bf16.msrb.mxu0 %v14466_v35  ;;  %v19436_v35 = vld [vmem:[#allocation2 + $0xea4] sm:$0xf0]  ;;  %v20922_v55 = vadd.f32 %v9850_v47, %v9838_v46  ;;  %v14865_v46 = vld [vmem:[#allocation2 + $0x1170] sm:$0xf]  ;;  %v19526_v47 = vld [vmem:[#allocation2 + $0x1174] sm:$0xf0]  ;;  %v14490_v54 = vor.u32 %v19432_v15, %v14489_v14 }
 0x108   :  { %10077 = vmatpush.bf16.msrb.mxu1 %v14530_v43  ;;  %v14569_v43 = vld [vmem:[#allocation2 + $0xf20] sm:$0xf]  ;;  %v14506_v56 = vor.u32 %v19436_v35, %v14505_v8  ;;  %v14737_v8 = vld [vmem:[#allocation2 + $0x1070] sm:$0xf]  ;;  %v19524_v14 = vld [vmem:[#allocation2 + $0x1164] sm:$0xf0] }
 0x109   :  { %10090 = vmatpush.bf16.msrb.mxu2 %v14594_v44  ;;  %v19452_v44 = vld [vmem:[#allocation2 + $0xf24] sm:$0xf0]  ;;  %v14801_v35 = vld [vmem:[#allocation2 + $0x10f0] sm:$0xf] }
 0x10a   :  { %10103 = vmatpush.bf16.msrb.mxu3 %v14658_v49  ;;  %v19468_v49 = vld [vmem:[#allocation2 + $0xfa4] sm:$0xf0]  ;;  %v14570_v57 = vor.u32 %v19452_v44, %v14569_v43  ;;  %v19510_v43 = vld [vmem:[#allocation2 + $0x10f4] sm:$0xf0] }
 0x10b   :  { %10065 = vmatpush.bf16.msrb.mxu0 %v14458_v58  ;;  %v19418_v58 = vld [vmem:[#allocation2 + $0xe14] sm:$0xf0]  ;;  %v9839_v44 = vpop.f32.mrf.mxu2 }
 0x10c   :  { %10078 = vmatpush.bf16.msrb.mxu1 %v14522_v60  ;;  %v19434_v60 = vld [vmem:[#allocation2 + $0xe94] sm:$0xf0]  ;;  %v14434_v13 = vor.u32 %v19418_v58, %v14433_v53  ;;  %v202_v58 = vld.sshfl [vmem:[#allocation1 + $0x30] sm:$0xff pattern:$0x73625140] }
 0x10d   :  { %10091 = vmatpush.bf16.msrb.mxu2 %v14586_v61  ;;  %v14634_v61 = vor.u32 %v19468_v49, %v14633_v48  ;;  %v9852_v48 = vpop.f32.mrf.mxu3  ;;  %v123_v49 = vld [vmem:[%s21411_s0 + $0x40] sm:$0xff]  ;;  %v19492_v44 = vld [vmem:[#allocation2 + $0x1064] sm:$0xf0]  ;;  %v20929_v15 = vpack.c.bf16 %v202_v58, %v202_v58  ;;  %v14713_v58 = vld [vmem:[#allocation2 + $0x1040] sm:$0xf] }
 0x10e   :  { %10104 = vmatpush.bf16.msrb.mxu3 %v14650_v7  ;;  %v19466_v7 = vld [vmem:[#allocation2 + $0xf94] sm:$0xf0]  ;;  %204 = vst [vmem:[#allocation1] ss:$4 sm:$0xff] %v123_v49  ;;  %v14849_v49 = vld [vmem:[#allocation2 + $0x1150] sm:$0xf] }
 0x10f   :  { %10066 = vmatpush.bf16.msrb.mxu0 %v14450_v19  ;;  %v19448_v19 = vld [vmem:[#allocation2 + $0xf04] sm:$0xf0]  ;;  %v19542_v53 = vld [vmem:[#allocation2 + $0x11f4] sm:$0xf0]  ;;  %21483 = vst [vmem:[#allocation19_spill] sm:$0xff] %v20929_v15 }
 0x110   :  { %10079 = vmatpush.bf16.msrb.mxu1 %v14514_v50  ;;  %v14498_v50 = vor.u32 %v19434_v60, %v14497_v59  ;;  %v14618_v59 = vor.u32 %v19464_v27, %v14617_v25  ;;  %v14738_v60 = vor.u32 %v19494_v31, %v14737_v8  ;;  %v19540_v25 = vld [vmem:[#allocation2 + $0x11e4] sm:$0xf0]  ;;  %v19506_v48 = vld [vmem:[#allocation2 + $0x10d4] sm:$0xf0] }
 0x111   :  { %10092 = vmatpush.bf16.msrb.mxu2 %v14578_v20  ;;  %v14562_v20 = vor.u32 %v19450_v1, %v14561_v0  ;;  %v203_v0 = vld.sshfl [vmem:[#allocation1 + $0x38] sm:$0xff pattern:$0x73625140]  ;;  %v14802_v1 = vor.u32 %v19510_v43, %v14801_v35  ;;  %v19490_v43 = vld [vmem:[#allocation2 + $0x1054] sm:$0xf0] }
 0x112   :  { %10105 = vmatpush.bf16.msrb.mxu3 %v14642_v30  ;;  %v14626_v30 = vor.u32 %v19466_v7, %v14625_v2  ;;  %v14866_v2 = vor.u32 %v19526_v47, %v14865_v46  ;;  %v14729_v7 = vld [vmem:[#allocation2 + $0x1060] sm:$0xf]  ;;  %v20933_v27 = vpack.c.bf16 %v203_v0, %v203_v0  ;;  %v14721_v35 = vld [vmem:[#allocation2 + $0x1050] sm:$0xf]  ;;  %v19504_v0 = vld [vmem:[#allocation2 + $0x10c4] sm:$0xf0] }
 0x113   :  { %10067 = vmatpush.bf16.msrb.mxu0 %v14442_v52  ;;  %v14929_v52 = vld [vmem:[#allocation2 + $0x11f0] sm:$0xf]  ;;  %v14730_v8 = vor.u32 %v19492_v44, %v14729_v7  ;;  %v14905_v44 = vld [vmem:[#allocation2 + $0x11c0] sm:$0xf] }
 0x114   :  { %10080 = vmatpush.bf16.msrb.mxu1 %v14506_v56  ;;  %v14554_v56 = vor.u32 %v19448_v19, %v14553_v17  ;;  %v14930_v10 = vor.u32 %v19542_v53, %v14929_v52  ;;  %v14921_v19 = vld [vmem:[#allocation2 + $0x11e0] sm:$0xf]  ;;  %21485 = vst [vmem:[#allocation21_spill] sm:$0xff] %v20933_v27  ;;  %v14785_v46 = vld [vmem:[#allocation2 + $0x10d0] sm:$0xf] }
 0x115   :  { %10093 = vmatpush.bf16.msrb.mxu2 %v14570_v57  ;;  %v200_v57 = vld.sshfl [vmem:[#allocation1 + $0x20] sm:$0xff pattern:$0x73625140]  ;;  %v14922_v47 = vor.u32 %v19540_v25, %v14921_v19  ;;  %v14913_v52 = vld [vmem:[#allocation2 + $0x11d0] sm:$0xf] }
 0x116   :  { %10106 = vmatpush.bf16.msrb.mxu3 %v14634_v61  ;;  %v201_v61 = vld.sshfl [vmem:[#allocation1 + $0x28] sm:$0xff pattern:$0x73625140]  ;;  %v20927_v12 = vpack.c.bf16 %v200_v57, %v200_v57  ;;  %v19538_v53 = vld [vmem:[#allocation2 + $0x11d4] sm:$0xf0] }
 0x117   :  { %10068 = vmatpush.bf16.msrb.mxu0 %v14434_v13  ;;  %v14793_v13 = vld [vmem:[#allocation2 + $0x10e0] sm:$0xf]  ;;  %v20931_v17 = vpack.c.bf16 %v201_v61, %v201_v61  ;;  %v14914_v61 = vor.u32 %v19538_v53, %v14913_v52  ;;  %v14705_v25 = vld [vmem:[#allocation2 + $0x1030] sm:$0xf] }
 0x118   :  { %10081 = vmatpush.bf16.msrb.mxu1 %v14498_v50  ;;  %v19508_v50 = vld [vmem:[#allocation2 + $0x10e4] sm:$0xf0]  ;;  %v14697_v53 = vld [vmem:[#allocation2 + $0x1020] sm:$0xf] }
 0x119   :  { %10094 = vmatpush.bf16.msrb.mxu2 %v14562_v20  ;;  %v14857_v20 = vld [vmem:[#allocation2 + $0x1160] sm:$0xf]  ;;  %21484 = vst [vmem:[#allocation20_spill] sm:$0xff] %v20931_v17 }
 0x11a   :  { %10107 = vmatpush.bf16.msrb.mxu3 %v14626_v30  ;;  %v14794_v30 = vor.u32 %v19508_v50, %v14793_v13  ;;  %v14858_v31 = vor.u32 %v19524_v14, %v14857_v20  ;;  %v19536_v13 = vld [vmem:[#allocation2 + $0x11c4] sm:$0xf0] }
 0x11b   :  { %10069 = vmatpush.bf16.msrb.mxu0 %v14426_v51  ;;  %v19522_v51 = vld [vmem:[#allocation2 + $0x1154] sm:$0xf0]  ;;  %v9863_v7 = vpop.f32.mrf.mxu0 }
 0x11c   :  { %10082 = vmatpush.bf16.msrb.mxu1 %v14490_v54  ;;  %v14722_v54 = vor.u32 %v19490_v43, %v14721_v35  ;;  %v14850_v57 = vor.u32 %v19522_v51, %v14849_v49  ;;  %v9876_v20 = vpop.f32.mrf.mxu1  ;;  %v19502_v43 = vld [vmem:[#allocation2 + $0x10b4] sm:$0xf0] }
 0x11d   :  { %10095 = vmatpush.bf16.msrb.mxu2 %v14554_v56  ;;  %v14786_v56 = vor.u32 %v19506_v48, %v14785_v46  ;;  %v14833_v46 = vld [vmem:[#allocation2 + $0x1130] sm:$0xf]  ;;  %v19534_v49 = vld [vmem:[#allocation2 + $0x11b4] sm:$0xf0] }
 0x11e   :  { %10108 = vmatpush.bf16.msrb.mxu3 %v14618_v59  ;;  %10070 = vmatmul.bf16.vlgmr.msrb.gmra.mxu0 %v20927_v12  ;;  %v19488_v59 = vld [vmem:[#allocation2 + $0x1044] sm:$0xf0]  ;;  %v14897_v48 = vld [vmem:[#allocation2 + $0x11b0] sm:$0xf] }
 0x11f   :  { %10114 = vmatpush.bf16.msra.mxu0 %v14738_v60  ;;  %10083 = vmatmul.bf16.vlgmr.msrb.gmra.mxu1 %v20931_v17  ;;  %v14777_v60 = vld [vmem:[#allocation2 + $0x10c0] sm:$0xf]  ;;  %v14714_v50 = vor.u32 %v19488_v59, %v14713_v58  ;;  %v19500_v59 = vld [vmem:[#allocation2 + $0x10a4] sm:$0xf0] }
 0x120   :  { %10127 = vmatpush.bf16.msra.mxu1 %v14802_v1  ;;  %10096 = vmatmul.bf16.vlgmr.msrb.gmra.mxu2 %v20929_v15  ;;  %v14841_v1 = vld [vmem:[#allocation2 + $0x1140] sm:$0xf]  ;;  %v14778_v14 = vor.u32 %v19504_v0, %v14777_v60  ;;  %v19556_v15 = vld [vmem:[#allocation2 + $0x1264] sm:$0xf0] }
 0x121   :  { %10140 = vmatpush.bf16.msra.mxu2 %v14866_v2  ;;  %10109 = vmatmul.bf16.vlgmr.msrb.gmra.mxu3 %v20933_v27  ;;  %v19520_v2 = vld [vmem:[#allocation2 + $0x1144] sm:$0xf0]  ;;  %v14825_v60 = vld [vmem:[#allocation2 + $0x1120] sm:$0xf] }
 0x122   :  { %10153 = vmatpush.bf16.msra.mxu3 %v14930_v10  ;;  %v9864_v10 = vadd.f32 %v9863_v7, %v20922_v55  ;;  %v14842_v19 = vor.u32 %v19520_v2, %v14841_v1  ;;  %v14889_v2 = vld [vmem:[#allocation2 + $0x11a0] sm:$0xf]  ;;  %v19532_v7 = vld [vmem:[#allocation2 + $0x11a4] sm:$0xf0] }
 0x123   :  { %10115 = vmatpush.bf16.msra.mxu0 %v14730_v8  ;;  %v19486_v8 = vld [vmem:[#allocation2 + $0x1034] sm:$0xf0]  ;;  %v9889_v58 = vpop.f32.mrf.mxu2  ;;  %v14985_v17 = vld [vmem:[#allocation2 + $0x1260] sm:$0xf] }
 0x124   :  { %10128 = vmatpush.bf16.msra.mxu1 %v14794_v30  ;;  %v14769_v30 = vld [vmem:[#allocation2 + $0x10b0] sm:$0xf]  ;;  %v9877_v35 = vadd.f32 %v9876_v20, %v9864_v10  ;;  %v14706_v51 = vor.u32 %v19486_v8, %v14705_v25  ;;  %v9902_v1 = vpop.f32.mrf.mxu3  ;;  %v19482_v25 = vld [vmem:[#allocation2 + $0x1014] sm:$0xf0] }
 0x125   :  { %10141 = vmatpush.bf16.msra.mxu2 %v14858_v31  ;;  %v14906_v31 = vor.u32 %v19536_v13, %v14905_v44  ;;  %v14770_v55 = vor.u32 %v19502_v43, %v14769_v30  ;;  %v9865_v44 = vpop.f32.mrf.mxu0  ;;  %v14689_v10 = vld [vmem:[#allocation2 + $0x1010] sm:$0xf]  ;;  %v19498_v30 = vld [vmem:[#allocation2 + $0x1094] sm:$0xf0] }
 0x126   :  { %10154 = vmatpush.bf16.msra.mxu3 %v14922_v47  ;;  %v19518_v47 = vld [vmem:[#allocation2 + $0x1134] sm:$0xf0]  ;;  %v9890_v0 = vadd.f32 %v9889_v58, %v9877_v35  ;;  %v14753_v8 = vld [vmem:[#allocation2 + $0x1090] sm:$0xf] }
 0x127   :  { %10116 = vmatpush.bf16.msra.mxu0 %v14722_v54  ;;  %v14834_v52 = vor.u32 %v19518_v47, %v14833_v46  ;;  %v19484_v54 = vld [vmem:[#allocation2 + $0x1024] sm:$0xf0]  ;;  %v14817_v35 = vld [vmem:[#allocation2 + $0x1110] sm:$0xf]  ;;  %v19514_v43 = vld [vmem:[#allocation2 + $0x1114] sm:$0xf0] }
 0x128   :  { %10129 = vmatpush.bf16.msra.mxu1 %v14786_v56  ;;  %v14761_v56 = vld [vmem:[#allocation2 + $0x10a0] sm:$0xf]  ;;  %v14698_v13 = vor.u32 %v19484_v54, %v14697_v53  ;;  %v20940_v20 = vadd.f32 %v9902_v1, %v9890_v0  ;;  %v14881_v46 = vld [vmem:[#allocation2 + $0x1190] sm:$0xf]  ;;  %v19530_v47 = vld [vmem:[#allocation2 + $0x1194] sm:$0xf0]  ;;  %v14818_v58 = vor.u32 %v19514_v43, %v14817_v35 }
 0x129   :  { %10142 = vmatpush.bf16.msra.mxu2 %v14850_v57  ;;  %v14898_v57 = vor.u32 %v19534_v49, %v14897_v48  ;;  %v14681_v48 = vld [vmem:[#allocation2 + $0x1000] sm:$0xf]  ;;  %v19480_v49 = vld [vmem:[#allocation2 + $0x1004] sm:$0xf0]  ;;  %v19558_v0 = vld [vmem:[#allocation2 + $0x1274] sm:$0xf0] }
 0x12a   :  { %10155 = vmatpush.bf16.msra.mxu3 %v14914_v61  ;;  %v19516_v61 = vld [vmem:[#allocation2 + $0x1124] sm:$0xf0]  ;;  %v14745_v53 = vld [vmem:[#allocation2 + $0x1080] sm:$0xf]  ;;  %v15057_v1 = vld [vmem:[#allocation2 + $0x12f0] sm:$0xf] }
 0x12b   :  { %10117 = vmatpush.bf16.msra.mxu0 %v14714_v50  ;;  %v9878_v50 = vpop.f32.mrf.mxu1  ;;  %v19512_v54 = vld [vmem:[#allocation2 + $0x1104] sm:$0xf0]  ;;  %v15121_v44 = vld [vmem:[#allocation2 + $0x1370] sm:$0xf] }
 0x12c   :  { %10130 = vmatpush.bf16.msra.mxu1 %v14778_v14  ;;  %v14762_v14 = vor.u32 %v19500_v59, %v14761_v56  ;;  %v14754_v56 = vor.u32 %v19498_v30, %v14753_v8  ;;  %v14873_v59 = vld [vmem:[#allocation2 + $0x1180] sm:$0xf]  ;;  %v208_v35 = vld.sshfl [vmem:[#allocation1 + $0x10] sm:$0xff pattern:$0x73625140] }
 0x12d   :  { %10143 = vmatpush.bf16.msra.mxu2 %v14842_v19  ;;  %v14826_v19 = vor.u32 %v19516_v61, %v14825_v60  ;;  %v19528_v60 = vld [vmem:[#allocation2 + $0x1184] sm:$0xf0]  ;;  %v14882_v61 = vor.u32 %v19530_v47, %v14881_v46  ;;  %v124_v50 = vld [vmem:[%s21411_s0 + $0x48] sm:$0xff] }
 0x12e   :  { %10156 = vmatpush.bf16.msra.mxu3 %v14906_v31  ;;  %v14890_v31 = vor.u32 %v19532_v7, %v14889_v2  ;;  %v19574_v2 = vld [vmem:[#allocation2 + $0x12f4] sm:$0xf0]  ;;  %v9891_v7 = vpop.f32.mrf.mxu2  ;;  %205 = vst [vmem:[#allocation1 + $0x20] ss:$4 sm:$0xff] %v124_v50  ;;  %v14874_v43 = vor.u32 %v19528_v60, %v14873_v59  ;;  %v19604_v59 = vld [vmem:[#allocation2 + $0x13e4] sm:$0xf0] }
 0x12f   :  { %10118 = vmatpush.bf16.msra.mxu0 %v14706_v51  ;;  %v14690_v51 = vor.u32 %v19482_v25, %v14689_v10  ;;  %v9904_v10 = vpop.f32.mrf.mxu3  ;;  %v19606_v25 = vld [vmem:[#allocation2 + $0x13f4] sm:$0xf0]  ;;  %v207_v47 = vld.sshfl [vmem:[#allocation1 + $0x8] sm:$0xff pattern:$0x73625140] }
 0x130   :  { %10131 = vmatpush.bf16.msra.mxu1 %v14770_v55  ;;  %v19496_v55 = vld [vmem:[#allocation2 + $0x1084] sm:$0xf0]  ;;  %v209_v7 = vld.sshfl [vmem:[#allocation1 + $0x18] sm:$0xff pattern:$0x73625140]  ;;  %v15058_v10 = vor.u32 %v19574_v2, %v15057_v1 }
 0x131   :  { %10144 = vmatpush.bf16.msra.mxu2 %v14834_v52  ;;  %v14809_v52 = vld [vmem:[#allocation2 + $0x1100] sm:$0xf]  ;;  %v14746_v8 = vor.u32 %v19496_v55, %v14745_v53  ;;  %v19588_v53 = vld [vmem:[#allocation2 + $0x1364] sm:$0xf0]  ;;  %v20947_v55 = vpack.c.bf16 %v208_v35, %v208_v35  ;;  %v20951_v60 = vpack.c.bf16 %v209_v7, %v209_v7  ;;  %v14977_v1 = vld [vmem:[#allocation2 + $0x1250] sm:$0xf] }
 0x132   :  { %10157 = vmatpush.bf16.msra.mxu3 %v14898_v57  ;;  %v14993_v57 = vld [vmem:[#allocation2 + $0x1270] sm:$0xf]  ;;  %v14810_v30 = vor.u32 %v19512_v54, %v14809_v52  ;;  %v20949_v52 = vpack.c.bf16 %v207_v47, %v207_v47  ;;  %v15177_v54 = vld [vmem:[#allocation2 + $0x13e0] sm:$0xf]  ;;  %v19554_v2 = vld [vmem:[#allocation2 + $0x1254] sm:$0xf0] }
 0x133   :  { %10119 = vmatpush.bf16.msra.mxu0 %v14698_v13  ;;  %v19590_v13 = vld [vmem:[#allocation2 + $0x1374] sm:$0xf0]  ;;  %v14994_v46 = vor.u32 %v19558_v0, %v14993_v57  ;;  %21487 = vst [vmem:[#allocation23_spill] sm:$0xff] %v20947_v55  ;;  %v14986_v57 = vor.u32 %v19556_v15, %v14985_v17  ;;  %v14978_v17 = vor.u32 %v19554_v2, %v14977_v1  ;;  %v15033_v35 = vld [vmem:[#allocation2 + $0x12c0] sm:$0xf] }
 0x134   :  { %10132 = vmatpush.bf16.msra.mxu1 %v14762_v14  ;;  %v14682_v14 = vor.u32 %v19480_v49, %v14681_v48  ;;  %v15122_v27 = vor.u32 %v19590_v13, %v15121_v44  ;;  %21488 = vst [vmem:[#allocation24_spill] sm:$0xff] %v20949_v52  ;;  %v15041_v44 = vld [vmem:[#allocation2 + $0x12d0] sm:$0xf]  ;;  %v15178_v13 = vor.u32 %v19604_v59, %v15177_v54  ;;  %v19570_v50 = vld [vmem:[#allocation2 + $0x12d4] sm:$0xf0] }
 0x135   :  { %10145 = vmatpush.bf16.msra.mxu2 %v14826_v19  ;;  %v15185_v19 = vld [vmem:[#allocation2 + $0x13f0] sm:$0xf]  ;;  %21489 = vst [vmem:[#allocation25_spill] sm:$0xff] %v20951_v60  ;;  %v19602_v15 = vld [vmem:[#allocation2 + $0x13d4] sm:$0xf0] }
 0x136   :  { %10158 = vmatpush.bf16.msra.mxu3 %v14890_v31  ;;  %v206_v31 = vld.sshfl [vmem:[#allocation1] sm:$0xff pattern:$0x73625140]  ;;  %v15186_v48 = vor.u32 %v19606_v25, %v15185_v19  ;;  %v15169_v25 = vld [vmem:[#allocation2 + $0x13d0] sm:$0xf] }
 0x137   :  { %10120 = vmatpush.bf16.msra.mxu0 %v14690_v51  ;;  %v15049_v51 = vld [vmem:[#allocation2 + $0x12e0] sm:$0xf]  ;;  %v20945_v49 = vpack.c.bf16 %v206_v31, %v206_v31  ;;  %v19586_v19 = vld [vmem:[#allocation2 + $0x1354] sm:$0xf0]  ;;  %v19552_v31 = vld [vmem:[#allocation2 + $0x1244] sm:$0xf0] }
 0x138   :  { %10133 = vmatpush.bf16.msra.mxu1 %v14754_v56  ;;  %v19572_v56 = vld [vmem:[#allocation2 + $0x12e4] sm:$0xf0]  ;;  %v15097_v47 = vld [vmem:[#allocation2 + $0x1340] sm:$0xf] }
 0x139   :  { %10146 = vmatpush.bf16.msra.mxu2 %v14818_v58  ;;  %21486 = vst [vmem:[#allocation22_spill] sm:$0xff] %v20945_v49  ;;  %v15113_v58 = vld [vmem:[#allocation2 + $0x1360] sm:$0xf]  ;;  %v19584_v7 = vld [vmem:[#allocation2 + $0x1344] sm:$0xf0] }
 0x13a   :  { %10159 = vmatpush.bf16.msra.mxu3 %v14882_v61  ;;  %v15050_v61 = vor.u32 %v19572_v56, %v15049_v51  ;;  %v15114_v0 = vor.u32 %v19588_v53, %v15113_v58  ;;  %v15161_v51 = vld [vmem:[#allocation2 + $0x13c0] sm:$0xf]  ;;  %v15098_v59 = vor.u32 %v19584_v7, %v15097_v47 }
 0x13b   :  { %10121 = vmatpush.bf16.msra.mxu0 %v14682_v14  ;;  %v15105_v14 = vld [vmem:[#allocation2 + $0x1350] sm:$0xf] }
 0x13c   :  { %10134 = vmatpush.bf16.msra.mxu1 %v14746_v8  ;;  %v15106_v8 = vor.u32 %v19586_v19, %v15105_v14  ;;  %v9928_v53 = vpop.f32.mrf.mxu1  ;;  %v15153_v14 = vld [vmem:[#allocation2 + $0x13b0] sm:$0xf]  ;;  %v19598_v19 = vld [vmem:[#allocation2 + $0x13b4] sm:$0xf0] }
 0x13d   :  { %10147 = vmatpush.bf16.msra.mxu2 %v14810_v30  ;;  %v14969_v30 = vld [vmem:[#allocation2 + $0x1240] sm:$0xf] }
 0x13e   :  { %10160 = vmatpush.bf16.msra.mxu3 %v14874_v43  ;;  %10122 = vmatmul.bf16.vlgmr.msra.gmra.mxu0 %v20945_v49  ;;  %v15170_v43 = vor.u32 %v19602_v15, %v15169_v25  ;;  %v14970_v58 = vor.u32 %v19552_v31, %v14969_v30  ;;  %v15154_v30 = vor.u32 %v19598_v19, %v15153_v14  ;;  %v19594_v14 = vld [vmem:[#allocation2 + $0x1394] sm:$0xf0]  ;;  %v14937_v19 = vld [vmem:[#allocation2 + $0x1200] sm:$0xf]  ;;  %v19620_v49 = vld [vmem:[#allocation2 + $0x1464] sm:$0xf0] }
 0x13f   :  { %10166 = vmatpush.bf16.msrb.mxu0 %v14994_v46  ;;  %10135 = vmatmul.bf16.vlgmr.msra.gmra.mxu1 %v20949_v52  ;;  %v19568_v46 = vld [vmem:[#allocation2 + $0x12c4] sm:$0xf0] }
 0x140   :  { %10179 = vmatpush.bf16.msrb.mxu1 %v15058_v10  ;;  %10148 = vmatmul.bf16.vlgmr.msra.gmra.mxu2 %v20947_v55  ;;  %v9915_v10 = vpop.f32.mrf.mxu0  ;;  %v15034_v54 = vor.u32 %v19568_v46, %v15033_v35  ;;  %v19564_v35 = vld [vmem:[#allocation2 + $0x12a4] sm:$0xf0]  ;;  %v15241_v55 = vld [vmem:[#allocation2 + $0x1460] sm:$0xf] }
 0x141   :  { %10192 = vmatpush.bf16.msrb.mxu2 %v15122_v27  ;;  %10161 = vmatmul.bf16.vlgmr.msra.gmra.mxu3 %v20951_v60  ;;  %v15042_v27 = vor.u32 %v19570_v50, %v15041_v44  ;;  %v9916_v56 = vadd.f32 %v9915_v10, %v20940_v20  ;;  %v19566_v44 = vld [vmem:[#allocation2 + $0x12b4] sm:$0xf0]  ;;  %v19580_v46 = vld [vmem:[#allocation2 + $0x1324] sm:$0xf0]  ;;  %v15145_v10 = vld [vmem:[#allocation2 + $0x13a0] sm:$0xf] }
 0x142   :  { %10205 = vmatpush.bf16.msrb.mxu3 %v15186_v48  ;;  %v19600_v48 = vld [vmem:[#allocation2 + $0x13c4] sm:$0xf0]  ;;  %v19582_v50 = vld [vmem:[#allocation2 + $0x1334] sm:$0xf0] }
 0x143   :  { %10167 = vmatpush.bf16.msrb.mxu0 %v14986_v57  ;;  %v14961_v57 = vld [vmem:[#allocation2 + $0x1230] sm:$0xf]  ;;  %v15162_v1 = vor.u32 %v19600_v48, %v15161_v51  ;;  %v9929_v2 = vadd.f32 %v9928_v53, %v9916_v56  ;;  %v9941_v31 = vpop.f32.mrf.mxu2  ;;  %v19596_v51 = vld [vmem:[#allocation2 + $0x13a4] sm:$0xf0] }
 0x144   :  { %10180 = vmatpush.bf16.msrb.mxu1 %v15050_v61  ;;  %v19550_v61 = vld [vmem:[#allocation2 + $0x1234] sm:$0xf0]  ;;  %v9954_v7 = vpop.f32.mrf.mxu3  ;;  %v9930_v53 = vpop.f32.mrf.mxu1 }
 0x145   :  { %10193 = vmatpush.bf16.msrb.mxu2 %v15114_v0  ;;  %v15025_v0 = vld [vmem:[#allocation2 + $0x12b0] sm:$0xf]  ;;  %v14962_v25 = vor.u32 %v19550_v61, %v14961_v57  ;;  %v9942_v47 = vadd.f32 %v9941_v31, %v9929_v2  ;;  %v19546_v61 = vld [vmem:[#allocation2 + $0x1214] sm:$0xf0]  ;;  %v19576_v31 = vld [vmem:[#allocation2 + $0x1304] sm:$0xf0] }
 0x146   :  { %10206 = vmatpush.bf16.msrb.mxu3 %v15178_v13  ;;  %v15089_v13 = vld [vmem:[#allocation2 + $0x1330] sm:$0xf]  ;;  %v15026_v20 = vor.u32 %v19566_v44, %v15025_v0  ;;  %v15146_v44 = vor.u32 %v19596_v51, %v15145_v10  ;;  %v19638_v51 = vld [vmem:[#allocation2 + $0x14f4] sm:$0xf0] }
 0x147   :  { %10168 = vmatpush.bf16.msrb.mxu0 %v14978_v17  ;;  %v15090_v15 = vor.u32 %v19582_v50, %v15089_v13  ;;  %v14953_v17 = vld [vmem:[#allocation2 + $0x1220] sm:$0xf]  ;;  %v15009_v0 = vld [vmem:[#allocation2 + $0x1290] sm:$0xf]  ;;  %v19578_v13 = vld [vmem:[#allocation2 + $0x1314] sm:$0xf0] }
 0x148   :  { %10181 = vmatpush.bf16.msrb.mxu1 %v15042_v27  ;;  %v19548_v27 = vld [vmem:[#allocation2 + $0x1224] sm:$0xf0]  ;;  %v9917_v48 = vpop.f32.mrf.mxu0  ;;  %v15073_v2 = vld [vmem:[#allocation2 + $0x1310] sm:$0xf] }
 0x149   :  { %10194 = vmatpush.bf16.msrb.mxu2 %v15106_v8  ;;  %v15017_v8 = vld [vmem:[#allocation2 + $0x12a0] sm:$0xf]  ;;  %v14954_v56 = vor.u32 %v19548_v27, %v14953_v17  ;;  %v15137_v50 = vld [vmem:[#allocation2 + $0x1390] sm:$0xf] }
 0x14a   :  { %10207 = vmatpush.bf16.msrb.mxu3 %v15170_v43  ;;  %v15081_v43 = vld [vmem:[#allocation2 + $0x1320] sm:$0xf]  ;;  %v15313_v10 = vld [vmem:[#allocation2 + $0x14f0] sm:$0xf] }
 0x14b   :  { %10169 = vmatpush.bf16.msrb.mxu0 %v14970_v58  ;;  %v14945_v58 = vld [vmem:[#allocation2 + $0x1210] sm:$0xf]  ;;  %v15082_v57 = vor.u32 %v19580_v46, %v15081_v43  ;;  %v15001_v27 = vld [vmem:[#allocation2 + $0x1280] sm:$0xf]  ;;  %v19592_v46 = vld [vmem:[#allocation2 + $0x1384] sm:$0xf0]  ;;  %v9943_v48 = vpop.f32.mrf.mxu2  ;;  %v15314_v60 = vor.u32 %v19638_v51, %v15313_v10 }
 0x14c   :  { %10182 = vmatpush.bf16.msrb.mxu1 %v15034_v54  ;;  %v20958_v54 = vadd.f32 %v9954_v7, %v9942_v47  ;;  %v14946_v17 = vor.u32 %v19546_v61, %v14945_v58  ;;  %v15129_v43 = vld [vmem:[#allocation2 + $0x1380] sm:$0xf]  ;;  %v15138_v47 = vor.u32 %v19594_v14, %v15137_v50  ;;  %v19622_v7 = vld [vmem:[#allocation2 + $0x1474] sm:$0xf0]  ;;  %v15377_v53 = vld [vmem:[#allocation2 + $0x1570] sm:$0xf]  ;;  %v9956_v58 = vpop.f32.mrf.mxu3 }
 0x14d   :  { %10195 = vmatpush.bf16.msrb.mxu2 %v15098_v59  ;;  %v15018_v59 = vor.u32 %v19564_v35, %v15017_v8  ;;  %v15074_v35 = vor.u32 %v19578_v13, %v15073_v2  ;;  %v125_v61 = vld [vmem:[%s21411_s0 + $0x50] sm:$0xff]  ;;  %v210_v2 = vld.sshfl [vmem:[#allocation1 + $0x20] sm:$0xff pattern:$0x73625140]  ;;  %v15130_v50 = vor.u32 %v19592_v46, %v15129_v43  ;;  %v15233_v10 = vld [vmem:[#allocation2 + $0x1450] sm:$0xf] }
 0x14e   :  { %10208 = vmatpush.bf16.msrb.mxu3 %v15162_v1  ;;  %v19562_v1 = vld [vmem:[#allocation2 + $0x1294] sm:$0xf0]  ;;  %214 = vst [vmem:[#allocation1] ss:$4 sm:$0xff] %v125_v61  ;;  %v19668_v43 = vld [vmem:[#allocation2 + $0x15e4] sm:$0xf0] }
 0x14f   :  { %10170 = vmatpush.bf16.msrb.mxu0 %v14962_v25  ;;  %v19544_v25 = vld [vmem:[#allocation2 + $0x1204] sm:$0xf0]  ;;  %v15010_v8 = vor.u32 %v19562_v1, %v15009_v0  ;;  %v19670_v0 = vld [vmem:[#allocation2 + $0x15f4] sm:$0xf0] }
 0x150   :  { %10183 = vmatpush.bf16.msrb.mxu1 %v15026_v20  ;;  %v19560_v20 = vld [vmem:[#allocation2 + $0x1284] sm:$0xf0]  ;;  %v211_v48 = vld.sshfl [vmem:[#allocation1 + $0x28] sm:$0xff pattern:$0x73625140] }
 0x151   :  { %10196 = vmatpush.bf16.msrb.mxu2 %v15090_v15  ;;  %v15065_v15 = vld [vmem:[#allocation2 + $0x1300] sm:$0xf]  ;;  %v15002_v1 = vor.u32 %v19560_v20, %v15001_v27  ;;  %v212_v13 = vld.sshfl [vmem:[#allocation1 + $0x30] sm:$0xff pattern:$0x73625140] }
 0x152   :  { %10209 = vmatpush.bf16.msrb.mxu3 %v15154_v30  ;;  %v15249_v30 = vld [vmem:[#allocation2 + $0x1470] sm:$0xf]  ;;  %v19652_v27 = vld [vmem:[#allocation2 + $0x1564] sm:$0xf0]  ;;  %v20965_v20 = vpack.c.bf16 %v212_v13, %v212_v13  ;;  %v19618_v51 = vld [vmem:[#allocation2 + $0x1454] sm:$0xf0] }
 0x153   :  { %10171 = vmatpush.bf16.msrb.mxu0 %v14954_v56  ;;  %v19654_v56 = vld [vmem:[#allocation2 + $0x1574] sm:$0xf0]  ;;  %v15250_v14 = vor.u32 %v19622_v7, %v15249_v30  ;;  %v213_v58 = vld.sshfl [vmem:[#allocation1 + $0x38] sm:$0xff pattern:$0x73625140]  ;;  %v15242_v30 = vor.u32 %v19620_v49, %v15241_v55  ;;  %v15234_v55 = vor.u32 %v19618_v51, %v15233_v10 }
 0x154   :  { %10184 = vmatpush.bf16.msrb.mxu1 %v15018_v59  ;;  %v14938_v59 = vor.u32 %v19544_v25, %v14937_v19  ;;  %v15378_v52 = vor.u32 %v19654_v56, %v15377_v53  ;;  %v20963_v25 = vpack.c.bf16 %v210_v2, %v210_v2  ;;  %21491 = vst [vmem:[#allocation27_spill] sm:$0xff] %v20965_v20  ;;  %v15297_v53 = vld [vmem:[#allocation2 + $0x14d0] sm:$0xf]  ;;  %v19634_v61 = vld [vmem:[#allocation2 + $0x14d4] sm:$0xf0] }
 0x155   :  { %10197 = vmatpush.bf16.msrb.mxu2 %v15082_v57  ;;  %v15441_v57 = vld [vmem:[#allocation2 + $0x15f0] sm:$0xf]  ;;  %v20969_v46 = vpack.c.bf16 %v213_v58, %v213_v58  ;;  %v19666_v49 = vld [vmem:[#allocation2 + $0x15d4] sm:$0xf0]  ;;  %v15289_v2 = vld [vmem:[#allocation2 + $0x14c0] sm:$0xf] }
 0x156   :  { %10210 = vmatpush.bf16.msrb.mxu3 %v15146_v44  ;;  %v15066_v44 = vor.u32 %v19576_v31, %v15065_v15  ;;  %v15442_v19 = vor.u32 %v19670_v0, %v15441_v57  ;;  %21490 = vst [vmem:[#allocation26_spill] sm:$0xff] %v20963_v25  ;;  %v20967_v15 = vpack.c.bf16 %v211_v48, %v211_v48  ;;  %v15433_v31 = vld [vmem:[#allocation2 + $0x15e0] sm:$0xf]  ;;  %v19650_v57 = vld [vmem:[#allocation2 + $0x1554] sm:$0xf0] }
 0x157   :  { %10172 = vmatpush.bf16.msrb.mxu0 %v14946_v17  ;;  %v15305_v17 = vld [vmem:[#allocation2 + $0x14e0] sm:$0xf]  ;;  %21493 = vst [vmem:[#allocation29_spill] sm:$0xff] %v20969_v46  ;;  %v15434_v56 = vor.u32 %v19668_v43, %v15433_v31  ;;  %v15425_v0 = vld [vmem:[#allocation2 + $0x15d0] sm:$0xf] }
 0x158   :  { %10185 = vmatpush.bf16.msrb.mxu1 %v15010_v8  ;;  %v19636_v8 = vld [vmem:[#allocation2 + $0x14e4] sm:$0xf0]  ;;  %21492 = vst [vmem:[#allocation28_spill] sm:$0xff] %v20967_v15  ;;  %v15426_v13 = vor.u32 %v19666_v49, %v15425_v0 }
 0x159   :  { %10198 = vmatpush.bf16.msrb.mxu2 %v15074_v35  ;;  %v15369_v35 = vld [vmem:[#allocation2 + $0x1560] sm:$0xf]  ;;  %v19648_v48 = vld [vmem:[#allocation2 + $0x1544] sm:$0xf0] }
 0x15a   :  { %10211 = vmatpush.bf16.msrb.mxu3 %v15138_v47  ;;  %v15306_v47 = vor.u32 %v19636_v8, %v15305_v17  ;;  %v15370_v7 = vor.u32 %v19652_v27, %v15369_v35  ;;  %v15417_v17 = vld [vmem:[#allocation2 + $0x15c0] sm:$0xf] }
 0x15b   :  { %10173 = vmatpush.bf16.msrb.mxu0 %v14938_v59  ;;  %v15361_v59 = vld [vmem:[#allocation2 + $0x1550] sm:$0xf]  ;;  %v9967_v58 = vpop.f32.mrf.mxu0 }
 0x15c   :  { %10186 = vmatpush.bf16.msrb.mxu1 %v15002_v1  ;;  %v15225_v1 = vld [vmem:[#allocation2 + $0x1440] sm:$0xf]  ;;  %v9968_v8 = vadd.f32 %v9967_v58, %v20958_v54  ;;  %v9980_v27 = vpop.f32.mrf.mxu1 }
 0x15d   :  { %10199 = vmatpush.bf16.msrb.mxu2 %v15066_v44  ;;  %v19616_v44 = vld [vmem:[#allocation2 + $0x1444] sm:$0xf0]  ;;  %v15401_v58 = vld [vmem:[#allocation2 + $0x15a0] sm:$0xf] }
 0x15e   :  { %10212 = vmatpush.bf16.msrb.mxu3 %v15130_v50  ;;  %10174 = vmatmul.bf16.vlgmr.msrb.gmra.mxu0 %v20963_v25  ;;  %v19632_v50 = vld [vmem:[#allocation2 + $0x14c4] sm:$0xf0]  ;;  %v15226_v35 = vor.u32 %v19616_v44, %v15225_v1  ;;  %v9981_v51 = vadd.f32 %v9980_v27, %v9968_v8 }
 0x15f   :  { %10218 = vmatpush.bf16.msra.mxu0 %v15250_v14  ;;  %10187 = vmatmul.bf16.vlgmr.msrb.gmra.mxu1 %v20967_v15  ;;  %v15353_v14 = vld [vmem:[#allocation2 + $0x1540] sm:$0xf]  ;;  %v15290_v31 = vor.u32 %v19632_v50, %v15289_v2  ;;  %v19628_v2 = vld [vmem:[#allocation2 + $0x14a4] sm:$0xf0] }
 0x160   :  { %10231 = vmatpush.bf16.msra.mxu1 %v15314_v60  ;;  %10200 = vmatmul.bf16.vlgmr.msrb.gmra.mxu2 %v20965_v20  ;;  %v15362_v60 = vor.u32 %v19650_v57, %v15361_v59  ;;  %v15354_v43 = vor.u32 %v19648_v48, %v15353_v14  ;;  %v15409_v59 = vld [vmem:[#allocation2 + $0x15b0] sm:$0xf]  ;;  %v19662_v57 = vld [vmem:[#allocation2 + $0x15b4] sm:$0xf0]  ;;  %v19644_v50 = vld [vmem:[#allocation2 + $0x1524] sm:$0xf0] }
 0x161   :  { %10244 = vmatpush.bf16.msra.mxu2 %v15378_v52  ;;  %10213 = vmatmul.bf16.vlgmr.msrb.gmra.mxu3 %v20969_v46  ;;  %v15298_v52 = vor.u32 %v19634_v61, %v15297_v53  ;;  %v19630_v53 = vld [vmem:[#allocation2 + $0x14b4] sm:$0xf0]  ;;  %v15410_v1 = vor.u32 %v19662_v57, %v15409_v59  ;;  %v15193_v57 = vld [vmem:[#allocation2 + $0x1400] sm:$0xf]  ;;  %v19684_v25 = vld [vmem:[#allocation2 + $0x1664] sm:$0xf0] }
 0x162   :  { %10257 = vmatpush.bf16.msra.mxu3 %v15442_v19  ;;  %v19664_v19 = vld [vmem:[#allocation2 + $0x15c4] sm:$0xf0]  ;;  %v19646_v61 = vld [vmem:[#allocation2 + $0x1534] sm:$0xf0]  ;;  %v15497_v20 = vld [vmem:[#allocation2 + $0x1660] sm:$0xf] }
 0x163   :  { %10219 = vmatpush.bf16.msra.mxu0 %v15242_v30  ;;  %v15217_v30 = vld [vmem:[#allocation2 + $0x1430] sm:$0xf]  ;;  %v15418_v10 = vor.u32 %v19664_v19, %v15417_v17  ;;  %v9993_v44 = vpop.f32.mrf.mxu2  ;;  %v19660_v17 = vld [vmem:[#allocation2 + $0x15a4] sm:$0xf0]  ;;  %v9969_v19 = vpop.f32.mrf.mxu0  ;;  %v19658_v59 = vld [vmem:[#allocation2 + $0x1594] sm:$0xf0] }
 0x164   :  { %10232 = vmatpush.bf16.msra.mxu1 %v15306_v47  ;;  %v19614_v47 = vld [vmem:[#allocation2 + $0x1434] sm:$0xf0]  ;;  %v9994_v14 = vadd.f32 %v9993_v44, %v9981_v51  ;;  %v10006_v48 = vpop.f32.mrf.mxu3  ;;  %v9982_v27 = vpop.f32.mrf.mxu1  ;;  %v15329_v51 = vld [vmem:[#allocation2 + $0x1510] sm:$0xf]  ;;  %v19640_v44 = vld [vmem:[#allocation2 + $0x1504] sm:$0xf0] }
 0x165   :  { %10245 = vmatpush.bf16.msra.mxu2 %v15370_v7  ;;  %v15281_v7 = vld [vmem:[#allocation2 + $0x14b0] sm:$0xf]  ;;  %v15218_v0 = vor.u32 %v19614_v47, %v15217_v30  ;;  %v19610_v47 = vld [vmem:[#allocation2 + $0x1414] sm:$0xf0] }
 0x166   :  { %10258 = vmatpush.bf16.msra.mxu3 %v15434_v56  ;;  %v15345_v56 = vld [vmem:[#allocation2 + $0x1530] sm:$0xf]  ;;  %v15282_v54 = vor.u32 %v19630_v53, %v15281_v7  ;;  %v15402_v53 = vor.u32 %v19660_v17, %v15401_v58  ;;  %v19702_v17 = vld [vmem:[#allocation2 + $0x16f4] sm:$0xf0] }
 0x167   :  { %10220 = vmatpush.bf16.msra.mxu0 %v15234_v55  ;;  %v15346_v49 = vor.u32 %v19646_v61, %v15345_v56  ;;  %v15209_v55 = vld [vmem:[#allocation2 + $0x1420] sm:$0xf]  ;;  %v15265_v7 = vld [vmem:[#allocation2 + $0x1490] sm:$0xf]  ;;  %v19642_v56 = vld [vmem:[#allocation2 + $0x1514] sm:$0xf0] }
 0x168   :  { %10233 = vmatpush.bf16.msra.mxu1 %v15298_v52  ;;  %v19612_v52 = vld [vmem:[#allocation2 + $0x1424] sm:$0xf0]  ;;  %v15393_v61 = vld [vmem:[#allocation2 + $0x1590] sm:$0xf] }
 0x169   :  { %10246 = vmatpush.bf16.msra.mxu2 %v15362_v60  ;;  %v15273_v60 = vld [vmem:[#allocation2 + $0x14a0] sm:$0xf]  ;;  %v15210_v8 = vor.u32 %v19612_v52, %v15209_v55  ;;  %v15569_v58 = vld [vmem:[#allocation2 + $0x16f0] sm:$0xf] }
 0x16a   :  { %10259 = vmatpush.bf16.msra.mxu3 %v15426_v13  ;;  %v15337_v13 = vld [vmem:[#allocation2 + $0x1520] sm:$0xf]  ;;  %v15633_v27 = vld [vmem:[#allocation2 + $0x1770] sm:$0xf]  ;;  %v15570_v46 = vor.u32 %v19702_v17, %v15569_v58  ;;  %v19682_v17 = vld [vmem:[#allocation2 + $0x1654] sm:$0xf0] }
 0x16b   :  { %10221 = vmatpush.bf16.msra.mxu0 %v15226_v35  ;;  %v15201_v35 = vld [vmem:[#allocation2 + $0x1410] sm:$0xf]  ;;  %v15338_v30 = vor.u32 %v19644_v50, %v15337_v13  ;;  %v15257_v52 = vld [vmem:[#allocation2 + $0x1480] sm:$0xf]  ;;  %v19656_v50 = vld [vmem:[#allocation2 + $0x1584] sm:$0xf0]  ;;  %v9995_v19 = vpop.f32.mrf.mxu2 }
 0x16c   :  { %10234 = vmatpush.bf16.msra.mxu1 %v15290_v31  ;;  %v20976_v31 = vadd.f32 %v10006_v48, %v9994_v14  ;;  %v15202_v55 = vor.u32 %v19610_v47, %v15201_v35  ;;  %v15385_v13 = vld [vmem:[#allocation2 + $0x1580] sm:$0xf]  ;;  %v15394_v14 = vor.u32 %v19658_v59, %v15393_v61  ;;  %v19686_v48 = vld [vmem:[#allocation2 + $0x1674] sm:$0xf0]  ;;  %v10008_v35 = vpop.f32.mrf.mxu3  ;;  %v126_v47 = vld [vmem:[%s21411_s0 + $0x58] sm:$0xff] }
 0x16d   :  { %10247 = vmatpush.bf16.msra.mxu2 %v15354_v43  ;;  %v15274_v43 = vor.u32 %v19628_v2, %v15273_v60  ;;  %v15330_v2 = vor.u32 %v19642_v56, %v15329_v51  ;;  %215 = vst [vmem:[#allocation1 + $0x20] ss:$4 sm:$0xff] %v126_v47  ;;  %v216_v51 = vld.sshfl [vmem:[#allocation1] sm:$0xff pattern:$0x73625140]  ;;  %v15386_v61 = vor.u32 %v19656_v50, %v15385_v13 }
 0x16e   :  { %10260 = vmatpush.bf16.msra.mxu3 %v15418_v10  ;;  %v19626_v10 = vld [vmem:[#allocation2 + $0x1494] sm:$0xf0]  ;;  %v218_v56 = vld.sshfl [vmem:[#allocation1 + $0x10] sm:$0xff pattern:$0x73625140] }
 0x16f   :  { %10222 = vmatpush.bf16.msra.mxu0 %v15218_v0  ;;  %v19608_v0 = vld [vmem:[#allocation2 + $0x1404] sm:$0xf0]  ;;  %v15266_v60 = vor.u32 %v19626_v10, %v15265_v7  ;;  %v19734_v7 = vld [vmem:[#allocation2 + $0x17f4] sm:$0xf0]  ;;  %v15489_v58 = vld [vmem:[#allocation2 + $0x1650] sm:$0xf] }
 0x170   :  { %10235 = vmatpush.bf16.msra.mxu1 %v15282_v54  ;;  %v19624_v54 = vld [vmem:[#allocation2 + $0x1484] sm:$0xf0]  ;;  %v217_v19 = vld.sshfl [vmem:[#allocation1 + $0x8] sm:$0xff pattern:$0x73625140] }
 0x171   :  { %10248 = vmatpush.bf16.msra.mxu2 %v15346_v49  ;;  %v15321_v49 = vld [vmem:[#allocation2 + $0x1500] sm:$0xf]  ;;  %v15258_v10 = vor.u32 %v19624_v54, %v15257_v52  ;;  %v219_v35 = vld.sshfl [vmem:[#allocation1 + $0x18] sm:$0xff pattern:$0x73625140]  ;;  %v20983_v54 = vpack.c.bf16 %v218_v56, %v218_v56 }
 0x172   :  { %10261 = vmatpush.bf16.msra.mxu3 %v15410_v1  ;;  %v15505_v1 = vld [vmem:[#allocation2 + $0x1670] sm:$0xf]  ;;  %v19716_v52 = vld [vmem:[#allocation2 + $0x1764] sm:$0xf0]  ;;  %v20987_v50 = vpack.c.bf16 %v219_v35, %v219_v35  ;;  %v19698_v47 = vld [vmem:[#allocation2 + $0x16d4] sm:$0xf0] }
 0x173   :  { %10223 = vmatpush.bf16.msra.mxu0 %v15210_v8  ;;  %v19718_v8 = vld [vmem:[#allocation2 + $0x1774] sm:$0xf0]  ;;  %v15506_v59 = vor.u32 %v19686_v48, %v15505_v1  ;;  %21495 = vst [vmem:[#allocation31_spill] sm:$0xff] %v20983_v54  ;;  %v19732_v13 = vld [vmem:[#allocation2 + $0x17e4] sm:$0xf0]  ;;  %v15498_v1 = vor.u32 %v19684_v25, %v15497_v20  ;;  %v15490_v20 = vor.u32 %v19682_v17, %v15489_v58 }
 0x174   :  { %10236 = vmatpush.bf16.msra.mxu1 %v15274_v43  ;;  %v15194_v43 = vor.u32 %v19608_v0, %v15193_v57  ;;  %v15634_v15 = vor.u32 %v19718_v8, %v15633_v27  ;;  %v20981_v0 = vpack.c.bf16 %v216_v51, %v216_v51  ;;  %21497 = vst [vmem:[#allocation33_spill] sm:$0xff] %v20987_v50  ;;  %v15553_v27 = vld [vmem:[#allocation2 + $0x16d0] sm:$0xf]  ;;  %v19730_v25 = vld [vmem:[#allocation2 + $0x17d4] sm:$0xf0] }
 0x175   :  { %10249 = vmatpush.bf16.msra.mxu2 %v15338_v30  ;;  %v15697_v30 = vld [vmem:[#allocation2 + $0x17f0] sm:$0xf]  ;;  %v15545_v51 = vld [vmem:[#allocation2 + $0x16c0] sm:$0xf] }
 0x176   :  { %10262 = vmatpush.bf16.msra.mxu3 %v15402_v53  ;;  %v15322_v53 = vor.u32 %v19640_v44, %v15321_v49  ;;  %v15698_v57 = vor.u32 %v19734_v7, %v15697_v30  ;;  %21494 = vst [vmem:[#allocation30_spill] sm:$0xff] %v20981_v0  ;;  %v20985_v49 = vpack.c.bf16 %v217_v19, %v217_v19  ;;  %v15689_v44 = vld [vmem:[#allocation2 + $0x17e0] sm:$0xf]  ;;  %v19714_v30 = vld [vmem:[#allocation2 + $0x1754] sm:$0xf0] }
 0x177   :  { %10224 = vmatpush.bf16.msra.mxu0 %v15202_v55  ;;  %v15561_v55 = vld [vmem:[#allocation2 + $0x16e0] sm:$0xf]  ;;  %v15690_v8 = vor.u32 %v19732_v13, %v15689_v44  ;;  %v15681_v7 = vld [vmem:[#allocation2 + $0x17d0] sm:$0xf]  ;;  %v19712_v19 = vld [vmem:[#allocation2 + $0x1744] sm:$0xf0] }
 0x178   :  { %10237 = vmatpush.bf16.msra.mxu1 %v15266_v60  ;;  %v19700_v60 = vld [vmem:[#allocation2 + $0x16e4] sm:$0xf0]  ;;  %21496 = vst [vmem:[#allocation32_spill] sm:$0xff] %v20985_v49  ;;  %v15682_v56 = vor.u32 %v19730_v25, %v15681_v7 }
 0x179   :  { %10250 = vmatpush.bf16.msra.mxu2 %v15330_v2  ;;  %v15625_v2 = vld [vmem:[#allocation2 + $0x1760] sm:$0xf] }
 0x17a   :  { %10263 = vmatpush.bf16.msra.mxu3 %v15394_v14  ;;  %v15562_v14 = vor.u32 %v19700_v60, %v15561_v55  ;;  %v15626_v48 = vor.u32 %v19716_v52, %v15625_v2  ;;  %v15673_v55 = vld [vmem:[#allocation2 + $0x17c0] sm:$0xf] }
 0x17b   :  { %10225 = vmatpush.bf16.msra.mxu0 %v15194_v43  ;;  %v15617_v43 = vld [vmem:[#allocation2 + $0x1750] sm:$0xf]  ;;  %v10019_v35 = vpop.f32.mrf.mxu0 }
 0x17c   :  { %10238 = vmatpush.bf16.msra.mxu1 %v15258_v10  ;;  %v15481_v10 = vld [vmem:[#allocation2 + $0x1640] sm:$0xf]  ;;  %v10020_v60 = vadd.f32 %v10019_v35, %v20976_v31  ;;  %v10032_v52 = vpop.f32.mrf.mxu1 }
 0x17d   :  { %10251 = vmatpush.bf16.msra.mxu2 %v15322_v53  ;;  %v19680_v53 = vld [vmem:[#allocation2 + $0x1644] sm:$0xf0]  ;;  %v15657_v35 = vld [vmem:[#allocation2 + $0x17a0] sm:$0xf] }
 0x17e   :  { %10264 = vmatpush.bf16.msra.mxu3 %v15386_v61  ;;  %10226 = vmatmul.bf16.vlgmr.msra.gmra.mxu0 %v20981_v0  ;;  %v19696_v61 = vld [vmem:[#allocation2 + $0x16c4] sm:$0xf0]  ;;  %v15482_v2 = vor.u32 %v19680_v53, %v15481_v10  ;;  %v10033_v17 = vadd.f32 %v10032_v52, %v10020_v60 }
 0x17f   :  { %10270 = vmatpush.bf16.msrb.mxu0 %v15506_v59  ;;  %10239 = vmatmul.bf16.vlgmr.msra.gmra.mxu1 %v20985_v49  ;;  %v15609_v59 = vld [vmem:[#allocation2 + $0x1740] sm:$0xf]  ;;  %v15546_v44 = vor.u32 %v19696_v61, %v15545_v51  ;;  %v19692_v51 = vld [vmem:[#allocation2 + $0x16a4] sm:$0xf0] }
 0x180   :  { %10283 = vmatpush.bf16.msrb.mxu1 %v15570_v46  ;;  %10252 = vmatmul.bf16.vlgmr.msra.gmra.mxu2 %v20983_v54  ;;  %v15618_v46 = vor.u32 %v19714_v30, %v15617_v43  ;;  %v15610_v13 = vor.u32 %v19712_v19, %v15609_v59  ;;  %v15665_v43 = vld [vmem:[#allocation2 + $0x17b0] sm:$0xf]  ;;  %v19726_v30 = vld [vmem:[#allocation2 + $0x17b4] sm:$0xf0]  ;;  %v19708_v61 = vld [vmem:[#allocation2 + $0x1724] sm:$0xf0] }
 0x181   :  { %10296 = vmatpush.bf16.msrb.mxu2 %v15634_v15  ;;  %10265 = vmatmul.bf16.vlgmr.msra.gmra.mxu3 %v20987_v50  ;;  %v15554_v15 = vor.u32 %v19698_v47, %v15553_v27  ;;  %v19694_v27 = vld [vmem:[#allocation2 + $0x16b4] sm:$0xf0]  ;;  %v15666_v10 = vor.u32 %v19726_v30, %v15665_v43  ;;  %v15449_v30 = vld [vmem:[#allocation2 + $0x1600] sm:$0xf]  ;;  %v19748_v0 = vld [vmem:[#allocation2 + $0x1864] sm:$0xf0] }
 0x182   :  { %10309 = vmatpush.bf16.msrb.mxu3 %v15698_v57  ;;  %v19728_v57 = vld [vmem:[#allocation2 + $0x17c4] sm:$0xf0]  ;;  %v19710_v47 = vld [vmem:[#allocation2 + $0x1734] sm:$0xf0]  ;;  %v15753_v54 = vld [vmem:[#allocation2 + $0x1860] sm:$0xf] }
 0x183   :  { %10271 = vmatpush.bf16.msrb.mxu0 %v15498_v1  ;;  %v15473_v1 = vld [vmem:[#allocation2 + $0x1630] sm:$0xf]  ;;  %v15674_v58 = vor.u32 %v19728_v57, %v15673_v55  ;;  %v10045_v53 = vpop.f32.mrf.mxu2  ;;  %v19724_v55 = vld [vmem:[#allocation2 + $0x17a4] sm:$0xf0]  ;;  %v10021_v57 = vpop.f32.mrf.mxu0  ;;  %v19722_v43 = vld [vmem:[#allocation2 + $0x1794] sm:$0xf0] }
 0x184   :  { %10284 = vmatpush.bf16.msrb.mxu1 %v15562_v14  ;;  %v19678_v14 = vld [vmem:[#allocation2 + $0x1634] sm:$0xf0]  ;;  %v10046_v59 = vadd.f32 %v10045_v53, %v10033_v17  ;;  %v10058_v19 = vpop.f32.mrf.mxu3  ;;  %v10034_v52 = vpop.f32.mrf.mxu1  ;;  %v15585_v17 = vld [vmem:[#allocation2 + $0x1710] sm:$0xf]  ;;  %v19704_v53 = vld [vmem:[#allocation2 + $0x1704] sm:$0xf0] }
 0x185   :  { %10297 = vmatpush.bf16.msrb.mxu2 %v15626_v48  ;;  %v15537_v48 = vld [vmem:[#allocation2 + $0x16b0] sm:$0xf]  ;;  %v15474_v7 = vor.u32 %v19678_v14, %v15473_v1  ;;  %v19674_v14 = vld [vmem:[#allocation2 + $0x1614] sm:$0xf0] }
 0x186   :  { %10310 = vmatpush.bf16.msrb.mxu3 %v15690_v8  ;;  %v15601_v8 = vld [vmem:[#allocation2 + $0x1730] sm:$0xf]  ;;  %v15538_v31 = vor.u32 %v19694_v27, %v15537_v48  ;;  %v15658_v27 = vor.u32 %v19724_v55, %v15657_v35  ;;  %v19766_v55 = vld [vmem:[#allocation2 + $0x18f4] sm:$0xf0] }
 0x187   :  { %10272 = vmatpush.bf16.msrb.mxu0 %v15490_v20  ;;  %v15602_v25 = vor.u32 %v19710_v47, %v15601_v8  ;;  %v15465_v20 = vld [vmem:[#allocation2 + $0x1620] sm:$0xf]  ;;  %v15521_v48 = vld [vmem:[#allocation2 + $0x1690] sm:$0xf]  ;;  %v19706_v8 = vld [vmem:[#allocation2 + $0x1714] sm:$0xf0] }
 0x188   :  { %10285 = vmatpush.bf16.msrb.mxu1 %v15554_v15  ;;  %v19676_v15 = vld [vmem:[#allocation2 + $0x1624] sm:$0xf0]  ;;  %v15649_v47 = vld [vmem:[#allocation2 + $0x1790] sm:$0xf] }
 0x189   :  { %10298 = vmatpush.bf16.msrb.mxu2 %v15618_v46  ;;  %v15529_v46 = vld [vmem:[#allocation2 + $0x16a0] sm:$0xf]  ;;  %v15466_v60 = vor.u32 %v19676_v15, %v15465_v20  ;;  %v15825_v35 = vld [vmem:[#allocation2 + $0x18f0] sm:$0xf] }
 0x18a   :  { %10311 = vmatpush.bf16.msrb.mxu3 %v15682_v56  ;;  %v15593_v56 = vld [vmem:[#allocation2 + $0x1720] sm:$0xf]  ;;  %v15889_v52 = vld [vmem:[#allocation2 + $0x1970] sm:$0xf]  ;;  %v15826_v50 = vor.u32 %v19766_v55, %v15825_v35  ;;  %v19746_v55 = vld [vmem:[#allocation2 + $0x1854] sm:$0xf0] }
 0x18b   :  { %10273 = vmatpush.bf16.msrb.mxu0 %v15482_v2  ;;  %v15457_v2 = vld [vmem:[#allocation2 + $0x1610] sm:$0xf]  ;;  %v15594_v1 = vor.u32 %v19708_v61, %v15593_v56  ;;  %v15513_v15 = vld [vmem:[#allocation2 + $0x1680] sm:$0xf]  ;;  %v19720_v61 = vld [vmem:[#allocation2 + $0x1784] sm:$0xf0]  ;;  %v10047_v57 = vpop.f32.mrf.mxu2 }
 0x18c   :  { %10286 = vmatpush.bf16.msrb.mxu1 %v15546_v44  ;;  %v20994_v44 = vadd.f32 %v10058_v19, %v10046_v59  ;;  %v15458_v20 = vor.u32 %v19674_v14, %v15457_v2  ;;  %v15641_v56 = vld [vmem:[#allocation2 + $0x1780] sm:$0xf]  ;;  %v15650_v59 = vor.u32 %v19722_v43, %v15649_v47  ;;  %v19750_v19 = vld [vmem:[#allocation2 + $0x1874] sm:$0xf0]  ;;  %v10060_v2 = vpop.f32.mrf.mxu3  ;;  %v15745_v35 = vld [vmem:[#allocation2 + $0x1850] sm:$0xf] }
 0x18d   :  { %10299 = vmatpush.bf16.msrb.mxu2 %v15610_v13  ;;  %v15530_v13 = vor.u32 %v19692_v51, %v15529_v46  ;;  %v15586_v51 = vor.u32 %v19706_v8, %v15585_v17  ;;  %v127_v14 = vld [vmem:[%s21411_s0 + $0x60] sm:$0xff]  ;;  %v222_v8 = vld.sshfl [vmem:[#allocation1 + $0x30] sm:$0xff pattern:$0x73625140]  ;;  %v15642_v47 = vor.u32 %v19720_v61, %v15641_v56 }
 0x18e   :  { %10312 = vmatpush.bf16.msrb.mxu3 %v15674_v58  ;;  %v19690_v58 = vld [vmem:[#allocation2 + $0x1694] sm:$0xf0]  ;;  %224 = vst [vmem:[#allocation1] ss:$4 sm:$0xff] %v127_v14  ;;  %v19796_v56 = vld [vmem:[#allocation2 + $0x19e4] sm:$0xf0] }
 0x18f   :  { %10274 = vmatpush.bf16.msrb.mxu0 %v15474_v7  ;;  %v19672_v7 = vld [vmem:[#allocation2 + $0x1604] sm:$0xf0]  ;;  %v15522_v46 = vor.u32 %v19690_v58, %v15521_v48  ;;  %v19798_v48 = vld [vmem:[#allocation2 + $0x19f4] sm:$0xf0] }
 0x190   :  { %10287 = vmatpush.bf16.msrb.mxu1 %v15538_v31  ;;  %v19688_v31 = vld [vmem:[#allocation2 + $0x1684] sm:$0xf0]  ;;  %v220_v17 = vld.sshfl [vmem:[#allocation1 + $0x20] sm:$0xff pattern:$0x73625140] }
 0x191   :  { %10300 = vmatpush.bf16.msrb.mxu2 %v15602_v25  ;;  %v15577_v25 = vld [vmem:[#allocation2 + $0x1700] sm:$0xf]  ;;  %v15514_v58 = vor.u32 %v19688_v31, %v15513_v15  ;;  %v223_v2 = vld.sshfl [vmem:[#allocation1 + $0x38] sm:$0xff pattern:$0x73625140]  ;;  %v21001_v31 = vpack.c.bf16 %v222_v8, %v222_v8 }
 0x192   :  { %10313 = vmatpush.bf16.msrb.mxu3 %v15666_v10  ;;  %v15761_v10 = vld [vmem:[#allocation2 + $0x1870] sm:$0xf]  ;;  %v221_v57 = vld.sshfl [vmem:[#allocation1 + $0x28] sm:$0xff pattern:$0x73625140]  ;;  %v21005_v61 = vpack.c.bf16 %v223_v2, %v223_v2 }
 0x193   :  { %10275 = vmatpush.bf16.msrb.mxu0 %v15466_v60  ;;  %v19782_v60 = vld [vmem:[#allocation2 + $0x1974] sm:$0xf0]  ;;  %v15762_v43 = vor.u32 %v19750_v19, %v15761_v10  ;;  %v19780_v15 = vld [vmem:[#allocation2 + $0x1964] sm:$0xf0]  ;;  %21499 = vst [vmem:[#allocation35_spill] sm:$0xff] %v21001_v31  ;;  %v15754_v10 = vor.u32 %v19748_v0, %v15753_v54  ;;  %v15746_v54 = vor.u32 %v19746_v55, %v15745_v35 }
 0x194   :  { %10288 = vmatpush.bf16.msrb.mxu1 %v15530_v13  ;;  %v15450_v13 = vor.u32 %v19672_v7, %v15449_v30  ;;  %v15890_v49 = vor.u32 %v19782_v60, %v15889_v52  ;;  %v20999_v7 = vpack.c.bf16 %v220_v17, %v220_v17  ;;  %21501 = vst [vmem:[#allocation37_spill] sm:$0xff] %v21005_v61  ;;  %v15809_v52 = vld [vmem:[#allocation2 + $0x18d0] sm:$0xf]  ;;  %v19762_v14 = vld [vmem:[#allocation2 + $0x18d4] sm:$0xf0] }
 0x195   :  { %10301 = vmatpush.bf16.msrb.mxu2 %v15594_v1  ;;  %v15953_v1 = vld [vmem:[#allocation2 + $0x19f0] sm:$0xf]  ;;  %v19794_v0 = vld [vmem:[#allocation2 + $0x19d4] sm:$0xf0]  ;;  %v15801_v17 = vld [vmem:[#allocation2 + $0x18c0] sm:$0xf] }
 0x196   :  { %10314 = vmatpush.bf16.msrb.mxu3 %v15658_v27  ;;  %v15578_v27 = vor.u32 %v19704_v53, %v15577_v25  ;;  %v15954_v30 = vor.u32 %v19798_v48, %v15953_v1  ;;  %21498 = vst [vmem:[#allocation34_spill] sm:$0xff] %v20999_v7  ;;  %v21003_v25 = vpack.c.bf16 %v221_v57, %v221_v57  ;;  %v15945_v53 = vld [vmem:[#allocation2 + $0x19e0] sm:$0xf]  ;;  %v19778_v1 = vld [vmem:[#allocation2 + $0x1954] sm:$0xf0] }
 0x197   :  { %10276 = vmatpush.bf16.msrb.mxu0 %v15458_v20  ;;  %v15817_v20 = vld [vmem:[#allocation2 + $0x18e0] sm:$0xf]  ;;  %v15946_v60 = vor.u32 %v19796_v56, %v15945_v53  ;;  %v15937_v48 = vld [vmem:[#allocation2 + $0x19d0] sm:$0xf]  ;;  %v19776_v57 = vld [vmem:[#allocation2 + $0x1944] sm:$0xf0] }
 0x198   :  { %10289 = vmatpush.bf16.msrb.mxu1 %v15522_v46  ;;  %v19764_v46 = vld [vmem:[#allocation2 + $0x18e4] sm:$0xf0]  ;;  %21500 = vst [vmem:[#allocation36_spill] sm:$0xff] %v21003_v25  ;;  %v15938_v8 = vor.u32 %v19794_v0, %v15937_v48 }
 0x199   :  { %10302 = vmatpush.bf16.msrb.mxu2 %v15586_v51  ;;  %v15881_v51 = vld [vmem:[#allocation2 + $0x1960] sm:$0xf] }
 0x19a   :  { %10315 = vmatpush.bf16.msrb.mxu3 %v15650_v59  ;;  %v15818_v59 = vor.u32 %v19764_v46, %v15817_v20  ;;  %v15882_v19 = vor.u32 %v19780_v15, %v15881_v51  ;;  %v15929_v20 = vld [vmem:[#allocation2 + $0x19c0] sm:$0xf] }
 0x19b   :  { %10277 = vmatpush.bf16.msrb.mxu0 %v15450_v13  ;;  %v15873_v13 = vld [vmem:[#allocation2 + $0x1950] sm:$0xf]  ;;  %v10071_v2 = vpop.f32.mrf.mxu0 }
 0x19c   :  { %10290 = vmatpush.bf16.msrb.mxu1 %v15514_v58  ;;  %v15737_v58 = vld [vmem:[#allocation2 + $0x1840] sm:$0xf]  ;;  %v10072_v46 = vadd.f32 %v10071_v2, %v20994_v44  ;;  %v10084_v15 = vpop.f32.mrf.mxu1 }
 0x19d   :  { %10303 = vmatpush.bf16.msrb.mxu2 %v15578_v27  ;;  %v19744_v27 = vld [vmem:[#allocation2 + $0x1844] sm:$0xf0]  ;;  %v15913_v2 = vld [vmem:[#allocation2 + $0x19a0] sm:$0xf] }
 0x19e   :  { %10316 = vmatpush.bf16.msrb.mxu3 %v15642_v47  ;;  %10278 = vmatmul.bf16.vlgmr.msrb.gmra.mxu0 %v20999_v7  ;;  %v19760_v47 = vld [vmem:[#allocation2 + $0x18c4] sm:$0xf0]  ;;  %v15738_v51 = vor.u32 %v19744_v27, %v15737_v58  ;;  %v10085_v55 = vadd.f32 %v10084_v15, %v10072_v46 }
 0x19f   :  { %10322 = vmatpush.bf16.msra.mxu0 %v15762_v43  ;;  %10291 = vmatmul.bf16.vlgmr.msrb.gmra.mxu1 %v21003_v25  ;;  %v15865_v43 = vld [vmem:[#allocation2 + $0x1940] sm:$0xf]  ;;  %v15802_v53 = vor.u32 %v19760_v47, %v15801_v17  ;;  %v19756_v17 = vld [vmem:[#allocation2 + $0x18a4] sm:$0xf0] }
 0x1a0   :  { %10335 = vmatpush.bf16.msra.mxu1 %v15826_v50  ;;  %10304 = vmatmul.bf16.vlgmr.msrb.gmra.mxu2 %v21001_v31  ;;  %v15874_v50 = vor.u32 %v19778_v1, %v15873_v13  ;;  %v15866_v56 = vor.u32 %v19776_v57, %v15865_v43  ;;  %v15921_v13 = vld [vmem:[#allocation2 + $0x19b0] sm:$0xf]  ;;  %v19790_v1 = vld [vmem:[#allocation2 + $0x19b4] sm:$0xf0]  ;;  %v19772_v47 = vld [vmem:[#allocation2 + $0x1924] sm:$0xf0] }
 0x1a1   :  { %10348 = vmatpush.bf16.msra.mxu2 %v15890_v49  ;;  %10317 = vmatmul.bf16.vlgmr.msrb.gmra.mxu3 %v21005_v61  ;;  %v15810_v49 = vor.u32 %v19762_v14, %v15809_v52  ;;  %v19758_v52 = vld [vmem:[#allocation2 + $0x18b4] sm:$0xf0]  ;;  %v15922_v58 = vor.u32 %v19790_v1, %v15921_v13  ;;  %v15705_v1 = vld [vmem:[#allocation2 + $0x1800] sm:$0xf]  ;;  %v19812_v7 = vld [vmem:[#allocation2 + $0x1a64] sm:$0xf0] }
 0x1a2   :  { %10361 = vmatpush.bf16.msra.mxu3 %v15954_v30  ;;  %v19792_v30 = vld [vmem:[#allocation2 + $0x19c4] sm:$0xf0]  ;;  %v19774_v14 = vld [vmem:[#allocation2 + $0x1934] sm:$0xf0]  ;;  %v16009_v31 = vld [vmem:[#allocation2 + $0x1a60] sm:$0xf] }
 0x1a3   :  { %10323 = vmatpush.bf16.msra.mxu0 %v15754_v10  ;;  %v15729_v10 = vld [vmem:[#allocation2 + $0x1830] sm:$0xf]  ;;  %v15930_v35 = vor.u32 %v19792_v30, %v15929_v20  ;;  %v10097_v27 = vpop.f32.mrf.mxu2  ;;  %v19788_v20 = vld [vmem:[#allocation2 + $0x19a4] sm:$0xf0]  ;;  %v10073_v30 = vpop.f32.mrf.mxu0  ;;  %v19786_v13 = vld [vmem:[#allocation2 + $0x1994] sm:$0xf0] }
 0x1a4   :  { %10336 = vmatpush.bf16.msra.mxu1 %v15818_v59  ;;  %v19742_v59 = vld [vmem:[#allocation2 + $0x1834] sm:$0xf0]  ;;  %v10098_v43 = vadd.f32 %v10097_v27, %v10085_v55  ;;  %v10110_v57 = vpop.f32.mrf.mxu3  ;;  %v10086_v15 = vpop.f32.mrf.mxu1  ;;  %v15841_v55 = vld [vmem:[#allocation2 + $0x1910] sm:$0xf]  ;;  %v19768_v27 = vld [vmem:[#allocation2 + $0x1904] sm:$0xf0] }
 0x1a5   :  { %10349 = vmatpush.bf16.msra.mxu2 %v15882_v19  ;;  %v15793_v19 = vld [vmem:[#allocation2 + $0x18b0] sm:$0xf]  ;;  %v15730_v48 = vor.u32 %v19742_v59, %v15729_v10  ;;  %v19738_v59 = vld [vmem:[#allocation2 + $0x1814] sm:$0xf0] }
 0x1a6   :  { %10362 = vmatpush.bf16.msra.mxu3 %v15946_v60  ;;  %v15857_v60 = vld [vmem:[#allocation2 + $0x1930] sm:$0xf]  ;;  %v15794_v44 = vor.u32 %v19758_v52, %v15793_v19  ;;  %v15914_v52 = vor.u32 %v19788_v20, %v15913_v2  ;;  %v19830_v20 = vld [vmem:[#allocation2 + $0x1af4] sm:$0xf0] }
 0x1a7   :  { %10324 = vmatpush.bf16.msra.mxu0 %v15746_v54  ;;  %v15858_v0 = vor.u32 %v19774_v14, %v15857_v60  ;;  %v15721_v54 = vld [vmem:[#allocation2 + $0x1820] sm:$0xf]  ;;  %v15777_v19 = vld [vmem:[#allocation2 + $0x1890] sm:$0xf]  ;;  %v19770_v60 = vld [vmem:[#allocation2 + $0x1914] sm:$0xf0] }
 0x1a8   :  { %10337 = vmatpush.bf16.msra.mxu1 %v15810_v49  ;;  %v19740_v49 = vld [vmem:[#allocation2 + $0x1824] sm:$0xf0]  ;;  %v15905_v14 = vld [vmem:[#allocation2 + $0x1990] sm:$0xf] }
 0x1a9   :  { %10350 = vmatpush.bf16.msra.mxu2 %v15874_v50  ;;  %v15785_v50 = vld [vmem:[#allocation2 + $0x18a0] sm:$0xf]  ;;  %v15722_v46 = vor.u32 %v19740_v49, %v15721_v54  ;;  %v16081_v2 = vld [vmem:[#allocation2 + $0x1af0] sm:$0xf] }
 0x1aa   :  { %10363 = vmatpush.bf16.msra.mxu3 %v15938_v8  ;;  %v15849_v8 = vld [vmem:[#allocation2 + $0x1920] sm:$0xf]  ;;  %v16145_v15 = vld [vmem:[#allocation2 + $0x1b70] sm:$0xf]  ;;  %v16082_v61 = vor.u32 %v19830_v20, %v16081_v2  ;;  %v19810_v20 = vld [vmem:[#allocation2 + $0x1a54] sm:$0xf0] }
 0x1ab   :  { %10325 = vmatpush.bf16.msra.mxu0 %v15738_v51  ;;  %v15713_v51 = vld [vmem:[#allocation2 + $0x1810] sm:$0xf]  ;;  %v15850_v10 = vor.u32 %v19772_v47, %v15849_v8  ;;  %v15769_v49 = vld [vmem:[#allocation2 + $0x1880] sm:$0xf]  ;;  %v19784_v47 = vld [vmem:[#allocation2 + $0x1984] sm:$0xf0]  ;;  %v10099_v30 = vpop.f32.mrf.mxu2 }
 0x1ac   :  { %10338 = vmatpush.bf16.msra.mxu1 %v15802_v53  ;;  %v21012_v53 = vadd.f32 %v10110_v57, %v10098_v43  ;;  %v15714_v54 = vor.u32 %v19738_v59, %v15713_v51  ;;  %v15897_v8 = vld [vmem:[#allocation2 + $0x1980] sm:$0xf]  ;;  %v15906_v43 = vor.u32 %v19786_v13, %v15905_v14  ;;  %v19814_v57 = vld [vmem:[#allocation2 + $0x1a74] sm:$0xf0]  ;;  %v10112_v51 = vpop.f32.mrf.mxu3  ;;  %v16001_v2 = vld [vmem:[#allocation2 + $0x1a50] sm:$0xf] }
 0x1ad   :  { %10351 = vmatpush.bf16.msra.mxu2 %v15866_v56  ;;  %v15786_v56 = vor.u32 %v19756_v17, %v15785_v50  ;;  %v15842_v17 = vor.u32 %v19770_v60, %v15841_v55  ;;  %v128_v59 = vld [vmem:[%s21411_s0 + $0x68] sm:$0xff]  ;;  %v226_v55 = vld.sshfl [vmem:[#allocation1] sm:$0xff pattern:$0x73625140]  ;;  %v15898_v14 = vor.u32 %v19784_v47, %v15897_v8  ;;  %v19860_v8 = vld [vmem:[#allocation2 + $0x1be4] sm:$0xf0] }
 0x1ae   :  { %10364 = vmatpush.bf16.msra.mxu3 %v15930_v35  ;;  %v19754_v35 = vld [vmem:[#allocation2 + $0x1894] sm:$0xf0]  ;;  %225 = vst [vmem:[#allocation1 + $0x20] ss:$4 sm:$0xff] %v128_v59 }
 0x1af   :  { %10326 = vmatpush.bf16.msra.mxu0 %v15730_v48  ;;  %v19736_v48 = vld [vmem:[#allocation2 + $0x1804] sm:$0xf0]  ;;  %v15778_v50 = vor.u32 %v19754_v35, %v15777_v19  ;;  %v19862_v19 = vld [vmem:[#allocation2 + $0x1bf4] sm:$0xf0] }
 0x1b0   :  { %10339 = vmatpush.bf16.msra.mxu1 %v15794_v44  ;;  %v19752_v44 = vld [vmem:[#allocation2 + $0x1884] sm:$0xf0]  ;;  %v227_v30 = vld.sshfl [vmem:[#allocation1 + $0x8] sm:$0xff pattern:$0x73625140] }
 0x1b1   :  { %10352 = vmatpush.bf16.msra.mxu2 %v15858_v0  ;;  %v15833_v0 = vld [vmem:[#allocation2 + $0x1900] sm:$0xf]  ;;  %v15770_v35 = vor.u32 %v19752_v44, %v15769_v49  ;;  %v228_v60 = vld.sshfl [vmem:[#allocation1 + $0x10] sm:$0xff pattern:$0x73625140] }
 0x1b2   :  { %10365 = vmatpush.bf16.msra.mxu3 %v15922_v58  ;;  %v16017_v58 = vld [vmem:[#allocation2 + $0x1a70] sm:$0xf]  ;;  %v19844_v49 = vld [vmem:[#allocation2 + $0x1b64] sm:$0xf0]  ;;  %v21019_v44 = vpack.c.bf16 %v228_v60, %v228_v60  ;;  %v19826_v59 = vld [vmem:[#allocation2 + $0x1ad4] sm:$0xf0] }
 0x1b3   :  { %10327 = vmatpush.bf16.msra.mxu0 %v15722_v46  ;;  %v19846_v46 = vld [vmem:[#allocation2 + $0x1b74] sm:$0xf0]  ;;  %v16018_v13 = vor.u32 %v19814_v57, %v16017_v58  ;;  %v229_v51 = vld.sshfl [vmem:[#allocation1 + $0x18] sm:$0xff pattern:$0x73625140]  ;;  %v16010_v58 = vor.u32 %v19812_v7, %v16009_v31  ;;  %v16002_v31 = vor.u32 %v19810_v20, %v16001_v2 }
 0x1b4   :  { %10340 = vmatpush.bf16.msra.mxu1 %v15786_v56  ;;  %v15706_v56 = vor.u32 %v19736_v48, %v15705_v1  ;;  %v16146_v25 = vor.u32 %v19846_v46, %v16145_v15  ;;  %v21017_v48 = vpack.c.bf16 %v226_v55, %v226_v55  ;;  %21503 = vst [vmem:[#allocation39_spill] sm:$0xff] %v21019_v44  ;;  %v16065_v15 = vld [vmem:[#allocation2 + $0x1ad0] sm:$0xf]  ;;  %v19858_v7 = vld [vmem:[#allocation2 + $0x1bd4] sm:$0xf0] }
 0x1b5   :  { %10353 = vmatpush.bf16.msra.mxu2 %v15850_v10  ;;  %v16209_v10 = vld [vmem:[#allocation2 + $0x1bf0] sm:$0xf]  ;;  %v21023_v47 = vpack.c.bf16 %v229_v51, %v229_v51  ;;  %v16057_v55 = vld [vmem:[#allocation2 + $0x1ac0] sm:$0xf] }
 0x1b6   :  { %10366 = vmatpush.bf16.msra.mxu3 %v15914_v52  ;;  %v15834_v52 = vor.u32 %v19768_v27, %v15833_v0  ;;  %v16210_v1 = vor.u32 %v19862_v19, %v16209_v10  ;;  %21502 = vst [vmem:[#allocation38_spill] sm:$0xff] %v21017_v48  ;;  %v21021_v0 = vpack.c.bf16 %v227_v30, %v227_v30  ;;  %v16201_v27 = vld [vmem:[#allocation2 + $0x1be0] sm:$0xf]  ;;  %v19842_v10 = vld [vmem:[#allocation2 + $0x1b54] sm:$0xf0] }
 0x1b7   :  { %10328 = vmatpush.bf16.msra.mxu0 %v15714_v54  ;;  %v16073_v54 = vld [vmem:[#allocation2 + $0x1ae0] sm:$0xf]  ;;  %21505 = vst [vmem:[#allocation41_spill] sm:$0xff] %v21023_v47  ;;  %v16202_v46 = vor.u32 %v19860_v8, %v16201_v27  ;;  %v16193_v19 = vld [vmem:[#allocation2 + $0x1bd0] sm:$0xf] }
 0x1b8   :  { %10341 = vmatpush.bf16.msra.mxu1 %v15778_v50  ;;  %v19828_v50 = vld [vmem:[#allocation2 + $0x1ae4] sm:$0xf0]  ;;  %21504 = vst [vmem:[#allocation40_spill] sm:$0xff] %v21021_v0  ;;  %v16194_v60 = vor.u32 %v19858_v7, %v16193_v19 }
 0x1b9   :  { %10354 = vmatpush.bf16.msra.mxu2 %v15842_v17  ;;  %v16137_v17 = vld [vmem:[#allocation2 + $0x1b60] sm:$0xf]  ;;  %v19840_v30 = vld [vmem:[#allocation2 + $0x1b44] sm:$0xf0] }
 0x1ba   :  { %10367 = vmatpush.bf16.msra.mxu3 %v15906_v43  ;;  %v16074_v43 = vor.u32 %v19828_v50, %v16073_v54  ;;  %v16138_v57 = vor.u32 %v19844_v49, %v16137_v17  ;;  %v16185_v54 = vld [vmem:[#allocation2 + $0x1bc0] sm:$0xf] }
 0x1bb   :  { %10329 = vmatpush.bf16.msra.mxu0 %v15706_v56  ;;  %v16129_v56 = vld [vmem:[#allocation2 + $0x1b50] sm:$0xf]  ;;  %v10123_v51 = vpop.f32.mrf.mxu0 }
 0x1bc   :  { %10342 = vmatpush.bf16.msra.mxu1 %v15770_v35  ;;  %v15993_v35 = vld [vmem:[#allocation2 + $0x1a40] sm:$0xf]  ;;  %v10124_v50 = vadd.f32 %v10123_v51, %v21012_v53  ;;  %v10136_v49 = vpop.f32.mrf.mxu1 }
 0x1bd   :  { %10355 = vmatpush.bf16.msra.mxu2 %v15834_v52  ;;  %v19808_v52 = vld [vmem:[#allocation2 + $0x1a44] sm:$0xf0]  ;;  %v16169_v51 = vld [vmem:[#allocation2 + $0x1ba0] sm:$0xf] }
 0x1be   :  { %10368 = vmatpush.bf16.msra.mxu3 %v15898_v14  ;;  %10330 = vmatmul.bf16.vlgmr.msra.gmra.mxu0 %v21017_v48  ;;  %v19824_v14 = vld [vmem:[#allocation2 + $0x1ac4] sm:$0xf0]  ;;  %v15994_v17 = vor.u32 %v19808_v52, %v15993_v35  ;;  %v10137_v20 = vadd.f32 %v10136_v49, %v10124_v50 }
 0x1bf   :  { %10374 = vmatpush.bf16.msrb.mxu0 %v16018_v13  ;;  %10343 = vmatmul.bf16.vlgmr.msra.gmra.mxu1 %v21021_v0  ;;  %v16121_v13 = vld [vmem:[#allocation2 + $0x1b40] sm:$0xf]  ;;  %v16058_v27 = vor.u32 %v19824_v14, %v16057_v55  ;;  %v19820_v55 = vld [vmem:[#allocation2 + $0x1aa4] sm:$0xf0] }
 0x1c0   :  { %10387 = vmatpush.bf16.msrb.mxu1 %v16082_v61  ;;  %10356 = vmatmul.bf16.vlgmr.msra.gmra.mxu2 %v21019_v44  ;;  %v16130_v61 = vor.u32 %v19842_v10, %v16129_v56  ;;  %v16122_v8 = vor.u32 %v19840_v30, %v16121_v13  ;;  %v16177_v56 = vld [vmem:[#allocation2 + $0x1bb0] sm:$0xf]  ;;  %v19854_v10 = vld [vmem:[#allocation2 + $0x1bb4] sm:$0xf0]  ;;  %v19836_v14 = vld [vmem:[#allocation2 + $0x1b24] sm:$0xf0] }
 0x1c1   :  { %10400 = vmatpush.bf16.msrb.mxu2 %v16146_v25  ;;  %10369 = vmatmul.bf16.vlgmr.msra.gmra.mxu3 %v21023_v47  ;;  %v16066_v25 = vor.u32 %v19826_v59, %v16065_v15  ;;  %v19822_v15 = vld [vmem:[#allocation2 + $0x1ab4] sm:$0xf0]  ;;  %v16178_v35 = vor.u32 %v19854_v10, %v16177_v56  ;;  %v15961_v10 = vld [vmem:[#allocation2 + $0x1a00] sm:$0xf]  ;;  %v19876_v48 = vld [vmem:[#allocation2 + $0x1c64] sm:$0xf0] }
 0x1c2   :  { %10413 = vmatpush.bf16.msrb.mxu3 %v16210_v1  ;;  %v19856_v1 = vld [vmem:[#allocation2 + $0x1bc4] sm:$0xf0]  ;;  %v19838_v59 = vld [vmem:[#allocation2 + $0x1b34] sm:$0xf0]  ;;  %v16265_v44 = vld [vmem:[#allocation2 + $0x1c60] sm:$0xf] }
 0x1c3   :  { %10375 = vmatpush.bf16.msrb.mxu0 %v16010_v58  ;;  %v15985_v58 = vld [vmem:[#allocation2 + $0x1a30] sm:$0xf]  ;;  %v16186_v2 = vor.u32 %v19856_v1, %v16185_v54  ;;  %v10149_v52 = vpop.f32.mrf.mxu2  ;;  %v19852_v54 = vld [vmem:[#allocation2 + $0x1ba4] sm:$0xf0]  ;;  %v10125_v1 = vpop.f32.mrf.mxu0  ;;  %v19850_v56 = vld [vmem:[#allocation2 + $0x1b94] sm:$0xf0] }
 0x1c4   :  { %10388 = vmatpush.bf16.msrb.mxu1 %v16074_v43  ;;  %v19806_v43 = vld [vmem:[#allocation2 + $0x1a34] sm:$0xf0]  ;;  %v10150_v13 = vadd.f32 %v10149_v52, %v10137_v20  ;;  %v10162_v30 = vpop.f32.mrf.mxu3  ;;  %v10138_v49 = vpop.f32.mrf.mxu1  ;;  %v16097_v20 = vld [vmem:[#allocation2 + $0x1b10] sm:$0xf]  ;;  %v19832_v52 = vld [vmem:[#allocation2 + $0x1b04] sm:$0xf0] }
 0x1c5   :  { %10401 = vmatpush.bf16.msrb.mxu2 %v16138_v57  ;;  %v16049_v57 = vld [vmem:[#allocation2 + $0x1ab0] sm:$0xf]  ;;  %v15986_v19 = vor.u32 %v19806_v43, %v15985_v58  ;;  %v19802_v43 = vld [vmem:[#allocation2 + $0x1a14] sm:$0xf0] }
 0x1c6   :  { %10414 = vmatpush.bf16.msrb.mxu3 %v16202_v46  ;;  %v16113_v46 = vld [vmem:[#allocation2 + $0x1b30] sm:$0xf]  ;;  %v16050_v53 = vor.u32 %v19822_v15, %v16049_v57  ;;  %v16170_v15 = vor.u32 %v19852_v54, %v16169_v51  ;;  %v19894_v54 = vld [vmem:[#allocation2 + $0x1cf4] sm:$0xf0] }
 0x1c7   :  { %10376 = vmatpush.bf16.msrb.mxu0 %v16002_v31  ;;  %v16114_v7 = vor.u32 %v19838_v59, %v16113_v46  ;;  %v15977_v31 = vld [vmem:[#allocation2 + $0x1a20] sm:$0xf]  ;;  %v16033_v57 = vld [vmem:[#allocation2 + $0x1a90] sm:$0xf]  ;;  %v19834_v46 = vld [vmem:[#allocation2 + $0x1b14] sm:$0xf0] }
 0x1c8   :  { %10389 = vmatpush.bf16.msrb.mxu1 %v16066_v25  ;;  %v19804_v25 = vld [vmem:[#allocation2 + $0x1a24] sm:$0xf0]  ;;  %v16161_v59 = vld [vmem:[#allocation2 + $0x1b90] sm:$0xf] }
 0x1c9   :  { %10402 = vmatpush.bf16.msrb.mxu2 %v16130_v61  ;;  %v16041_v61 = vld [vmem:[#allocation2 + $0x1aa0] sm:$0xf]  ;;  %v15978_v50 = vor.u32 %v19804_v25, %v15977_v31  ;;  %v16337_v51 = vld [vmem:[#allocation2 + $0x1cf0] sm:$0xf] }
 0x1ca   :  { %10415 = vmatpush.bf16.msrb.mxu3 %v16194_v60  ;;  %v16105_v60 = vld [vmem:[#allocation2 + $0x1b20] sm:$0xf]  ;;  %v16401_v49 = vld [vmem:[#allocation2 + $0x1d70] sm:$0xf]  ;;  %v16338_v47 = vor.u32 %v19894_v54, %v16337_v51  ;;  %v19874_v54 = vld [vmem:[#allocation2 + $0x1c54] sm:$0xf0] }
 0x1cb   :  { %10377 = vmatpush.bf16.msrb.mxu0 %v15994_v17  ;;  %v15969_v17 = vld [vmem:[#allocation2 + $0x1a10] sm:$0xf]  ;;  %v16106_v58 = vor.u32 %v19836_v14, %v16105_v60  ;;  %v16025_v25 = vld [vmem:[#allocation2 + $0x1a80] sm:$0xf]  ;;  %v19848_v14 = vld [vmem:[#allocation2 + $0x1b84] sm:$0xf0]  ;;  %v10151_v1 = vpop.f32.mrf.mxu2 }
 0x1cc   :  { %10390 = vmatpush.bf16.msrb.mxu1 %v16058_v27  ;;  %v21030_v27 = vadd.f32 %v10162_v30, %v10150_v13  ;;  %v15970_v31 = vor.u32 %v19802_v43, %v15969_v17  ;;  %v16153_v60 = vld [vmem:[#allocation2 + $0x1b80] sm:$0xf]  ;;  %v16162_v13 = vor.u32 %v19850_v56, %v16161_v59  ;;  %v19878_v30 = vld [vmem:[#allocation2 + $0x1c74] sm:$0xf0]  ;;  %v10164_v17 = vpop.f32.mrf.mxu3  ;;  %v129_v43 = vld [vmem:[%s21411_s0 + $0x70] sm:$0xff] }
 0x1cd   :  { %10403 = vmatpush.bf16.msrb.mxu2 %v16122_v8  ;;  %v16042_v8 = vor.u32 %v19820_v55, %v16041_v61  ;;  %v16098_v55 = vor.u32 %v19834_v46, %v16097_v20  ;;  %234 = vst [vmem:[#allocation1] ss:$4 sm:$0xff] %v129_v43  ;;  %v230_v20 = vld.sshfl [vmem:[#allocation1 + $0x20] sm:$0xff pattern:$0x73625140]  ;;  %v16154_v59 = vor.u32 %v19848_v14, %v16153_v60 }
 0x1ce   :  { %10416 = vmatpush.bf16.msrb.mxu3 %v16186_v2  ;;  %v19818_v2 = vld [vmem:[#allocation2 + $0x1a94] sm:$0xf0]  ;;  %v232_v46 = vld.sshfl [vmem:[#allocation1 + $0x30] sm:$0xff pattern:$0x73625140] }
 0x1cf   :  { %10378 = vmatpush.bf16.msrb.mxu0 %v15986_v19  ;;  %v19800_v19 = vld [vmem:[#allocation2 + $0x1a04] sm:$0xf0]  ;;  %v16034_v61 = vor.u32 %v19818_v2, %v16033_v57  ;;  %v19926_v57 = vld [vmem:[#allocation2 + $0x1df4] sm:$0xf0]  ;;  %v16257_v51 = vld [vmem:[#allocation2 + $0x1c50] sm:$0xf] }
 0x1d0   :  { %10391 = vmatpush.bf16.msrb.mxu1 %v16050_v53  ;;  %v19816_v53 = vld [vmem:[#allocation2 + $0x1a84] sm:$0xf0]  ;;  %v231_v1 = vld.sshfl [vmem:[#allocation1 + $0x28] sm:$0xff pattern:$0x73625140] }
 0x1d1   :  { %10404 = vmatpush.bf16.msrb.mxu2 %v16114_v7  ;;  %v16089_v7 = vld [vmem:[#allocation2 + $0x1b00] sm:$0xf]  ;;  %v16026_v2 = vor.u32 %v19816_v53, %v16025_v25  ;;  %v233_v17 = vld.sshfl [vmem:[#allocation1 + $0x38] sm:$0xff pattern:$0x73625140]  ;;  %v21037_v53 = vpack.c.bf16 %v232_v46, %v232_v46 }
 0x1d2   :  { %10417 = vmatpush.bf16.msrb.mxu3 %v16178_v35  ;;  %v16273_v35 = vld [vmem:[#allocation2 + $0x1c70] sm:$0xf]  ;;  %v19908_v25 = vld [vmem:[#allocation2 + $0x1d64] sm:$0xf0]  ;;  %v21041_v14 = vpack.c.bf16 %v233_v17, %v233_v17  ;;  %v19890_v43 = vld [vmem:[#allocation2 + $0x1cd4] sm:$0xf0] }
 0x1d3   :  { %10379 = vmatpush.bf16.msrb.mxu0 %v15978_v50  ;;  %v19910_v50 = vld [vmem:[#allocation2 + $0x1d74] sm:$0xf0]  ;;  %v16274_v56 = vor.u32 %v19878_v30, %v16273_v35  ;;  %21507 = vst [vmem:[#allocation43_spill] sm:$0xff] %v21037_v53  ;;  %v19924_v60 = vld [vmem:[#allocation2 + $0x1de4] sm:$0xf0]  ;;  %v16266_v35 = vor.u32 %v19876_v48, %v16265_v44  ;;  %v16258_v44 = vor.u32 %v19874_v54, %v16257_v51 }
 0x1d4   :  { %10392 = vmatpush.bf16.msrb.mxu1 %v16042_v8  ;;  %v15962_v8 = vor.u32 %v19800_v19, %v15961_v10  ;;  %v16402_v0 = vor.u32 %v19910_v50, %v16401_v49  ;;  %v21035_v19 = vpack.c.bf16 %v230_v20, %v230_v20  ;;  %21509 = vst [vmem:[#allocation45_spill] sm:$0xff] %v21041_v14  ;;  %v16321_v49 = vld [vmem:[#allocation2 + $0x1cd0] sm:$0xf]  ;;  %v19922_v48 = vld [vmem:[#allocation2 + $0x1dd4] sm:$0xf0] }
 0x1d5   :  { %10405 = vmatpush.bf16.msrb.mxu2 %v16106_v58  ;;  %v16465_v58 = vld [vmem:[#allocation2 + $0x1df0] sm:$0xf]  ;;  %v16313_v20 = vld [vmem:[#allocation2 + $0x1cc0] sm:$0xf] }
 0x1d6   :  { %10418 = vmatpush.bf16.msrb.mxu3 %v16170_v15  ;;  %v16090_v15 = vor.u32 %v19832_v52, %v16089_v7  ;;  %v16466_v10 = vor.u32 %v19926_v57, %v16465_v58  ;;  %21506 = vst [vmem:[#allocation42_spill] sm:$0xff] %v21035_v19  ;;  %v21039_v7 = vpack.c.bf16 %v231_v1, %v231_v1  ;;  %v16457_v52 = vld [vmem:[#allocation2 + $0x1de0] sm:$0xf]  ;;  %v19906_v58 = vld [vmem:[#allocation2 + $0x1d54] sm:$0xf0] }
 0x1d7   :  { %10380 = vmatpush.bf16.msrb.mxu0 %v15970_v31  ;;  %v16329_v31 = vld [vmem:[#allocation2 + $0x1ce0] sm:$0xf]  ;;  %v16458_v50 = vor.u32 %v19924_v60, %v16457_v52  ;;  %v16449_v57 = vld [vmem:[#allocation2 + $0x1dd0] sm:$0xf]  ;;  %v19904_v1 = vld [vmem:[#allocation2 + $0x1d44] sm:$0xf0] }
 0x1d8   :  { %10393 = vmatpush.bf16.msrb.mxu1 %v16034_v61  ;;  %v19892_v61 = vld [vmem:[#allocation2 + $0x1ce4] sm:$0xf0]  ;;  %21508 = vst [vmem:[#allocation44_spill] sm:$0xff] %v21039_v7  ;;  %v16450_v46 = vor.u32 %v19922_v48, %v16449_v57 }
 0x1d9   :  { %10406 = vmatpush.bf16.msrb.mxu2 %v16098_v55  ;;  %v16393_v55 = vld [vmem:[#allocation2 + $0x1d60] sm:$0xf] }
 0x1da   :  { %10419 = vmatpush.bf16.msrb.mxu3 %v16162_v13  ;;  %v16330_v13 = vor.u32 %v19892_v61, %v16329_v31  ;;  %v16394_v30 = vor.u32 %v19908_v25, %v16393_v55  ;;  %v16441_v31 = vld [vmem:[#allocation2 + $0x1dc0] sm:$0xf] }
 0x1db   :  { %10381 = vmatpush.bf16.msrb.mxu0 %v15962_v8  ;;  %v16385_v8 = vld [vmem:[#allocation2 + $0x1d50] sm:$0xf]  ;;  %v10175_v17 = vpop.f32.mrf.mxu0 }
 0x1dc   :  { %10394 = vmatpush.bf16.msrb.mxu1 %v16026_v2  ;;  %v16249_v2 = vld [vmem:[#allocation2 + $0x1c40] sm:$0xf]  ;;  %v10176_v61 = vadd.f32 %v10175_v17, %v21030_v27  ;;  %v10188_v25 = vpop.f32.mrf.mxu1 }
 0x1dd   :  { %10407 = vmatpush.bf16.msrb.mxu2 %v16090_v15  ;;  %v19872_v15 = vld [vmem:[#allocation2 + $0x1c44] sm:$0xf0]  ;;  %v16425_v17 = vld [vmem:[#allocation2 + $0x1da0] sm:$0xf] }
 0x1de   :  { %10420 = vmatpush.bf16.msrb.mxu3 %v16154_v59  ;;  %10382 = vmatmul.bf16.vlgmr.msrb.gmra.mxu0 %v21035_v19  ;;  %v19888_v59 = vld [vmem:[#allocation2 + $0x1cc4] sm:$0xf0]  ;;  %v16250_v55 = vor.u32 %v19872_v15, %v16249_v2  ;;  %v10189_v54 = vadd.f32 %v10188_v25, %v10176_v61 }
 0x1df   :  { %10426 = vmatpush.bf16.msra.mxu0 %v16274_v56  ;;  %10395 = vmatmul.bf16.vlgmr.msrb.gmra.mxu1 %v21039_v7  ;;  %v16377_v56 = vld [vmem:[#allocation2 + $0x1d40] sm:$0xf]  ;;  %v16314_v52 = vor.u32 %v19888_v59, %v16313_v20  ;;  %v19884_v20 = vld [vmem:[#allocation2 + $0x1ca4] sm:$0xf0] }
 0x1e0   :  { %10439 = vmatpush.bf16.msra.mxu1 %v16338_v47  ;;  %10408 = vmatmul.bf16.vlgmr.msrb.gmra.mxu2 %v21037_v53  ;;  %v16386_v47 = vor.u32 %v19906_v58, %v16385_v8  ;;  %v16378_v60 = vor.u32 %v19904_v1, %v16377_v56  ;;  %v16433_v8 = vld [vmem:[#allocation2 + $0x1db0] sm:$0xf]  ;;  %v19918_v58 = vld [vmem:[#allocation2 + $0x1db4] sm:$0xf0]  ;;  %v19900_v59 = vld [vmem:[#allocation2 + $0x1d24] sm:$0xf0] }
 0x1e1   :  { %10452 = vmatpush.bf16.msra.mxu2 %v16402_v0  ;;  %10421 = vmatmul.bf16.vlgmr.msrb.gmra.mxu3 %v21041_v14  ;;  %v16322_v0 = vor.u32 %v19890_v43, %v16321_v49  ;;  %v19886_v49 = vld [vmem:[#allocation2 + $0x1cb4] sm:$0xf0]  ;;  %v16434_v2 = vor.u32 %v19918_v58, %v16433_v8  ;;  %v16217_v58 = vld [vmem:[#allocation2 + $0x1c00] sm:$0xf]  ;;  %v19940_v19 = vld [vmem:[#allocation2 + $0x1e64] sm:$0xf0] }
 0x1e2   :  { %10465 = vmatpush.bf16.msra.mxu3 %v16466_v10  ;;  %v19920_v10 = vld [vmem:[#allocation2 + $0x1dc4] sm:$0xf0]  ;;  %v19902_v43 = vld [vmem:[#allocation2 + $0x1d34] sm:$0xf0]  ;;  %v16521_v53 = vld [vmem:[#allocation2 + $0x1e60] sm:$0xf] }
 0x1e3   :  { %10427 = vmatpush.bf16.msra.mxu0 %v16266_v35  ;;  %v16241_v35 = vld [vmem:[#allocation2 + $0x1c30] sm:$0xf]  ;;  %v16442_v51 = vor.u32 %v19920_v10, %v16441_v31  ;;  %v10201_v15 = vpop.f32.mrf.mxu2  ;;  %v19916_v31 = vld [vmem:[#allocation2 + $0x1da4] sm:$0xf0]  ;;  %v10177_v10 = vpop.f32.mrf.mxu0  ;;  %v19914_v8 = vld [vmem:[#allocation2 + $0x1d94] sm:$0xf0] }
 0x1e4   :  { %10440 = vmatpush.bf16.msra.mxu1 %v16330_v13  ;;  %v19870_v13 = vld [vmem:[#allocation2 + $0x1c34] sm:$0xf0]  ;;  %v10202_v56 = vadd.f32 %v10201_v15, %v10189_v54  ;;  %v10214_v1 = vpop.f32.mrf.mxu3  ;;  %v10190_v25 = vpop.f32.mrf.mxu1  ;;  %v16353_v54 = vld [vmem:[#allocation2 + $0x1d10] sm:$0xf]  ;;  %v19896_v15 = vld [vmem:[#allocation2 + $0x1d04] sm:$0xf0] }
 0x1e5   :  { %10453 = vmatpush.bf16.msra.mxu2 %v16394_v30  ;;  %v16305_v30 = vld [vmem:[#allocation2 + $0x1cb0] sm:$0xf]  ;;  %v16242_v57 = vor.u32 %v19870_v13, %v16241_v35  ;;  %v19866_v13 = vld [vmem:[#allocation2 + $0x1c14] sm:$0xf0] }
 0x1e6   :  { %10466 = vmatpush.bf16.msra.mxu3 %v16458_v50  ;;  %v16369_v50 = vld [vmem:[#allocation2 + $0x1d30] sm:$0xf]  ;;  %v16306_v27 = vor.u32 %v19886_v49, %v16305_v30  ;;  %v16426_v49 = vor.u32 %v19916_v31, %v16425_v17  ;;  %v19958_v31 = vld [vmem:[#allocation2 + $0x1ef4] sm:$0xf0] }
 0x1e7   :  { %10428 = vmatpush.bf16.msra.mxu0 %v16258_v44  ;;  %v16370_v48 = vor.u32 %v19902_v43, %v16369_v50  ;;  %v16233_v44 = vld [vmem:[#allocation2 + $0x1c20] sm:$0xf]  ;;  %v16289_v30 = vld [vmem:[#allocation2 + $0x1c90] sm:$0xf]  ;;  %v19898_v50 = vld [vmem:[#allocation2 + $0x1d14] sm:$0xf0] }
 0x1e8   :  { %10441 = vmatpush.bf16.msra.mxu1 %v16322_v0  ;;  %v19868_v0 = vld [vmem:[#allocation2 + $0x1c24] sm:$0xf0]  ;;  %v16417_v43 = vld [vmem:[#allocation2 + $0x1d90] sm:$0xf] }
 0x1e9   :  { %10454 = vmatpush.bf16.msra.mxu2 %v16386_v47  ;;  %v16297_v47 = vld [vmem:[#allocation2 + $0x1ca0] sm:$0xf]  ;;  %v16234_v61 = vor.u32 %v19868_v0, %v16233_v44  ;;  %v16593_v17 = vld [vmem:[#allocation2 + $0x1ef0] sm:$0xf] }
 0x1ea   :  { %10467 = vmatpush.bf16.msra.mxu3 %v16450_v46  ;;  %v16361_v46 = vld [vmem:[#allocation2 + $0x1d20] sm:$0xf]  ;;  %v16657_v25 = vld [vmem:[#allocation2 + $0x1f70] sm:$0xf]  ;;  %v16594_v14 = vor.u32 %v19958_v31, %v16593_v17  ;;  %v19938_v31 = vld [vmem:[#allocation2 + $0x1e54] sm:$0xf0] }
 0x1eb   :  { %10429 = vmatpush.bf16.msra.mxu0 %v16250_v55  ;;  %v16225_v55 = vld [vmem:[#allocation2 + $0x1c10] sm:$0xf]  ;;  %v16362_v35 = vor.u32 %v19900_v59, %v16361_v46  ;;  %v16281_v0 = vld [vmem:[#allocation2 + $0x1c80] sm:$0xf]  ;;  %v19912_v59 = vld [vmem:[#allocation2 + $0x1d84] sm:$0xf0]  ;;  %v10203_v10 = vpop.f32.mrf.mxu2 }
 0x1ec   :  { %10442 = vmatpush.bf16.msra.mxu1 %v16314_v52  ;;  %v21048_v52 = vadd.f32 %v10214_v1, %v10202_v56  ;;  %v16226_v44 = vor.u32 %v19866_v13, %v16225_v55  ;;  %v16409_v46 = vld [vmem:[#allocation2 + $0x1d80] sm:$0xf]  ;;  %v16418_v56 = vor.u32 %v19914_v8, %v16417_v43  ;;  %v19942_v1 = vld [vmem:[#allocation2 + $0x1e74] sm:$0xf0]  ;;  %v10216_v55 = vpop.f32.mrf.mxu3  ;;  %v130_v13 = vld [vmem:[%s21411_s0 + $0x78] sm:$0xff] }
 0x1ed   :  { %10455 = vmatpush.bf16.msra.mxu2 %v16378_v60  ;;  %v16298_v60 = vor.u32 %v19884_v20, %v16297_v47  ;;  %v16354_v20 = vor.u32 %v19898_v50, %v16353_v54  ;;  %235 = vst [vmem:[#allocation1 + $0x20] ss:$4 sm:$0xff] %v130_v13  ;;  %v236_v54 = vld.sshfl [vmem:[#allocation1] sm:$0xff pattern:$0x73625140]  ;;  %v16410_v43 = vor.u32 %v19912_v59, %v16409_v46 }
 0x1ee   :  { %10468 = vmatpush.bf16.msra.mxu3 %v16442_v51  ;;  %v19882_v51 = vld [vmem:[#allocation2 + $0x1c94] sm:$0xf0]  ;;  %v238_v50 = vld.sshfl [vmem:[#allocation1 + $0x10] sm:$0xff pattern:$0x73625140] }
 0x1ef   :  { %10430 = vmatpush.bf16.msra.mxu0 %v16242_v57  ;;  %v19864_v57 = vld [vmem:[#allocation2 + $0x1c04] sm:$0xf0]  ;;  %v16290_v47 = vor.u32 %v19882_v51, %v16289_v30  ;;  %v19990_v30 = vld [vmem:[#allocation2 + $0x1ff4] sm:$0xf0]  ;;  %v16513_v17 = vld [vmem:[#allocation2 + $0x1e50] sm:$0xf] }
 0x1f0   :  { %10443 = vmatpush.bf16.msra.mxu1 %v16306_v27  ;;  %v19880_v27 = vld [vmem:[#allocation2 + $0x1c84] sm:$0xf0]  ;;  %v237_v10 = vld.sshfl [vmem:[#allocation1 + $0x8] sm:$0xff pattern:$0x73625140] }
 0x1f1   :  { %10456 = vmatpush.bf16.msra.mxu2 %v16370_v48  ;;  %v16345_v48 = vld [vmem:[#allocation2 + $0x1d00] sm:$0xf]  ;;  %v16282_v51 = vor.u32 %v19880_v27, %v16281_v0  ;;  %v239_v55 = vld.sshfl [vmem:[#allocation1 + $0x18] sm:$0xff pattern:$0x73625140]  ;;  %v21055_v27 = vpack.c.bf16 %v238_v50, %v238_v50 }
 0x1f2   :  { %10469 = vmatpush.bf16.msra.mxu3 %v16434_v2  ;;  %v16529_v2 = vld [vmem:[#allocation2 + $0x1e70] sm:$0xf]  ;;  %v19972_v0 = vld [vmem:[#allocation2 + $0x1f64] sm:$0xf0]  ;;  %v21059_v59 = vpack.c.bf16 %v239_v55, %v239_v55  ;;  %v19954_v13 = vld [vmem:[#allocation2 + $0x1ed4] sm:$0xf0] }
 0x1f3   :  { %10431 = vmatpush.bf16.msra.mxu0 %v16234_v61  ;;  %v19974_v61 = vld [vmem:[#allocation2 + $0x1f74] sm:$0xf0]  ;;  %v16530_v8 = vor.u32 %v19942_v1, %v16529_v2  ;;  %21511 = vst [vmem:[#allocation47_spill] sm:$0xff] %v21055_v27  ;;  %v19988_v46 = vld [vmem:[#allocation2 + $0x1fe4] sm:$0xf0]  ;;  %v16522_v2 = vor.u32 %v19940_v19, %v16521_v53  ;;  %v16514_v53 = vor.u32 %v19938_v31, %v16513_v17 }
 0x1f4   :  { %10444 = vmatpush.bf16.msra.mxu1 %v16298_v60  ;;  %v16218_v60 = vor.u32 %v19864_v57, %v16217_v58  ;;  %v16658_v7 = vor.u32 %v19974_v61, %v16657_v25  ;;  %v21053_v57 = vpack.c.bf16 %v236_v54, %v236_v54  ;;  %21513 = vst [vmem:[#allocation49_spill] sm:$0xff] %v21059_v59  ;;  %v16577_v25 = vld [vmem:[#allocation2 + $0x1ed0] sm:$0xf]  ;;  %v19986_v19 = vld [vmem:[#allocation2 + $0x1fd4] sm:$0xf0] }
 0x1f5   :  { %10457 = vmatpush.bf16.msra.mxu2 %v16362_v35  ;;  %v16721_v35 = vld [vmem:[#allocation2 + $0x1ff0] sm:$0xf]  ;;  %v16569_v54 = vld [vmem:[#allocation2 + $0x1ec0] sm:$0xf] }
 0x1f6   :  { %10470 = vmatpush.bf16.msra.mxu3 %v16426_v49  ;;  %v16346_v49 = vor.u32 %v19896_v15, %v16345_v48  ;;  %v16722_v58 = vor.u32 %v19990_v30, %v16721_v35  ;;  %21510 = vst [vmem:[#allocation46_spill] sm:$0xff] %v21053_v57  ;;  %v21057_v48 = vpack.c.bf16 %v237_v10, %v237_v10  ;;  %v16713_v15 = vld [vmem:[#allocation2 + $0x1fe0] sm:$0xf]  ;;  %v19970_v35 = vld [vmem:[#allocation2 + $0x1f54] sm:$0xf0] }
 0x1f7   :  { %10432 = vmatpush.bf16.msra.mxu0 %v16226_v44  ;;  %v16585_v44 = vld [vmem:[#allocation2 + $0x1ee0] sm:$0xf]  ;;  %v16714_v61 = vor.u32 %v19988_v46, %v16713_v15  ;;  %v16705_v30 = vld [vmem:[#allocation2 + $0x1fd0] sm:$0xf]  ;;  %v19968_v10 = vld [vmem:[#allocation2 + $0x1f44] sm:$0xf0] }
 0x1f8   :  { %10445 = vmatpush.bf16.msra.mxu1 %v16290_v47  ;;  %v19956_v47 = vld [vmem:[#allocation2 + $0x1ee4] sm:$0xf0]  ;;  %21512 = vst [vmem:[#allocation48_spill] sm:$0xff] %v21057_v48  ;;  %v16706_v50 = vor.u32 %v19986_v19, %v16705_v30 }
 0x1f9   :  { %10458 = vmatpush.bf16.msra.mxu2 %v16354_v20  ;;  %v16649_v20 = vld [vmem:[#allocation2 + $0x1f60] sm:$0xf] }
 0x1fa   :  { %10471 = vmatpush.bf16.msra.mxu3 %v16418_v56  ;;  %v16586_v56 = vor.u32 %v19956_v47, %v16585_v44  ;;  %v16650_v1 = vor.u32 %v19972_v0, %v16649_v20  ;;  %v16697_v44 = vld [vmem:[#allocation2 + $0x1fc0] sm:$0xf] }
 0x1fb   :  { %10433 = vmatpush.bf16.msra.mxu0 %v16218_v60  ;;  %v16641_v60 = vld [vmem:[#allocation2 + $0x1f50] sm:$0xf]  ;;  %v10227_v55 = vpop.f32.mrf.mxu0 }
 0x1fc   :  { %10446 = vmatpush.bf16.msra.mxu1 %v16282_v51  ;;  %v16505_v51 = vld [vmem:[#allocation2 + $0x1e40] sm:$0xf]  ;;  %v10228_v47 = vadd.f32 %v10227_v55, %v21048_v52  ;;  %v10240_v0 = vpop.f32.mrf.mxu1 }
 0x1fd   :  { %10459 = vmatpush.bf16.msra.mxu2 %v16346_v49  ;;  %v19936_v49 = vld [vmem:[#allocation2 + $0x1e44] sm:$0xf0]  ;;  %v16681_v55 = vld [vmem:[#allocation2 + $0x1fa0] sm:$0xf] }
 0x1fe   :  { %10472 = vmatpush.bf16.msra.mxu3 %v16410_v43  ;;  %10434 = vmatmul.bf16.vlgmr.msra.gmra.mxu0 %v21053_v57  ;;  %v19952_v43 = vld [vmem:[#allocation2 + $0x1ec4] sm:$0xf0]  ;;  %v16506_v20 = vor.u32 %v19936_v49, %v16505_v51  ;;  %v10241_v31 = vadd.f32 %v10240_v0, %v10228_v47 }
 0x1ff   :  { %10478 = vmatpush.bf16.msrb.mxu0 %v16530_v8  ;;  %10447 = vmatmul.bf16.vlgmr.msra.gmra.mxu1 %v21057_v48  ;;  %v16633_v8 = vld [vmem:[#allocation2 + $0x1f40] sm:$0xf]  ;;  %v16570_v15 = vor.u32 %v19952_v43, %v16569_v54  ;;  %v19948_v54 = vld [vmem:[#allocation2 + $0x1ea4] sm:$0xf0] }
 0x200   :  { %10491 = vmatpush.bf16.msrb.mxu1 %v16594_v14  ;;  %10460 = vmatmul.bf16.vlgmr.msra.gmra.mxu2 %v21055_v27  ;;  %v16642_v14 = vor.u32 %v19970_v35, %v16641_v60  ;;  %v16634_v46 = vor.u32 %v19968_v10, %v16633_v8  ;;  %v16689_v60 = vld [vmem:[#allocation2 + $0x1fb0] sm:$0xf]  ;;  %v19982_v35 = vld [vmem:[#allocation2 + $0x1fb4] sm:$0xf0]  ;;  %v19964_v43 = vld [vmem:[#allocation2 + $0x1f24] sm:$0xf0] }
 0x201   :  { %10504 = vmatpush.bf16.msrb.mxu2 %v16658_v7  ;;  %10473 = vmatmul.bf16.vlgmr.msra.gmra.mxu3 %v21059_v59  ;;  %v16578_v7 = vor.u32 %v19954_v13, %v16577_v25  ;;  %v19950_v25 = vld [vmem:[#allocation2 + $0x1eb4] sm:$0xf0]  ;;  %v16690_v51 = vor.u32 %v19982_v35, %v16689_v60  ;;  %v16473_v35 = vld [vmem:[#allocation2 + $0x1e00] sm:$0xf]  ;;  %v20004_v57 = vld [vmem:[#allocation2 + $0x2064] sm:$0xf0] }
 0x202   :  { %10517 = vmatpush.bf16.msrb.mxu3 %v16722_v58  ;;  %v19984_v58 = vld [vmem:[#allocation2 + $0x1fc4] sm:$0xf0]  ;;  %v19966_v13 = vld [vmem:[#allocation2 + $0x1f34] sm:$0xf0]  ;;  %v16777_v27 = vld [vmem:[#allocation2 + $0x2060] sm:$0xf] }
 0x203   :  { %10479 = vmatpush.bf16.msrb.mxu0 %v16522_v2  ;;  %v16497_v2 = vld [vmem:[#allocation2 + $0x1e30] sm:$0xf]  ;;  %v16698_v17 = vor.u32 %v19984_v58, %v16697_v44  ;;  %v10253_v49 = vpop.f32.mrf.mxu2  ;;  %v19980_v44 = vld [vmem:[#allocation2 + $0x1fa4] sm:$0xf0]  ;;  %v10229_v58 = vpop.f32.mrf.mxu0  ;;  %v19978_v60 = vld [vmem:[#allocation2 + $0x1f94] sm:$0xf0] }
 0x204   :  { %10492 = vmatpush.bf16.msrb.mxu1 %v16586_v56  ;;  %v19934_v56 = vld [vmem:[#allocation2 + $0x1e34] sm:$0xf0]  ;;  %v10254_v8 = vadd.f32 %v10253_v49, %v10241_v31  ;;  %v10266_v10 = vpop.f32.mrf.mxu3  ;;  %v10242_v0 = vpop.f32.mrf.mxu1  ;;  %v16609_v31 = vld [vmem:[#allocation2 + $0x1f10] sm:$0xf]  ;;  %v19960_v49 = vld [vmem:[#allocation2 + $0x1f04] sm:$0xf0] }
 0x205   :  { %10505 = vmatpush.bf16.msrb.mxu2 %v16650_v1  ;;  %v16561_v1 = vld [vmem:[#allocation2 + $0x1eb0] sm:$0xf]  ;;  %v16498_v30 = vor.u32 %v19934_v56, %v16497_v2  ;;  %v19930_v56 = vld [vmem:[#allocation2 + $0x1e14] sm:$0xf0] }
 0x206   :  { %10518 = vmatpush.bf16.msrb.mxu3 %v16714_v61  ;;  %v16625_v61 = vld [vmem:[#allocation2 + $0x1f30] sm:$0xf]  ;;  %v16562_v52 = vor.u32 %v19950_v25, %v16561_v1  ;;  %v16682_v25 = vor.u32 %v19980_v44, %v16681_v55  ;;  %v20022_v44 = vld [vmem:[#allocation2 + $0x20f4] sm:$0xf0] }
 0x207   :  { %10480 = vmatpush.bf16.msrb.mxu0 %v16514_v53  ;;  %v16626_v19 = vor.u32 %v19966_v13, %v16625_v61  ;;  %v16489_v53 = vld [vmem:[#allocation2 + $0x1e20] sm:$0xf]  ;;  %v16545_v1 = vld [vmem:[#allocation2 + $0x1e90] sm:$0xf]  ;;  %v19962_v61 = vld [vmem:[#allocation2 + $0x1f14] sm:$0xf0] }
 0x208   :  { %10493 = vmatpush.bf16.msrb.mxu1 %v16578_v7  ;;  %v19932_v7 = vld [vmem:[#allocation2 + $0x1e24] sm:$0xf0]  ;;  %v16673_v13 = vld [vmem:[#allocation2 + $0x1f90] sm:$0xf] }
 0x209   :  { %10506 = vmatpush.bf16.msrb.mxu2 %v16642_v14  ;;  %v16553_v14 = vld [vmem:[#allocation2 + $0x1ea0] sm:$0xf]  ;;  %v16490_v47 = vor.u32 %v19932_v7, %v16489_v53  ;;  %v16849_v55 = vld [vmem:[#allocation2 + $0x20f0] sm:$0xf] }
 0x20a   :  { %10519 = vmatpush.bf16.msrb.mxu3 %v16706_v50  ;;  %v16617_v50 = vld [vmem:[#allocation2 + $0x1f20] sm:$0xf]  ;;  %v16913_v0 = vld [vmem:[#allocation2 + $0x2170] sm:$0xf]  ;;  %v16850_v59 = vor.u32 %v20022_v44, %v16849_v55  ;;  %v20002_v44 = vld [vmem:[#allocation2 + $0x2054] sm:$0xf0] }
 0x20b   :  { %10481 = vmatpush.bf16.msrb.mxu0 %v16506_v20  ;;  %v16481_v20 = vld [vmem:[#allocation2 + $0x1e10] sm:$0xf]  ;;  %v16618_v2 = vor.u32 %v19964_v43, %v16617_v50  ;;  %v16537_v7 = vld [vmem:[#allocation2 + $0x1e80] sm:$0xf]  ;;  %v19976_v43 = vld [vmem:[#allocation2 + $0x1f84] sm:$0xf0]  ;;  %v10255_v58 = vpop.f32.mrf.mxu2 }
 0x20c   :  { %10494 = vmatpush.bf16.msrb.mxu1 %v16570_v15  ;;  %v21066_v15 = vadd.f32 %v10266_v10, %v10254_v8  ;;  %v16482_v53 = vor.u32 %v19930_v56, %v16481_v20  ;;  %v16665_v50 = vld [vmem:[#allocation2 + $0x1f80] sm:$0xf]  ;;  %v16674_v8 = vor.u32 %v19978_v60, %v16673_v13  ;;  %v20006_v10 = vld [vmem:[#allocation2 + $0x2074] sm:$0xf0]  ;;  %v10268_v20 = vpop.f32.mrf.mxu3  ;;  %v16769_v55 = vld [vmem:[#allocation2 + $0x2050] sm:$0xf] }
 0x20d   :  { %10507 = vmatpush.bf16.msrb.mxu2 %v16634_v46  ;;  %v16554_v46 = vor.u32 %v19948_v54, %v16553_v14  ;;  %v16610_v54 = vor.u32 %v19962_v61, %v16609_v31  ;;  %v131_v56 = vld [vmem:[%s21411_s0 + $0x80] sm:$0xff]  ;;  %v242_v61 = vld.sshfl [vmem:[#allocation1 + $0x30] sm:$0xff pattern:$0x73625140]  ;;  %v16666_v13 = vor.u32 %v19976_v43, %v16665_v50 }
 0x20e   :  { %10520 = vmatpush.bf16.msrb.mxu3 %v16698_v17  ;;  %v19946_v17 = vld [vmem:[#allocation2 + $0x1e94] sm:$0xf0]  ;;  %244 = vst [vmem:[#allocation1] ss:$4 sm:$0xff] %v131_v56  ;;  %v20052_v50 = vld [vmem:[#allocation2 + $0x21e4] sm:$0xf0] }
 0x20f   :  { %10482 = vmatpush.bf16.msrb.mxu0 %v16498_v30  ;;  %v19928_v30 = vld [vmem:[#allocation2 + $0x1e04] sm:$0xf0]  ;;  %v16546_v14 = vor.u32 %v19946_v17, %v16545_v1  ;;  %v20054_v1 = vld [vmem:[#allocation2 + $0x21f4] sm:$0xf0] }
 0x210   :  { %10495 = vmatpush.bf16.msrb.mxu1 %v16562_v52  ;;  %v19944_v52 = vld [vmem:[#allocation2 + $0x1e84] sm:$0xf0]  ;;  %v240_v31 = vld.sshfl [vmem:[#allocation1 + $0x20] sm:$0xff pattern:$0x73625140] }
 0x211   :  { %10508 = vmatpush.bf16.msrb.mxu2 %v16626_v19  ;;  %v16601_v19 = vld [vmem:[#allocation2 + $0x1f00] sm:$0xf]  ;;  %v16538_v17 = vor.u32 %v19944_v52, %v16537_v7  ;;  %v243_v20 = vld.sshfl [vmem:[#allocation1 + $0x38] sm:$0xff pattern:$0x73625140]  ;;  %v21073_v52 = vpack.c.bf16 %v242_v61, %v242_v61 }
 0x212   :  { %10521 = vmatpush.bf16.msrb.mxu3 %v16690_v51  ;;  %v16785_v51 = vld [vmem:[#allocation2 + $0x2070] sm:$0xf]  ;;  %v241_v58 = vld.sshfl [vmem:[#allocation1 + $0x28] sm:$0xff pattern:$0x73625140]  ;;  %v21077_v43 = vpack.c.bf16 %v243_v20, %v243_v20 }
 0x213   :  { %10483 = vmatpush.bf16.msrb.mxu0 %v16490_v47  ;;  %v20038_v47 = vld [vmem:[#allocation2 + $0x2174] sm:$0xf0]  ;;  %v16786_v60 = vor.u32 %v20006_v10, %v16785_v51  ;;  %v20036_v7 = vld [vmem:[#allocation2 + $0x2164] sm:$0xf0]  ;;  %21515 = vst [vmem:[#allocation51_spill] sm:$0xff] %v21073_v52  ;;  %v16778_v51 = vor.u32 %v20004_v57, %v16777_v27  ;;  %v16770_v27 = vor.u32 %v20002_v44, %v16769_v55 }
 0x214   :  { %10496 = vmatpush.bf16.msrb.mxu1 %v16554_v46  ;;  %v16474_v46 = vor.u32 %v19928_v30, %v16473_v35  ;;  %v16914_v48 = vor.u32 %v20038_v47, %v16913_v0  ;;  %v21071_v30 = vpack.c.bf16 %v240_v31, %v240_v31  ;;  %21517 = vst [vmem:[#allocation53_spill] sm:$0xff] %v21077_v43  ;;  %v16833_v0 = vld [vmem:[#allocation2 + $0x20d0] sm:$0xf]  ;;  %v20018_v56 = vld [vmem:[#allocation2 + $0x20d4] sm:$0xf0] }
 0x215   :  { %10509 = vmatpush.bf16.msrb.mxu2 %v16618_v2  ;;  %v16977_v2 = vld [vmem:[#allocation2 + $0x21f0] sm:$0xf]  ;;  %v20050_v57 = vld [vmem:[#allocation2 + $0x21d4] sm:$0xf0]  ;;  %v16825_v31 = vld [vmem:[#allocation2 + $0x20c0] sm:$0xf] }
 0x216   :  { %10522 = vmatpush.bf16.msrb.mxu3 %v16682_v25  ;;  %v16602_v25 = vor.u32 %v19960_v49, %v16601_v19  ;;  %v16978_v35 = vor.u32 %v20054_v1, %v16977_v2  ;;  %21514 = vst [vmem:[#allocation50_spill] sm:$0xff] %v21071_v30  ;;  %v21075_v19 = vpack.c.bf16 %v241_v58, %v241_v58  ;;  %v16969_v49 = vld [vmem:[#allocation2 + $0x21e0] sm:$0xf]  ;;  %v20034_v2 = vld [vmem:[#allocation2 + $0x2154] sm:$0xf0] }
 0x217   :  { %10484 = vmatpush.bf16.msrb.mxu0 %v16482_v53  ;;  %v16841_v53 = vld [vmem:[#allocation2 + $0x20e0] sm:$0xf]  ;;  %v16970_v47 = vor.u32 %v20052_v50, %v16969_v49  ;;  %v16961_v1 = vld [vmem:[#allocation2 + $0x21d0] sm:$0xf]  ;;  %v20032_v58 = vld [vmem:[#allocation2 + $0x2144] sm:$0xf0] }
 0x218   :  { %10497 = vmatpush.bf16.msrb.mxu1 %v16546_v14  ;;  %v20020_v14 = vld [vmem:[#allocation2 + $0x20e4] sm:$0xf0]  ;;  %21516 = vst [vmem:[#allocation52_spill] sm:$0xff] %v21075_v19  ;;  %v16962_v61 = vor.u32 %v20050_v57, %v16961_v1 }
 0x219   :  { %10510 = vmatpush.bf16.msrb.mxu2 %v16610_v54  ;;  %v16905_v54 = vld [vmem:[#allocation2 + $0x2160] sm:$0xf] }
 0x21a   :  { %10523 = vmatpush.bf16.msrb.mxu3 %v16674_v8  ;;  %v16842_v8 = vor.u32 %v20020_v14, %v16841_v53  ;;  %v16906_v10 = vor.u32 %v20036_v7, %v16905_v54  ;;  %v16953_v53 = vld [vmem:[#allocation2 + $0x21c0] sm:$0xf] }
 0x21b   :  { %10485 = vmatpush.bf16.msrb.mxu0 %v16474_v46  ;;  %v16897_v46 = vld [vmem:[#allocation2 + $0x2150] sm:$0xf]  ;;  %v10279_v20 = vpop.f32.mrf.mxu0 }
 0x21c   :  { %10498 = vmatpush.bf16.msrb.mxu1 %v16538_v17  ;;  %v16761_v17 = vld [vmem:[#allocation2 + $0x2040] sm:$0xf]  ;;  %v10280_v14 = vadd.f32 %v10279_v20, %v21066_v15  ;;  %v10292_v7 = vpop.f32.mrf.mxu1 }
 0x21d   :  { %10511 = vmatpush.bf16.msrb.mxu2 %v16602_v25  ;;  %v20000_v25 = vld [vmem:[#allocation2 + $0x2044] sm:$0xf0]  ;;  %v16937_v20 = vld [vmem:[#allocation2 + $0x21a0] sm:$0xf] }
 0x21e   :  { %10524 = vmatpush.bf16.msrb.mxu3 %v16666_v13  ;;  %10486 = vmatmul.bf16.vlgmr.msrb.gmra.mxu0 %v21071_v30  ;;  %v20016_v13 = vld [vmem:[#allocation2 + $0x20c4] sm:$0xf0]  ;;  %v16762_v54 = vor.u32 %v20000_v25, %v16761_v17  ;;  %v10293_v44 = vadd.f32 %v10292_v7, %v10280_v14 }
 0x21f   :  { %10530 = vmatpush.bf16.msra.mxu0 %v16786_v60  ;;  %10499 = vmatmul.bf16.vlgmr.msrb.gmra.mxu1 %v21075_v19  ;;  %v16889_v60 = vld [vmem:[#allocation2 + $0x2140] sm:$0xf]  ;;  %v16826_v49 = vor.u32 %v20016_v13, %v16825_v31  ;;  %v20012_v31 = vld [vmem:[#allocation2 + $0x20a4] sm:$0xf0] }
 0x220   :  { %10543 = vmatpush.bf16.msra.mxu1 %v16850_v59  ;;  %10512 = vmatmul.bf16.vlgmr.msrb.gmra.mxu2 %v21073_v52  ;;  %v16898_v59 = vor.u32 %v20034_v2, %v16897_v46  ;;  %v16890_v50 = vor.u32 %v20032_v58, %v16889_v60  ;;  %v16945_v46 = vld [vmem:[#allocation2 + $0x21b0] sm:$0xf]  ;;  %v20046_v2 = vld [vmem:[#allocation2 + $0x21b4] sm:$0xf0]  ;;  %v20028_v13 = vld [vmem:[#allocation2 + $0x2124] sm:$0xf0] }
 0x221   :  { %10556 = vmatpush.bf16.msra.mxu2 %v16914_v48  ;;  %10525 = vmatmul.bf16.vlgmr.msrb.gmra.mxu3 %v21077_v43  ;;  %v16834_v48 = vor.u32 %v20018_v56, %v16833_v0  ;;  %v20014_v0 = vld [vmem:[#allocation2 + $0x20b4] sm:$0xf0]  ;;  %v16946_v17 = vor.u32 %v20046_v2, %v16945_v46  ;;  %v16729_v2 = vld [vmem:[#allocation2 + $0x2000] sm:$0xf]  ;;  %v20068_v30 = vld [vmem:[#allocation2 + $0x2264] sm:$0xf0] }
 0x222   :  { %10569 = vmatpush.bf16.msra.mxu3 %v16978_v35  ;;  %v20048_v35 = vld [vmem:[#allocation2 + $0x21c4] sm:$0xf0]  ;;  %v20030_v56 = vld [vmem:[#allocation2 + $0x2134] sm:$0xf0]  ;;  %v17033_v52 = vld [vmem:[#allocation2 + $0x2260] sm:$0xf] }
 0x223   :  { %10531 = vmatpush.bf16.msra.mxu0 %v16778_v51  ;;  %v16753_v51 = vld [vmem:[#allocation2 + $0x2030] sm:$0xf]  ;;  %v16954_v55 = vor.u32 %v20048_v35, %v16953_v53  ;;  %v10305_v25 = vpop.f32.mrf.mxu2  ;;  %v20044_v53 = vld [vmem:[#allocation2 + $0x21a4] sm:$0xf0]  ;;  %v10281_v35 = vpop.f32.mrf.mxu0  ;;  %v20042_v46 = vld [vmem:[#allocation2 + $0x2194] sm:$0xf0] }
 0x224   :  { %10544 = vmatpush.bf16.msra.mxu1 %v16842_v8  ;;  %v19998_v8 = vld [vmem:[#allocation2 + $0x2034] sm:$0xf0]  ;;  %v10306_v60 = vadd.f32 %v10305_v25, %v10293_v44  ;;  %v10318_v58 = vpop.f32.mrf.mxu3  ;;  %v10294_v7 = vpop.f32.mrf.mxu1  ;;  %v16865_v44 = vld [vmem:[#allocation2 + $0x2110] sm:$0xf]  ;;  %v20024_v25 = vld [vmem:[#allocation2 + $0x2104] sm:$0xf0] }
 0x225   :  { %10557 = vmatpush.bf16.msra.mxu2 %v16906_v10  ;;  %v16817_v10 = vld [vmem:[#allocation2 + $0x20b0] sm:$0xf]  ;;  %v16754_v1 = vor.u32 %v19998_v8, %v16753_v51  ;;  %v19994_v8 = vld [vmem:[#allocation2 + $0x2014] sm:$0xf0] }
 0x226   :  { %10570 = vmatpush.bf16.msra.mxu3 %v16970_v47  ;;  %v16881_v47 = vld [vmem:[#allocation2 + $0x2130] sm:$0xf]  ;;  %v16818_v15 = vor.u32 %v20014_v0, %v16817_v10  ;;  %v16938_v0 = vor.u32 %v20044_v53, %v16937_v20  ;;  %v20086_v53 = vld [vmem:[#allocation2 + $0x22f4] sm:$0xf0] }
 0x227   :  { %10532 = vmatpush.bf16.msra.mxu0 %v16770_v27  ;;  %v16882_v57 = vor.u32 %v20030_v56, %v16881_v47  ;;  %v16745_v27 = vld [vmem:[#allocation2 + $0x2020] sm:$0xf]  ;;  %v16801_v10 = vld [vmem:[#allocation2 + $0x2090] sm:$0xf]  ;;  %v20026_v47 = vld [vmem:[#allocation2 + $0x2114] sm:$0xf0] }
 0x228   :  { %10545 = vmatpush.bf16.msra.mxu1 %v16834_v48  ;;  %v19996_v48 = vld [vmem:[#allocation2 + $0x2024] sm:$0xf0]  ;;  %v16929_v56 = vld [vmem:[#allocation2 + $0x2190] sm:$0xf] }
 0x229   :  { %10558 = vmatpush.bf16.msra.mxu2 %v16898_v59  ;;  %v16809_v59 = vld [vmem:[#allocation2 + $0x20a0] sm:$0xf]  ;;  %v16746_v14 = vor.u32 %v19996_v48, %v16745_v27  ;;  %v17105_v20 = vld [vmem:[#allocation2 + $0x22f0] sm:$0xf] }
 0x22a   :  { %10571 = vmatpush.bf16.msra.mxu3 %v16962_v61  ;;  %v16873_v61 = vld [vmem:[#allocation2 + $0x2120] sm:$0xf]  ;;  %v17169_v7 = vld [vmem:[#allocation2 + $0x2370] sm:$0xf]  ;;  %v17106_v43 = vor.u32 %v20086_v53, %v17105_v20  ;;  %v20066_v53 = vld [vmem:[#allocation2 + $0x2254] sm:$0xf0] }
 0x22b   :  { %10533 = vmatpush.bf16.msra.mxu0 %v16762_v54  ;;  %v16737_v54 = vld [vmem:[#allocation2 + $0x2010] sm:$0xf]  ;;  %v16874_v51 = vor.u32 %v20028_v13, %v16873_v61  ;;  %v16793_v48 = vld [vmem:[#allocation2 + $0x2080] sm:$0xf]  ;;  %v20040_v13 = vld [vmem:[#allocation2 + $0x2184] sm:$0xf0]  ;;  %v10307_v35 = vpop.f32.mrf.mxu2 }
 0x22c   :  { %10546 = vmatpush.bf16.msra.mxu1 %v16826_v49  ;;  %v21084_v49 = vadd.f32 %v10318_v58, %v10306_v60  ;;  %v16738_v27 = vor.u32 %v19994_v8, %v16737_v54  ;;  %v16921_v61 = vld [vmem:[#allocation2 + $0x2180] sm:$0xf]  ;;  %v16930_v60 = vor.u32 %v20042_v46, %v16929_v56  ;;  %v20070_v58 = vld [vmem:[#allocation2 + $0x2274] sm:$0xf0]  ;;  %v10320_v54 = vpop.f32.mrf.mxu3  ;;  %v17025_v20 = vld [vmem:[#allocation2 + $0x2250] sm:$0xf] }
 0x22d   :  { %10559 = vmatpush.bf16.msra.mxu2 %v16890_v50  ;;  %v16810_v50 = vor.u32 %v20012_v31, %v16809_v59  ;;  %v16866_v31 = vor.u32 %v20026_v47, %v16865_v44  ;;  %v132_v8 = vld [vmem:[%s21411_s0 + $0x88] sm:$0xff]  ;;  %v246_v44 = vld.sshfl [vmem:[#allocation1] sm:$0xff pattern:$0x73625140]  ;;  %v16922_v56 = vor.u32 %v20040_v13, %v16921_v61  ;;  %v20116_v61 = vld [vmem:[#allocation2 + $0x23e4] sm:$0xf0] }
 0x22e   :  { %10572 = vmatpush.bf16.msra.mxu3 %v16954_v55  ;;  %v20010_v55 = vld [vmem:[#allocation2 + $0x2094] sm:$0xf0]  ;;  %245 = vst [vmem:[#allocation1 + $0x20] ss:$4 sm:$0xff] %v132_v8 }
 0x22f   :  { %10534 = vmatpush.bf16.msra.mxu0 %v16754_v1  ;;  %v19992_v1 = vld [vmem:[#allocation2 + $0x2004] sm:$0xf0]  ;;  %v16802_v59 = vor.u32 %v20010_v55, %v16801_v10  ;;  %v20118_v10 = vld [vmem:[#allocation2 + $0x23f4] sm:$0xf0] }
 0x230   :  { %10547 = vmatpush.bf16.msra.mxu1 %v16818_v15  ;;  %v20008_v15 = vld [vmem:[#allocation2 + $0x2084] sm:$0xf0]  ;;  %v247_v35 = vld.sshfl [vmem:[#allocation1 + $0x8] sm:$0xff pattern:$0x73625140] }
 0x231   :  { %10560 = vmatpush.bf16.msra.mxu2 %v16882_v57  ;;  %v16857_v57 = vld [vmem:[#allocation2 + $0x2100] sm:$0xf]  ;;  %v16794_v55 = vor.u32 %v20008_v15, %v16793_v48  ;;  %v248_v47 = vld.sshfl [vmem:[#allocation1 + $0x10] sm:$0xff pattern:$0x73625140] }
 0x232   :  { %10573 = vmatpush.bf16.msra.mxu3 %v16946_v17  ;;  %v17041_v17 = vld [vmem:[#allocation2 + $0x2270] sm:$0xf]  ;;  %v20100_v48 = vld [vmem:[#allocation2 + $0x2364] sm:$0xf0]  ;;  %v21091_v15 = vpack.c.bf16 %v248_v47, %v248_v47  ;;  %v20082_v8 = vld [vmem:[#allocation2 + $0x22d4] sm:$0xf0] }
 0x233   :  { %10535 = vmatpush.bf16.msra.mxu0 %v16746_v14  ;;  %v20102_v14 = vld [vmem:[#allocation2 + $0x2374] sm:$0xf0]  ;;  %v17042_v46 = vor.u32 %v20070_v58, %v17041_v17  ;;  %v249_v54 = vld.sshfl [vmem:[#allocation1 + $0x18] sm:$0xff pattern:$0x73625140]  ;;  %v17034_v17 = vor.u32 %v20068_v30, %v17033_v52  ;;  %v17026_v52 = vor.u32 %v20066_v53, %v17025_v20 }
 0x234   :  { %10548 = vmatpush.bf16.msra.mxu1 %v16810_v50  ;;  %v16730_v50 = vor.u32 %v19992_v1, %v16729_v2  ;;  %v17170_v19 = vor.u32 %v20102_v14, %v17169_v7  ;;  %v21089_v1 = vpack.c.bf16 %v246_v44, %v246_v44  ;;  %21519 = vst [vmem:[#allocation55_spill] sm:$0xff] %v21091_v15  ;;  %v17089_v7 = vld [vmem:[#allocation2 + $0x22d0] sm:$0xf]  ;;  %v20114_v30 = vld [vmem:[#allocation2 + $0x23d4] sm:$0xf0] }
 0x235   :  { %10561 = vmatpush.bf16.msra.mxu2 %v16874_v51  ;;  %v17233_v51 = vld [vmem:[#allocation2 + $0x23f0] sm:$0xf]  ;;  %v21095_v13 = vpack.c.bf16 %v249_v54, %v249_v54  ;;  %v17081_v44 = vld [vmem:[#allocation2 + $0x22c0] sm:$0xf] }
 0x236   :  { %10574 = vmatpush.bf16.msra.mxu3 %v16938_v0  ;;  %v16858_v0 = vor.u32 %v20024_v25, %v16857_v57  ;;  %v17234_v2 = vor.u32 %v20118_v10, %v17233_v51  ;;  %21518 = vst [vmem:[#allocation54_spill] sm:$0xff] %v21089_v1  ;;  %v21093_v57 = vpack.c.bf16 %v247_v35, %v247_v35  ;;  %v17225_v25 = vld [vmem:[#allocation2 + $0x23e0] sm:$0xf]  ;;  %v20098_v51 = vld [vmem:[#allocation2 + $0x2354] sm:$0xf0] }
 0x237   :  { %10536 = vmatpush.bf16.msra.mxu0 %v16738_v27  ;;  %v17097_v27 = vld [vmem:[#allocation2 + $0x22e0] sm:$0xf]  ;;  %21521 = vst [vmem:[#allocation57_spill] sm:$0xff] %v21095_v13  ;;  %v17226_v14 = vor.u32 %v20116_v61, %v17225_v25  ;;  %v17217_v10 = vld [vmem:[#allocation2 + $0x23d0] sm:$0xf] }
 0x238   :  { %10549 = vmatpush.bf16.msra.mxu1 %v16802_v59  ;;  %v20084_v59 = vld [vmem:[#allocation2 + $0x22e4] sm:$0xf0]  ;;  %21520 = vst [vmem:[#allocation56_spill] sm:$0xff] %v21093_v57  ;;  %v17218_v47 = vor.u32 %v20114_v30, %v17217_v10 }
 0x239   :  { %10562 = vmatpush.bf16.msra.mxu2 %v16866_v31  ;;  %v17161_v31 = vld [vmem:[#allocation2 + $0x2360] sm:$0xf]  ;;  %v20096_v35 = vld [vmem:[#allocation2 + $0x2344] sm:$0xf0] }
 0x23a   :  { %10575 = vmatpush.bf16.msra.mxu3 %v16930_v60  ;;  %v17098_v60 = vor.u32 %v20084_v59, %v17097_v27  ;;  %v17162_v58 = vor.u32 %v20100_v48, %v17161_v31  ;;  %v17209_v27 = vld [vmem:[#allocation2 + $0x23c0] sm:$0xf] }
 0x23b   :  { %10537 = vmatpush.bf16.msra.mxu0 %v16730_v50  ;;  %v17153_v50 = vld [vmem:[#allocation2 + $0x2350] sm:$0xf]  ;;  %v10331_v54 = vpop.f32.mrf.mxu0 }
 0x23c   :  { %10550 = vmatpush.bf16.msra.mxu1 %v16794_v55  ;;  %v17017_v55 = vld [vmem:[#allocation2 + $0x2240] sm:$0xf]  ;;  %v10332_v59 = vadd.f32 %v10331_v54, %v21084_v49  ;;  %v10344_v48 = vpop.f32.mrf.mxu1 }
 0x23d   :  { %10563 = vmatpush.bf16.msra.mxu2 %v16858_v0  ;;  %v20064_v0 = vld [vmem:[#allocation2 + $0x2244] sm:$0xf0]  ;;  %v17193_v54 = vld [vmem:[#allocation2 + $0x23a0] sm:$0xf] }
 0x23e   :  { %10576 = vmatpush.bf16.msra.mxu3 %v16922_v56  ;;  %10538 = vmatmul.bf16.vlgmr.msra.gmra.mxu0 %v21089_v1  ;;  %v20080_v56 = vld [vmem:[#allocation2 + $0x22c4] sm:$0xf0]  ;;  %v17018_v31 = vor.u32 %v20064_v0, %v17017_v55  ;;  %v10345_v53 = vadd.f32 %v10344_v48, %v10332_v59 }
 0x23f   :  { %10582 = vmatpush.bf16.msrb.mxu0 %v17042_v46  ;;  %10551 = vmatmul.bf16.vlgmr.msra.gmra.mxu1 %v21093_v57  ;;  %v17145_v46 = vld [vmem:[#allocation2 + $0x2340] sm:$0xf]  ;;  %v17082_v25 = vor.u32 %v20080_v56, %v17081_v44  ;;  %v20076_v44 = vld [vmem:[#allocation2 + $0x22a4] sm:$0xf0] }
 0x240   :  { %10595 = vmatpush.bf16.msrb.mxu1 %v17106_v43  ;;  %10564 = vmatmul.bf16.vlgmr.msra.gmra.mxu2 %v21091_v15  ;;  %v17154_v43 = vor.u32 %v20098_v51, %v17153_v50  ;;  %v17146_v61 = vor.u32 %v20096_v35, %v17145_v46  ;;  %v17201_v50 = vld [vmem:[#allocation2 + $0x23b0] sm:$0xf]  ;;  %v20110_v51 = vld [vmem:[#allocation2 + $0x23b4] sm:$0xf0]  ;;  %v20092_v56 = vld [vmem:[#allocation2 + $0x2324] sm:$0xf0] }
 0x241   :  { %10608 = vmatpush.bf16.msrb.mxu2 %v17170_v19  ;;  %10577 = vmatmul.bf16.vlgmr.msra.gmra.mxu3 %v21095_v13  ;;  %v17090_v19 = vor.u32 %v20082_v8, %v17089_v7  ;;  %v20078_v7 = vld [vmem:[#allocation2 + $0x22b4] sm:$0xf0]  ;;  %v17202_v55 = vor.u32 %v20110_v51, %v17201_v50  ;;  %v16985_v51 = vld [vmem:[#allocation2 + $0x2200] sm:$0xf]  ;;  %v20132_v1 = vld [vmem:[#allocation2 + $0x2464] sm:$0xf0] }
 0x242   :  { %10621 = vmatpush.bf16.msrb.mxu3 %v17234_v2  ;;  %v20112_v2 = vld [vmem:[#allocation2 + $0x23c4] sm:$0xf0]  ;;  %v20094_v8 = vld [vmem:[#allocation2 + $0x2334] sm:$0xf0]  ;;  %v17289_v15 = vld [vmem:[#allocation2 + $0x2460] sm:$0xf] }
 0x243   :  { %10583 = vmatpush.bf16.msrb.mxu0 %v17034_v17  ;;  %v17009_v17 = vld [vmem:[#allocation2 + $0x2230] sm:$0xf]  ;;  %v17210_v20 = vor.u32 %v20112_v2, %v17209_v27  ;;  %v10357_v0 = vpop.f32.mrf.mxu2  ;;  %v20108_v27 = vld [vmem:[#allocation2 + $0x23a4] sm:$0xf0]  ;;  %v10333_v2 = vpop.f32.mrf.mxu0  ;;  %v20106_v50 = vld [vmem:[#allocation2 + $0x2394] sm:$0xf0] }
 0x244   :  { %10596 = vmatpush.bf16.msrb.mxu1 %v17098_v60  ;;  %v20062_v60 = vld [vmem:[#allocation2 + $0x2234] sm:$0xf0]  ;;  %v10358_v46 = vadd.f32 %v10357_v0, %v10345_v53  ;;  %v10370_v35 = vpop.f32.mrf.mxu3  ;;  %v10346_v48 = vpop.f32.mrf.mxu1  ;;  %v17121_v53 = vld [vmem:[#allocation2 + $0x2310] sm:$0xf]  ;;  %v20088_v0 = vld [vmem:[#allocation2 + $0x2304] sm:$0xf0] }
 0x245   :  { %10609 = vmatpush.bf16.msrb.mxu2 %v17162_v58  ;;  %v17073_v58 = vld [vmem:[#allocation2 + $0x22b0] sm:$0xf]  ;;  %v17010_v10 = vor.u32 %v20062_v60, %v17009_v17  ;;  %v20058_v60 = vld [vmem:[#allocation2 + $0x2214] sm:$0xf0] }
 0x246   :  { %10622 = vmatpush.bf16.msrb.mxu3 %v17226_v14  ;;  %v17137_v14 = vld [vmem:[#allocation2 + $0x2330] sm:$0xf]  ;;  %v17074_v49 = vor.u32 %v20078_v7, %v17073_v58  ;;  %v17194_v7 = vor.u32 %v20108_v27, %v17193_v54  ;;  %v20150_v27 = vld [vmem:[#allocation2 + $0x24f4] sm:$0xf0] }
 0x247   :  { %10584 = vmatpush.bf16.msrb.mxu0 %v17026_v52  ;;  %v17138_v30 = vor.u32 %v20094_v8, %v17137_v14  ;;  %v17001_v52 = vld [vmem:[#allocation2 + $0x2220] sm:$0xf]  ;;  %v17057_v58 = vld [vmem:[#allocation2 + $0x2290] sm:$0xf]  ;;  %v20090_v14 = vld [vmem:[#allocation2 + $0x2314] sm:$0xf0] }
 0x248   :  { %10597 = vmatpush.bf16.msrb.mxu1 %v17090_v19  ;;  %v20060_v19 = vld [vmem:[#allocation2 + $0x2224] sm:$0xf0]  ;;  %v17185_v8 = vld [vmem:[#allocation2 + $0x2390] sm:$0xf] }
 0x249   :  { %10610 = vmatpush.bf16.msrb.mxu2 %v17154_v43  ;;  %v17065_v43 = vld [vmem:[#allocation2 + $0x22a0] sm:$0xf]  ;;  %v17002_v59 = vor.u32 %v20060_v19, %v17001_v52  ;;  %v17361_v54 = vld [vmem:[#allocation2 + $0x24f0] sm:$0xf] }
 0x24a   :  { %10623 = vmatpush.bf16.msrb.mxu3 %v17218_v47  ;;  %v17129_v47 = vld [vmem:[#allocation2 + $0x2320] sm:$0xf]  ;;  %v17425_v48 = vld [vmem:[#allocation2 + $0x2570] sm:$0xf]  ;;  %v17362_v13 = vor.u32 %v20150_v27, %v17361_v54  ;;  %v20130_v27 = vld [vmem:[#allocation2 + $0x2454] sm:$0xf0] }
 0x24b   :  { %10585 = vmatpush.bf16.msrb.mxu0 %v17018_v31  ;;  %v16993_v31 = vld [vmem:[#allocation2 + $0x2210] sm:$0xf]  ;;  %v17130_v17 = vor.u32 %v20092_v56, %v17129_v47  ;;  %v17049_v19 = vld [vmem:[#allocation2 + $0x2280] sm:$0xf]  ;;  %v20104_v56 = vld [vmem:[#allocation2 + $0x2384] sm:$0xf0]  ;;  %v10359_v2 = vpop.f32.mrf.mxu2 }
 0x24c   :  { %10598 = vmatpush.bf16.msrb.mxu1 %v17082_v25  ;;  %v21102_v25 = vadd.f32 %v10370_v35, %v10358_v46  ;;  %v16994_v52 = vor.u32 %v20058_v60, %v16993_v31  ;;  %v17177_v47 = vld [vmem:[#allocation2 + $0x2380] sm:$0xf]  ;;  %v17186_v46 = vor.u32 %v20106_v50, %v17185_v8  ;;  %v20134_v35 = vld [vmem:[#allocation2 + $0x2474] sm:$0xf0]  ;;  %v10372_v31 = vpop.f32.mrf.mxu3  ;;  %v133_v60 = vld [vmem:[%s21411_s0 + $0x90] sm:$0xff] }
 0x24d   :  { %10611 = vmatpush.bf16.msrb.mxu2 %v17146_v61  ;;  %v17066_v61 = vor.u32 %v20076_v44, %v17065_v43  ;;  %v17122_v44 = vor.u32 %v20090_v14, %v17121_v53  ;;  %254 = vst [vmem:[#allocation1] ss:$4 sm:$0xff] %v133_v60  ;;  %v250_v53 = vld.sshfl [vmem:[#allocation1 + $0x20] sm:$0xff pattern:$0x73625140]  ;;  %v17178_v8 = vor.u32 %v20104_v56, %v17177_v47 }
 0x24e   :  { %10624 = vmatpush.bf16.msrb.mxu3 %v17210_v20  ;;  %v20074_v20 = vld [vmem:[#allocation2 + $0x2294] sm:$0xf0]  ;;  %v252_v14 = vld.sshfl [vmem:[#allocation1 + $0x30] sm:$0xff pattern:$0x73625140] }
 0x24f   :  { %10586 = vmatpush.bf16.msrb.mxu0 %v17010_v10  ;;  %v20056_v10 = vld [vmem:[#allocation2 + $0x2204] sm:$0xf0]  ;;  %v17058_v43 = vor.u32 %v20074_v20, %v17057_v58  ;;  %v20182_v58 = vld [vmem:[#allocation2 + $0x25f4] sm:$0xf0]  ;;  %v17281_v54 = vld [vmem:[#allocation2 + $0x2450] sm:$0xf] }
 0x250   :  { %10599 = vmatpush.bf16.msrb.mxu1 %v17074_v49  ;;  %v20072_v49 = vld [vmem:[#allocation2 + $0x2284] sm:$0xf0]  ;;  %v251_v2 = vld.sshfl [vmem:[#allocation1 + $0x28] sm:$0xff pattern:$0x73625140] }
 0x251   :  { %10612 = vmatpush.bf16.msrb.mxu2 %v17138_v30  ;;  %v17113_v30 = vld [vmem:[#allocation2 + $0x2300] sm:$0xf]  ;;  %v17050_v20 = vor.u32 %v20072_v49, %v17049_v19  ;;  %v253_v31 = vld.sshfl [vmem:[#allocation1 + $0x38] sm:$0xff pattern:$0x73625140]  ;;  %v21109_v49 = vpack.c.bf16 %v252_v14, %v252_v14 }
 0x252   :  { %10625 = vmatpush.bf16.msrb.mxu3 %v17202_v55  ;;  %v17297_v55 = vld [vmem:[#allocation2 + $0x2470] sm:$0xf]  ;;  %v20164_v19 = vld [vmem:[#allocation2 + $0x2564] sm:$0xf0]  ;;  %v21113_v56 = vpack.c.bf16 %v253_v31, %v253_v31  ;;  %v20146_v60 = vld [vmem:[#allocation2 + $0x24d4] sm:$0xf0] }
 0x253   :  { %10587 = vmatpush.bf16.msrb.mxu0 %v17002_v59  ;;  %v20166_v59 = vld [vmem:[#allocation2 + $0x2574] sm:$0xf0]  ;;  %v17298_v50 = vor.u32 %v20134_v35, %v17297_v55  ;;  %21523 = vst [vmem:[#allocation59_spill] sm:$0xff] %v21109_v49  ;;  %v20180_v47 = vld [vmem:[#allocation2 + $0x25e4] sm:$0xf0]  ;;  %v17290_v55 = vor.u32 %v20132_v1, %v17289_v15  ;;  %v17282_v15 = vor.u32 %v20130_v27, %v17281_v54 }
 0x254   :  { %10600 = vmatpush.bf16.msrb.mxu1 %v17066_v61  ;;  %v16986_v61 = vor.u32 %v20056_v10, %v16985_v51  ;;  %v17426_v57 = vor.u32 %v20166_v59, %v17425_v48  ;;  %v21107_v10 = vpack.c.bf16 %v250_v53, %v250_v53  ;;  %21525 = vst [vmem:[#allocation61_spill] sm:$0xff] %v21113_v56  ;;  %v17345_v48 = vld [vmem:[#allocation2 + $0x24d0] sm:$0xf]  ;;  %v20178_v1 = vld [vmem:[#allocation2 + $0x25d4] sm:$0xf0] }
 0x255   :  { %10613 = vmatpush.bf16.msrb.mxu2 %v17130_v17  ;;  %v17489_v17 = vld [vmem:[#allocation2 + $0x25f0] sm:$0xf]  ;;  %v17337_v53 = vld [vmem:[#allocation2 + $0x24c0] sm:$0xf] }
 0x256   :  { %10626 = vmatpush.bf16.msrb.mxu3 %v17194_v7  ;;  %v17114_v7 = vor.u32 %v20088_v0, %v17113_v30  ;;  %v17490_v51 = vor.u32 %v20182_v58, %v17489_v17  ;;  %21522 = vst [vmem:[#allocation58_spill] sm:$0xff] %v21107_v10  ;;  %v21111_v30 = vpack.c.bf16 %v251_v2, %v251_v2  ;;  %v17481_v0 = vld [vmem:[#allocation2 + $0x25e0] sm:$0xf]  ;;  %v20162_v17 = vld [vmem:[#allocation2 + $0x2554] sm:$0xf0] }
 0x257   :  { %10588 = vmatpush.bf16.msrb.mxu0 %v16994_v52  ;;  %v17353_v52 = vld [vmem:[#allocation2 + $0x24e0] sm:$0xf]  ;;  %v17482_v59 = vor.u32 %v20180_v47, %v17481_v0  ;;  %v17473_v58 = vld [vmem:[#allocation2 + $0x25d0] sm:$0xf]  ;;  %v20160_v2 = vld [vmem:[#allocation2 + $0x2544] sm:$0xf0] }
 0x258   :  { %10601 = vmatpush.bf16.msrb.mxu1 %v17058_v43  ;;  %v20148_v43 = vld [vmem:[#allocation2 + $0x24e4] sm:$0xf0]  ;;  %21524 = vst [vmem:[#allocation60_spill] sm:$0xff] %v21111_v30  ;;  %v17474_v14 = vor.u32 %v20178_v1, %v17473_v58 }
 0x259   :  { %10614 = vmatpush.bf16.msrb.mxu2 %v17122_v44  ;;  %v17417_v44 = vld [vmem:[#allocation2 + $0x2560] sm:$0xf] }
 0x25a   :  { %10627 = vmatpush.bf16.msrb.mxu3 %v17186_v46  ;;  %v17354_v46 = vor.u32 %v20148_v43, %v17353_v52  ;;  %v17418_v35 = vor.u32 %v20164_v19, %v17417_v44  ;;  %v17465_v52 = vld [vmem:[#allocation2 + $0x25c0] sm:$0xf] }
 0x25b   :  { %10589 = vmatpush.bf16.msrb.mxu0 %v16986_v61  ;;  %v17409_v61 = vld [vmem:[#allocation2 + $0x2550] sm:$0xf]  ;;  %v10383_v31 = vpop.f32.mrf.mxu0 }
 0x25c   :  { %10602 = vmatpush.bf16.msrb.mxu1 %v17050_v20  ;;  %v17273_v20 = vld [vmem:[#allocation2 + $0x2440] sm:$0xf]  ;;  %v10384_v43 = vadd.f32 %v10383_v31, %v21102_v25  ;;  %v10396_v19 = vpop.f32.mrf.mxu1 }
 0x25d   :  { %10615 = vmatpush.bf16.msrb.mxu2 %v17114_v7  ;;  %v20128_v7 = vld [vmem:[#allocation2 + $0x2444] sm:$0xf0]  ;;  %v17449_v31 = vld [vmem:[#allocation2 + $0x25a0] sm:$0xf] }
 0x25e   :  { %10628 = vmatpush.bf16.msrb.mxu3 %v17178_v8  ;;  %10590 = vmatmul.bf16.vlgmr.msrb.gmra.mxu0 %v21107_v10  ;;  %v20144_v8 = vld [vmem:[#allocation2 + $0x24c4] sm:$0xf0]  ;;  %v17274_v44 = vor.u32 %v20128_v7, %v17273_v20  ;;  %v10397_v27 = vadd.f32 %v10396_v19, %v10384_v43 }
 0x25f   :  { %10634 = vmatpush.bf16.msra.mxu0 %v17298_v50  ;;  %10603 = vmatmul.bf16.vlgmr.msrb.gmra.mxu1 %v21111_v30  ;;  %v17401_v50 = vld [vmem:[#allocation2 + $0x2540] sm:$0xf]  ;;  %v17338_v0 = vor.u32 %v20144_v8, %v17337_v53  ;;  %v20140_v53 = vld [vmem:[#allocation2 + $0x24a4] sm:$0xf0] }
 0x260   :  { %10647 = vmatpush.bf16.msra.mxu1 %v17362_v13  ;;  %10616 = vmatmul.bf16.vlgmr.msrb.gmra.mxu2 %v21109_v49  ;;  %v17410_v13 = vor.u32 %v20162_v17, %v17409_v61  ;;  %v17402_v47 = vor.u32 %v20160_v2, %v17401_v50  ;;  %v17457_v61 = vld [vmem:[#allocation2 + $0x25b0] sm:$0xf]  ;;  %v20174_v17 = vld [vmem:[#allocation2 + $0x25b4] sm:$0xf0]  ;;  %v20156_v8 = vld [vmem:[#allocation2 + $0x2524] sm:$0xf0] }
 0x261   :  { %10660 = vmatpush.bf16.msra.mxu2 %v17426_v57  ;;  %10629 = vmatmul.bf16.vlgmr.msrb.gmra.mxu3 %v21113_v56  ;;  %v17346_v57 = vor.u32 %v20146_v60, %v17345_v48  ;;  %v20142_v48 = vld [vmem:[#allocation2 + $0x24b4] sm:$0xf0]  ;;  %v17458_v20 = vor.u32 %v20174_v17, %v17457_v61  ;;  %v17241_v17 = vld [vmem:[#allocation2 + $0x2400] sm:$0xf]  ;;  %v20196_v10 = vld [vmem:[#allocation2 + $0x2664] sm:$0xf0] }
 0x262   :  { %10673 = vmatpush.bf16.msra.mxu3 %v17490_v51  ;;  %v20176_v51 = vld [vmem:[#allocation2 + $0x25c4] sm:$0xf0]  ;;  %v20158_v60 = vld [vmem:[#allocation2 + $0x2534] sm:$0xf0]  ;;  %v17545_v49 = vld [vmem:[#allocation2 + $0x2660] sm:$0xf] }
 0x263   :  { %10635 = vmatpush.bf16.msra.mxu0 %v17290_v55  ;;  %v17265_v55 = vld [vmem:[#allocation2 + $0x2430] sm:$0xf]  ;;  %v17466_v54 = vor.u32 %v20176_v51, %v17465_v52  ;;  %v10409_v7 = vpop.f32.mrf.mxu2  ;;  %v20172_v52 = vld [vmem:[#allocation2 + $0x25a4] sm:$0xf0]  ;;  %v10385_v51 = vpop.f32.mrf.mxu0  ;;  %v20170_v61 = vld [vmem:[#allocation2 + $0x2594] sm:$0xf0] }
 0x264   :  { %10648 = vmatpush.bf16.msra.mxu1 %v17354_v46  ;;  %v20126_v46 = vld [vmem:[#allocation2 + $0x2434] sm:$0xf0]  ;;  %v10410_v50 = vadd.f32 %v10409_v7, %v10397_v27  ;;  %v10422_v2 = vpop.f32.mrf.mxu3  ;;  %v10398_v19 = vpop.f32.mrf.mxu1  ;;  %v17377_v27 = vld [vmem:[#allocation2 + $0x2510] sm:$0xf]  ;;  %v20152_v7 = vld [vmem:[#allocation2 + $0x2504] sm:$0xf0] }
 0x265   :  { %10661 = vmatpush.bf16.msra.mxu2 %v17418_v35  ;;  %v17329_v35 = vld [vmem:[#allocation2 + $0x24b0] sm:$0xf]  ;;  %v17266_v58 = vor.u32 %v20126_v46, %v17265_v55  ;;  %v20122_v46 = vld [vmem:[#allocation2 + $0x2414] sm:$0xf0] }
 0x266   :  { %10674 = vmatpush.bf16.msra.mxu3 %v17482_v59  ;;  %v17393_v59 = vld [vmem:[#allocation2 + $0x2530] sm:$0xf]  ;;  %v17330_v25 = vor.u32 %v20142_v48, %v17329_v35  ;;  %v17450_v48 = vor.u32 %v20172_v52, %v17449_v31  ;;  %v20214_v52 = vld [vmem:[#allocation2 + $0x26f4] sm:$0xf0] }
 0x267   :  { %10636 = vmatpush.bf16.msra.mxu0 %v17282_v15  ;;  %v17394_v1 = vor.u32 %v20158_v60, %v17393_v59  ;;  %v17257_v15 = vld [vmem:[#allocation2 + $0x2420] sm:$0xf]  ;;  %v17313_v35 = vld [vmem:[#allocation2 + $0x2490] sm:$0xf]  ;;  %v20154_v59 = vld [vmem:[#allocation2 + $0x2514] sm:$0xf0] }
 0x268   :  { %10649 = vmatpush.bf16.msra.mxu1 %v17346_v57  ;;  %v20124_v57 = vld [vmem:[#allocation2 + $0x2424] sm:$0xf0]  ;;  %v17441_v60 = vld [vmem:[#allocation2 + $0x2590] sm:$0xf] }
 0x269   :  { %10662 = vmatpush.bf16.msra.mxu2 %v17410_v13  ;;  %v17321_v13 = vld [vmem:[#allocation2 + $0x24a0] sm:$0xf]  ;;  %v17258_v43 = vor.u32 %v20124_v57, %v17257_v15  ;;  %v17617_v31 = vld [vmem:[#allocation2 + $0x26f0] sm:$0xf] }
 0x26a   :  { %10675 = vmatpush.bf16.msra.mxu3 %v17474_v14  ;;  %v17385_v14 = vld [vmem:[#allocation2 + $0x2520] sm:$0xf]  ;;  %v17681_v19 = vld [vmem:[#allocation2 + $0x2770] sm:$0xf]  ;;  %v17618_v56 = vor.u32 %v20214_v52, %v17617_v31  ;;  %v20194_v52 = vld [vmem:[#allocation2 + $0x2654] sm:$0xf0] }
 0x26b   :  { %10637 = vmatpush.bf16.msra.mxu0 %v17274_v44  ;;  %v17249_v44 = vld [vmem:[#allocation2 + $0x2410] sm:$0xf]  ;;  %v17386_v55 = vor.u32 %v20156_v8, %v17385_v14  ;;  %v17305_v57 = vld [vmem:[#allocation2 + $0x2480] sm:$0xf]  ;;  %v20168_v8 = vld [vmem:[#allocation2 + $0x2584] sm:$0xf0]  ;;  %v10411_v51 = vpop.f32.mrf.mxu2 }
 0x26c   :  { %10650 = vmatpush.bf16.msra.mxu1 %v17338_v0  ;;  %v21120_v0 = vadd.f32 %v10422_v2, %v10410_v50  ;;  %v17250_v15 = vor.u32 %v20122_v46, %v17249_v44  ;;  %v17433_v14 = vld [vmem:[#allocation2 + $0x2580] sm:$0xf]  ;;  %v17442_v50 = vor.u32 %v20170_v61, %v17441_v60  ;;  %v20198_v2 = vld [vmem:[#allocation2 + $0x2674] sm:$0xf0]  ;;  %v10424_v44 = vpop.f32.mrf.mxu3  ;;  %v134_v46 = vld [vmem:[%s21411_s0 + $0x98] sm:$0xff] }
 0x26d   :  { %10663 = vmatpush.bf16.msra.mxu2 %v17402_v47  ;;  %v17322_v47 = vor.u32 %v20140_v53, %v17321_v13  ;;  %v17378_v53 = vor.u32 %v20154_v59, %v17377_v27  ;;  %255 = vst [vmem:[#allocation1 + $0x20] ss:$4 sm:$0xff] %v134_v46  ;;  %v256_v27 = vld.sshfl [vmem:[#allocation1] sm:$0xff pattern:$0x73625140]  ;;  %v17434_v60 = vor.u32 %v20168_v8, %v17433_v14 }
 0x26e   :  { %10676 = vmatpush.bf16.msra.mxu3 %v17466_v54  ;;  %v20138_v54 = vld [vmem:[#allocation2 + $0x2494] sm:$0xf0]  ;;  %v258_v59 = vld.sshfl [vmem:[#allocation1 + $0x10] sm:$0xff pattern:$0x73625140] }
 0x26f   :  { %10638 = vmatpush.bf16.msra.mxu0 %v17266_v58  ;;  %v20120_v58 = vld [vmem:[#allocation2 + $0x2404] sm:$0xf0]  ;;  %v17314_v13 = vor.u32 %v20138_v54, %v17313_v35  ;;  %v20246_v35 = vld [vmem:[#allocation2 + $0x27f4] sm:$0xf0]  ;;  %v17537_v31 = vld [vmem:[#allocation2 + $0x2650] sm:$0xf] }
 0x270   :  { %10651 = vmatpush.bf16.msra.mxu1 %v17330_v25  ;;  %v20136_v25 = vld [vmem:[#allocation2 + $0x2484] sm:$0xf0]  ;;  %v257_v51 = vld.sshfl [vmem:[#allocation1 + $0x8] sm:$0xff pattern:$0x73625140] }
 0x271   :  { %10664 = vmatpush.bf16.msra.mxu2 %v17394_v1  ;;  %v17369_v1 = vld [vmem:[#allocation2 + $0x2500] sm:$0xf]  ;;  %v17306_v54 = vor.u32 %v20136_v25, %v17305_v57  ;;  %v259_v44 = vld.sshfl [vmem:[#allocation1 + $0x18] sm:$0xff pattern:$0x73625140]  ;;  %v21127_v25 = vpack.c.bf16 %v258_v59, %v258_v59 }
 0x272   :  { %10677 = vmatpush.bf16.msra.mxu3 %v17458_v20  ;;  %v17553_v20 = vld [vmem:[#allocation2 + $0x2670] sm:$0xf]  ;;  %v20228_v57 = vld [vmem:[#allocation2 + $0x2764] sm:$0xf0]  ;;  %v21131_v8 = vpack.c.bf16 %v259_v44, %v259_v44  ;;  %v20210_v46 = vld [vmem:[#allocation2 + $0x26d4] sm:$0xf0] }
 0x273   :  { %10639 = vmatpush.bf16.msra.mxu0 %v17258_v43  ;;  %v20230_v43 = vld [vmem:[#allocation2 + $0x2774] sm:$0xf0]  ;;  %v17554_v61 = vor.u32 %v20198_v2, %v17553_v20  ;;  %21527 = vst [vmem:[#allocation63_spill] sm:$0xff] %v21127_v25  ;;  %v20244_v14 = vld [vmem:[#allocation2 + $0x27e4] sm:$0xf0]  ;;  %v17546_v20 = vor.u32 %v20196_v10, %v17545_v49  ;;  %v17538_v49 = vor.u32 %v20194_v52, %v17537_v31 }
 0x274   :  { %10652 = vmatpush.bf16.msra.mxu1 %v17322_v47  ;;  %v17242_v47 = vor.u32 %v20120_v58, %v17241_v17  ;;  %v17682_v30 = vor.u32 %v20230_v43, %v17681_v19  ;;  %v21125_v58 = vpack.c.bf16 %v256_v27, %v256_v27  ;;  %21529 = vst [vmem:[#allocation65_spill] sm:$0xff] %v21131_v8  ;;  %v17601_v19 = vld [vmem:[#allocation2 + $0x26d0] sm:$0xf]  ;;  %v20242_v10 = vld [vmem:[#allocation2 + $0x27d4] sm:$0xf0] }
 0x275   :  { %10665 = vmatpush.bf16.msra.mxu2 %v17386_v55  ;;  %v17745_v55 = vld [vmem:[#allocation2 + $0x27f0] sm:$0xf]  ;;  %v17593_v27 = vld [vmem:[#allocation2 + $0x26c0] sm:$0xf] }
 0x276   :  { %10678 = vmatpush.bf16.msra.mxu3 %v17450_v48  ;;  %v17370_v48 = vor.u32 %v20152_v7, %v17369_v1  ;;  %v17746_v17 = vor.u32 %v20246_v35, %v17745_v55  ;;  %21526 = vst [vmem:[#allocation62_spill] sm:$0xff] %v21125_v58  ;;  %v21129_v1 = vpack.c.bf16 %v257_v51, %v257_v51  ;;  %v17737_v7 = vld [vmem:[#allocation2 + $0x27e0] sm:$0xf]  ;;  %v20226_v55 = vld [vmem:[#allocation2 + $0x2754] sm:$0xf0] }
 0x277   :  { %10640 = vmatpush.bf16.msra.mxu0 %v17250_v15  ;;  %v17609_v15 = vld [vmem:[#allocation2 + $0x26e0] sm:$0xf]  ;;  %v17738_v43 = vor.u32 %v20244_v14, %v17737_v7  ;;  %v17729_v35 = vld [vmem:[#allocation2 + $0x27d0] sm:$0xf]  ;;  %v20224_v51 = vld [vmem:[#allocation2 + $0x2744] sm:$0xf0] }
 0x278   :  { %10653 = vmatpush.bf16.msra.mxu1 %v17314_v13  ;;  %v20212_v13 = vld [vmem:[#allocation2 + $0x26e4] sm:$0xf0]  ;;  %21528 = vst [vmem:[#allocation64_spill] sm:$0xff] %v21129_v1  ;;  %v17730_v59 = vor.u32 %v20242_v10, %v17729_v35 }
 0x279   :  { %10666 = vmatpush.bf16.msra.mxu2 %v17378_v53  ;;  %v17673_v53 = vld [vmem:[#allocation2 + $0x2760] sm:$0xf] }
 0x27a   :  { %10679 = vmatpush.bf16.msra.mxu3 %v17442_v50  ;;  %v17610_v50 = vor.u32 %v20212_v13, %v17609_v15  ;;  %v17674_v2 = vor.u32 %v20228_v57, %v17673_v53  ;;  %v17721_v15 = vld [vmem:[#allocation2 + $0x27c0] sm:$0xf] }
 0x27b   :  { %10641 = vmatpush.bf16.msra.mxu0 %v17242_v47  ;;  %v17665_v47 = vld [vmem:[#allocation2 + $0x2750] sm:$0xf]  ;;  %v10435_v44 = vpop.f32.mrf.mxu0 }
 0x27c   :  { %10654 = vmatpush.bf16.msra.mxu1 %v17306_v54  ;;  %v17529_v54 = vld [vmem:[#allocation2 + $0x2640] sm:$0xf]  ;;  %v10436_v13 = vadd.f32 %v10435_v44, %v21120_v0  ;;  %v10448_v57 = vpop.f32.mrf.mxu1 }
 0x27d   :  { %10667 = vmatpush.bf16.msra.mxu2 %v17370_v48  ;;  %v20192_v48 = vld [vmem:[#allocation2 + $0x2644] sm:$0xf0]  ;;  %v17705_v44 = vld [vmem:[#allocation2 + $0x27a0] sm:$0xf] }
 0x27e   :  { %10680 = vmatpush.bf16.msra.mxu3 %v17434_v60  ;;  %10642 = vmatmul.bf16.vlgmr.msra.gmra.mxu0 %v21125_v58  ;;  %v20208_v60 = vld [vmem:[#allocation2 + $0x26c4] sm:$0xf0]  ;;  %v17530_v53 = vor.u32 %v20192_v48, %v17529_v54  ;;  %v10449_v52 = vadd.f32 %v10448_v57, %v10436_v13 }
 0x27f   :  { %10686 = vmatpush.bf16.msrb.mxu0 %v17554_v61  ;;  %10655 = vmatmul.bf16.vlgmr.msra.gmra.mxu1 %v21129_v1  ;;  %v17657_v61 = vld [vmem:[#allocation2 + $0x2740] sm:$0xf]  ;;  %v17594_v7 = vor.u32 %v20208_v60, %v17593_v27  ;;  %v20204_v27 = vld [vmem:[#allocation2 + $0x26a4] sm:$0xf0] }
 0x280   :  { %10699 = vmatpush.bf16.msrb.mxu1 %v17618_v56  ;;  %10668 = vmatmul.bf16.vlgmr.msra.gmra.mxu2 %v21127_v25  ;;  %v17666_v56 = vor.u32 %v20226_v55, %v17665_v47  ;;  %v17658_v14 = vor.u32 %v20224_v51, %v17657_v61  ;;  %v17713_v47 = vld [vmem:[#allocation2 + $0x27b0] sm:$0xf]  ;;  %v20238_v55 = vld [vmem:[#allocation2 + $0x27b4] sm:$0xf0]  ;;  %v20220_v60 = vld [vmem:[#allocation2 + $0x2724] sm:$0xf0] }
 0x281   :  { %10712 = vmatpush.bf16.msrb.mxu2 %v17682_v30  ;;  %10681 = vmatmul.bf16.vlgmr.msra.gmra.mxu3 %v21131_v8  ;;  %v17602_v30 = vor.u32 %v20210_v46, %v17601_v19  ;;  %v20206_v19 = vld [vmem:[#allocation2 + $0x26b4] sm:$0xf0]  ;;  %v17714_v54 = vor.u32 %v20238_v55, %v17713_v47  ;;  %v17497_v55 = vld [vmem:[#allocation2 + $0x2600] sm:$0xf]  ;;  %v20260_v58 = vld [vmem:[#allocation2 + $0x2864] sm:$0xf0] }
 0x282   :  { %10725 = vmatpush.bf16.msrb.mxu3 %v17746_v17  ;;  %v20240_v17 = vld [vmem:[#allocation2 + $0x27c4] sm:$0xf0]  ;;  %v20222_v46 = vld [vmem:[#allocation2 + $0x2734] sm:$0xf0]  ;;  %v17801_v25 = vld [vmem:[#allocation2 + $0x2860] sm:$0xf] }
 0x283   :  { %10687 = vmatpush.bf16.msrb.mxu0 %v17546_v20  ;;  %v17521_v20 = vld [vmem:[#allocation2 + $0x2630] sm:$0xf]  ;;  %v17722_v31 = vor.u32 %v20240_v17, %v17721_v15  ;;  %v10461_v48 = vpop.f32.mrf.mxu2  ;;  %v20236_v15 = vld [vmem:[#allocation2 + $0x27a4] sm:$0xf0]  ;;  %v10437_v17 = vpop.f32.mrf.mxu0  ;;  %v20234_v47 = vld [vmem:[#allocation2 + $0x2794] sm:$0xf0] }
 0x284   :  { %10700 = vmatpush.bf16.msrb.mxu1 %v17610_v50  ;;  %v20190_v50 = vld [vmem:[#allocation2 + $0x2634] sm:$0xf0]  ;;  %v10462_v61 = vadd.f32 %v10461_v48, %v10449_v52  ;;  %v10474_v51 = vpop.f32.mrf.mxu3  ;;  %v10450_v57 = vpop.f32.mrf.mxu1  ;;  %v17633_v52 = vld [vmem:[#allocation2 + $0x2710] sm:$0xf]  ;;  %v20216_v48 = vld [vmem:[#allocation2 + $0x2704] sm:$0xf0] }
 0x285   :  { %10713 = vmatpush.bf16.msrb.mxu2 %v17674_v2  ;;  %v17585_v2 = vld [vmem:[#allocation2 + $0x26b0] sm:$0xf]  ;;  %v17522_v35 = vor.u32 %v20190_v50, %v17521_v20  ;;  %v20186_v50 = vld [vmem:[#allocation2 + $0x2614] sm:$0xf0] }
 0x286   :  { %10726 = vmatpush.bf16.msrb.mxu3 %v17738_v43  ;;  %v17649_v43 = vld [vmem:[#allocation2 + $0x2730] sm:$0xf]  ;;  %v17586_v0 = vor.u32 %v20206_v19, %v17585_v2  ;;  %v17706_v19 = vor.u32 %v20236_v15, %v17705_v44  ;;  %v20278_v15 = vld [vmem:[#allocation2 + $0x28f4] sm:$0xf0] }
 0x287   :  { %10688 = vmatpush.bf16.msrb.mxu0 %v17538_v49  ;;  %v17650_v10 = vor.u32 %v20222_v46, %v17649_v43  ;;  %v17513_v49 = vld [vmem:[#allocation2 + $0x2620] sm:$0xf]  ;;  %v17569_v2 = vld [vmem:[#allocation2 + $0x2690] sm:$0xf]  ;;  %v20218_v43 = vld [vmem:[#allocation2 + $0x2714] sm:$0xf0] }
 0x288   :  { %10701 = vmatpush.bf16.msrb.mxu1 %v17602_v30  ;;  %v20188_v30 = vld [vmem:[#allocation2 + $0x2624] sm:$0xf0]  ;;  %v17697_v46 = vld [vmem:[#allocation2 + $0x2790] sm:$0xf] }
 0x289   :  { %10714 = vmatpush.bf16.msrb.mxu2 %v17666_v56  ;;  %v17577_v56 = vld [vmem:[#allocation2 + $0x26a0] sm:$0xf]  ;;  %v17514_v13 = vor.u32 %v20188_v30, %v17513_v49  ;;  %v17873_v44 = vld [vmem:[#allocation2 + $0x28f0] sm:$0xf] }
 0x28a   :  { %10727 = vmatpush.bf16.msrb.mxu3 %v17730_v59  ;;  %v17641_v59 = vld [vmem:[#allocation2 + $0x2720] sm:$0xf]  ;;  %v17937_v57 = vld [vmem:[#allocation2 + $0x2970] sm:$0xf]  ;;  %v17874_v8 = vor.u32 %v20278_v15, %v17873_v44  ;;  %v20258_v15 = vld [vmem:[#allocation2 + $0x2854] sm:$0xf0] }
 0x28b   :  { %10689 = vmatpush.bf16.msrb.mxu0 %v17530_v53  ;;  %v17505_v53 = vld [vmem:[#allocation2 + $0x2610] sm:$0xf]  ;;  %v17642_v20 = vor.u32 %v20220_v60, %v17641_v59  ;;  %v17561_v30 = vld [vmem:[#allocation2 + $0x2680] sm:$0xf]  ;;  %v20232_v60 = vld [vmem:[#allocation2 + $0x2784] sm:$0xf0]  ;;  %v10463_v17 = vpop.f32.mrf.mxu2 }
 0x28c   :  { %10702 = vmatpush.bf16.msrb.mxu1 %v17594_v7  ;;  %v21138_v7 = vadd.f32 %v10474_v51, %v10462_v61  ;;  %v17506_v49 = vor.u32 %v20186_v50, %v17505_v53  ;;  %v17689_v59 = vld [vmem:[#allocation2 + $0x2780] sm:$0xf]  ;;  %v17698_v61 = vor.u32 %v20234_v47, %v17697_v46  ;;  %v20262_v51 = vld [vmem:[#allocation2 + $0x2874] sm:$0xf0]  ;;  %v10476_v53 = vpop.f32.mrf.mxu3  ;;  %v17793_v44 = vld [vmem:[#allocation2 + $0x2850] sm:$0xf] }
 0x28d   :  { %10715 = vmatpush.bf16.msrb.mxu2 %v17658_v14  ;;  %v17578_v14 = vor.u32 %v20204_v27, %v17577_v56  ;;  %v17634_v27 = vor.u32 %v20218_v43, %v17633_v52  ;;  %v135_v50 = vld [vmem:[%s21411_s0 + $0xa0] sm:$0xff]  ;;  %v262_v43 = vld.sshfl [vmem:[#allocation1 + $0x30] sm:$0xff pattern:$0x73625140]  ;;  %v17690_v46 = vor.u32 %v20232_v60, %v17689_v59 }
 0x28e   :  { %10728 = vmatpush.bf16.msrb.mxu3 %v17722_v31  ;;  %v20202_v31 = vld [vmem:[#allocation2 + $0x2694] sm:$0xf0]  ;;  %264 = vst [vmem:[#allocation1] ss:$4 sm:$0xff] %v135_v50  ;;  %v20308_v59 = vld [vmem:[#allocation2 + $0x29e4] sm:$0xf0] }
 0x28f   :  { %10690 = vmatpush.bf16.msrb.mxu0 %v17522_v35  ;;  %v20184_v35 = vld [vmem:[#allocation2 + $0x2604] sm:$0xf0]  ;;  %v17570_v56 = vor.u32 %v20202_v31, %v17569_v2  ;;  %v20310_v2 = vld [vmem:[#allocation2 + $0x29f4] sm:$0xf0] }
 0x290   :  { %10703 = vmatpush.bf16.msrb.mxu1 %v17586_v0  ;;  %v20200_v0 = vld [vmem:[#allocation2 + $0x2684] sm:$0xf0]  ;;  %v260_v52 = vld.sshfl [vmem:[#allocation1 + $0x20] sm:$0xff pattern:$0x73625140] }
 0x291   :  { %10716 = vmatpush.bf16.msrb.mxu2 %v17650_v10  ;;  %v17625_v10 = vld [vmem:[#allocation2 + $0x2700] sm:$0xf]  ;;  %v17562_v31 = vor.u32 %v20200_v0, %v17561_v30  ;;  %v263_v53 = vld.sshfl [vmem:[#allocation1 + $0x38] sm:$0xff pattern:$0x73625140]  ;;  %v21145_v0 = vpack.c.bf16 %v262_v43, %v262_v43 }
 0x292   :  { %10729 = vmatpush.bf16.msrb.mxu3 %v17714_v54  ;;  %v17809_v54 = vld [vmem:[#allocation2 + $0x2870] sm:$0xf]  ;;  %v261_v17 = vld.sshfl [vmem:[#allocation1 + $0x28] sm:$0xff pattern:$0x73625140]  ;;  %v21149_v60 = vpack.c.bf16 %v263_v53, %v263_v53 }
 0x293   :  { %10691 = vmatpush.bf16.msrb.mxu0 %v17514_v13  ;;  %v20294_v13 = vld [vmem:[#allocation2 + $0x2974] sm:$0xf0]  ;;  %v17810_v47 = vor.u32 %v20262_v51, %v17809_v54  ;;  %v20292_v30 = vld [vmem:[#allocation2 + $0x2964] sm:$0xf0]  ;;  %21531 = vst [vmem:[#allocation67_spill] sm:$0xff] %v21145_v0  ;;  %v17802_v54 = vor.u32 %v20260_v58, %v17801_v25  ;;  %v17794_v25 = vor.u32 %v20258_v15, %v17793_v44 }
 0x294   :  { %10704 = vmatpush.bf16.msrb.mxu1 %v17578_v14  ;;  %v17498_v14 = vor.u32 %v20184_v35, %v17497_v55  ;;  %v17938_v1 = vor.u32 %v20294_v13, %v17937_v57  ;;  %v21143_v35 = vpack.c.bf16 %v260_v52, %v260_v52  ;;  %21533 = vst [vmem:[#allocation69_spill] sm:$0xff] %v21149_v60  ;;  %v17857_v57 = vld [vmem:[#allocation2 + $0x28d0] sm:$0xf]  ;;  %v20274_v50 = vld [vmem:[#allocation2 + $0x28d4] sm:$0xf0] }
 0x295   :  { %10717 = vmatpush.bf16.msrb.mxu2 %v17642_v20  ;;  %v18001_v20 = vld [vmem:[#allocation2 + $0x29f0] sm:$0xf]  ;;  %v20306_v58 = vld [vmem:[#allocation2 + $0x29d4] sm:$0xf0]  ;;  %v17849_v52 = vld [vmem:[#allocation2 + $0x28c0] sm:$0xf] }
 0x296   :  { %10730 = vmatpush.bf16.msrb.mxu3 %v17706_v19  ;;  %v17626_v19 = vor.u32 %v20216_v48, %v17625_v10  ;;  %v18002_v55 = vor.u32 %v20310_v2, %v18001_v20  ;;  %21530 = vst [vmem:[#allocation66_spill] sm:$0xff] %v21143_v35  ;;  %v21147_v10 = vpack.c.bf16 %v261_v17, %v261_v17  ;;  %v17993_v48 = vld [vmem:[#allocation2 + $0x29e0] sm:$0xf]  ;;  %v20290_v20 = vld [vmem:[#allocation2 + $0x2954] sm:$0xf0] }
 0x297   :  { %10692 = vmatpush.bf16.msrb.mxu0 %v17506_v49  ;;  %v17865_v49 = vld [vmem:[#allocation2 + $0x28e0] sm:$0xf]  ;;  %v17994_v13 = vor.u32 %v20308_v59, %v17993_v48  ;;  %v17985_v2 = vld [vmem:[#allocation2 + $0x29d0] sm:$0xf]  ;;  %v20288_v17 = vld [vmem:[#allocation2 + $0x2944] sm:$0xf0] }
 0x298   :  { %10705 = vmatpush.bf16.msrb.mxu1 %v17570_v56  ;;  %v20276_v56 = vld [vmem:[#allocation2 + $0x28e4] sm:$0xf0]  ;;  %21532 = vst [vmem:[#allocation68_spill] sm:$0xff] %v21147_v10  ;;  %v17986_v43 = vor.u32 %v20306_v58, %v17985_v2 }
 0x299   :  { %10718 = vmatpush.bf16.msrb.mxu2 %v17634_v27  ;;  %v17929_v27 = vld [vmem:[#allocation2 + $0x2960] sm:$0xf] }
 0x29a   :  { %10731 = vmatpush.bf16.msrb.mxu3 %v17698_v61  ;;  %v17866_v61 = vor.u32 %v20276_v56, %v17865_v49  ;;  %v17930_v51 = vor.u32 %v20292_v30, %v17929_v27  ;;  %v17977_v49 = vld [vmem:[#allocation2 + $0x29c0] sm:$0xf] }
 0x29b   :  { %10693 = vmatpush.bf16.msrb.mxu0 %v17498_v14  ;;  %v17921_v14 = vld [vmem:[#allocation2 + $0x2950] sm:$0xf]  ;;  %v10487_v53 = vpop.f32.mrf.mxu0 }
 0x29c   :  { %10706 = vmatpush.bf16.msrb.mxu1 %v17562_v31  ;;  %v17785_v31 = vld [vmem:[#allocation2 + $0x2840] sm:$0xf]  ;;  %v10488_v56 = vadd.f32 %v10487_v53, %v21138_v7  ;;  %v10500_v30 = vpop.f32.mrf.mxu1 }
 0x29d   :  { %10719 = vmatpush.bf16.msrb.mxu2 %v17626_v19  ;;  %v20256_v19 = vld [vmem:[#allocation2 + $0x2844] sm:$0xf0]  ;;  %v17961_v53 = vld [vmem:[#allocation2 + $0x29a0] sm:$0xf] }
 0x29e   :  { %10732 = vmatpush.bf16.msrb.mxu3 %v17690_v46  ;;  %10694 = vmatmul.bf16.vlgmr.msrb.gmra.mxu0 %v21143_v35  ;;  %v20272_v46 = vld [vmem:[#allocation2 + $0x28c4] sm:$0xf0]  ;;  %v17786_v27 = vor.u32 %v20256_v19, %v17785_v31  ;;  %v10501_v15 = vadd.f32 %v10500_v30, %v10488_v56 }
 0x29f   :  { %10738 = vmatpush.bf16.msra.mxu0 %v17810_v47  ;;  %10707 = vmatmul.bf16.vlgmr.msrb.gmra.mxu1 %v21147_v10  ;;  %v17913_v47 = vld [vmem:[#allocation2 + $0x2940] sm:$0xf]  ;;  %v17850_v48 = vor.u32 %v20272_v46, %v17849_v52  ;;  %v20268_v52 = vld [vmem:[#allocation2 + $0x28a4] sm:$0xf0] }
 0x2a0   :  { %10751 = vmatpush.bf16.msra.mxu1 %v17874_v8  ;;  %10720 = vmatmul.bf16.vlgmr.msrb.gmra.mxu2 %v21145_v0  ;;  %v17922_v8 = vor.u32 %v20290_v20, %v17921_v14  ;;  %v17914_v59 = vor.u32 %v20288_v17, %v17913_v47  ;;  %v17969_v14 = vld [vmem:[#allocation2 + $0x29b0] sm:$0xf]  ;;  %v20302_v20 = vld [vmem:[#allocation2 + $0x29b4] sm:$0xf0]  ;;  %v20284_v46 = vld [vmem:[#allocation2 + $0x2924] sm:$0xf0] }
 0x2a1   :  { %10764 = vmatpush.bf16.msra.mxu2 %v17938_v1  ;;  %10733 = vmatmul.bf16.vlgmr.msrb.gmra.mxu3 %v21149_v60  ;;  %v17858_v1 = vor.u32 %v20274_v50, %v17857_v57  ;;  %v20270_v57 = vld [vmem:[#allocation2 + $0x28b4] sm:$0xf0]  ;;  %v17970_v31 = vor.u32 %v20302_v20, %v17969_v14  ;;  %v17753_v20 = vld [vmem:[#allocation2 + $0x2800] sm:$0xf]  ;;  %v20324_v35 = vld [vmem:[#allocation2 + $0x2a64] sm:$0xf0] }
 0x2a2   :  { %10777 = vmatpush.bf16.msra.mxu3 %v18002_v55  ;;  %v20304_v55 = vld [vmem:[#allocation2 + $0x29c4] sm:$0xf0]  ;;  %v20286_v50 = vld [vmem:[#allocation2 + $0x2934] sm:$0xf0]  ;;  %v18057_v0 = vld [vmem:[#allocation2 + $0x2a60] sm:$0xf] }
 0x2a3   :  { %10739 = vmatpush.bf16.msra.mxu0 %v17802_v54  ;;  %v17777_v54 = vld [vmem:[#allocation2 + $0x2830] sm:$0xf]  ;;  %v17978_v44 = vor.u32 %v20304_v55, %v17977_v49  ;;  %v10513_v19 = vpop.f32.mrf.mxu2  ;;  %v20300_v49 = vld [vmem:[#allocation2 + $0x29a4] sm:$0xf0]  ;;  %v10489_v55 = vpop.f32.mrf.mxu0  ;;  %v20298_v14 = vld [vmem:[#allocation2 + $0x2994] sm:$0xf0] }
 0x2a4   :  { %10752 = vmatpush.bf16.msra.mxu1 %v17866_v61  ;;  %v20254_v61 = vld [vmem:[#allocation2 + $0x2834] sm:$0xf0]  ;;  %v10514_v47 = vadd.f32 %v10513_v19, %v10501_v15  ;;  %v10526_v17 = vpop.f32.mrf.mxu3  ;;  %v10502_v30 = vpop.f32.mrf.mxu1  ;;  %v17889_v15 = vld [vmem:[#allocation2 + $0x2910] sm:$0xf]  ;;  %v20280_v19 = vld [vmem:[#allocation2 + $0x2904] sm:$0xf0] }
 0x2a5   :  { %10765 = vmatpush.bf16.msra.mxu2 %v17930_v51  ;;  %v17841_v51 = vld [vmem:[#allocation2 + $0x28b0] sm:$0xf]  ;;  %v17778_v2 = vor.u32 %v20254_v61, %v17777_v54  ;;  %v20250_v61 = vld [vmem:[#allocation2 + $0x2814] sm:$0xf0] }
 0x2a6   :  { %10778 = vmatpush.bf16.msra.mxu3 %v17994_v13  ;;  %v17905_v13 = vld [vmem:[#allocation2 + $0x2930] sm:$0xf]  ;;  %v17842_v7 = vor.u32 %v20270_v57, %v17841_v51  ;;  %v17962_v57 = vor.u32 %v20300_v49, %v17961_v53  ;;  %v20342_v49 = vld [vmem:[#allocation2 + $0x2af4] sm:$0xf0] }
 0x2a7   :  { %10740 = vmatpush.bf16.msra.mxu0 %v17794_v25  ;;  %v17906_v58 = vor.u32 %v20286_v50, %v17905_v13  ;;  %v17769_v25 = vld [vmem:[#allocation2 + $0x2820] sm:$0xf]  ;;  %v17825_v51 = vld [vmem:[#allocation2 + $0x2890] sm:$0xf]  ;;  %v20282_v13 = vld [vmem:[#allocation2 + $0x2914] sm:$0xf0] }
 0x2a8   :  { %10753 = vmatpush.bf16.msra.mxu1 %v17858_v1  ;;  %v20252_v1 = vld [vmem:[#allocation2 + $0x2824] sm:$0xf0]  ;;  %v17953_v50 = vld [vmem:[#allocation2 + $0x2990] sm:$0xf] }
 0x2a9   :  { %10766 = vmatpush.bf16.msra.mxu2 %v17922_v8  ;;  %v17833_v8 = vld [vmem:[#allocation2 + $0x28a0] sm:$0xf]  ;;  %v17770_v56 = vor.u32 %v20252_v1, %v17769_v25  ;;  %v18129_v53 = vld [vmem:[#allocation2 + $0x2af0] sm:$0xf] }
 0x2aa   :  { %10779 = vmatpush.bf16.msra.mxu3 %v17986_v43  ;;  %v17897_v43 = vld [vmem:[#allocation2 + $0x2920] sm:$0xf]  ;;  %v18193_v30 = vld [vmem:[#allocation2 + $0x2b70] sm:$0xf]  ;;  %v18130_v60 = vor.u32 %v20342_v49, %v18129_v53  ;;  %v20322_v49 = vld [vmem:[#allocation2 + $0x2a54] sm:$0xf0] }
 0x2ab   :  { %10741 = vmatpush.bf16.msra.mxu0 %v17786_v27  ;;  %v17761_v27 = vld [vmem:[#allocation2 + $0x2810] sm:$0xf]  ;;  %v17898_v54 = vor.u32 %v20284_v46, %v17897_v43  ;;  %v17817_v1 = vld [vmem:[#allocation2 + $0x2880] sm:$0xf]  ;;  %v20296_v46 = vld [vmem:[#allocation2 + $0x2984] sm:$0xf0]  ;;  %v10515_v55 = vpop.f32.mrf.mxu2 }
 0x2ac   :  { %10754 = vmatpush.bf16.msra.mxu1 %v17850_v48  ;;  %v21156_v48 = vadd.f32 %v10526_v17, %v10514_v47  ;;  %v17762_v25 = vor.u32 %v20250_v61, %v17761_v27  ;;  %v17945_v43 = vld [vmem:[#allocation2 + $0x2980] sm:$0xf]  ;;  %v17954_v47 = vor.u32 %v20298_v14, %v17953_v50  ;;  %v20326_v17 = vld [vmem:[#allocation2 + $0x2a74] sm:$0xf0]  ;;  %v10528_v27 = vpop.f32.mrf.mxu3  ;;  %v18049_v53 = vld [vmem:[#allocation2 + $0x2a50] sm:$0xf] }
 0x2ad   :  { %10767 = vmatpush.bf16.msra.mxu2 %v17914_v59  ;;  %v17834_v59 = vor.u32 %v20268_v52, %v17833_v8  ;;  %v17890_v52 = vor.u32 %v20282_v13, %v17889_v15  ;;  %v136_v61 = vld [vmem:[%s21411_s0 + $0xa8] sm:$0xff]  ;;  %v266_v15 = vld.sshfl [vmem:[#allocation1] sm:$0xff pattern:$0x73625140]  ;;  %v17946_v50 = vor.u32 %v20296_v46, %v17945_v43  ;;  %v20372_v43 = vld [vmem:[#allocation2 + $0x2be4] sm:$0xf0] }
 0x2ae   :  { %10780 = vmatpush.bf16.msra.mxu3 %v17978_v44  ;;  %v20266_v44 = vld [vmem:[#allocation2 + $0x2894] sm:$0xf0]  ;;  %265 = vst [vmem:[#allocation1 + $0x20] ss:$4 sm:$0xff] %v136_v61 }
 0x2af   :  { %10742 = vmatpush.bf16.msra.mxu0 %v17778_v2  ;;  %v20248_v2 = vld [vmem:[#allocation2 + $0x2804] sm:$0xf0]  ;;  %v17826_v8 = vor.u32 %v20266_v44, %v17825_v51  ;;  %v20374_v51 = vld [vmem:[#allocation2 + $0x2bf4] sm:$0xf0] }
 0x2b0   :  { %10755 = vmatpush.bf16.msra.mxu1 %v17842_v7  ;;  %v20264_v7 = vld [vmem:[#allocation2 + $0x2884] sm:$0xf0]  ;;  %v267_v55 = vld.sshfl [vmem:[#allocation1 + $0x8] sm:$0xff pattern:$0x73625140] }
 0x2b1   :  { %10768 = vmatpush.bf16.msra.mxu2 %v17906_v58  ;;  %v17881_v58 = vld [vmem:[#allocation2 + $0x2900] sm:$0xf]  ;;  %v17818_v44 = vor.u32 %v20264_v7, %v17817_v1  ;;  %v268_v13 = vld.sshfl [vmem:[#allocation1 + $0x10] sm:$0xff pattern:$0x73625140] }
 0x2b2   :  { %10781 = vmatpush.bf16.msra.mxu3 %v17970_v31  ;;  %v18065_v31 = vld [vmem:[#allocation2 + $0x2a70] sm:$0xf]  ;;  %v20356_v1 = vld [vmem:[#allocation2 + $0x2b64] sm:$0xf0]  ;;  %v21163_v7 = vpack.c.bf16 %v268_v13, %v268_v13  ;;  %v20338_v61 = vld [vmem:[#allocation2 + $0x2ad4] sm:$0xf0] }
 0x2b3   :  { %10743 = vmatpush.bf16.msra.mxu0 %v17770_v56  ;;  %v20358_v56 = vld [vmem:[#allocation2 + $0x2b74] sm:$0xf0]  ;;  %v18066_v14 = vor.u32 %v20326_v17, %v18065_v31  ;;  %v269_v27 = vld.sshfl [vmem:[#allocation1 + $0x18] sm:$0xff pattern:$0x73625140]  ;;  %v18058_v31 = vor.u32 %v20324_v35, %v18057_v0  ;;  %v18050_v0 = vor.u32 %v20322_v49, %v18049_v53 }
 0x2b4   :  { %10756 = vmatpush.bf16.msra.mxu1 %v17834_v59  ;;  %v17754_v59 = vor.u32 %v20248_v2, %v17753_v20  ;;  %v18194_v10 = vor.u32 %v20358_v56, %v18193_v30  ;;  %v21161_v2 = vpack.c.bf16 %v266_v15, %v266_v15  ;;  %21535 = vst [vmem:[#allocation71_spill] sm:$0xff] %v21163_v7  ;;  %v18113_v30 = vld [vmem:[#allocation2 + $0x2ad0] sm:$0xf]  ;;  %v20370_v35 = vld [vmem:[#allocation2 + $0x2bd4] sm:$0xf0] }
 0x2b5   :  { %10769 = vmatpush.bf16.msra.mxu2 %v17898_v54  ;;  %v18257_v54 = vld [vmem:[#allocation2 + $0x2bf0] sm:$0xf]  ;;  %v21167_v46 = vpack.c.bf16 %v269_v27, %v269_v27  ;;  %v18105_v15 = vld [vmem:[#allocation2 + $0x2ac0] sm:$0xf] }
 0x2b6   :  { %10782 = vmatpush.bf16.msra.mxu3 %v17962_v57  ;;  %v17882_v57 = vor.u32 %v20280_v19, %v17881_v58  ;;  %v18258_v20 = vor.u32 %v20374_v51, %v18257_v54  ;;  %21534 = vst [vmem:[#allocation70_spill] sm:$0xff] %v21161_v2  ;;  %v21165_v58 = vpack.c.bf16 %v267_v55, %v267_v55  ;;  %v18249_v19 = vld [vmem:[#allocation2 + $0x2be0] sm:$0xf]  ;;  %v20354_v54 = vld [vmem:[#allocation2 + $0x2b54] sm:$0xf0] }
 0x2b7   :  { %10744 = vmatpush.bf16.msra.mxu0 %v17762_v25  ;;  %v18121_v25 = vld [vmem:[#allocation2 + $0x2ae0] sm:$0xf]  ;;  %21537 = vst [vmem:[#allocation73_spill] sm:$0xff] %v21167_v46  ;;  %v18250_v56 = vor.u32 %v20372_v43, %v18249_v19  ;;  %v18241_v51 = vld [vmem:[#allocation2 + $0x2bd0] sm:$0xf] }
 0x2b8   :  { %10757 = vmatpush.bf16.msra.mxu1 %v17826_v8  ;;  %v20340_v8 = vld [vmem:[#allocation2 + $0x2ae4] sm:$0xf0]  ;;  %21536 = vst [vmem:[#allocation72_spill] sm:$0xff] %v21165_v58  ;;  %v18242_v13 = vor.u32 %v20370_v35, %v18241_v51 }
 0x2b9   :  { %10770 = vmatpush.bf16.msra.mxu2 %v17890_v52  ;;  %v18185_v52 = vld [vmem:[#allocation2 + $0x2b60] sm:$0xf]  ;;  %v20352_v55 = vld [vmem:[#allocation2 + $0x2b44] sm:$0xf0] }
 0x2ba   :  { %10783 = vmatpush.bf16.msra.mxu3 %v17954_v47  ;;  %v18122_v47 = vor.u32 %v20340_v8, %v18121_v25  ;;  %v18186_v17 = vor.u32 %v20356_v1, %v18185_v52  ;;  %v18233_v25 = vld [vmem:[#allocation2 + $0x2bc0] sm:$0xf] }
 0x2bb   :  { %10745 = vmatpush.bf16.msra.mxu0 %v17754_v59  ;;  %v18177_v59 = vld [vmem:[#allocation2 + $0x2b50] sm:$0xf]  ;;  %v10539_v27 = vpop.f32.mrf.mxu0 }
 0x2bc   :  { %10758 = vmatpush.bf16.msra.mxu1 %v17818_v44  ;;  %v18041_v44 = vld [vmem:[#allocation2 + $0x2a40] sm:$0xf]  ;;  %v10540_v8 = vadd.f32 %v10539_v27, %v21156_v48  ;;  %v10552_v1 = vpop.f32.mrf.mxu1 }
 0x2bd   :  { %10771 = vmatpush.bf16.msra.mxu2 %v17882_v57  ;;  %v20320_v57 = vld [vmem:[#allocation2 + $0x2a44] sm:$0xf0]  ;;  %v18217_v27 = vld [vmem:[#allocation2 + $0x2ba0] sm:$0xf] }
 0x2be   :  { %10784 = vmatpush.bf16.msra.mxu3 %v17946_v50  ;;  %10746 = vmatmul.bf16.vlgmr.msra.gmra.mxu0 %v21161_v2  ;;  %v20336_v50 = vld [vmem:[#allocation2 + $0x2ac4] sm:$0xf0]  ;;  %v18042_v52 = vor.u32 %v20320_v57, %v18041_v44  ;;  %v10553_v49 = vadd.f32 %v10552_v1, %v10540_v8 }
 0x2bf   :  { %10790 = vmatpush.bf16.msrb.mxu0 %v18066_v14  ;;  %10759 = vmatmul.bf16.vlgmr.msra.gmra.mxu1 %v21165_v58  ;;  %v18169_v14 = vld [vmem:[#allocation2 + $0x2b40] sm:$0xf]  ;;  %v18106_v19 = vor.u32 %v20336_v50, %v18105_v15  ;;  %v20332_v15 = vld [vmem:[#allocation2 + $0x2aa4] sm:$0xf0] }
 0x2c0   :  { %10803 = vmatpush.bf16.msrb.mxu1 %v18130_v60  ;;  %10772 = vmatmul.bf16.vlgmr.msra.gmra.mxu2 %v21163_v7  ;;  %v18178_v60 = vor.u32 %v20354_v54, %v18177_v59  ;;  %v18170_v43 = vor.u32 %v20352_v55, %v18169_v14  ;;  %v18225_v59 = vld [vmem:[#allocation2 + $0x2bb0] sm:$0xf]  ;;  %v20366_v54 = vld [vmem:[#allocation2 + $0x2bb4] sm:$0xf0]  ;;  %v20348_v50 = vld [vmem:[#allocation2 + $0x2b24] sm:$0xf0] }
 0x2c1   :  { %10816 = vmatpush.bf16.msrb.mxu2 %v18194_v10  ;;  %10785 = vmatmul.bf16.vlgmr.msra.gmra.mxu3 %v21167_v46  ;;  %v18114_v10 = vor.u32 %v20338_v61, %v18113_v30  ;;  %v20334_v30 = vld [vmem:[#allocation2 + $0x2ab4] sm:$0xf0]  ;;  %v18226_v44 = vor.u32 %v20366_v54, %v18225_v59  ;;  %v18009_v54 = vld [vmem:[#allocation2 + $0x2a00] sm:$0xf]  ;;  %v20388_v2 = vld [vmem:[#allocation2 + $0x2c64] sm:$0xf0] }
 0x2c2   :  { %10829 = vmatpush.bf16.msrb.mxu3 %v18258_v20  ;;  %v20368_v20 = vld [vmem:[#allocation2 + $0x2bc4] sm:$0xf0]  ;;  %v20350_v61 = vld [vmem:[#allocation2 + $0x2b34] sm:$0xf0]  ;;  %v18313_v7 = vld [vmem:[#allocation2 + $0x2c60] sm:$0xf] }
 0x2c3   :  { %10791 = vmatpush.bf16.msrb.mxu0 %v18058_v31  ;;  %v18033_v31 = vld [vmem:[#allocation2 + $0x2a30] sm:$0xf]  ;;  %v18234_v53 = vor.u32 %v20368_v20, %v18233_v25  ;;  %v10565_v57 = vpop.f32.mrf.mxu2  ;;  %v20364_v25 = vld [vmem:[#allocation2 + $0x2ba4] sm:$0xf0]  ;;  %v10541_v20 = vpop.f32.mrf.mxu0  ;;  %v20362_v59 = vld [vmem:[#allocation2 + $0x2b94] sm:$0xf0] }
 0x2c4   :  { %10804 = vmatpush.bf16.msrb.mxu1 %v18122_v47  ;;  %v20318_v47 = vld [vmem:[#allocation2 + $0x2a34] sm:$0xf0]  ;;  %v10566_v14 = vadd.f32 %v10565_v57, %v10553_v49  ;;  %v10578_v55 = vpop.f32.mrf.mxu3  ;;  %v10554_v1 = vpop.f32.mrf.mxu1  ;;  %v18145_v49 = vld [vmem:[#allocation2 + $0x2b10] sm:$0xf]  ;;  %v20344_v57 = vld [vmem:[#allocation2 + $0x2b04] sm:$0xf0] }
 0x2c5   :  { %10817 = vmatpush.bf16.msrb.mxu2 %v18186_v17  ;;  %v18097_v17 = vld [vmem:[#allocation2 + $0x2ab0] sm:$0xf]  ;;  %v18034_v51 = vor.u32 %v20318_v47, %v18033_v31  ;;  %v20314_v47 = vld [vmem:[#allocation2 + $0x2a14] sm:$0xf0] }
 0x2c6   :  { %10830 = vmatpush.bf16.msrb.mxu3 %v18250_v56  ;;  %v18161_v56 = vld [vmem:[#allocation2 + $0x2b30] sm:$0xf]  ;;  %v18098_v48 = vor.u32 %v20334_v30, %v18097_v17  ;;  %v18218_v30 = vor.u32 %v20364_v25, %v18217_v27  ;;  %v20406_v25 = vld [vmem:[#allocation2 + $0x2cf4] sm:$0xf0] }
 0x2c7   :  { %10792 = vmatpush.bf16.msrb.mxu0 %v18050_v0  ;;  %v18162_v35 = vor.u32 %v20350_v61, %v18161_v56  ;;  %v18025_v0 = vld [vmem:[#allocation2 + $0x2a20] sm:$0xf]  ;;  %v18081_v17 = vld [vmem:[#allocation2 + $0x2a90] sm:$0xf]  ;;  %v20346_v56 = vld [vmem:[#allocation2 + $0x2b14] sm:$0xf0] }
 0x2c8   :  { %10805 = vmatpush.bf16.msrb.mxu1 %v18114_v10  ;;  %v20316_v10 = vld [vmem:[#allocation2 + $0x2a24] sm:$0xf0]  ;;  %v18209_v61 = vld [vmem:[#allocation2 + $0x2b90] sm:$0xf] }
 0x2c9   :  { %10818 = vmatpush.bf16.msrb.mxu2 %v18178_v60  ;;  %v18089_v60 = vld [vmem:[#allocation2 + $0x2aa0] sm:$0xf]  ;;  %v18026_v8 = vor.u32 %v20316_v10, %v18025_v0  ;;  %v18385_v27 = vld [vmem:[#allocation2 + $0x2cf0] sm:$0xf] }
 0x2ca   :  { %10831 = vmatpush.bf16.msrb.mxu3 %v18242_v13  ;;  %v18153_v13 = vld [vmem:[#allocation2 + $0x2b20] sm:$0xf]  ;;  %v18449_v1 = vld [vmem:[#allocation2 + $0x2d70] sm:$0xf]  ;;  %v18386_v46 = vor.u32 %v20406_v25, %v18385_v27  ;;  %v20386_v25 = vld [vmem:[#allocation2 + $0x2c54] sm:$0xf0] }
 0x2cb   :  { %10793 = vmatpush.bf16.msrb.mxu0 %v18042_v52  ;;  %v18017_v52 = vld [vmem:[#allocation2 + $0x2a10] sm:$0xf]  ;;  %v18154_v31 = vor.u32 %v20348_v50, %v18153_v13  ;;  %v18073_v10 = vld [vmem:[#allocation2 + $0x2a80] sm:$0xf]  ;;  %v20360_v50 = vld [vmem:[#allocation2 + $0x2b84] sm:$0xf0]  ;;  %v10567_v20 = vpop.f32.mrf.mxu2 }
 0x2cc   :  { %10806 = vmatpush.bf16.msrb.mxu1 %v18106_v19  ;;  %v21174_v19 = vadd.f32 %v10578_v55, %v10566_v14  ;;  %v18018_v0 = vor.u32 %v20314_v47, %v18017_v52  ;;  %v18201_v13 = vld [vmem:[#allocation2 + $0x2b80] sm:$0xf]  ;;  %v18210_v14 = vor.u32 %v20362_v59, %v18209_v61  ;;  %v20390_v55 = vld [vmem:[#allocation2 + $0x2c74] sm:$0xf0]  ;;  %v10580_v52 = vpop.f32.mrf.mxu3  ;;  %v137_v47 = vld [vmem:[%s21411_s0 + $0xb0] sm:$0xff] }
 0x2cd   :  { %10819 = vmatpush.bf16.msrb.mxu2 %v18170_v43  ;;  %v18090_v43 = vor.u32 %v20332_v15, %v18089_v60  ;;  %v18146_v15 = vor.u32 %v20346_v56, %v18145_v49  ;;  %274 = vst [vmem:[#allocation1] ss:$4 sm:$0xff] %v137_v47  ;;  %v270_v49 = vld.sshfl [vmem:[#allocation1 + $0x20] sm:$0xff pattern:$0x73625140]  ;;  %v18202_v61 = vor.u32 %v20360_v50, %v18201_v13 }
 0x2ce   :  { %10832 = vmatpush.bf16.msrb.mxu3 %v18234_v53  ;;  %v20330_v53 = vld [vmem:[#allocation2 + $0x2a94] sm:$0xf0]  ;;  %v272_v56 = vld.sshfl [vmem:[#allocation1 + $0x30] sm:$0xff pattern:$0x73625140] }
 0x2cf   :  { %10794 = vmatpush.bf16.msrb.mxu0 %v18034_v51  ;;  %v20312_v51 = vld [vmem:[#allocation2 + $0x2a04] sm:$0xf0]  ;;  %v18082_v60 = vor.u32 %v20330_v53, %v18081_v17  ;;  %v20438_v17 = vld [vmem:[#allocation2 + $0x2df4] sm:$0xf0]  ;;  %v18305_v27 = vld [vmem:[#allocation2 + $0x2c50] sm:$0xf] }
 0x2d0   :  { %10807 = vmatpush.bf16.msrb.mxu1 %v18098_v48  ;;  %v20328_v48 = vld [vmem:[#allocation2 + $0x2a84] sm:$0xf0]  ;;  %v271_v20 = vld.sshfl [vmem:[#allocation1 + $0x28] sm:$0xff pattern:$0x73625140] }
 0x2d1   :  { %10820 = vmatpush.bf16.msrb.mxu2 %v18162_v35  ;;  %v18137_v35 = vld [vmem:[#allocation2 + $0x2b00] sm:$0xf]  ;;  %v18074_v53 = vor.u32 %v20328_v48, %v18073_v10  ;;  %v273_v52 = vld.sshfl [vmem:[#allocation1 + $0x38] sm:$0xff pattern:$0x73625140]  ;;  %v21181_v48 = vpack.c.bf16 %v272_v56, %v272_v56 }
 0x2d2   :  { %10833 = vmatpush.bf16.msrb.mxu3 %v18226_v44  ;;  %v18321_v44 = vld [vmem:[#allocation2 + $0x2c70] sm:$0xf]  ;;  %v20420_v10 = vld [vmem:[#allocation2 + $0x2d64] sm:$0xf0]  ;;  %v21185_v50 = vpack.c.bf16 %v273_v52, %v273_v52  ;;  %v20402_v47 = vld [vmem:[#allocation2 + $0x2cd4] sm:$0xf0] }
 0x2d3   :  { %10795 = vmatpush.bf16.msrb.mxu0 %v18026_v8  ;;  %v20422_v8 = vld [vmem:[#allocation2 + $0x2d74] sm:$0xf0]  ;;  %v18322_v59 = vor.u32 %v20390_v55, %v18321_v44  ;;  %21539 = vst [vmem:[#allocation75_spill] sm:$0xff] %v21181_v48  ;;  %v20436_v13 = vld [vmem:[#allocation2 + $0x2de4] sm:$0xf0]  ;;  %v18314_v44 = vor.u32 %v20388_v2, %v18313_v7  ;;  %v18306_v7 = vor.u32 %v20386_v25, %v18305_v27 }
 0x2d4   :  { %10808 = vmatpush.bf16.msrb.mxu1 %v18090_v43  ;;  %v18010_v43 = vor.u32 %v20312_v51, %v18009_v54  ;;  %v18450_v58 = vor.u32 %v20422_v8, %v18449_v1  ;;  %v21179_v51 = vpack.c.bf16 %v270_v49, %v270_v49  ;;  %21541 = vst [vmem:[#allocation77_spill] sm:$0xff] %v21185_v50  ;;  %v18369_v1 = vld [vmem:[#allocation2 + $0x2cd0] sm:$0xf]  ;;  %v20434_v2 = vld [vmem:[#allocation2 + $0x2dd4] sm:$0xf0] }
 0x2d5   :  { %10821 = vmatpush.bf16.msrb.mxu2 %v18154_v31  ;;  %v18513_v31 = vld [vmem:[#allocation2 + $0x2df0] sm:$0xf]  ;;  %v18361_v49 = vld [vmem:[#allocation2 + $0x2cc0] sm:$0xf] }
 0x2d6   :  { %10834 = vmatpush.bf16.msrb.mxu3 %v18218_v30  ;;  %v18138_v30 = vor.u32 %v20344_v57, %v18137_v35  ;;  %v18514_v54 = vor.u32 %v20438_v17, %v18513_v31  ;;  %21538 = vst [vmem:[#allocation74_spill] sm:$0xff] %v21179_v51  ;;  %v21183_v35 = vpack.c.bf16 %v271_v20, %v271_v20  ;;  %v18505_v57 = vld [vmem:[#allocation2 + $0x2de0] sm:$0xf]  ;;  %v20418_v31 = vld [vmem:[#allocation2 + $0x2d54] sm:$0xf0] }
 0x2d7   :  { %10796 = vmatpush.bf16.msrb.mxu0 %v18018_v0  ;;  %v18377_v0 = vld [vmem:[#allocation2 + $0x2ce0] sm:$0xf]  ;;  %v18506_v8 = vor.u32 %v20436_v13, %v18505_v57  ;;  %v18497_v17 = vld [vmem:[#allocation2 + $0x2dd0] sm:$0xf]  ;;  %v20416_v20 = vld [vmem:[#allocation2 + $0x2d44] sm:$0xf0] }
 0x2d8   :  { %10809 = vmatpush.bf16.msrb.mxu1 %v18082_v60  ;;  %v20404_v60 = vld [vmem:[#allocation2 + $0x2ce4] sm:$0xf0]  ;;  %21540 = vst [vmem:[#allocation76_spill] sm:$0xff] %v21183_v35  ;;  %v18498_v56 = vor.u32 %v20434_v2, %v18497_v17 }
 0x2d9   :  { %10822 = vmatpush.bf16.msrb.mxu2 %v18146_v15  ;;  %v18441_v15 = vld [vmem:[#allocation2 + $0x2d60] sm:$0xf] }
 0x2da   :  { %10835 = vmatpush.bf16.msrb.mxu3 %v18210_v14  ;;  %v18378_v14 = vor.u32 %v20404_v60, %v18377_v0  ;;  %v18442_v55 = vor.u32 %v20420_v10, %v18441_v15  ;;  %v18489_v0 = vld [vmem:[#allocation2 + $0x2dc0] sm:$0xf] }
 0x2db   :  { %10797 = vmatpush.bf16.msrb.mxu0 %v18010_v43  ;;  %v18433_v43 = vld [vmem:[#allocation2 + $0x2d50] sm:$0xf]  ;;  %v10591_v52 = vpop.f32.mrf.mxu0 }
 0x2dc   :  { %10810 = vmatpush.bf16.msrb.mxu1 %v18074_v53  ;;  %v18297_v53 = vld [vmem:[#allocation2 + $0x2c40] sm:$0xf]  ;;  %v10592_v60 = vadd.f32 %v10591_v52, %v21174_v19  ;;  %v10604_v10 = vpop.f32.mrf.mxu1 }
 0x2dd   :  { %10823 = vmatpush.bf16.msrb.mxu2 %v18138_v30  ;;  %v20384_v30 = vld [vmem:[#allocation2 + $0x2c44] sm:$0xf0]  ;;  %v18473_v52 = vld [vmem:[#allocation2 + $0x2da0] sm:$0xf] }
 0x2de   :  { %10836 = vmatpush.bf16.msrb.mxu3 %v18202_v61  ;;  %10798 = vmatmul.bf16.vlgmr.msrb.gmra.mxu0 %v21179_v51  ;;  %v20400_v61 = vld [vmem:[#allocation2 + $0x2cc4] sm:$0xf0]  ;;  %v18298_v15 = vor.u32 %v20384_v30, %v18297_v53  ;;  %v10605_v25 = vadd.f32 %v10604_v10, %v10592_v60 }
 0x2df   :  { %10842 = vmatpush.bf16.msra.mxu0 %v18322_v59  ;;  %10811 = vmatmul.bf16.vlgmr.msrb.gmra.mxu1 %v21183_v35  ;;  %v18425_v59 = vld [vmem:[#allocation2 + $0x2d40] sm:$0xf]  ;;  %v18362_v57 = vor.u32 %v20400_v61, %v18361_v49  ;;  %v20396_v49 = vld [vmem:[#allocation2 + $0x2ca4] sm:$0xf0] }
 0x2e0   :  { %10855 = vmatpush.bf16.msra.mxu1 %v18386_v46  ;;  %10824 = vmatmul.bf16.vlgmr.msrb.gmra.mxu2 %v21181_v48  ;;  %v18434_v46 = vor.u32 %v20418_v31, %v18433_v43  ;;  %v18426_v13 = vor.u32 %v20416_v20, %v18425_v59  ;;  %v18481_v43 = vld [vmem:[#allocation2 + $0x2db0] sm:$0xf]  ;;  %v20430_v31 = vld [vmem:[#allocation2 + $0x2db4] sm:$0xf0]  ;;  %v20412_v61 = vld [vmem:[#allocation2 + $0x2d24] sm:$0xf0] }
 0x2e1   :  { %10868 = vmatpush.bf16.msra.mxu2 %v18450_v58  ;;  %10837 = vmatmul.bf16.vlgmr.msrb.gmra.mxu3 %v21185_v50  ;;  %v18370_v58 = vor.u32 %v20402_v47, %v18369_v1  ;;  %v20398_v1 = vld [vmem:[#allocation2 + $0x2cb4] sm:$0xf0]  ;;  %v18482_v53 = vor.u32 %v20430_v31, %v18481_v43  ;;  %v18265_v31 = vld [vmem:[#allocation2 + $0x2c00] sm:$0xf]  ;;  %v20452_v51 = vld [vmem:[#allocation2 + $0x2e64] sm:$0xf0] }
 0x2e2   :  { %10881 = vmatpush.bf16.msra.mxu3 %v18514_v54  ;;  %v20432_v54 = vld [vmem:[#allocation2 + $0x2dc4] sm:$0xf0]  ;;  %v20414_v47 = vld [vmem:[#allocation2 + $0x2d34] sm:$0xf0]  ;;  %v18569_v48 = vld [vmem:[#allocation2 + $0x2e60] sm:$0xf] }
 0x2e3   :  { %10843 = vmatpush.bf16.msra.mxu0 %v18314_v44  ;;  %v18289_v44 = vld [vmem:[#allocation2 + $0x2c30] sm:$0xf]  ;;  %v18490_v27 = vor.u32 %v20432_v54, %v18489_v0  ;;  %v10617_v30 = vpop.f32.mrf.mxu2  ;;  %v20428_v0 = vld [vmem:[#allocation2 + $0x2da4] sm:$0xf0]  ;;  %v10593_v54 = vpop.f32.mrf.mxu0  ;;  %v20426_v43 = vld [vmem:[#allocation2 + $0x2d94] sm:$0xf0] }
 0x2e4   :  { %10856 = vmatpush.bf16.msra.mxu1 %v18378_v14  ;;  %v20382_v14 = vld [vmem:[#allocation2 + $0x2c34] sm:$0xf0]  ;;  %v10618_v59 = vadd.f32 %v10617_v30, %v10605_v25  ;;  %v10630_v20 = vpop.f32.mrf.mxu3  ;;  %v10606_v10 = vpop.f32.mrf.mxu1  ;;  %v18401_v25 = vld [vmem:[#allocation2 + $0x2d10] sm:$0xf]  ;;  %v20408_v30 = vld [vmem:[#allocation2 + $0x2d04] sm:$0xf0] }
 0x2e5   :  { %10869 = vmatpush.bf16.msra.mxu2 %v18442_v55  ;;  %v18353_v55 = vld [vmem:[#allocation2 + $0x2cb0] sm:$0xf]  ;;  %v18290_v17 = vor.u32 %v20382_v14, %v18289_v44  ;;  %v20378_v14 = vld [vmem:[#allocation2 + $0x2c14] sm:$0xf0] }
 0x2e6   :  { %10882 = vmatpush.bf16.msra.mxu3 %v18506_v8  ;;  %v18417_v8 = vld [vmem:[#allocation2 + $0x2d30] sm:$0xf]  ;;  %v18354_v19 = vor.u32 %v20398_v1, %v18353_v55  ;;  %v18474_v1 = vor.u32 %v20428_v0, %v18473_v52  ;;  %v20470_v0 = vld [vmem:[#allocation2 + $0x2ef4] sm:$0xf0] }
 0x2e7   :  { %10844 = vmatpush.bf16.msra.mxu0 %v18306_v7  ;;  %v18418_v2 = vor.u32 %v20414_v47, %v18417_v8  ;;  %v18281_v7 = vld [vmem:[#allocation2 + $0x2c20] sm:$0xf]  ;;  %v18337_v55 = vld [vmem:[#allocation2 + $0x2c90] sm:$0xf]  ;;  %v20410_v8 = vld [vmem:[#allocation2 + $0x2d14] sm:$0xf0] }
 0x2e8   :  { %10857 = vmatpush.bf16.msra.mxu1 %v18370_v58  ;;  %v20380_v58 = vld [vmem:[#allocation2 + $0x2c24] sm:$0xf0]  ;;  %v18465_v47 = vld [vmem:[#allocation2 + $0x2d90] sm:$0xf] }
 0x2e9   :  { %10870 = vmatpush.bf16.msra.mxu2 %v18434_v46  ;;  %v18345_v46 = vld [vmem:[#allocation2 + $0x2ca0] sm:$0xf]  ;;  %v18282_v60 = vor.u32 %v20380_v58, %v18281_v7  ;;  %v18641_v52 = vld [vmem:[#allocation2 + $0x2ef0] sm:$0xf] }
 0x2ea   :  { %10883 = vmatpush.bf16.msra.mxu3 %v18498_v56  ;;  %v18409_v56 = vld [vmem:[#allocation2 + $0x2d20] sm:$0xf]  ;;  %v18705_v10 = vld [vmem:[#allocation2 + $0x2f70] sm:$0xf]  ;;  %v18642_v50 = vor.u32 %v20470_v0, %v18641_v52  ;;  %v20450_v0 = vld [vmem:[#allocation2 + $0x2e54] sm:$0xf0] }
 0x2eb   :  { %10845 = vmatpush.bf16.msra.mxu0 %v18298_v15  ;;  %v18273_v15 = vld [vmem:[#allocation2 + $0x2c10] sm:$0xf]  ;;  %v18410_v44 = vor.u32 %v20412_v61, %v18409_v56  ;;  %v18329_v58 = vld [vmem:[#allocation2 + $0x2c80] sm:$0xf]  ;;  %v20424_v61 = vld [vmem:[#allocation2 + $0x2d84] sm:$0xf0]  ;;  %v10619_v54 = vpop.f32.mrf.mxu2 }
 0x2ec   :  { %10858 = vmatpush.bf16.msra.mxu1 %v18362_v57  ;;  %v21192_v57 = vadd.f32 %v10630_v20, %v10618_v59  ;;  %v18274_v7 = vor.u32 %v20378_v14, %v18273_v15  ;;  %v18457_v56 = vld [vmem:[#allocation2 + $0x2d80] sm:$0xf]  ;;  %v18466_v59 = vor.u32 %v20426_v43, %v18465_v47  ;;  %v20454_v20 = vld [vmem:[#allocation2 + $0x2e74] sm:$0xf0]  ;;  %v10632_v15 = vpop.f32.mrf.mxu3  ;;  %v138_v14 = vld [vmem:[%s21411_s0 + $0xb8] sm:$0xff]  ;;  %s20752_s0 = smov [#allocation13]  }
 0x2ed   :  { %10871 = vmatpush.bf16.msra.mxu2 %v18426_v13  ;;  %v18346_v13 = vor.u32 %v20396_v49, %v18345_v46  ;;  %v18402_v49 = vor.u32 %v20410_v8, %v18401_v25  ;;  %275 = vst [vmem:[#allocation1 + $0x20] ss:$4 sm:$0xff] %v138_v14  ;;  %v276_v25 = vld.sshfl [vmem:[#allocation1] sm:$0xff pattern:$0x73625140]  ;;  %v18458_v47 = vor.u32 %v20424_v61, %v18457_v56  ;;  %s12616_s1 = sshll.u32 %s20752_s0, 4  ;;  %s12617_s1 = int_to_ptr.vmem [resolvable:$true] %s12616_s1 }
 0x2ee   :  { %10884 = vmatpush.bf16.msra.mxu3 %v18490_v27  ;;  %v20394_v27 = vld [vmem:[#allocation2 + $0x2c94] sm:$0xf0]  ;;  %v278_v8 = vld.sshfl [vmem:[#allocation1 + $0x10] sm:$0xff pattern:$0x73625140] }
 0x2ef   :  { %10846 = vmatpush.bf16.msra.mxu0 %v18290_v17  ;;  %v20376_v17 = vld [vmem:[#allocation2 + $0x2c04] sm:$0xf0]  ;;  %v18338_v46 = vor.u32 %v20394_v27, %v18337_v55  ;;  %v20502_v55 = vld [vmem:[#allocation2 + $0x2ff4] sm:$0xf0]  ;;  %v18561_v52 = vld [vmem:[#allocation2 + $0x2e50] sm:$0xf] }
 0x2f0   :  { %10859 = vmatpush.bf16.msra.mxu1 %v18354_v19  ;;  %v20392_v19 = vld [vmem:[#allocation2 + $0x2c84] sm:$0xf0]  ;;  %v277_v54 = vld.sshfl [vmem:[#allocation1 + $0x8] sm:$0xff pattern:$0x73625140] }
 0x2f1   :  { %10872 = vmatpush.bf16.msra.mxu2 %v18418_v2  ;;  %v18393_v2 = vld [vmem:[#allocation2 + $0x2d00] sm:$0xf]  ;;  %v18330_v27 = vor.u32 %v20392_v19, %v18329_v58  ;;  %v279_v15 = vld.sshfl [vmem:[#allocation1 + $0x18] sm:$0xff pattern:$0x73625140]  ;;  %v21199_v19 = vpack.c.bf16 %v278_v8, %v278_v8 }
 0x2f2   :  { %10885 = vmatpush.bf16.msra.mxu3 %v18482_v53  ;;  %v18577_v53 = vld [vmem:[#allocation2 + $0x2e70] sm:$0xf]  ;;  %v20484_v58 = vld [vmem:[#allocation2 + $0x2f64] sm:$0xf0]  ;;  %v21203_v61 = vpack.c.bf16 %v279_v15, %v279_v15  ;;  %v20466_v14 = vld [vmem:[#allocation2 + $0x2ed4] sm:$0xf0] }
 0x2f3   :  { %10847 = vmatpush.bf16.msra.mxu0 %v18282_v60  ;;  %v20486_v60 = vld [vmem:[#allocation2 + $0x2f74] sm:$0xf0]  ;;  %v18578_v43 = vor.u32 %v20454_v20, %v18577_v53  ;;  %21542 = vst [vmem:[#allocation78_spill] sm:$0xff] %v21199_v19  ;;  %v20500_v56 = vld [vmem:[#allocation2 + $0x2fe4] sm:$0xf0]  ;;  %v18570_v53 = vor.u32 %v20452_v51, %v18569_v48  ;;  %v18562_v48 = vor.u32 %v20450_v0, %v18561_v52 }
 0x2f4   :  { %10860 = vmatpush.bf16.msra.mxu1 %v18346_v13  ;;  %v18266_v13 = vor.u32 %v20376_v17, %v18265_v31  ;;  %v18706_v35 = vor.u32 %v20486_v60, %v18705_v10  ;;  %v21197_v17 = vpack.c.bf16 %v276_v25, %v276_v25  ;;  %21544 = vst [vmem:[#allocation80_spill] sm:$0xff] %v21203_v61  ;;  %v18625_v10 = vld [vmem:[#allocation2 + $0x2ed0] sm:$0xf]  ;;  %v20498_v51 = vld [vmem:[#allocation2 + $0x2fd4] sm:$0xf0] }
 0x2f5   :  { %10873 = vmatpush.bf16.msra.mxu2 %v18410_v44  ;;  %v18769_v44 = vld [vmem:[#allocation2 + $0x2ff0] sm:$0xf]  ;;  %v18617_v25 = vld [vmem:[#allocation2 + $0x2ec0] sm:$0xf] }
 0x2f6   :  { %10886 = vmatpush.bf16.msra.mxu3 %v18474_v1  ;;  %v18394_v1 = vor.u32 %v20408_v30, %v18393_v2  ;;  %v18770_v31 = vor.u32 %v20502_v55, %v18769_v44  ;;  %v21201_v2 = vpack.c.bf16 %v277_v54, %v277_v54  ;;  %v18761_v30 = vld [vmem:[#allocation2 + $0x2fe0] sm:$0xf]  ;;  %v20482_v44 = vld [vmem:[#allocation2 + $0x2f54] sm:$0xf0]  ;;  %v18753_v55 = vld [vmem:[#allocation2 + $0x2fd0] sm:$0xf] }
 0x2f7   :  { %10848 = vmatpush.bf16.msra.mxu0 %v18274_v7  ;;  %v18633_v7 = vld [vmem:[#allocation2 + $0x2ee0] sm:$0xf]  ;;  %v18762_v60 = vor.u32 %v20500_v56, %v18761_v30  ;;  %v18754_v8 = vor.u32 %v20498_v51, %v18753_v55  ;;  %v20480_v54 = vld [vmem:[#allocation2 + $0x2f44] sm:$0xf0] }
 0x2f8   :  { %10861 = vmatpush.bf16.msra.mxu1 %v18338_v46  ;;  %v20468_v46 = vld [vmem:[#allocation2 + $0x2ee4] sm:$0xf0]  ;;  %21543 = vst [vmem:[#allocation79_spill] sm:$0xff] %v21201_v2 }
 0x2f9   :  { %10874 = vmatpush.bf16.msra.mxu2 %v18402_v49  ;;  %v18697_v49 = vld [vmem:[#allocation2 + $0x2f60] sm:$0xf] }
 0x2fa   :  { %10887 = vmatpush.bf16.msra.mxu3 %v18466_v59  ;;  %v18634_v59 = vor.u32 %v20468_v46, %v18633_v7  ;;  %v18698_v20 = vor.u32 %v20484_v58, %v18697_v49  ;;  %v18745_v7 = vld [vmem:[#allocation2 + $0x2fc0] sm:$0xf] }
 0x2fb   :  { %10849 = vmatpush.bf16.msra.mxu0 %v18266_v13  ;;  %v18689_v13 = vld [vmem:[#allocation2 + $0x2f50] sm:$0xf]  ;;  %v10643_v15 = vpop.f32.mrf.mxu0 }
 0x2fc   :  { %10862 = vmatpush.bf16.msra.mxu1 %v18330_v27  ;;  %v18553_v27 = vld [vmem:[#allocation2 + $0x2e40] sm:$0xf]  ;;  %v10644_v46 = vadd.f32 %v10643_v15, %v21192_v57  ;;  %v10656_v58 = vpop.f32.mrf.mxu1 }
 0x2fd   :  { %10875 = vmatpush.bf16.msra.mxu2 %v18394_v1  ;;  %v20448_v1 = vld [vmem:[#allocation2 + $0x2e44] sm:$0xf0]  ;;  %v18729_v15 = vld [vmem:[#allocation2 + $0x2fa0] sm:$0xf] }
 0x2fe   :  { %10888 = vmatpush.bf16.msra.mxu3 %v18458_v47  ;;  %10850 = vmatmul.bf16.vlgmr.msra.gmra.mxu0 %v21197_v17  ;;  %v20464_v47 = vld [vmem:[#allocation2 + $0x2ec4] sm:$0xf0]  ;;  %v18554_v49 = vor.u32 %v20448_v1, %v18553_v27  ;;  %v10657_v0 = vadd.f32 %v10656_v58, %v10644_v46 }
 0x2ff   :  { %10894 = vmatpush.bf16.msrb.mxu0 %v18578_v43  ;;  %10863 = vmatmul.bf16.vlgmr.msra.gmra.mxu1 %v21201_v2  ;;  %v18681_v43 = vld [vmem:[#allocation2 + $0x2f40] sm:$0xf]  ;;  %v18618_v30 = vor.u32 %v20464_v47, %v18617_v25  ;;  %v20460_v25 = vld [vmem:[#allocation2 + $0x2ea4] sm:$0xf0] }
 0x300   :  { %10907 = vmatpush.bf16.msrb.mxu1 %v18642_v50  ;;  %10876 = vmatmul.bf16.vlgmr.msra.gmra.mxu2 %v21199_v19  ;;  %v18690_v50 = vor.u32 %v20482_v44, %v18689_v13  ;;  %v18682_v56 = vor.u32 %v20480_v54, %v18681_v43  ;;  %v18737_v13 = vld [vmem:[#allocation2 + $0x2fb0] sm:$0xf]  ;;  %v20494_v44 = vld [vmem:[#allocation2 + $0x2fb4] sm:$0xf0]  ;;  %v20476_v47 = vld [vmem:[#allocation2 + $0x2f24] sm:$0xf0] }
 0x301   :  { %10920 = vmatpush.bf16.msrb.mxu2 %v18706_v35  ;;  %10889 = vmatmul.bf16.vlgmr.msra.gmra.mxu3 %v21203_v61  ;;  %v18626_v35 = vor.u32 %v20466_v14, %v18625_v10  ;;  %v20462_v10 = vld [vmem:[#allocation2 + $0x2eb4] sm:$0xf0]  ;;  %v18738_v27 = vor.u32 %v20494_v44, %v18737_v13  ;;  %v18521_v44 = vld [vmem:[#allocation2 + $0x2e00] sm:$0xf]  ;;  %v18979_v19 = vld [vmem:[#allocation2 + $0x64] sm:$0xf] }
 0x302   :  { %10933 = vmatpush.bf16.msrb.mxu3 %v18770_v31  ;;  %v20496_v31 = vld [vmem:[#allocation2 + $0x2fc4] sm:$0xf0]  ;;  %v20478_v14 = vld [vmem:[#allocation2 + $0x2f34] sm:$0xf0] }
 0x303   :  { %10895 = vmatpush.bf16.msrb.mxu0 %v18570_v53  ;;  %v18545_v53 = vld [vmem:[#allocation2 + $0x2e30] sm:$0xf]  ;;  %v18746_v52 = vor.u32 %v20496_v31, %v18745_v7  ;;  %v10669_v1 = vpop.f32.mrf.mxu2  ;;  %v20492_v7 = vld [vmem:[#allocation2 + $0x2fa4] sm:$0xf0]  ;;  %v10645_v31 = vpop.f32.mrf.mxu0  ;;  %v20490_v13 = vld [vmem:[#allocation2 + $0x2f94] sm:$0xf0] }
 0x304   :  { %10908 = vmatpush.bf16.msrb.mxu1 %v18634_v59  ;;  %v20446_v59 = vld [vmem:[#allocation2 + $0x2e34] sm:$0xf0]  ;;  %v10670_v43 = vadd.f32 %v10669_v1, %v10657_v0  ;;  %v10682_v54 = vpop.f32.mrf.mxu3  ;;  %v18657_v0 = vld [vmem:[#allocation2 + $0x2f10] sm:$0xf]  ;;  %v18649_v1 = vld [vmem:[#allocation2 + $0x2f00] sm:$0xf] }
 0x305   :  { %10921 = vmatpush.bf16.msrb.mxu2 %v18698_v20  ;;  %v18609_v20 = vld [vmem:[#allocation2 + $0x2eb0] sm:$0xf]  ;;  %v18546_v55 = vor.u32 %v20446_v59, %v18545_v53  ;;  %v20442_v59 = vld [vmem:[#allocation2 + $0x2e14] sm:$0xf0]  ;;  %v12755_v31 = vld [vmem:[#allocation2 + $0xf8] sm:$0xf0] }
 0x306   :  { %10934 = vmatpush.bf16.msrb.mxu3 %v18762_v60  ;;  %v18673_v60 = vld [vmem:[#allocation2 + $0x2f30] sm:$0xf]  ;;  %v18610_v57 = vor.u32 %v20462_v10, %v18609_v20  ;;  %v21210_v58 = vadd.f32 %v10682_v54, %v10670_v43  ;;  %v20458_v10 = vld [vmem:[#allocation2 + $0x2e94] sm:$0xf0]  ;;  %v18981_v43 = vld [vmem:[#allocation2 + $0x74] sm:$0xf] }
 0x307   :  { %10896 = vmatpush.bf16.msrb.mxu0 %v18562_v48  ;;  %v18674_v51 = vor.u32 %v20478_v14, %v18673_v60  ;;  %v18537_v48 = vld [vmem:[#allocation2 + $0x2e20] sm:$0xf]  ;;  %v18529_v53 = vld [vmem:[#allocation2 + $0x2e10] sm:$0xf]  ;;  %v20474_v60 = vld [vmem:[#allocation2 + $0x2f14] sm:$0xf0] }
 0x308   :  { %10909 = vmatpush.bf16.msrb.mxu1 %v18626_v35  ;;  %v20444_v35 = vld [vmem:[#allocation2 + $0x2e24] sm:$0xf0]  ;;  %v18593_v20 = vld [vmem:[#allocation2 + $0x2e90] sm:$0xf]  ;;  %v12691_v54 = vld [vmem:[#allocation2 + $0x78] sm:$0xf0] }
 0x309   :  { %10922 = vmatpush.bf16.msrb.mxu2 %v18690_v50  ;;  %v18601_v50 = vld [vmem:[#allocation2 + $0x2ea0] sm:$0xf]  ;;  %v18538_v46 = vor.u32 %v20444_v35, %v18537_v48  ;;  %v18721_v14 = vld [vmem:[#allocation2 + $0x2f90] sm:$0xf]  ;;  %v20440_v48 = vld [vmem:[#allocation2 + $0x2e04] sm:$0xf0]  ;;  %v18594_v35 = vor.u32 %v20458_v10, %v18593_v20 }
 0x30a   :  { %10935 = vmatpush.bf16.msrb.mxu3 %v18754_v8  ;;  %v18665_v8 = vld [vmem:[#allocation2 + $0x2f20] sm:$0xf] }
 0x30b   :  { %10897 = vmatpush.bf16.msrb.mxu0 %v18554_v49  ;;  %v10658_v49 = vpop.f32.mrf.mxu1 }
 0x30c   :  { %10910 = vmatpush.bf16.msrb.mxu1 %v18618_v30  ;;  %v18602_v30 = vor.u32 %v20460_v25, %v18601_v50  ;;  %v18658_v50 = vor.u32 %v20474_v60, %v18657_v0  ;;  %v20472_v25 = vld [vmem:[#allocation2 + $0x2f04] sm:$0xf0]  ;;  %v10684_v49 = vpop.f32.mrf.mxu3  ;;  %v280_v0 = vld.sshfl [vmem:[#allocation1 + $0x20] sm:$0xff pattern:$0x73625140] }
 0x30d   :  { %10923 = vmatpush.bf16.msrb.mxu2 %v18682_v56  ;;  %v18666_v56 = vor.u32 %v20476_v47, %v18665_v8  ;;  %v18713_v8 = vld [vmem:[#allocation2 + $0x2f80] sm:$0xf]  ;;  %v20488_v47 = vld [vmem:[#allocation2 + $0x2f84] sm:$0xf0]  ;;  %v18650_v10 = vor.u32 %v20472_v25, %v18649_v1  ;;  %v12683_v49 = vld [vmem:[#allocation2 + $0x68] sm:$0xf0] }
 0x30e   :  { %10936 = vmatpush.bf16.msrb.mxu3 %v18746_v52  ;;  %v18730_v52 = vor.u32 %v20492_v7, %v18729_v15  ;;  %v10671_v15 = vpop.f32.mrf.mxu2  ;;  %v18997_v7 = vld [vmem:[#allocation2 + $0xf4] sm:$0xf]  ;;  %v18714_v60 = vor.u32 %v20488_v47, %v18713_v8  ;;  %v19027_v25 = vld [vmem:[#allocation2 + $0x1e4] sm:$0xf]  ;;  %v12875_v8 = vld [vmem:[#allocation2 + $0x1e8] sm:$0xf0]  ;;  %v12686_v47 = vor.u32 %v18979_v19, %v12683_v49 }
 0x30f   :  { %10898 = vmatpush.bf16.msrb.mxu0 %v18546_v55  ;;  %v18530_v55 = vor.u32 %v20442_v59, %v18529_v53  ;;  %v18522_v53 = vor.u32 %v20440_v48, %v18521_v44  ;;  %v12819_v59 = vld [vmem:[#allocation2 + $0x178] sm:$0xf0]  ;;  %v283_v15 = vld.sshfl [vmem:[#allocation1 + $0x38] sm:$0xff pattern:$0x73625140]  ;;  %v12758_v61 = vor.u32 %v18997_v7, %v12755_v31  ;;  %v21212_v48 = vpack.c.bf16 %v280_v0, %v280_v0 }
 0x310   :  { %10911 = vmatpush.bf16.msrb.mxu1 %v18610_v57  ;;  %v18585_v57 = vld [vmem:[#allocation2 + $0x2e80] sm:$0xf]  ;;  %v18977_v7 = vld [vmem:[#allocation2 + $0x54] sm:$0xf]  ;;  %v12675_v31 = vld [vmem:[#allocation2 + $0x58] sm:$0xf0] }
 0x311   :  { %10924 = vmatpush.bf16.msrb.mxu2 %v18674_v51  ;;  %v20456_v51 = vld [vmem:[#allocation2 + $0x2e84] sm:$0xf0]  ;;  %v12867_v19 = vld [vmem:[#allocation2 + $0x1d8] sm:$0xf0]  ;;  %v18975_v0 = vld [vmem:[#allocation2 + $0x44] sm:$0xf] }
 0x312   :  { %10937 = vmatpush.bf16.msrb.mxu3 %v18738_v27  ;;  %v18722_v27 = vor.u32 %v20490_v13, %v18721_v14  ;;  %v18586_v20 = vor.u32 %v20456_v51, %v18585_v57  ;;  %v12694_v14 = vor.u32 %v18981_v43, %v12691_v54  ;;  %v281_v13 = vld.sshfl [vmem:[#allocation1 + $0x28] sm:$0xff pattern:$0x73625140]  ;;  %v12811_v57 = vld [vmem:[#allocation2 + $0x168] sm:$0xf0] }
 0x313   :  { %10899 = vmatpush.bf16.msrb.mxu0 %v18538_v46  ;;  %v19013_v46 = vld [vmem:[#allocation2 + $0x174] sm:$0xf]  ;;  %v21216_v1 = vpack.c.bf16 %v281_v13, %v281_v13  ;;  %v12731_v13 = vld [vmem:[#allocation2 + $0xc8] sm:$0xf0] }
 0x314   :  { %10912 = vmatpush.bf16.msrb.mxu1 %v18602_v30  ;;  %v19029_v30 = vld [vmem:[#allocation2 + $0x1f4] sm:$0xf]  ;;  %v12822_v2 = vor.u32 %v19013_v46, %v12819_v59  ;;  %v12739_v59 = vld [vmem:[#allocation2 + $0xd8] sm:$0xf0]  ;;  %v12795_v49 = vld [vmem:[#allocation2 + $0x148] sm:$0xf0] }
 0x315   :  { %10925 = vmatpush.bf16.msrb.mxu2 %v18666_v56  ;;  %v12883_v56 = vld [vmem:[#allocation2 + $0x1f8] sm:$0xf0]  ;;  %v18993_v46 = vld [vmem:[#allocation2 + $0xd4] sm:$0xf] }
 0x316   :  { %10938 = vmatpush.bf16.msrb.mxu3 %v18730_v52  ;;  %v282_v52 = vld.sshfl [vmem:[#allocation1 + $0x30] sm:$0xff pattern:$0x73625140]  ;;  %v12886_v44 = vor.u32 %v19029_v30, %v12883_v56  ;;  %v19009_v30 = vld [vmem:[#allocation2 + $0x154] sm:$0xf] }
 0x317   :  { %10900 = vmatpush.bf16.msrb.mxu0 %v18530_v55  ;;  %v18995_v55 = vld [vmem:[#allocation2 + $0xe4] sm:$0xf]  ;;  %v21214_v51 = vpack.c.bf16 %v282_v52, %v282_v52  ;;  %v12803_v56 = vld [vmem:[#allocation2 + $0x158] sm:$0xf0]  ;;  %v12667_v52 = vld [vmem:[#allocation2 + $0x48] sm:$0xf0] }
 0x318   :  { %10913 = vmatpush.bf16.msrb.mxu1 %v18594_v35  ;;  %v12747_v35 = vld [vmem:[#allocation2 + $0xe8] sm:$0xf0] }
 0x319   :  { %10926 = vmatpush.bf16.msrb.mxu2 %v18658_v50  ;;  %v19011_v50 = vld [vmem:[#allocation2 + $0x164] sm:$0xf]  ;;  %21545 = vst [vmem:[#allocation81_spill] sm:$0xff] %v21214_v51  ;;  %v12750_v43 = vor.u32 %v18995_v55, %v12747_v35  ;;  %v12859_v35 = vld [vmem:[#allocation2 + $0x1c8] sm:$0xf0] }
 0x31a   :  { %10939 = vmatpush.bf16.msrb.mxu3 %v18722_v27  ;;  %v21218_v27 = vpack.c.bf16 %v283_v15, %v283_v15  ;;  %v12814_v54 = vor.u32 %v19011_v50, %v12811_v57  ;;  %v19007_v15 = vld [vmem:[#allocation2 + $0x144] sm:$0xf]  ;;  %v12670_v57 = vor.u32 %v18975_v0, %v12667_v52 }
 0x31b   :  { %10901 = vmatpush.bf16.msrb.mxu0 %v18522_v53  ;;  %v12878_v53 = vor.u32 %v19027_v25, %v12875_v8  ;;  %v10695_v55 = vpop.f32.mrf.mxu0  ;;  %v18987_v0 = vld [vmem:[#allocation2 + $0xa4] sm:$0xf] }
 0x31c   :  { %10914 = vmatpush.bf16.msrb.mxu1 %v18586_v20  ;;  %21546 = vst [vmem:[#allocation82_spill] sm:$0xff] %v21218_v27  ;;  %v19025_v20 = vld [vmem:[#allocation2 + $0x1d4] sm:$0xf]  ;;  %v10696_v50 = vadd.f32 %v10695_v55, %v21210_v58  ;;  %v10708_v25 = vpop.f32.mrf.mxu1 }
 0x31d   :  { %10927 = vmatpush.bf16.msrb.mxu2 %v18650_v10  ;;  %v12806_v10 = vor.u32 %v19009_v30, %v12803_v56  ;;  %v12787_v30 = vld [vmem:[#allocation2 + $0x138] sm:$0xf0]  ;;  %v19021_v56 = vld [vmem:[#allocation2 + $0x1b4] sm:$0xf] }
 0x31e   :  { %10940 = vmatpush.bf16.msrb.mxu3 %v18714_v60  ;;  %10902 = vmatmul.bf16.vlgmr.msrb.gmra.mxu0 %v21212_v48  ;;  %v18991_v60 = vld [vmem:[#allocation2 + $0xc4] sm:$0xf] }
 0x31f   :  { %10946 = vmatpush.bf16.msra.mxu0 %v12694_v14  ;;  %10915 = vmatmul.bf16.vlgmr.msrb.gmra.mxu1 %v21216_v1  ;;  %v12870_v14 = vor.u32 %v19025_v20, %v12867_v19  ;;  %v12734_v8 = vor.u32 %v18991_v60, %v12731_v13  ;;  %v12851_v20 = vld [vmem:[#allocation2 + $0x1b8] sm:$0xf0]  ;;  %v19003_v13 = vld [vmem:[#allocation2 + $0x124] sm:$0xf] }
 0x320   :  { %10959 = vmatpush.bf16.msra.mxu1 %v12758_v61  ;;  %10928 = vmatmul.bf16.vlgmr.msrb.gmra.mxu2 %v21214_v51  ;;  %v12742_v61 = vor.u32 %v18993_v46, %v12739_v59  ;;  %v10709_v46 = vadd.f32 %v10708_v25, %v10696_v50  ;;  %v19005_v59 = vld [vmem:[#allocation2 + $0x134] sm:$0xf]  ;;  %v12854_v52 = vor.u32 %v19021_v56, %v12851_v20  ;;  %v12835_v20 = vld [vmem:[#allocation2 + $0x198] sm:$0xf0]  ;;  %v19059_v51 = vld [vmem:[#allocation2 + $0x2e4] sm:$0xf] }
 0x321   :  { %10972 = vmatpush.bf16.msra.mxu2 %v12822_v2  ;;  %10941 = vmatmul.bf16.vlgmr.msrb.gmra.mxu3 %v21218_v27  ;;  %v12678_v2 = vor.u32 %v18977_v7, %v12675_v31  ;;  %v18989_v7 = vld [vmem:[#allocation2 + $0xb4] sm:$0xf]  ;;  %v12939_v27 = vld [vmem:[#allocation2 + $0x268] sm:$0xf0] }
 0x322   :  { %10985 = vmatpush.bf16.msra.mxu3 %v12886_v44  ;;  %v19023_v44 = vld [vmem:[#allocation2 + $0x1c4] sm:$0xf]  ;;  %v19017_v56 = vld [vmem:[#allocation2 + $0x194] sm:$0xf] }
 0x323   :  { %10947 = vmatpush.bf16.msra.mxu0 %v12686_v47  ;;  %v12798_v47 = vor.u32 %v19007_v15, %v12795_v49  ;;  %v12862_v31 = vor.u32 %v19023_v44, %v12859_v35  ;;  %v10721_v60 = vpop.f32.mrf.mxu2  ;;  %v12779_v15 = vld [vmem:[#allocation2 + $0x128] sm:$0xf0]  ;;  %v19019_v44 = vld [vmem:[#allocation2 + $0x1a4] sm:$0xf]  ;;  %v10697_v50 = vpop.f32.mrf.mxu0 }
 0x324   :  { %10960 = vmatpush.bf16.msra.mxu1 %v12750_v43  ;;  %v18973_v43 = vld [vmem:[#allocation2 + $0x34] sm:$0xf]  ;;  %v10722_v49 = vadd.f32 %v10721_v60, %v10709_v46  ;;  %v10734_v55 = vpop.f32.mrf.mxu3  ;;  %v12843_v35 = vld [vmem:[#allocation2 + $0x1a8] sm:$0xf0]  ;;  %v10710_v25 = vpop.f32.mrf.mxu1 }
 0x325   :  { %10973 = vmatpush.bf16.msra.mxu2 %v12814_v54  ;;  %v12659_v54 = vld [vmem:[#allocation2 + $0x38] sm:$0xf0]  ;;  %v19001_v46 = vld [vmem:[#allocation2 + $0x114] sm:$0xf]  ;;  %v12699_v60 = vld [vmem:[#allocation2 + $0x88] sm:$0xf0] }
 0x326   :  { %10986 = vmatpush.bf16.msra.mxu3 %v12878_v53  ;;  %v12723_v53 = vld [vmem:[#allocation2 + $0xb8] sm:$0xf0]  ;;  %v12662_v19 = vor.u32 %v18973_v43, %v12659_v54  ;;  %v12782_v43 = vor.u32 %v19003_v13, %v12779_v15  ;;  %v18969_v54 = vld [vmem:[#allocation2 + $0x14] sm:$0xf]  ;;  %v12838_v13 = vor.u32 %v19017_v56, %v12835_v20  ;;  %v19015_v15 = vld [vmem:[#allocation2 + $0x184] sm:$0xf] }
 0x327   :  { %10948 = vmatpush.bf16.msra.mxu0 %v12678_v2  ;;  %v12726_v58 = vor.u32 %v18989_v7, %v12723_v53  ;;  %v12790_v2 = vor.u32 %v19005_v59, %v12787_v30  ;;  %v12643_v7 = vld [vmem:[#allocation2 + $0x18] sm:$0xf0]  ;;  %v12846_v53 = vor.u32 %v19019_v44, %v12843_v35  ;;  %v19045_v44 = vld [vmem:[#allocation2 + $0x274] sm:$0xf] }
 0x328   :  { %10961 = vmatpush.bf16.msra.mxu1 %v12742_v61  ;;  %v18971_v61 = vld [vmem:[#allocation2 + $0x24] sm:$0xf]  ;;  %v12707_v59 = vld [vmem:[#allocation2 + $0x98] sm:$0xf0]  ;;  %v19061_v50 = vld [vmem:[#allocation2 + $0x2f4] sm:$0xf] }
 0x329   :  { %10974 = vmatpush.bf16.msra.mxu2 %v12806_v10  ;;  %v12651_v10 = vld [vmem:[#allocation2 + $0x28] sm:$0xf0]  ;;  %v12771_v30 = vld [vmem:[#allocation2 + $0x118] sm:$0xf0] }
 0x32a   :  { %10987 = vmatpush.bf16.msra.mxu3 %v12870_v14  ;;  %v12715_v14 = vld [vmem:[#allocation2 + $0xa8] sm:$0xf0]  ;;  %v12947_v35 = vld [vmem:[#allocation2 + $0x278] sm:$0xf0] }
 0x32b   :  { %10949 = vmatpush.bf16.msra.mxu0 %v12670_v57  ;;  %v12654_v57 = vor.u32 %v18971_v61, %v12651_v10  ;;  %v18967_v61 = vld [vmem:[#allocation2 + $0x4] sm:$0xf]  ;;  %v12635_v10 = vld [vmem:[#allocation2 + $0x8] sm:$0xf0] }
 0x32c   :  { %10962 = vmatpush.bf16.msra.mxu1 %v12734_v8  ;;  %v21225_v8 = vadd.f32 %v10734_v55, %v10722_v49  ;;  %v12827_v49 = vld [vmem:[#allocation2 + $0x188] sm:$0xf0]  ;;  %v10723_v55 = vpop.f32.mrf.mxu2  ;;  %v12638_v25 = vor.u32 %v18967_v61, %v12635_v10  ;;  %v19075_v10 = vld [vmem:[#allocation2 + $0x364] sm:$0xf] }
 0x32d   :  { %10975 = vmatpush.bf16.msra.mxu2 %v12798_v47  ;;  %v12718_v47 = vor.u32 %v18987_v0, %v12715_v14  ;;  %v18983_v0 = vld [vmem:[#allocation2 + $0x84] sm:$0xf]  ;;  %v13003_v61 = vld [vmem:[#allocation2 + $0x2e8] sm:$0xf0] }
 0x32e   :  { %10988 = vmatpush.bf16.msra.mxu3 %v12862_v31  ;;  %v18985_v31 = vld [vmem:[#allocation2 + $0x94] sm:$0xf]  ;;  %v18999_v14 = vld [vmem:[#allocation2 + $0x104] sm:$0xf] }
 0x32f   :  { %10950 = vmatpush.bf16.msra.mxu0 %v12662_v19  ;;  %v12646_v19 = vor.u32 %v18969_v54, %v12643_v7  ;;  %v13011_v54 = vld [vmem:[#allocation2 + $0x2f8] sm:$0xf0]  ;;  %v12702_v7 = vor.u32 %v18983_v0, %v12699_v60  ;;  %v19043_v55 = vld [vmem:[#allocation2 + $0x264] sm:$0xf]  ;;  %v13006_v60 = vor.u32 %v19059_v51, %v13003_v61  ;;  %v19037_v61 = vld [vmem:[#allocation2 + $0x234] sm:$0xf] }
 0x330   :  { %10963 = vmatpush.bf16.msra.mxu1 %v12726_v58  ;;  %v12710_v58 = vor.u32 %v18985_v31, %v12707_v59  ;;  %v19093_v59 = vld [vmem:[#allocation2 + $0x3f4] sm:$0xf]  ;;  %v13014_v56 = vor.u32 %v19061_v50, %v13011_v54  ;;  %v12942_v0 = vor.u32 %v19043_v55, %v12939_v27  ;;  %v13059_v50 = vld [vmem:[#allocation2 + $0x358] sm:$0xf0] }
 0x331   :  { %10976 = vmatpush.bf16.msra.mxu2 %v12790_v2  ;;  %v12774_v2 = vor.u32 %v19001_v46, %v12771_v30  ;;  %v12830_v46 = vor.u32 %v19015_v15, %v12827_v49  ;;  %v12950_v30 = vor.u32 %v19045_v44, %v12947_v35  ;;  %v19057_v15 = vld [vmem:[#allocation2 + $0x2d4] sm:$0xf]  ;;  %v12995_v44 = vld [vmem:[#allocation2 + $0x2d8] sm:$0xf0] }
 0x332   :  { %10989 = vmatpush.bf16.msra.mxu3 %v12854_v52  ;;  %v12763_v52 = vld [vmem:[#allocation2 + $0x108] sm:$0xf0]  ;;  %v19073_v35 = vld [vmem:[#allocation2 + $0x354] sm:$0xf]  ;;  %v13123_v54 = vld [vmem:[#allocation2 + $0x3d8] sm:$0xf0]  ;;  %v12998_v51 = vor.u32 %v19057_v15, %v12995_v44 }
 0x333   :  { %10951 = vmatpush.bf16.msra.mxu0 %v12654_v57  ;;  %v10736_v57 = vpop.f32.mrf.mxu3  ;;  %v12766_v31 = vor.u32 %v18999_v14, %v12763_v52  ;;  %v12931_v52 = vld [vmem:[#allocation2 + $0x258] sm:$0xf0]  ;;  %v19035_v44 = vld [vmem:[#allocation2 + $0x224] sm:$0xf] }
 0x334   :  { %10964 = vmatpush.bf16.msra.mxu1 %v12718_v47  ;;  %v19077_v47 = vld [vmem:[#allocation2 + $0x374] sm:$0xf]  ;;  %v13067_v57 = vld [vmem:[#allocation2 + $0x368] sm:$0xf0] }
 0x335   :  { %10977 = vmatpush.bf16.msra.mxu2 %v12782_v43  ;;  %v13075_v43 = vld [vmem:[#allocation2 + $0x378] sm:$0xf0]  ;;  %v13070_v14 = vor.u32 %v19075_v10, %v13067_v57  ;;  %v19053_v57 = vld [vmem:[#allocation2 + $0x2b4] sm:$0xf] }
 0x336   :  { %10990 = vmatpush.bf16.msra.mxu3 %v12846_v53  ;;  %v13139_v53 = vld [vmem:[#allocation2 + $0x3f8] sm:$0xf0]  ;;  %v13078_v20 = vor.u32 %v19077_v47, %v13075_v43  ;;  %v13062_v47 = vor.u32 %v19073_v35, %v13059_v50  ;;  %v19039_v43 = vld [vmem:[#allocation2 + $0x244] sm:$0xf]  ;;  %v12907_v35 = vld [vmem:[#allocation2 + $0x228] sm:$0xf0] }
 0x337   :  { %10952 = vmatpush.bf16.msra.mxu0 %v12646_v19  ;;  %v13142_v19 = vor.u32 %v19093_v59, %v13139_v53  ;;  %v19071_v53 = vld [vmem:[#allocation2 + $0x344] sm:$0xf]  ;;  %v12915_v10 = vld [vmem:[#allocation2 + $0x238] sm:$0xf0] }
 0x338   :  { %10965 = vmatpush.bf16.msra.mxu1 %v12710_v58  ;;  %v19091_v58 = vld [vmem:[#allocation2 + $0x3e4] sm:$0xf]  ;;  %v12918_v15 = vor.u32 %v19037_v61, %v12915_v10  ;;  %v19065_v61 = vld [vmem:[#allocation2 + $0x314] sm:$0xf]  ;;  %v13027_v10 = vld [vmem:[#allocation2 + $0x318] sm:$0xf0] }
 0x339   :  { %10978 = vmatpush.bf16.msra.mxu2 %v12774_v2  ;;  %v13131_v2 = vld [vmem:[#allocation2 + $0x3e8] sm:$0xf0]  ;;  %v19051_v50 = vld [vmem:[#allocation2 + $0x2a4] sm:$0xf] }
 0x33a   :  { %10991 = vmatpush.bf16.msra.mxu3 %v12838_v13  ;;  %v19041_v13 = vld [vmem:[#allocation2 + $0x254] sm:$0xf]  ;;  %v13134_v49 = vor.u32 %v19091_v58, %v13131_v2 }
 0x33b   :  { %10953 = vmatpush.bf16.msra.mxu0 %v12638_v25  ;;  %v19089_v25 = vld [vmem:[#allocation2 + $0x3d4] sm:$0xf]  ;;  %v12934_v27 = vor.u32 %v19041_v13, %v12931_v52  ;;  %v13107_v52 = vld [vmem:[#allocation2 + $0x3b8] sm:$0xf0] }
 0x33c   :  { %10966 = vmatpush.bf16.msra.mxu1 %v12702_v7  ;;  %v12923_v7 = vld [vmem:[#allocation2 + $0x248] sm:$0xf0]  ;;  %v13126_v59 = vor.u32 %v19089_v25, %v13123_v54  ;;  %v19085_v13 = vld [vmem:[#allocation2 + $0x3b4] sm:$0xf] }
 0x33d   :  { %10979 = vmatpush.bf16.msra.mxu2 %v12766_v31  ;;  %v19055_v31 = vld [vmem:[#allocation2 + $0x2c4] sm:$0xf]  ;;  %v13110_v25 = vor.u32 %v19085_v13, %v13107_v52  ;;  %v13030_v13 = vor.u32 %v19065_v61, %v13027_v10 }
 0x33e   :  { %10992 = vmatpush.bf16.msra.mxu3 %v12830_v46  ;;  %10954 = vmatmul.bf16.vlgmr.msra.gmra.mxu0 %v20816_v34  ;;  %v13051_v46 = vld [vmem:[#allocation2 + $0x348] sm:$0xf0]  ;;  %v19087_v34 = vld [vmem:[#allocation2 + $0x3c4] sm:$0xf] }
 0x33f   :  { %10998 = vmatpush.bf16.msrb.mxu0 %v12950_v30  ;;  %10967 = vmatmul.bf16.vlgmr.msra.gmra.mxu1 %v20820_v42  ;;  %v10747_v30 = vpop.f32.mrf.mxu0  ;;  %v10760_v42 = vpop.f32.mrf.mxu1  ;;  %v19047_v52 = vld [vmem:[#allocation2 + $0x284] sm:$0xf] }
 0x340   :  { %11011 = vmatpush.bf16.msrb.mxu1 %v13014_v56  ;;  %10980 = vmatmul.bf16.vlgmr.msra.gmra.mxu2 %v20814_v33  ;;  %v12987_v33 = vld [vmem:[#allocation2 + $0x2c8] sm:$0xf0]  ;;  %v19123_v61 = vld [vmem:[#allocation2 + $0x4e4] sm:$0xf] }
 0x341   :  { %11024 = vmatpush.bf16.msrb.mxu2 %v13078_v20  ;;  %10993 = vmatmul.bf16.vlgmr.msra.gmra.mxu3 %v20818_v41  ;;  %v13115_v56 = vld [vmem:[#allocation2 + $0x3c8] sm:$0xf0]  ;;  %v10748_v41 = vadd.f32 %v10747_v30, %v21225_v8  ;;  %v12926_v20 = vor.u32 %v19039_v43, %v12923_v7  ;;  %v12990_v55 = vor.u32 %v19055_v31, %v12987_v33  ;;  %v19083_v31 = vld [vmem:[#allocation2 + $0x3a4] sm:$0xf] }
 0x342   :  { %11037 = vmatpush.bf16.msrb.mxu3 %v13142_v19  ;;  %v13054_v19 = vor.u32 %v19071_v53, %v13051_v46  ;;  %v13118_v58 = vor.u32 %v19087_v34, %v13115_v56  ;;  %v12910_v53 = vor.u32 %v19035_v44, %v12907_v35  ;;  %v13019_v44 = vld [vmem:[#allocation2 + $0x308] sm:$0xf0]  ;;  %v19079_v35 = vld [vmem:[#allocation2 + $0x384] sm:$0xf] }
 0x343   :  { %10999 = vmatpush.bf16.msrb.mxu0 %v12942_v0  ;;  %v10761_v2 = vadd.f32 %v10760_v42, %v10748_v41  ;;  %v12979_v0 = vld [vmem:[#allocation2 + $0x2b8] sm:$0xf0]  ;;  %v10773_v54 = vpop.f32.mrf.mxu2  ;;  %v19033_v41 = vld [vmem:[#allocation2 + $0x214] sm:$0xf] }
 0x344   :  { %11012 = vmatpush.bf16.msrb.mxu1 %v13006_v60  ;;  %v19069_v60 = vld [vmem:[#allocation2 + $0x334] sm:$0xf]  ;;  %v12982_v8 = vor.u32 %v19053_v57, %v12979_v0  ;;  %v10786_v7 = vpop.f32.mrf.mxu3  ;;  %v19031_v0 = vld [vmem:[#allocation2 + $0x204] sm:$0xf] }
 0x345   :  { %11025 = vmatpush.bf16.msrb.mxu2 %v13070_v14  ;;  %v13043_v14 = vld [vmem:[#allocation2 + $0x338] sm:$0xf0]  ;;  %v10774_v43 = vadd.f32 %v10773_v54, %v10761_v2  ;;  %v19049_v42 = vld [vmem:[#allocation2 + $0x294] sm:$0xf] }
 0x346   :  { %11038 = vmatpush.bf16.msrb.mxu3 %v13134_v49  ;;  %v13046_v49 = vor.u32 %v19069_v60, %v13043_v14  ;;  %v19081_v57 = vld [vmem:[#allocation2 + $0x394] sm:$0xf]  ;;  %v12891_v60 = vld [vmem:[#allocation2 + $0x208] sm:$0xf0] }
 0x347   :  { %11000 = vmatpush.bf16.msrb.mxu0 %v12934_v27  ;;  %v12971_v27 = vld [vmem:[#allocation2 + $0x2a8] sm:$0xf0]  ;;  %v10749_v33 = vpop.f32.mrf.mxu0  ;;  %v10762_v46 = vpop.f32.mrf.mxu1  ;;  %v21232_v30 = vadd.f32 %v10786_v7, %v10774_v43  ;;  %v19109_v54 = vld [vmem:[#allocation2 + $0x474] sm:$0xf]  ;;  %v12894_v43 = vor.u32 %v19031_v0, %v12891_v60  ;;  %v13267_v7 = vld [vmem:[#allocation2 + $0x4f8] sm:$0xf0] }
 0x348   :  { %11013 = vmatpush.bf16.msrb.mxu1 %v12998_v51  ;;  %v19067_v51 = vld [vmem:[#allocation2 + $0x324] sm:$0xf]  ;;  %v12974_v34 = vor.u32 %v19051_v50, %v12971_v27  ;;  %v13083_v50 = vld [vmem:[#allocation2 + $0x388] sm:$0xf0]  ;;  %v13203_v27 = vld [vmem:[#allocation2 + $0x478] sm:$0xf0] }
 0x349   :  { %11026 = vmatpush.bf16.msrb.mxu2 %v13062_v47  ;;  %v13035_v47 = vld [vmem:[#allocation2 + $0x328] sm:$0xf0]  ;;  %v19157_v46 = vld [vmem:[#allocation2 + $0x5f4] sm:$0xf]  ;;  %v19155_v0 = vld [vmem:[#allocation2 + $0x5e4] sm:$0xf] }
 0x34a   :  { %11039 = vmatpush.bf16.msrb.mxu3 %v13126_v59  ;;  %v13099_v59 = vld [vmem:[#allocation2 + $0x3a8] sm:$0xf0]  ;;  %v13038_v56 = vor.u32 %v19067_v51, %v13035_v47  ;;  %v19125_v51 = vld [vmem:[#allocation2 + $0x4f4] sm:$0xf] }
 0x34b   :  { %11001 = vmatpush.bf16.msrb.mxu0 %v12926_v20  ;;  %v12899_v20 = vld [vmem:[#allocation2 + $0x218] sm:$0xf0]  ;;  %v13387_v60 = vld [vmem:[#allocation2 + $0x5e8] sm:$0xf0] }
 0x34c   :  { %11014 = vmatpush.bf16.msrb.mxu1 %v12990_v55  ;;  %v13102_v55 = vor.u32 %v19083_v31, %v13099_v59  ;;  %v12902_v2 = vor.u32 %v19033_v41, %v12899_v20  ;;  %v10788_v47 = vpop.f32.mrf.mxu3  ;;  %v19141_v31 = vld [vmem:[#allocation2 + $0x574] sm:$0xf]  ;;  %v13331_v59 = vld [vmem:[#allocation2 + $0x578] sm:$0xf0]  ;;  %v13206_v41 = vor.u32 %v19109_v54, %v13203_v27  ;;  %v13270_v20 = vor.u32 %v19125_v51, %v13267_v7  ;;  %v19103_v7 = vld [vmem:[#allocation2 + $0x444] sm:$0xf] }
 0x34d   :  { %11027 = vmatpush.bf16.msrb.mxu2 %v13054_v19  ;;  %v12963_v19 = vld [vmem:[#allocation2 + $0x298] sm:$0xf0]  ;;  %v19153_v54 = vld [vmem:[#allocation2 + $0x5d4] sm:$0xf] }
 0x34e   :  { %11040 = vmatpush.bf16.msrb.mxu3 %v13118_v58  ;;  %v13091_v58 = vld [vmem:[#allocation2 + $0x398] sm:$0xf0]  ;;  %v12966_v14 = vor.u32 %v19049_v42, %v12963_v19  ;;  %v13334_v42 = vor.u32 %v19141_v31, %v13331_v59  ;;  %v13195_v19 = vld [vmem:[#allocation2 + $0x468] sm:$0xf0] }
 0x34f   :  { %11002 = vmatpush.bf16.msrb.mxu0 %v12918_v15  ;;  %v12955_v15 = vld [vmem:[#allocation2 + $0x288] sm:$0xf0]  ;;  %v13379_v27 = vld [vmem:[#allocation2 + $0x5d8] sm:$0xf0] }
 0x350   :  { %11015 = vmatpush.bf16.msrb.mxu1 %v12982_v8  ;;  %v19063_v8 = vld [vmem:[#allocation2 + $0x304] sm:$0xf]  ;;  %v12958_v33 = vor.u32 %v19047_v52, %v12955_v15  ;;  %v19105_v15 = vld [vmem:[#allocation2 + $0x454] sm:$0xf]  ;;  %v13179_v31 = vld [vmem:[#allocation2 + $0x448] sm:$0xf0]  ;;  %v13382_v59 = vor.u32 %v19153_v54, %v13379_v27 }
 0x351   :  { %11028 = vmatpush.bf16.msrb.mxu2 %v13046_v49  ;;  %v13094_v49 = vor.u32 %v19081_v57, %v13091_v58  ;;  %v13259_v57 = vld [vmem:[#allocation2 + $0x4e8] sm:$0xf0]  ;;  %v19139_v58 = vld [vmem:[#allocation2 + $0x564] sm:$0xf] }
 0x352   :  { %11041 = vmatpush.bf16.msrb.mxu3 %v13110_v25  ;;  %v10775_v25 = vpop.f32.mrf.mxu2  ;;  %v13291_v54 = vld [vmem:[#allocation2 + $0x528] sm:$0xf0] }
 0x353   :  { %11003 = vmatpush.bf16.msrb.mxu0 %v12910_v53  ;;  %v13022_v53 = vor.u32 %v19063_v8, %v13019_v44  ;;  %v13187_v8 = vld [vmem:[#allocation2 + $0x458] sm:$0xf0]  ;;  %v13390_v44 = vor.u32 %v19155_v0, %v13387_v60  ;;  %v19149_v60 = vld [vmem:[#allocation2 + $0x5b4] sm:$0xf] }
 0x354   :  { %11016 = vmatpush.bf16.msrb.mxu1 %v12974_v34  ;;  %v13395_v34 = vld [vmem:[#allocation2 + $0x5f8] sm:$0xf0]  ;;  %v13190_v51 = vor.u32 %v19105_v15, %v13187_v8  ;;  %v19099_v15 = vld [vmem:[#allocation2 + $0x424] sm:$0xf]  ;;  %v13163_v8 = vld [vmem:[#allocation2 + $0x428] sm:$0xf0] }
 0x355   :  { %11029 = vmatpush.bf16.msrb.mxu2 %v13038_v56  ;;  %v13086_v56 = vor.u32 %v19079_v35, %v13083_v50  ;;  %v13398_v10 = vor.u32 %v19157_v46, %v13395_v34  ;;  %v13251_v35 = vld [vmem:[#allocation2 + $0x4d8] sm:$0xf0]  ;;  %v19137_v50 = vld [vmem:[#allocation2 + $0x554] sm:$0xf]  ;;  %v13307_v46 = vld [vmem:[#allocation2 + $0x548] sm:$0xf0] }
 0x356   :  { %11042 = vmatpush.bf16.msrb.mxu3 %v13102_v55  ;;  %v19107_v55 = vld [vmem:[#allocation2 + $0x464] sm:$0xf]  ;;  %v13315_v25 = vld [vmem:[#allocation2 + $0x558] sm:$0xf0] }
 0x357   :  { %11004 = vmatpush.bf16.msrb.mxu0 %v12902_v2  ;;  %v13323_v2 = vld [vmem:[#allocation2 + $0x568] sm:$0xf0]  ;;  %v13299_v0 = vld [vmem:[#allocation2 + $0x538] sm:$0xf0] }
 0x358   :  { %11017 = vmatpush.bf16.msrb.mxu1 %v12966_v14  ;;  %v13198_v14 = vor.u32 %v19107_v55, %v13195_v19  ;;  %v13326_v52 = vor.u32 %v19139_v58, %v13323_v2  ;;  %v19101_v55 = vld [vmem:[#allocation2 + $0x434] sm:$0xf]  ;;  %v13171_v19 = vld [vmem:[#allocation2 + $0x438] sm:$0xf0] }
 0x359   :  { %11030 = vmatpush.bf16.msrb.mxu2 %v13030_v13  ;;  %v13262_v13 = vor.u32 %v19123_v61, %v13259_v57  ;;  %v19117_v61 = vld [vmem:[#allocation2 + $0x4b4] sm:$0xf]  ;;  %v13235_v58 = vld [vmem:[#allocation2 + $0x4b8] sm:$0xf0] }
 0x35a   :  { %11043 = vmatpush.bf16.msrb.mxu3 %v13094_v49  ;;  %v19121_v49 = vld [vmem:[#allocation2 + $0x4d4] sm:$0xf] }
 0x35b   :  { %11005 = vmatpush.bf16.msrb.mxu0 %v12894_v43  ;;  %v13254_v47 = vor.u32 %v19121_v49, %v13251_v35  ;;  %v13318_v43 = vor.u32 %v19137_v50, %v13315_v25  ;;  %v10799_v34 = vpop.f32.mrf.mxu0  ;;  %v19133_v2 = vld [vmem:[#allocation2 + $0x534] sm:$0xf]  ;;  %v19115_v49 = vld [vmem:[#allocation2 + $0x4a4] sm:$0xf]  ;;  %v13227_v50 = vld [vmem:[#allocation2 + $0x4a8] sm:$0xf0] }
 0x35c   :  { %11018 = vmatpush.bf16.msrb.mxu1 %v12958_v33  ;;  %v13243_v33 = vld [vmem:[#allocation2 + $0x4c8] sm:$0xf0]  ;;  %v19131_v25 = vld [vmem:[#allocation2 + $0x524] sm:$0xf] }
 0x35d   :  { %11031 = vmatpush.bf16.msrb.mxu2 %v13022_v53  ;;  %v19135_v53 = vld [vmem:[#allocation2 + $0x544] sm:$0xf] }
 0x35e   :  { %11044 = vmatpush.bf16.msrb.mxu3 %v13086_v56  ;;  %11006 = vmatmul.bf16.vlgmr.msrb.gmra.mxu0 %v20831_v37  ;;  %v19151_v37 = vld [vmem:[#allocation2 + $0x5c4] sm:$0xf]  ;;  %v13371_v56 = vld [vmem:[#allocation2 + $0x5c8] sm:$0xf0] }
 0x35f   :  { %11050 = vmatpush.bf16.msra.mxu0 %v13206_v41  ;;  %11019 = vmatmul.bf16.vlgmr.msrb.gmra.mxu1 %v20835_v40  ;;  %v13182_v41 = vor.u32 %v19103_v7, %v13179_v31  ;;  %v10812_v40 = vpop.f32.mrf.mxu1  ;;  %v13166_v31 = vor.u32 %v19099_v15, %v13163_v8  ;;  %v19173_v15 = vld [vmem:[#allocation2 + $0x674] sm:$0xf]  ;;  %v13459_v8 = vld [vmem:[#allocation2 + $0x678] sm:$0xf0] }
 0x360   :  { %11063 = vmatpush.bf16.msra.mxu1 %v13270_v20  ;;  %11032 = vmatmul.bf16.vlgmr.msrb.gmra.mxu2 %v20829_v32  ;;  %v19119_v32 = vld [vmem:[#allocation2 + $0x4c4] sm:$0xf] }
 0x361   :  { %11076 = vmatpush.bf16.msra.mxu2 %v13334_v42  ;;  %11045 = vmatmul.bf16.vlgmr.msrb.gmra.mxu3 %v20833_v38  ;;  %v10800_v38 = vadd.f32 %v10799_v34, %v21232_v30  ;;  %v13246_v20 = vor.u32 %v19119_v32, %v13243_v33  ;;  %v13310_v42 = vor.u32 %v19135_v53, %v13307_v46  ;;  %v19097_v46 = vld [vmem:[#allocation2 + $0x414] sm:$0xf]  ;;  %v13155_v34 = vld [vmem:[#allocation2 + $0x418] sm:$0xf0] }
 0x362   :  { %11089 = vmatpush.bf16.msra.mxu3 %v13398_v10  ;;  %v13374_v10 = vor.u32 %v19151_v37, %v13371_v56  ;;  %v13238_v30 = vor.u32 %v19117_v61, %v13235_v58  ;;  %v13230_v33 = vor.u32 %v19115_v49, %v13227_v50  ;;  %v13294_v53 = vor.u32 %v19131_v25, %v13291_v54  ;;  %v19113_v37 = vld [vmem:[#allocation2 + $0x494] sm:$0xf]  ;;  %v13147_v61 = vld [vmem:[#allocation2 + $0x408] sm:$0xf0]  ;;  %v19111_v58 = vld [vmem:[#allocation2 + $0x484] sm:$0xf] }
 0x363   :  { %11051 = vmatpush.bf16.msra.mxu0 %v13198_v14  ;;  %v10813_v57 = vadd.f32 %v10812_v40, %v10800_v38  ;;  %v13363_v14 = vld [vmem:[#allocation2 + $0x5b8] sm:$0xf0]  ;;  %v10825_v35 = vpop.f32.mrf.mxu2  ;;  %v10801_v7 = vpop.f32.mrf.mxu0  ;;  %v19189_v49 = vld [vmem:[#allocation2 + $0x6f4] sm:$0xf] }
 0x364   :  { %11064 = vmatpush.bf16.msra.mxu1 %v13262_v13  ;;  %v13174_v13 = vor.u32 %v19101_v55, %v13171_v19  ;;  %v13219_v38 = vld [vmem:[#allocation2 + $0x498] sm:$0xf0]  ;;  %v13158_v55 = vor.u32 %v19097_v46, %v13155_v34  ;;  %v19095_v19 = vld [vmem:[#allocation2 + $0x404] sm:$0xf]  ;;  %v19205_v25 = vld [vmem:[#allocation2 + $0x774] sm:$0xf] }
 0x365   :  { %11077 = vmatpush.bf16.msra.mxu2 %v13326_v52  ;;  %v13302_v52 = vor.u32 %v19133_v2, %v13299_v0  ;;  %v10826_v27 = vadd.f32 %v10825_v35, %v10813_v57  ;;  %v13283_v40 = vld [vmem:[#allocation2 + $0x518] sm:$0xf0]  ;;  %v13211_v2 = vld [vmem:[#allocation2 + $0x488] sm:$0xf0]  ;;  %v19127_v0 = vld [vmem:[#allocation2 + $0x504] sm:$0xf]  ;;  %v13150_v35 = vor.u32 %v19095_v19, %v13147_v61 }
 0x366   :  { %11090 = vmatpush.bf16.msra.mxu3 %v13390_v44  ;;  %v13366_v44 = vor.u32 %v19149_v60, %v13363_v14  ;;  %v13275_v14 = vld [vmem:[#allocation2 + $0x508] sm:$0xf0]  ;;  %v13523_v50 = vld [vmem:[#allocation2 + $0x6f8] sm:$0xf0]  ;;  %v19187_v34 = vld [vmem:[#allocation2 + $0x6e4] sm:$0xf] }
 0x367   :  { %11052 = vmatpush.bf16.msra.mxu0 %v13190_v51  ;;  %v10838_v51 = vpop.f32.mrf.mxu3  ;;  %v10814_v32 = vpop.f32.mrf.mxu1  ;;  %v13587_v54 = vld [vmem:[#allocation2 + $0x778] sm:$0xf0]  ;;  %v13451_v46 = vld [vmem:[#allocation2 + $0x668] sm:$0xf0]  ;;  %v19169_v61 = vld [vmem:[#allocation2 + $0x654] sm:$0xf] }
 0x368   :  { %11065 = vmatpush.bf16.msra.mxu1 %v13254_v47  ;;  %v19147_v47 = vld [vmem:[#allocation2 + $0x5a4] sm:$0xf]  ;;  %v13526_v32 = vor.u32 %v19189_v49, %v13523_v50 }
 0x369   :  { %11078 = vmatpush.bf16.msra.mxu2 %v13318_v43  ;;  %v13355_v43 = vld [vmem:[#allocation2 + $0x5a8] sm:$0xf0]  ;;  %v19183_v49 = vld [vmem:[#allocation2 + $0x6c4] sm:$0xf] }
 0x36a   :  { %11091 = vmatpush.bf16.msra.mxu3 %v13382_v59  ;;  %v21239_v59 = vadd.f32 %v10838_v51, %v10826_v27  ;;  %v13358_v56 = vor.u32 %v19147_v47, %v13355_v43  ;;  %v13214_v27 = vor.u32 %v19111_v58, %v13211_v2  ;;  %v13278_v51 = vor.u32 %v19127_v0, %v13275_v14  ;;  %v19221_v47 = vld [vmem:[#allocation2 + $0x7f4] sm:$0xf]  ;;  %v13651_v43 = vld [vmem:[#allocation2 + $0x7f8] sm:$0xf0]  ;;  %v19199_v50 = vld [vmem:[#allocation2 + $0x744] sm:$0xf] }
 0x36b   :  { %11053 = vmatpush.bf16.msra.mxu0 %v13182_v41  ;;  %v19129_v41 = vld [vmem:[#allocation2 + $0x514] sm:$0xf]  ;;  %v13507_v2 = vld [vmem:[#allocation2 + $0x6d8] sm:$0xf0] }
 0x36c   :  { %11066 = vmatpush.bf16.msra.mxu1 %v13246_v20  ;;  %v19145_v20 = vld [vmem:[#allocation2 + $0x594] sm:$0xf]  ;;  %v13286_v57 = vor.u32 %v19129_v41, %v13283_v40  ;;  %v13579_v41 = vld [vmem:[#allocation2 + $0x768] sm:$0xf0]  ;;  %v19219_v40 = vld [vmem:[#allocation2 + $0x7e4] sm:$0xf] }
 0x36d   :  { %11079 = vmatpush.bf16.msra.mxu2 %v13310_v42  ;;  %v13347_v42 = vld [vmem:[#allocation2 + $0x598] sm:$0xf0]  ;;  %v19201_v0 = vld [vmem:[#allocation2 + $0x754] sm:$0xf] }
 0x36e   :  { %11092 = vmatpush.bf16.msra.mxu3 %v13374_v10  ;;  %v13222_v10 = vor.u32 %v19113_v37, %v13219_v38  ;;  %v13350_v60 = vor.u32 %v19145_v20, %v13347_v42  ;;  %v13654_v37 = vor.u32 %v19221_v47, %v13651_v43  ;;  %v19203_v38 = vld [vmem:[#allocation2 + $0x764] sm:$0xf]  ;;  %v13643_v20 = vld [vmem:[#allocation2 + $0x7e8] sm:$0xf0]  ;;  %v19217_v14 = vld [vmem:[#allocation2 + $0x7d4] sm:$0xf] }
 0x36f   :  { %11054 = vmatpush.bf16.msra.mxu0 %v13174_v13  ;;  %v19143_v13 = vld [vmem:[#allocation2 + $0x584] sm:$0xf]  ;;  %v13582_v19 = vor.u32 %v19203_v38, %v13579_v41  ;;  %v13646_v58 = vor.u32 %v19219_v40, %v13643_v20  ;;  %v13619_v38 = vld [vmem:[#allocation2 + $0x7b8] sm:$0xf0] }
 0x370   :  { %11067 = vmatpush.bf16.msra.mxu1 %v13238_v30  ;;  %v13339_v30 = vld [vmem:[#allocation2 + $0x588] sm:$0xf0]  ;;  %v19163_v20 = vld [vmem:[#allocation2 + $0x624] sm:$0xf] }
 0x371   :  { %11080 = vmatpush.bf16.msra.mxu2 %v13302_v52  ;;  %v10827_v52 = vpop.f32.mrf.mxu2  ;;  %v13342_v7 = vor.u32 %v19143_v13, %v13339_v30  ;;  %v13635_v13 = vld [vmem:[#allocation2 + $0x7d8] sm:$0xf0] }
 0x372   :  { %11093 = vmatpush.bf16.msra.mxu3 %v13366_v44  ;;  %v10840_v44 = vpop.f32.mrf.mxu3 }
 0x373   :  { %11055 = vmatpush.bf16.msra.mxu0 %v13166_v31  ;;  %v13462_v31 = vor.u32 %v19173_v15, %v13459_v8  ;;  %v19167_v8 = vld [vmem:[#allocation2 + $0x644] sm:$0xf]  ;;  %v13638_v44 = vor.u32 %v19217_v14, %v13635_v13  ;;  %v13611_v14 = vld [vmem:[#allocation2 + $0x7a8] sm:$0xf0] }
 0x374   :  { %11068 = vmatpush.bf16.msra.mxu1 %v13230_v33  ;;  %v13590_v33 = vor.u32 %v19205_v25, %v13587_v54  ;;  %v13627_v54 = vld [vmem:[#allocation2 + $0x7c8] sm:$0xf0] }
 0x375   :  { %11081 = vmatpush.bf16.msra.mxu2 %v13294_v53  ;;  %v19171_v53 = vld [vmem:[#allocation2 + $0x664] sm:$0xf] }
 0x376   :  { %11094 = vmatpush.bf16.msra.mxu3 %v13358_v56  ;;  %v13515_v56 = vld [vmem:[#allocation2 + $0x6e8] sm:$0xf0]  ;;  %v13454_v42 = vor.u32 %v19171_v53, %v13451_v46  ;;  %v13491_v46 = vld [vmem:[#allocation2 + $0x6b8] sm:$0xf0] }
 0x377   :  { %11056 = vmatpush.bf16.msra.mxu0 %v13158_v55  ;;  %v13518_v55 = vor.u32 %v19187_v34, %v13515_v56  ;;  %v19197_v34 = vld [vmem:[#allocation2 + $0x734] sm:$0xf] }
 0x378   :  { %11069 = vmatpush.bf16.msra.mxu1 %v13222_v10  ;;  %v13443_v10 = vld [vmem:[#allocation2 + $0x658] sm:$0xf0]  ;;  %v19213_v56 = vld [vmem:[#allocation2 + $0x7b4] sm:$0xf] }
 0x379   :  { %11082 = vmatpush.bf16.msra.mxu2 %v13286_v57  ;;  %v19185_v57 = vld [vmem:[#allocation2 + $0x6d4] sm:$0xf]  ;;  %v13446_v30 = vor.u32 %v19169_v61, %v13443_v10  ;;  %v13483_v10 = vld [vmem:[#allocation2 + $0x6a8] sm:$0xf0] }
 0x37a   :  { %11095 = vmatpush.bf16.msra.mxu3 %v13350_v60  ;;  %v13571_v60 = vld [vmem:[#allocation2 + $0x758] sm:$0xf0]  ;;  %v13510_v52 = vor.u32 %v19185_v57, %v13507_v2  ;;  %v19195_v57 = vld [vmem:[#allocation2 + $0x724] sm:$0xf] }
 0x37b   :  { %11057 = vmatpush.bf16.msra.mxu0 %v13150_v35  ;;  %v13574_v15 = vor.u32 %v19201_v0, %v13571_v60  ;;  %v13499_v35 = vld [vmem:[#allocation2 + $0x6c8] sm:$0xf0]  ;;  %v10851_v25 = vpop.f32.mrf.mxu0  ;;  %v19211_v60 = vld [vmem:[#allocation2 + $0x7a4] sm:$0xf] }
 0x37c   :  { %11070 = vmatpush.bf16.msra.mxu1 %v13214_v27  ;;  %v13502_v47 = vor.u32 %v19183_v49, %v13499_v35  ;;  %v19161_v49 = vld [vmem:[#allocation2 + $0x614] sm:$0xf] }
 0x37d   :  { %11083 = vmatpush.bf16.msra.mxu2 %v13278_v51  ;;  %v10864_v51 = vpop.f32.mrf.mxu1  ;;  %v19177_v35 = vld [vmem:[#allocation2 + $0x694] sm:$0xf] }
 0x37e   :  { %11096 = vmatpush.bf16.msra.mxu3 %v13342_v7  ;;  %11058 = vmatmul.bf16.vlgmr.msra.gmra.mxu0 %v20844_v18  ;;  %v13435_v18 = vld [vmem:[#allocation2 + $0x648] sm:$0xf0]  ;;  %v19165_v7 = vld [vmem:[#allocation2 + $0x634] sm:$0xf] }
 0x37f   :  { %11102 = vmatpush.bf16.msrb.mxu0 %v13462_v31  ;;  %11071 = vmatmul.bf16.vlgmr.msra.gmra.mxu1 %v20848_v23  ;;  %v19215_v23 = vld [vmem:[#allocation2 + $0x7c4] sm:$0xf]  ;;  %v13438_v27 = vor.u32 %v19167_v8, %v13435_v18  ;;  %v13427_v31 = vld [vmem:[#allocation2 + $0x638] sm:$0xf0] }
 0x380   :  { %11115 = vmatpush.bf16.msrb.mxu1 %v13526_v32  ;;  %11084 = vmatmul.bf16.vlgmr.msra.gmra.mxu2 %v20846_v22  ;;  %v13563_v22 = vld [vmem:[#allocation2 + $0x748] sm:$0xf0]  ;;  %v19181_v32 = vld [vmem:[#allocation2 + $0x6b4] sm:$0xf]  ;;  %v13430_v41 = vor.u32 %v19165_v7, %v13427_v31  ;;  %v19175_v31 = vld [vmem:[#allocation2 + $0x684] sm:$0xf] }
 0x381   :  { %11128 = vmatpush.bf16.msrb.mxu2 %v13590_v33  ;;  %11097 = vmatmul.bf16.vlgmr.msra.gmra.mxu3 %v20850_v26  ;;  %v10852_v26 = vadd.f32 %v10851_v25, %v21239_v59  ;;  %v13566_v43 = vor.u32 %v19199_v50, %v13563_v22  ;;  %v13630_v33 = vor.u32 %v19215_v23, %v13627_v54  ;;  %v13475_v22 = vld [vmem:[#allocation2 + $0x698] sm:$0xf0]  ;;  %v19193_v25 = vld [vmem:[#allocation2 + $0x714] sm:$0xf] }
 0x382   :  { %11141 = vmatpush.bf16.msrb.mxu3 %v13654_v37  ;;  %v13555_v37 = vld [vmem:[#allocation2 + $0x738] sm:$0xf0]  ;;  %v13494_v59 = vor.u32 %v19181_v32, %v13491_v46  ;;  %v13614_v50 = vor.u32 %v19211_v60, %v13611_v14  ;;  %v19209_v54 = vld [vmem:[#allocation2 + $0x794] sm:$0xf]  ;;  %v13467_v32 = vld [vmem:[#allocation2 + $0x688] sm:$0xf0] }
 0x383   :  { %11103 = vmatpush.bf16.msrb.mxu0 %v13454_v42  ;;  %v10865_v53 = vadd.f32 %v10864_v51, %v10852_v26  ;;  %v13558_v40 = vor.u32 %v19197_v34, %v13555_v37  ;;  %v13419_v42 = vld [vmem:[#allocation2 + $0x628] sm:$0xf0]  ;;  %v10877_v61 = vpop.f32.mrf.mxu2  ;;  %v10853_v13 = vpop.f32.mrf.mxu0  ;;  %v13539_v23 = vld [vmem:[#allocation2 + $0x718] sm:$0xf0]  ;;  %v19159_v51 = vld [vmem:[#allocation2 + $0x604] sm:$0xf] }
 0x384   :  { %11116 = vmatpush.bf16.msrb.mxu1 %v13518_v55  ;;  %v19179_v55 = vld [vmem:[#allocation2 + $0x6a4] sm:$0xf]  ;;  %v10890_v0 = vpop.f32.mrf.mxu3  ;;  %v13603_v26 = vld [vmem:[#allocation2 + $0x798] sm:$0xf0]  ;;  %v13542_v7 = vor.u32 %v19193_v25, %v13539_v23  ;;  %v13531_v46 = vld [vmem:[#allocation2 + $0x708] sm:$0xf0] }
 0x385   :  { %11129 = vmatpush.bf16.msrb.mxu2 %v13582_v19  ;;  %v13622_v19 = vor.u32 %v19213_v56, %v13619_v38  ;;  %v10878_v2 = vadd.f32 %v10877_v61, %v10865_v53  ;;  %v13486_v8 = vor.u32 %v19179_v55, %v13483_v10  ;;  %v13606_v53 = vor.u32 %v19209_v54, %v13603_v26  ;;  %v19207_v34 = vld [vmem:[#allocation2 + $0x784] sm:$0xf]  ;;  %v13595_v37 = vld [vmem:[#allocation2 + $0x788] sm:$0xf0]  ;;  %v19237_v38 = vld [vmem:[#allocation2 + $0x874] sm:$0xf] }
 0x386   :  { %11142 = vmatpush.bf16.msrb.mxu3 %v13646_v58  ;;  %v13547_v58 = vld [vmem:[#allocation2 + $0x728] sm:$0xf0]  ;;  %v19269_v55 = vld [vmem:[#allocation2 + $0x974] sm:$0xf]  ;;  %v13470_v61 = vor.u32 %v19175_v31, %v13467_v32  ;;  %v19235_v13 = vld [vmem:[#allocation2 + $0x864] sm:$0xf] }
 0x387   :  { %11104 = vmatpush.bf16.msrb.mxu0 %v13446_v30  ;;  %v13422_v30 = vor.u32 %v19163_v20, %v13419_v42  ;;  %v13550_v18 = vor.u32 %v19195_v57, %v13547_v58  ;;  %v13779_v42 = vld [vmem:[#allocation2 + $0x8f8] sm:$0xf0]  ;;  %v19285_v57 = vld [vmem:[#allocation2 + $0x9f4] sm:$0xf] }
 0x388   :  { %11117 = vmatpush.bf16.msrb.mxu1 %v13510_v52  ;;  %v10866_v52 = vpop.f32.mrf.mxu1  ;;  %v13907_v58 = vld [vmem:[#allocation2 + $0x9f8] sm:$0xf0]  ;;  %v19233_v54 = vld [vmem:[#allocation2 + $0x854] sm:$0xf] }
 0x389   :  { %11130 = vmatpush.bf16.msrb.mxu2 %v13574_v15  ;;  %v21246_v15 = vadd.f32 %v10890_v0, %v10878_v2  ;;  %v13598_v2 = vor.u32 %v19207_v34, %v13595_v37  ;;  %v19251_v52 = vld [vmem:[#allocation2 + $0x8e4] sm:$0xf]  ;;  %v13699_v26 = vld [vmem:[#allocation2 + $0x858] sm:$0xf0]  ;;  %v19281_v31 = vld [vmem:[#allocation2 + $0x9d4] sm:$0xf] }
 0x38a   :  { %11143 = vmatpush.bf16.msrb.mxu3 %v13638_v44  ;;  %v13411_v44 = vld [vmem:[#allocation2 + $0x618] sm:$0xf0]  ;;  %v19231_v34 = vld [vmem:[#allocation2 + $0x844] sm:$0xf] }
 0x38b   :  { %11105 = vmatpush.bf16.msrb.mxu0 %v13438_v27  ;;  %v13414_v27 = vor.u32 %v19161_v49, %v13411_v44  ;;  %v10879_v56 = vpop.f32.mrf.mxu2  ;;  %v19267_v49 = vld [vmem:[#allocation2 + $0x964] sm:$0xf]  ;;  %v13835_v44 = vld [vmem:[#allocation2 + $0x968] sm:$0xf0]  ;;  %v13891_v32 = vld [vmem:[#allocation2 + $0x9d8] sm:$0xf0] }
 0x38c   :  { %11118 = vmatpush.bf16.msrb.mxu1 %v13502_v47  ;;  %v13403_v47 = vld [vmem:[#allocation2 + $0x608] sm:$0xf0]  ;;  %v13838_v23 = vor.u32 %v19267_v49, %v13835_v44  ;;  %v19247_v37 = vld [vmem:[#allocation2 + $0x8c4] sm:$0xf]  ;;  %v13894_v56 = vor.u32 %v19281_v31, %v13891_v32 }
 0x38d   :  { %11131 = vmatpush.bf16.msrb.mxu2 %v13566_v43  ;;  %v13478_v43 = vor.u32 %v19177_v35, %v13475_v22  ;;  %v13406_v20 = vor.u32 %v19159_v51, %v13403_v47  ;;  %v19283_v35 = vld [vmem:[#allocation2 + $0x9e4] sm:$0xf]  ;;  %v13763_v47 = vld [vmem:[#allocation2 + $0x8d8] sm:$0xf0]  ;;  %v13675_v49 = vld [vmem:[#allocation2 + $0x828] sm:$0xf0] }
 0x38e   :  { %11144 = vmatpush.bf16.msrb.mxu3 %v13630_v33  ;;  %v19191_v33 = vld [vmem:[#allocation2 + $0x704] sm:$0xf] }
 0x38f   :  { %11106 = vmatpush.bf16.msrb.mxu0 %v13430_v41  ;;  %v13715_v41 = vld [vmem:[#allocation2 + $0x878] sm:$0xf0]  ;;  %v13534_v10 = vor.u32 %v19191_v33, %v13531_v46  ;;  %v13702_v33 = vor.u32 %v19233_v54, %v13699_v26  ;;  %v19243_v44 = vld [vmem:[#allocation2 + $0x8a4] sm:$0xf] }
 0x390   :  { %11119 = vmatpush.bf16.msrb.mxu1 %v13494_v59  ;;  %v19253_v59 = vld [vmem:[#allocation2 + $0x8f4] sm:$0xf]  ;;  %v13718_v0 = vor.u32 %v19237_v38, %v13715_v41  ;;  %v13755_v38 = vld [vmem:[#allocation2 + $0x8c8] sm:$0xf0]  ;;  %v19263_v41 = vld [vmem:[#allocation2 + $0x944] sm:$0xf] }
 0x391   :  { %11132 = vmatpush.bf16.msrb.mxu2 %v13558_v40  ;;  %v10892_v40 = vpop.f32.mrf.mxu3  ;;  %v13782_v60 = vor.u32 %v19253_v59, %v13779_v42 }
 0x392   :  { %11145 = vmatpush.bf16.msrb.mxu3 %v13622_v19  ;;  %v13843_v19 = vld [vmem:[#allocation2 + $0x978] sm:$0xf0]  ;;  %v13883_v40 = vld [vmem:[#allocation2 + $0x9c8] sm:$0xf0] }
 0x393   :  { %11107 = vmatpush.bf16.msrb.mxu0 %v13422_v30  ;;  %v13846_v14 = vor.u32 %v19269_v55, %v13843_v19  ;;  %v13707_v30 = vld [vmem:[#allocation2 + $0x868] sm:$0xf0]  ;;  %v13758_v55 = vor.u32 %v19247_v37, %v13755_v38  ;;  %v13731_v37 = vld [vmem:[#allocation2 + $0x898] sm:$0xf0] }
 0x394   :  { %11120 = vmatpush.bf16.msrb.mxu1 %v13486_v8  ;;  %v13910_v8 = vor.u32 %v19285_v57, %v13907_v58  ;;  %v13710_v22 = vor.u32 %v19235_v13, %v13707_v30  ;;  %v19245_v57 = vld [vmem:[#allocation2 + $0x8b4] sm:$0xf]  ;;  %v13875_v30 = vld [vmem:[#allocation2 + $0x9b8] sm:$0xf0] }
 0x395   :  { %11133 = vmatpush.bf16.msrb.mxu2 %v13550_v18  ;;  %v13771_v18 = vld [vmem:[#allocation2 + $0x8e8] sm:$0xf0]  ;;  %v19277_v13 = vld [vmem:[#allocation2 + $0x9b4] sm:$0xf]  ;;  %v13795_v38 = vld [vmem:[#allocation2 + $0x918] sm:$0xf0] }
 0x396   :  { %11146 = vmatpush.bf16.msrb.mxu3 %v13614_v50  ;;  %v13899_v50 = vld [vmem:[#allocation2 + $0x9e8] sm:$0xf0]  ;;  %v13774_v25 = vor.u32 %v19251_v52, %v13771_v18  ;;  %v19227_v18 = vld [vmem:[#allocation2 + $0x824] sm:$0xf] }
 0x397   :  { %11108 = vmatpush.bf16.msrb.mxu0 %v13414_v27  ;;  %v19249_v27 = vld [vmem:[#allocation2 + $0x8d4] sm:$0xf]  ;;  %v13902_v51 = vor.u32 %v19283_v35, %v13899_v50  ;;  %v13878_v35 = vor.u32 %v19277_v13, %v13875_v30 }
 0x398   :  { %11121 = vmatpush.bf16.msrb.mxu1 %v13478_v43  ;;  %v19265_v43 = vld [vmem:[#allocation2 + $0x954] sm:$0xf] }
 0x399   :  { %11134 = vmatpush.bf16.msrb.mxu2 %v13542_v7  ;;  %v13827_v7 = vld [vmem:[#allocation2 + $0x958] sm:$0xf0] }
 0x39a   :  { %11147 = vmatpush.bf16.msrb.mxu3 %v13606_v53  ;;  %v13766_v53 = vor.u32 %v19249_v27, %v13763_v47  ;;  %v13830_v46 = vor.u32 %v19265_v43, %v13827_v7  ;;  %v19275_v27 = vld [vmem:[#allocation2 + $0x9a4] sm:$0xf]  ;;  %v13678_v43 = vor.u32 %v19227_v18, %v13675_v49 }
 0x39b   :  { %11109 = vmatpush.bf16.msrb.mxu0 %v13406_v20  ;;  %v10903_v59 = vpop.f32.mrf.mxu0 }
 0x39c   :  { %11122 = vmatpush.bf16.msrb.mxu1 %v13470_v61  ;;  %v10916_v42 = vpop.f32.mrf.mxu1  ;;  %v19229_v61 = vld [vmem:[#allocation2 + $0x834] sm:$0xf] }
 0x39d   :  { %11135 = vmatpush.bf16.msrb.mxu2 %v13534_v10  ;;  %v13683_v10 = vld [vmem:[#allocation2 + $0x838] sm:$0xf0] }
 0x39e   :  { %11148 = vmatpush.bf16.msrb.mxu3 %v13598_v2  ;;  %11110 = vmatmul.bf16.vlgmr.msrb.gmra.mxu0 %v20862_v16  ;;  %v13691_v16 = vld [vmem:[#allocation2 + $0x848] sm:$0xf0]  ;;  %v13686_v52 = vor.u32 %v19229_v61, %v13683_v10 }
 0x39f   :  { %11154 = vmatpush.bf16.msra.mxu0 %v13718_v0  ;;  %11123 = vmatmul.bf16.vlgmr.msrb.gmra.mxu1 %v20866_v24  ;;  %v19279_v24 = vld [vmem:[#allocation2 + $0x9c4] sm:$0xf]  ;;  %v13694_v20 = vor.u32 %v19231_v34, %v13691_v16  ;;  %v13747_v0 = vld [vmem:[#allocation2 + $0x8b8] sm:$0xf0]  ;;  %v19241_v34 = vld [vmem:[#allocation2 + $0x894] sm:$0xf] }
 0x3a0   :  { %11167 = vmatpush.bf16.msra.mxu1 %v13782_v60  ;;  %11136 = vmatmul.bf16.vlgmr.msrb.gmra.mxu2 %v20864_v21  ;;  %v13819_v21 = vld [vmem:[#allocation2 + $0x948] sm:$0xf0]  ;;  %v13886_v58 = vor.u32 %v19279_v24, %v13883_v40  ;;  %v19261_v60 = vld [vmem:[#allocation2 + $0x934] sm:$0xf]  ;;  %v19223_v24 = vld [vmem:[#allocation2 + $0x804] sm:$0xf] }
 0x3a1   :  { %11180 = vmatpush.bf16.msra.mxu2 %v13846_v14  ;;  %11149 = vmatmul.bf16.vlgmr.msrb.gmra.mxu3 %v20868_v28  ;;  %v10904_v28 = vadd.f32 %v10903_v59, %v21246_v15  ;;  %v13822_v19 = vor.u32 %v19263_v41, %v13819_v21  ;;  %v13811_v14 = vld [vmem:[#allocation2 + $0x938] sm:$0xf0]  ;;  %v13750_v15 = vor.u32 %v19245_v57, %v13747_v0  ;;  %v19273_v41 = vld [vmem:[#allocation2 + $0x994] sm:$0xf]  ;;  %v13659_v40 = vld [vmem:[#allocation2 + $0x808] sm:$0xf0] }
 0x3a2   :  { %11193 = vmatpush.bf16.msra.mxu3 %v13910_v8  ;;  %v13814_v8 = vor.u32 %v19261_v60, %v13811_v14  ;;  %v13859_v21 = vld [vmem:[#allocation2 + $0x998] sm:$0xf0]  ;;  %v13787_v10 = vld [vmem:[#allocation2 + $0x908] sm:$0xf0]  ;;  %v19271_v57 = vld [vmem:[#allocation2 + $0x984] sm:$0xf]  ;;  %v13662_v30 = vor.u32 %v19223_v24, %v13659_v40 }
 0x3a3   :  { %11155 = vmatpush.bf16.msra.mxu0 %v13710_v22  ;;  %v10917_v2 = vadd.f32 %v10916_v42, %v10904_v28  ;;  %v10929_v50 = vpop.f32.mrf.mxu2  ;;  %v13739_v22 = vld [vmem:[#allocation2 + $0x8a8] sm:$0xf0]  ;;  %v10905_v47 = vpop.f32.mrf.mxu0  ;;  %v13734_v28 = vor.u32 %v19241_v34, %v13731_v37  ;;  %v19239_v42 = vld [vmem:[#allocation2 + $0x884] sm:$0xf]  ;;  %v13862_v61 = vor.u32 %v19273_v41, %v13859_v21  ;;  %v19301_v0 = vld [vmem:[#allocation2 + $0xa74] sm:$0xf] }
 0x3a4   :  { %11168 = vmatpush.bf16.msra.mxu1 %v13774_v25  ;;  %v19259_v25 = vld [vmem:[#allocation2 + $0x924] sm:$0xf]  ;;  %v10942_v26 = vpop.f32.mrf.mxu3  ;;  %v10918_v7 = vpop.f32.mrf.mxu1  ;;  %v13742_v32 = vor.u32 %v19243_v44, %v13739_v22  ;;  %v13971_v60 = vld [vmem:[#allocation2 + $0xa78] sm:$0xf0]  ;;  %v19317_v14 = vld [vmem:[#allocation2 + $0xaf4] sm:$0xf] }
 0x3a5   :  { %11181 = vmatpush.bf16.msra.mxu2 %v13838_v23  ;;  %v13803_v23 = vld [vmem:[#allocation2 + $0x928] sm:$0xf0]  ;;  %v10930_v54 = vadd.f32 %v10929_v50, %v10917_v2  ;;  %v19349_v44 = vld [vmem:[#allocation2 + $0xbf4] sm:$0xf]  ;;  %v13974_v22 = vor.u32 %v19301_v0, %v13971_v60  ;;  %v13955_v37 = vld [vmem:[#allocation2 + $0xa58] sm:$0xf0] }
 0x3a6   :  { %11194 = vmatpush.bf16.msra.mxu3 %v13902_v51  ;;  %v13867_v51 = vld [vmem:[#allocation2 + $0x9a8] sm:$0xf0]  ;;  %v14019_v41 = vld [vmem:[#allocation2 + $0xad8] sm:$0xf0]  ;;  %v19329_v21 = vld [vmem:[#allocation2 + $0xb54] sm:$0xf] }
 0x3a7   :  { %11156 = vmatpush.bf16.msra.mxu0 %v13702_v33  ;;  %v21253_v31 = vadd.f32 %v10942_v26, %v10930_v54  ;;  %v13806_v33 = vor.u32 %v19259_v25, %v13803_v23  ;;  %v13870_v16 = vor.u32 %v19275_v27, %v13867_v51  ;;  %v19299_v54 = vld [vmem:[#allocation2 + $0xa64] sm:$0xf]  ;;  %v13963_v26 = vld [vmem:[#allocation2 + $0xa68] sm:$0xf0]  ;;  %v19345_v24 = vld [vmem:[#allocation2 + $0xbd4] sm:$0xf] }
 0x3a8   :  { %11169 = vmatpush.bf16.msra.mxu1 %v13766_v53  ;;  %v19225_v53 = vld [vmem:[#allocation2 + $0x814] sm:$0xf]  ;;  %v19315_v27 = vld [vmem:[#allocation2 + $0xae4] sm:$0xf]  ;;  %v14027_v47 = vld [vmem:[#allocation2 + $0xae8] sm:$0xf0] }
 0x3a9   :  { %11182 = vmatpush.bf16.msra.mxu2 %v13830_v46  ;;  %v13667_v46 = vld [vmem:[#allocation2 + $0x818] sm:$0xf0]  ;;  %v14091_v7 = vld [vmem:[#allocation2 + $0xb68] sm:$0xf0] }
 0x3aa   :  { %11195 = vmatpush.bf16.msra.mxu3 %v13894_v56  ;;  %v19257_v56 = vld [vmem:[#allocation2 + $0x914] sm:$0xf]  ;;  %v13670_v59 = vor.u32 %v19225_v53, %v13667_v46  ;;  %v13966_v53 = vor.u32 %v19299_v54, %v13963_v26  ;;  %v14030_v46 = vor.u32 %v19315_v27, %v14027_v47  ;;  %v14147_v40 = vld [vmem:[#allocation2 + $0xbd8] sm:$0xf0]  ;;  %v14139_v0 = vld [vmem:[#allocation2 + $0xbc8] sm:$0xf0] }
 0x3ab   :  { %11157 = vmatpush.bf16.msra.mxu0 %v13694_v20  ;;  %v13798_v20 = vor.u32 %v19257_v56, %v13795_v38  ;;  %v10931_v2 = vpop.f32.mrf.mxu2  ;;  %v19313_v56 = vld [vmem:[#allocation2 + $0xad4] sm:$0xf]  ;;  %v13931_v47 = vld [vmem:[#allocation2 + $0xa28] sm:$0xf0] }
 0x3ac   :  { %11170 = vmatpush.bf16.msra.mxu1 %v13758_v55  ;;  %v13723_v55 = vld [vmem:[#allocation2 + $0x888] sm:$0xf0]  ;;  %v10944_v13 = vpop.f32.mrf.mxu3  ;;  %v19343_v2 = vld [vmem:[#allocation2 + $0xbc4] sm:$0xf] }
 0x3ad   :  { %11183 = vmatpush.bf16.msra.mxu2 %v13822_v19  ;;  %v19255_v19 = vld [vmem:[#allocation2 + $0x904] sm:$0xf]  ;;  %v13726_v18 = vor.u32 %v19239_v42, %v13723_v55  ;;  %v14022_v42 = vor.u32 %v19313_v56, %v14019_v41  ;;  %v14123_v56 = vld [vmem:[#allocation2 + $0xba8] sm:$0xf0] }
 0x3ae   :  { %11196 = vmatpush.bf16.msra.mxu3 %v13886_v58  ;;  %v13851_v58 = vld [vmem:[#allocation2 + $0x988] sm:$0xf0]  ;;  %v13790_v49 = vor.u32 %v19255_v19, %v13787_v10  ;;  %v19311_v19 = vld [vmem:[#allocation2 + $0xac4] sm:$0xf] }
 0x3af   :  { %11158 = vmatpush.bf16.msra.mxu0 %v13686_v52  ;;  %v14035_v52 = vld [vmem:[#allocation2 + $0xaf8] sm:$0xf0]  ;;  %v13854_v50 = vor.u32 %v19271_v57, %v13851_v58  ;;  %v14150_v57 = vor.u32 %v19345_v24, %v14147_v40  ;;  %v19327_v58 = vld [vmem:[#allocation2 + $0xb44] sm:$0xf]  ;;  %v19289_v40 = vld [vmem:[#allocation2 + $0xa14] sm:$0xf] }
 0x3b0   :  { %11171 = vmatpush.bf16.msra.mxu1 %v13750_v15  ;;  %v19333_v15 = vld [vmem:[#allocation2 + $0xb74] sm:$0xf]  ;;  %v14038_v25 = vor.u32 %v19317_v14, %v14035_v52  ;;  %v13939_v52 = vld [vmem:[#allocation2 + $0xa38] sm:$0xf0] }
 0x3b1   :  { %11184 = vmatpush.bf16.msra.mxu2 %v13814_v8  ;;  %v14099_v8 = vld [vmem:[#allocation2 + $0xb78] sm:$0xf0] }
 0x3b2   :  { %11197 = vmatpush.bf16.msra.mxu3 %v13878_v35  ;;  %v14163_v35 = vld [vmem:[#allocation2 + $0xbf8] sm:$0xf0]  ;;  %v14102_v23 = vor.u32 %v19333_v15, %v14099_v8  ;;  %v19309_v15 = vld [vmem:[#allocation2 + $0xab4] sm:$0xf] }
 0x3b3   :  { %11159 = vmatpush.bf16.msra.mxu0 %v13678_v43  ;;  %v14166_v51 = vor.u32 %v19349_v44, %v14163_v35  ;;  %v19331_v43 = vld [vmem:[#allocation2 + $0xb64] sm:$0xf]  ;;  %v14003_v44 = vld [vmem:[#allocation2 + $0xab8] sm:$0xf0]  ;;  %v19325_v35 = vld [vmem:[#allocation2 + $0xb34] sm:$0xf] }
 0x3b4   :  { %11172 = vmatpush.bf16.msra.mxu1 %v13742_v32  ;;  %v19347_v32 = vld [vmem:[#allocation2 + $0xbe4] sm:$0xf]  ;;  %v14094_v34 = vor.u32 %v19331_v43, %v14091_v7  ;;  %v14006_v26 = vor.u32 %v19309_v15, %v14003_v44  ;;  %v14227_v44 = vld [vmem:[#allocation2 + $0xc78] sm:$0xf0] }
 0x3b5   :  { %11185 = vmatpush.bf16.msra.mxu2 %v13806_v33  ;;  %v14155_v33 = vld [vmem:[#allocation2 + $0xbe8] sm:$0xf0]  ;;  %v19307_v43 = vld [vmem:[#allocation2 + $0xaa4] sm:$0xf] }
 0x3b6   :  { %11198 = vmatpush.bf16.msra.mxu3 %v13870_v16  ;;  %v19297_v16 = vld [vmem:[#allocation2 + $0xa54] sm:$0xf]  ;;  %v14158_v38 = vor.u32 %v19347_v32, %v14155_v33  ;;  %v13995_v33 = vld [vmem:[#allocation2 + $0xaa8] sm:$0xf0]  ;;  %v19335_v15 = vld [vmem:[#allocation2 + $0xb84] sm:$0xf] }
 0x3b7   :  { %11160 = vmatpush.bf16.msra.mxu0 %v13670_v59  ;;  %v14083_v59 = vld [vmem:[#allocation2 + $0xb58] sm:$0xf0] }
 0x3b8   :  { %11173 = vmatpush.bf16.msra.mxu1 %v13734_v28  ;;  %v13958_v28 = vor.u32 %v19297_v16, %v13955_v37  ;;  %v14086_v55 = vor.u32 %v19329_v21, %v14083_v59  ;;  %v19339_v37 = vld [vmem:[#allocation2 + $0xba4] sm:$0xf]  ;;  %v13998_v59 = vor.u32 %v19307_v43, %v13995_v33 }
 0x3b9   :  { %11186 = vmatpush.bf16.msra.mxu2 %v13798_v20  ;;  %v19295_v20 = vld [vmem:[#allocation2 + $0xa44] sm:$0xf] }
 0x3ba   :  { %11199 = vmatpush.bf16.msra.mxu3 %v13862_v61  ;;  %v20563_v61 = vld [vmem:[#allocation5] sm:$0x3]  ;;  %v19363_v33 = vld [vmem:[#allocation2 + $0xc64] sm:$0xf] }
 0x3bb   :  { %11161 = vmatpush.bf16.msra.mxu0 %v13662_v30  ;;  %v2015_v10 = vperm.slane %v20563_v61, 1  ;;  %v10955_v60 = vpop.f32.mrf.mxu0  ;;  %v19293_v30 = vld [vmem:[#allocation2 + $0xa34] sm:$0xf]  ;;  %v14051_v61 = vld [vmem:[#allocation2 + $0xb18] sm:$0xf0] }
 0x3bc   :  { %11174 = vmatpush.bf16.msra.mxu1 %v13726_v18  ;;  %v10968_v18 = vpop.f32.mrf.mxu1  ;;  %v13942_v54 = vor.u32 %v19293_v30, %v13939_v52  ;;  %v14043_v52 = vld [vmem:[#allocation2 + $0xb08] sm:$0xf0] }
 0x3bd   :  { %11187 = vmatpush.bf16.msra.mxu2 %v13790_v49  ;;  %v10956_v8 = vadd.f32 %v10955_v60, %v2015_v10  ;;  %v14142_v49 = vor.u32 %v19343_v2, %v14139_v0  ;;  %v19337_v10 = vld [vmem:[#allocation2 + $0xb94] sm:$0xf]  ;;  %v13979_v60 = vld [vmem:[#allocation2 + $0xa88] sm:$0xf0] }
 0x3be   :  { %11200 = vmatpush.bf16.msra.mxu3 %v13854_v50  ;;  %11162 = vmatmul.bf16.vlgmr.msra.gmra.mxu0 %v20877_v29  ;;  %v13947_v29 = vld [vmem:[#allocation2 + $0xa48] sm:$0xf0]  ;;  %v14067_v50 = vld [vmem:[#allocation2 + $0xb38] sm:$0xf0] }
 0x3bf   :  { %11206 = vmatpush.bf16.msrb.mxu0 %v13974_v22  ;;  %11175 = vmatmul.bf16.vlgmr.msra.gmra.mxu1 %v20881_v39  ;;  %v14075_v39 = vld [vmem:[#allocation2 + $0xb48] sm:$0xf0]  ;;  %v19341_v22 = vld [vmem:[#allocation2 + $0xbb4] sm:$0xf]  ;;  %v14070_v27 = vor.u32 %v19325_v35, %v14067_v50 }
 0x3c0   :  { %11219 = vmatpush.bf16.msrb.mxu1 %v14038_v25  ;;  %11188 = vmatmul.bf16.vlgmr.msra.gmra.mxu2 %v20879_v36  ;;  %v14011_v36 = vld [vmem:[#allocation2 + $0xac8] sm:$0xf0]  ;;  %v14078_v13 = vor.u32 %v19327_v58, %v14075_v39  ;;  %v14131_v25 = vld [vmem:[#allocation2 + $0xbb8] sm:$0xf0]  ;;  %v19287_v58 = vld [vmem:[#allocation2 + $0xa04] sm:$0xf] }
 0x3c1   :  { %11232 = vmatpush.bf16.msrb.mxu2 %v14102_v23  ;;  %11201 = vmatmul.bf16.vlgmr.msra.gmra.mxu3 %v20883_v45  ;;  %v13950_v45 = vor.u32 %v19295_v20, %v13947_v29  ;;  %v14014_v14 = vor.u32 %v19311_v19, %v14011_v36  ;;  %v10969_v23 = vadd.f32 %v10968_v18, %v10956_v8  ;;  %v19305_v20 = vld [vmem:[#allocation2 + $0xa94] sm:$0xf]  ;;  %v13987_v29 = vld [vmem:[#allocation2 + $0xa98] sm:$0xf0]  ;;  %v13915_v39 = vld [vmem:[#allocation2 + $0xa08] sm:$0xf0] }
 0x3c2   :  { %11245 = vmatpush.bf16.msrb.mxu3 %v14166_v51  ;;  %v19291_v51 = vld [vmem:[#allocation2 + $0xa24] sm:$0xf]  ;;  %v14134_v32 = vor.u32 %v19341_v22, %v14131_v25  ;;  %v19321_v19 = vld [vmem:[#allocation2 + $0xb14] sm:$0xf]  ;;  %v13990_v2 = vor.u32 %v19305_v20, %v13987_v29  ;;  %v14107_v8 = vld [vmem:[#allocation2 + $0xb88] sm:$0xf0]  ;;  %v13918_v50 = vor.u32 %v19287_v58, %v13915_v39 }
 0x3c3   :  { %11207 = vmatpush.bf16.msrb.mxu0 %v13966_v53  ;;  %v10981_v7 = vpop.f32.mrf.mxu2  ;;  %v19323_v53 = vld [vmem:[#allocation2 + $0xb24] sm:$0xf]  ;;  %v10957_v21 = vpop.f32.mrf.mxu0  ;;  %v14054_v0 = vor.u32 %v19321_v19, %v14051_v61  ;;  %v19381_v35 = vld [vmem:[#allocation2 + $0xcf4] sm:$0xf]  ;;  %v14291_v22 = vld [vmem:[#allocation2 + $0xcf8] sm:$0xf0] }
 0x3c4   :  { %11220 = vmatpush.bf16.msrb.mxu1 %v14030_v46  ;;  %v14059_v46 = vld [vmem:[#allocation2 + $0xb28] sm:$0xf0]  ;;  %v10994_v16 = vpop.f32.mrf.mxu3  ;;  %v19397_v25 = vld [vmem:[#allocation2 + $0xd74] sm:$0xf]  ;;  %v14211_v20 = vld [vmem:[#allocation2 + $0xc58] sm:$0xf0] }
 0x3c5   :  { %11233 = vmatpush.bf16.msrb.mxu2 %v14094_v34  ;;  %v10982_v34 = vadd.f32 %v10981_v7, %v10969_v23  ;;  %v14062_v24 = vor.u32 %v19323_v53, %v14059_v46  ;;  %v14355_v23 = vld [vmem:[#allocation2 + $0xd78] sm:$0xf0]  ;;  %v14294_v7 = vor.u32 %v19381_v35, %v14291_v22  ;;  %v14219_v53 = vld [vmem:[#allocation2 + $0xc68] sm:$0xf0]  ;;  %v19379_v46 = vld [vmem:[#allocation2 + $0xce4] sm:$0xf] }
 0x3c6   :  { %11246 = vmatpush.bf16.msrb.mxu3 %v14158_v38  ;;  %v13934_v38 = vor.u32 %v19291_v51, %v13931_v47  ;;  %v14419_v51 = vld [vmem:[#allocation2 + $0xdf8] sm:$0xf0]  ;;  %v14110_v47 = vor.u32 %v19335_v15, %v14107_v8  ;;  %v14411_v21 = vld [vmem:[#allocation2 + $0xde8] sm:$0xf0]  ;;  %v19393_v19 = vld [vmem:[#allocation2 + $0xd54] sm:$0xf] }
 0x3c7   :  { %11208 = vmatpush.bf16.msrb.mxu0 %v13958_v28  ;;  %v21259_v41 = vadd.f32 %v10994_v16, %v10982_v34  ;;  %v13923_v28 = vld [vmem:[#allocation2 + $0xa18] sm:$0xf0]  ;;  %v14283_v16 = vld [vmem:[#allocation2 + $0xce8] sm:$0xf0]  ;;  %v19357_v8 = vld [vmem:[#allocation2 + $0xc34] sm:$0xf] }
 0x3c8   :  { %11221 = vmatpush.bf16.msrb.mxu1 %v14022_v42  ;;  %v10970_v42 = vpop.f32.mrf.mxu1  ;;  %v13926_v36 = vor.u32 %v19289_v40, %v13923_v28  ;;  %v19361_v28 = vld [vmem:[#allocation2 + $0xc54] sm:$0xf]  ;;  %v14275_v29 = vld [vmem:[#allocation2 + $0xcd8] sm:$0xf0] }
 0x3c9   :  { %11234 = vmatpush.bf16.msrb.mxu2 %v14086_v55  ;;  %v14126_v55 = vor.u32 %v19339_v37, %v14123_v56  ;;  %v19395_v37 = vld [vmem:[#allocation2 + $0xd64] sm:$0xf]  ;;  %v14347_v56 = vld [vmem:[#allocation2 + $0xd68] sm:$0xf0]  ;;  %v19377_v42 = vld [vmem:[#allocation2 + $0xcd4] sm:$0xf] }
 0x3ca   :  { %11247 = vmatpush.bf16.msrb.mxu3 %v14150_v57  ;;  %v14115_v57 = vld [vmem:[#allocation2 + $0xb98] sm:$0xf0]  ;;  %v14350_v40 = vor.u32 %v19395_v37, %v14347_v56  ;;  %v14278_v58 = vor.u32 %v19377_v42, %v14275_v29  ;;  %v19353_v42 = vld [vmem:[#allocation2 + $0xc14] sm:$0xf] }
 0x3cb   :  { %11209 = vmatpush.bf16.msrb.mxu0 %v13950_v45  ;;  %v19303_v45 = vld [vmem:[#allocation2 + $0xa84] sm:$0xf]  ;;  %v14118_v30 = vor.u32 %v19337_v10, %v14115_v57  ;;  %v14339_v61 = vld [vmem:[#allocation2 + $0xd58] sm:$0xf0]  ;;  %v19409_v10 = vld [vmem:[#allocation2 + $0xdd4] sm:$0xf] }
 0x3cc   :  { %11222 = vmatpush.bf16.msrb.mxu1 %v14014_v14  ;;  %v19319_v14 = vld [vmem:[#allocation2 + $0xb04] sm:$0xf]  ;;  %v10996_v18 = vpop.f32.mrf.mxu3  ;;  %v14403_v57 = vld [vmem:[#allocation2 + $0xdd8] sm:$0xf0]  ;;  %v14342_v39 = vor.u32 %v19393_v19, %v14339_v61  ;;  %v19369_v29 = vld [vmem:[#allocation2 + $0xc94] sm:$0xf] }
 0x3cd   :  { %11235 = vmatpush.bf16.msrb.mxu2 %v14078_v13  ;;  %v10983_v13 = vpop.f32.mrf.mxu2  ;;  %v14195_v18 = vld [vmem:[#allocation2 + $0xc38] sm:$0xf0] }
 0x3ce   :  { %11248 = vmatpush.bf16.msrb.mxu3 %v14142_v49  ;;  %v19365_v49 = vld [vmem:[#allocation2 + $0xc74] sm:$0xf]  ;;  %v19407_v13 = vld [vmem:[#allocation2 + $0xdc4] sm:$0xf]  ;;  %v14259_v22 = vld [vmem:[#allocation2 + $0xcb8] sm:$0xf0] }
 0x3cf   :  { %11210 = vmatpush.bf16.msrb.mxu0 %v13942_v54  ;;  %v13982_v54 = vor.u32 %v19303_v45, %v13979_v60  ;;  %v14230_v43 = vor.u32 %v19365_v49, %v14227_v44  ;;  %v14406_v45 = vor.u32 %v19409_v10, %v14403_v57  ;;  %v14267_v60 = vld [vmem:[#allocation2 + $0xcc8] sm:$0xf0]  ;;  %v19373_v49 = vld [vmem:[#allocation2 + $0xcb4] sm:$0xf]  ;;  %v14243_v10 = vld [vmem:[#allocation2 + $0xc98] sm:$0xf0] }
 0x3d0   :  { %11223 = vmatpush.bf16.msrb.mxu1 %v14006_v26  ;;  %v14046_v26 = vor.u32 %v19319_v14, %v14043_v52  ;;  %v19391_v14 = vld [vmem:[#allocation2 + $0xd44] sm:$0xf]  ;;  %v19385_v57 = vld [vmem:[#allocation2 + $0xd14] sm:$0xf] }
 0x3d1   :  { %11236 = vmatpush.bf16.msrb.mxu2 %v14070_v27  ;;  %v19413_v27 = vld [vmem:[#allocation2 + $0xdf4] sm:$0xf] }
 0x3d2   :  { %11249 = vmatpush.bf16.msrb.mxu3 %v14134_v32  ;;  %v14358_v32 = vor.u32 %v19397_v25, %v14355_v23  ;;  %v14422_v34 = vor.u32 %v19413_v27, %v14419_v51  ;;  %v19389_v25 = vld [vmem:[#allocation2 + $0xd34] sm:$0xf]  ;;  %v14323_v23 = vld [vmem:[#allocation2 + $0xd38] sm:$0xf0]  ;;  %v14198_v51 = vor.u32 %v19357_v8, %v14195_v18 }
 0x3d3   :  { %11211 = vmatpush.bf16.msrb.mxu0 %v13934_v38  ;;  %v19411_v38 = vld [vmem:[#allocation2 + $0xde4] sm:$0xf]  ;;  %v19429_v18 = vld [vmem:[#allocation2 + $0xe74] sm:$0xf] }
 0x3d4   :  { %11224 = vmatpush.bf16.msrb.mxu1 %v13998_v59  ;;  %v14222_v59 = vor.u32 %v19363_v33, %v14219_v53  ;;  %v19371_v33 = vld [vmem:[#allocation2 + $0xca4] sm:$0xf] }
 0x3d5   :  { %11237 = vmatpush.bf16.msrb.mxu2 %v14062_v24  ;;  %v14286_v24 = vor.u32 %v19379_v46, %v14283_v16  ;;  %v14251_v46 = vld [vmem:[#allocation2 + $0xca8] sm:$0xf0] }
 0x3d6   :  { %11250 = vmatpush.bf16.msrb.mxu3 %v14126_v55  ;;  %v14414_v55 = vor.u32 %v19411_v38, %v14411_v21  ;;  %v14315_v16 = vld [vmem:[#allocation2 + $0xd28] sm:$0xf0]  ;;  %v19403_v38 = vld [vmem:[#allocation2 + $0xda4] sm:$0xf] }
 0x3d7   :  { %11212 = vmatpush.bf16.msrb.mxu0 %v13926_v36  ;;  %v14214_v36 = vor.u32 %v19361_v28, %v14211_v20  ;;  %v14379_v21 = vld [vmem:[#allocation2 + $0xda8] sm:$0xf0]  ;;  %v14254_v28 = vor.u32 %v19371_v33, %v14251_v46 }
 0x3d8   :  { %11225 = vmatpush.bf16.msrb.mxu1 %v13990_v2  ;;  %v19359_v2 = vld [vmem:[#allocation2 + $0xc44] sm:$0xf]  ;;  %v14382_v61 = vor.u32 %v19403_v38, %v14379_v21  ;;  %v14475_v33 = vld [vmem:[#allocation2 + $0xe68] sm:$0xf0] }
 0x3d9   :  { %11238 = vmatpush.bf16.msrb.mxu2 %v14054_v0  ;;  %v19375_v0 = vld [vmem:[#allocation2 + $0xcc4] sm:$0xf]  ;;  %v14539_v46 = vld [vmem:[#allocation2 + $0xee8] sm:$0xf0] }
 0x3da   :  { %11251 = vmatpush.bf16.msrb.mxu3 %v14118_v30 }
 0x3db   :  { %11213 = vmatpush.bf16.msrb.mxu0 %v13918_v50  ;;  %v11007_v52 = vpop.f32.mrf.mxu0 }
 0x3dc   :  { %11226 = vmatpush.bf16.msrb.mxu1 %v13982_v54  ;;  %v11008_v44 = vadd.f32 %v11007_v52, %v21259_v41  ;;  %v11020_v35 = vpop.f32.mrf.mxu1  ;;  %v19405_v54 = vld [vmem:[#allocation2 + $0xdb4] sm:$0xf]  ;;  %v14299_v52 = vld [vmem:[#allocation2 + $0xd08] sm:$0xf0] }
 0x3dd   :  { %11239 = vmatpush.bf16.msrb.mxu2 %v14046_v26  ;;  %v14387_v26 = vld [vmem:[#allocation2 + $0xdb8] sm:$0xf0] }
 0x3de   :  { %11252 = vmatpush.bf16.msrb.mxu3 %v14110_v47  ;;  %11214 = vmatmul.bf16.vlgmr.msrb.gmra.mxu0 %v20892_v63  ;;  %v14203_v63 = vld [vmem:[#allocation2 + $0xc48] sm:$0xf0]  ;;  %v11021_v27 = vadd.f32 %v11020_v35, %v11008_v44  ;;  %v14262_v47 = vor.u32 %v19373_v49, %v14259_v22  ;;  %v14390_v41 = vor.u32 %v19405_v54, %v14387_v26  ;;  %v14483_v49 = vld [vmem:[#allocation2 + $0xe78] sm:$0xf0]  ;;  %v19445_v44 = vld [vmem:[#allocation2 + $0xef4] sm:$0xf] }
 0x3df   :  { %11258 = vmatpush.bf16.msra.mxu0 %v14230_v43  ;;  %11227 = vmatmul.bf16.vlgmr.msrb.gmra.mxu1 %v20896_v5  ;;  %v14395_v5 = vld [vmem:[#allocation2 + $0xdc8] sm:$0xf0]  ;;  %v14206_v30 = vor.u32 %v19359_v2, %v14203_v63  ;;  %v14326_v43 = vor.u32 %v19389_v25, %v14323_v23  ;;  %v19351_v63 = vld [vmem:[#allocation2 + $0xc04] sm:$0xf]  ;;  %v19461_v22 = vld [vmem:[#allocation2 + $0xf74] sm:$0xf] }
 0x3e0   :  { %11271 = vmatpush.bf16.msra.mxu1 %v14294_v7  ;;  %11240 = vmatmul.bf16.vlgmr.msrb.gmra.mxu2 %v20894_v4  ;;  %v14331_v4 = vld [vmem:[#allocation2 + $0xd48] sm:$0xf0]  ;;  %v14398_v50 = vor.u32 %v19407_v13, %v14395_v5  ;;  %v19355_v7 = vld [vmem:[#allocation2 + $0xc24] sm:$0xf]  ;;  %v14611_v25 = vld [vmem:[#allocation2 + $0xf78] sm:$0xf0] }
 0x3e1   :  { %11284 = vmatpush.bf16.msra.mxu2 %v14358_v32  ;;  %11253 = vmatmul.bf16.vlgmr.msrb.gmra.mxu3 %v20898_v9  ;;  %v14270_v9 = vor.u32 %v19375_v0, %v14267_v60  ;;  %v14334_v15 = vor.u32 %v19391_v14, %v14331_v4  ;;  %v14187_v32 = vld [vmem:[#allocation2 + $0xc28] sm:$0xf0]  ;;  %v19367_v14 = vld [vmem:[#allocation2 + $0xc84] sm:$0xf]  ;;  %v19477_v26 = vld [vmem:[#allocation2 + $0xff4] sm:$0xf] }
 0x3e2   :  { %11297 = vmatpush.bf16.msra.mxu3 %v14422_v34  ;;  %v19387_v34 = vld [vmem:[#allocation2 + $0xd24] sm:$0xf]  ;;  %v14171_v0 = vld [vmem:[#allocation2 + $0xc08] sm:$0xf0] }
 0x3e3   :  { %11259 = vmatpush.bf16.msra.mxu0 %v14222_v59  ;;  %v11033_v53 = vpop.f32.mrf.mxu2  ;;  %v14190_v59 = vor.u32 %v19355_v7, %v14187_v32  ;;  %v14318_v20 = vor.u32 %v19387_v34, %v14315_v16  ;;  %v14235_v4 = vld [vmem:[#allocation2 + $0xc88] sm:$0xf0]  ;;  %v19383_v13 = vld [vmem:[#allocation2 + $0xd04] sm:$0xf]  ;;  %v14174_v35 = vor.u32 %v19351_v63, %v14171_v0  ;;  %v14614_v7 = vor.u32 %v19461_v22, %v14611_v25  ;;  %v14643_v22 = vld [vmem:[#allocation2 + $0xfb8] sm:$0xf0] }
 0x3e4   :  { %11272 = vmatpush.bf16.msra.mxu1 %v14286_v24  ;;  %v11034_v37 = vadd.f32 %v11033_v53, %v11021_v27  ;;  %v11046_v56 = vpop.f32.mrf.mxu3  ;;  %v11022_v19 = vpop.f32.mrf.mxu1  ;;  %v14238_v23 = vor.u32 %v19367_v14, %v14235_v4  ;;  %v14302_v54 = vor.u32 %v19383_v13, %v14299_v52  ;;  %v14675_v27 = vld [vmem:[#allocation2 + $0xff8] sm:$0xf0]  ;;  %v19427_v32 = vld [vmem:[#allocation2 + $0xe64] sm:$0xf]  ;;  %v14603_v16 = vld [vmem:[#allocation2 + $0xf68] sm:$0xf0] }
 0x3e5   :  { %11285 = vmatpush.bf16.msra.mxu2 %v14350_v40  ;;  %v11009_v40 = vpop.f32.mrf.mxu0  ;;  %v19443_v53 = vld [vmem:[#allocation2 + $0xee4] sm:$0xf]  ;;  %v14478_v38 = vor.u32 %v19427_v32, %v14475_v33  ;;  %v14595_v19 = vld [vmem:[#allocation2 + $0xf58] sm:$0xf0]  ;;  %v14523_v0 = vld [vmem:[#allocation2 + $0xec8] sm:$0xf0] }
 0x3e6   :  { %11298 = vmatpush.bf16.msra.mxu3 %v14414_v55  ;;  %v21266_v24 = vadd.f32 %v11046_v56, %v11034_v37  ;;  %v14179_v55 = vld [vmem:[#allocation2 + $0xc18] sm:$0xf0]  ;;  %v19459_v34 = vld [vmem:[#allocation2 + $0xf64] sm:$0xf]  ;;  %v14667_v56 = vld [vmem:[#allocation2 + $0xfe8] sm:$0xf0]  ;;  %v14542_v21 = vor.u32 %v19443_v53, %v14539_v46 }
 0x3e7   :  { %11260 = vmatpush.bf16.msra.mxu0 %v14214_v36  ;;  %v14307_v36 = vld [vmem:[#allocation2 + $0xd18] sm:$0xf0]  ;;  %v14182_v2 = vor.u32 %v19353_v42, %v14179_v55  ;;  %v19475_v37 = vld [vmem:[#allocation2 + $0xfe4] sm:$0xf]  ;;  %v19425_v40 = vld [vmem:[#allocation2 + $0xe54] sm:$0xf] }
 0x3e8   :  { %11273 = vmatpush.bf16.msra.mxu1 %v14278_v58  ;;  %v19401_v58 = vld [vmem:[#allocation2 + $0xd94] sm:$0xf]  ;;  %v14310_v60 = vor.u32 %v19385_v57, %v14307_v36  ;;  %v14670_v42 = vor.u32 %v19475_v37, %v14667_v56  ;;  %v14531_v55 = vld [vmem:[#allocation2 + $0xed8] sm:$0xf0]  ;;  %v14651_v14 = vld [vmem:[#allocation2 + $0xfc8] sm:$0xf0] }
 0x3e9   :  { %11286 = vmatpush.bf16.msra.mxu2 %v14342_v39  ;;  %v14371_v39 = vld [vmem:[#allocation2 + $0xd98] sm:$0xf0]  ;;  %v19421_v52 = vld [vmem:[#allocation2 + $0xe34] sm:$0xf]  ;;  %v14571_v32 = vld [vmem:[#allocation2 + $0xf28] sm:$0xf0] }
 0x3ea   :  { %11299 = vmatpush.bf16.msra.mxu3 %v14406_v45  ;;  %v14246_v45 = vor.u32 %v19369_v29, %v14243_v10  ;;  %v19457_v29 = vld [vmem:[#allocation2 + $0xf54] sm:$0xf]  ;;  %v14659_v10 = vld [vmem:[#allocation2 + $0xfd8] sm:$0xf0]  ;;  %v14635_v46 = vld [vmem:[#allocation2 + $0xfa8] sm:$0xf0] }
 0x3eb   :  { %11261 = vmatpush.bf16.msra.mxu0 %v14206_v30  ;;  %v11035_v5 = vpop.f32.mrf.mxu2  ;;  %v14374_v30 = vor.u32 %v19401_v58, %v14371_v39  ;;  %v14598_v58 = vor.u32 %v19457_v29, %v14595_v19  ;;  %v19423_v39 = vld [vmem:[#allocation2 + $0xe44] sm:$0xf]  ;;  %v14563_v29 = vld [vmem:[#allocation2 + $0xf18] sm:$0xf0]  ;;  %v19465_v19 = vld [vmem:[#allocation2 + $0xf94] sm:$0xf] }
 0x3ec   :  { %11274 = vmatpush.bf16.msra.mxu1 %v14270_v9  ;;  %v19399_v9 = vld [vmem:[#allocation2 + $0xd84] sm:$0xf]  ;;  %v11048_v8 = vpop.f32.mrf.mxu3 }
 0x3ed   :  { %11287 = vmatpush.bf16.msra.mxu2 %v14334_v15  ;;  %v14363_v15 = vld [vmem:[#allocation2 + $0xd88] sm:$0xf0] }
 0x3ee   :  { %11300 = vmatpush.bf16.msra.mxu3 %v14398_v50  ;;  %v14547_v50 = vld [vmem:[#allocation2 + $0xef8] sm:$0xf0] }
 0x3ef   :  { %11262 = vmatpush.bf16.msra.mxu0 %v14198_v51  ;;  %v14366_v51 = vor.u32 %v19399_v9, %v14363_v15  ;;  %v14451_v9 = vld [vmem:[#allocation2 + $0xe38] sm:$0xf0]  ;;  %v19437_v15 = vld [vmem:[#allocation2 + $0xeb4] sm:$0xf] }
 0x3f0   :  { %11275 = vmatpush.bf16.msra.mxu1 %v14262_v47  ;;  %v14486_v47 = vor.u32 %v19429_v18, %v14483_v49  ;;  %v14515_v49 = vld [vmem:[#allocation2 + $0xeb8] sm:$0xf0]  ;;  %v14454_v25 = vor.u32 %v19421_v52, %v14451_v9  ;;  %v19525_v52 = vld [vmem:[#allocation2 + $0x1174] sm:$0xf] }
 0x3f1   :  { %11288 = vmatpush.bf16.msra.mxu2 %v14326_v43  ;;  %v14550_v43 = vor.u32 %v19445_v44, %v14547_v50  ;;  %v19453_v44 = vld [vmem:[#allocation2 + $0xf34] sm:$0xf]  ;;  %v14867_v9 = vld [vmem:[#allocation2 + $0x1178] sm:$0xf0] }
 0x3f2   :  { %11301 = vmatpush.bf16.msra.mxu3 %v14390_v41  ;;  %v14678_v41 = vor.u32 %v19477_v26, %v14675_v27  ;;  %v19469_v50 = vld [vmem:[#allocation2 + $0xfb4] sm:$0xf]  ;;  %v14443_v26 = vld [vmem:[#allocation2 + $0xe28] sm:$0xf0]  ;;  %v19435_v27 = vld [vmem:[#allocation2 + $0xea4] sm:$0xf] }
 0x3f3   :  { %11263 = vmatpush.bf16.msra.mxu0 %v14190_v59  ;;  %v14606_v59 = vor.u32 %v19459_v34, %v14603_v16 }
 0x3f4   :  { %11276 = vmatpush.bf16.msra.mxu1 %v14254_v28  ;;  %v14467_v28 = vld [vmem:[#allocation2 + $0xe58] sm:$0xf0] }
 0x3f5   :  { %11289 = vmatpush.bf16.msra.mxu2 %v14318_v20  ;;  %v19441_v20 = vld [vmem:[#allocation2 + $0xed4] sm:$0xf]  ;;  %v14470_v57 = vor.u32 %v19425_v40, %v14467_v28  ;;  %v14435_v40 = vld [vmem:[#allocation2 + $0xe18] sm:$0xf0] }
 0x3f6   :  { %11302 = vmatpush.bf16.msra.mxu3 %v14382_v61  ;;  %v19473_v61 = vld [vmem:[#allocation2 + $0xfd4] sm:$0xf]  ;;  %v14534_v36 = vor.u32 %v19441_v20, %v14531_v55 }
 0x3f7   :  { %11264 = vmatpush.bf16.msra.mxu0 %v14182_v2  ;;  %v19439_v2 = vld [vmem:[#allocation2 + $0xec4] sm:$0xf]  ;;  %v14662_v63 = vor.u32 %v19473_v61, %v14659_v10  ;;  %v19433_v28 = vld [vmem:[#allocation2 + $0xe94] sm:$0xf]  ;;  %v14627_v61 = vld [vmem:[#allocation2 + $0xf98] sm:$0xf0] }
 0x3f8   :  { %11277 = vmatpush.bf16.msra.mxu1 %v14246_v45  ;;  %v19455_v45 = vld [vmem:[#allocation2 + $0xf44] sm:$0xf]  ;;  %v14526_v5 = vor.u32 %v19439_v2, %v14523_v0  ;;  %v19449_v55 = vld [vmem:[#allocation2 + $0xf14] sm:$0xf]  ;;  %v14491_v2 = vld [vmem:[#allocation2 + $0xe88] sm:$0xf0]  ;;  %v14630_v0 = vor.u32 %v19465_v19, %v14627_v61 }
 0x3f9   :  { %11290 = vmatpush.bf16.msra.mxu2 %v14310_v60  ;;  %v19487_v19 = vld [vmem:[#allocation2 + $0x1044] sm:$0xf] }
 0x3fa   :  { %11303 = vmatpush.bf16.msra.mxu3 %v14374_v30  ;;  %v19503_v61 = vld [vmem:[#allocation2 + $0x10c4] sm:$0xf] }
 0x3fb   :  { %11265 = vmatpush.bf16.msra.mxu0 %v14174_v35  ;;  %v11059_v60 = vpop.f32.mrf.mxu0  ;;  %v14579_v35 = vld [vmem:[#allocation2 + $0xf38] sm:$0xf0] }
 0x3fc   :  { %11278 = vmatpush.bf16.msra.mxu1 %v14238_v23  ;;  %v11072_v13 = vpop.f32.mrf.mxu1  ;;  %v14582_v23 = vor.u32 %v19453_v44, %v14579_v35 }
 0x3fd   :  { %11291 = vmatpush.bf16.msra.mxu2 %v14302_v54  ;;  %v19419_v54 = vld [vmem:[#allocation2 + $0xe24] sm:$0xf] }
 0x3fe   :  { %11304 = vmatpush.bf16.msra.mxu3 %v14366_v51  ;;  %11266 = vmatmul.bf16.vlgmr.msra.gmra.mxu0 %v20909_v62  ;;  %v14459_v62 = vld [vmem:[#allocation2 + $0xe48] sm:$0xf0]  ;;  %v14646_v51 = vor.u32 %v19469_v50, %v14643_v22  ;;  %v14446_v16 = vor.u32 %v19419_v54, %v14443_v26  ;;  %v14870_v22 = vor.u32 %v19525_v52, %v14867_v9  ;;  %v14835_v52 = vld [vmem:[#allocation2 + $0x1138] sm:$0xf0]  ;;  %v19533_v9 = vld [vmem:[#allocation2 + $0x11b4] sm:$0xf] }
 0x3ff   :  { %11310 = vmatpush.bf16.msrb.mxu0 %v14486_v47  ;;  %11279 = vmatmul.bf16.vlgmr.msra.gmra.mxu1 %v20913_v6  ;;  %v19471_v6 = vld [vmem:[#allocation2 + $0xfc4] sm:$0xf]  ;;  %v14462_v4 = vor.u32 %v19423_v39, %v14459_v62  ;;  %v14566_v39 = vor.u32 %v19449_v55, %v14563_v29  ;;  %v14795_v26 = vld [vmem:[#allocation2 + $0x10e8] sm:$0xf0] }
 0x400   :  { %11323 = vmatpush.bf16.msrb.mxu1 %v14550_v43  ;;  %11292 = vmatmul.bf16.vlgmr.msra.gmra.mxu2 %v20911_v3  ;;  %v14587_v3 = vld [vmem:[#allocation2 + $0xf48] sm:$0xf0]  ;;  %v14654_v8 = vor.u32 %v19471_v6, %v14651_v14  ;;  %v19431_v62 = vld [vmem:[#allocation2 + $0xe84] sm:$0xf]  ;;  %v19493_v14 = vld [vmem:[#allocation2 + $0x1074] sm:$0xf] }
 0x401   :  { %11336 = vmatpush.bf16.msrb.mxu2 %v14614_v7  ;;  %11305 = vmatmul.bf16.vlgmr.msra.gmra.mxu3 %v20915_v11  ;;  %v11060_v11 = vadd.f32 %v11059_v60, %v21266_v24  ;;  %v14590_v30 = vor.u32 %v19455_v45, %v14587_v3  ;;  %v14518_v24 = vor.u32 %v19437_v15, %v14515_v49  ;;  %v14507_v43 = vld [vmem:[#allocation2 + $0xea8] sm:$0xf0]  ;;  %v19451_v7 = vld [vmem:[#allocation2 + $0xf24] sm:$0xf]  ;;  %v14931_v49 = vld [vmem:[#allocation2 + $0x11f8] sm:$0xf0] }
 0x402   :  { %11349 = vmatpush.bf16.msrb.mxu3 %v14678_v41  ;;  %v19467_v41 = vld [vmem:[#allocation2 + $0xfa4] sm:$0xf]  ;;  %v14555_v45 = vld [vmem:[#allocation2 + $0xf08] sm:$0xf0]  ;;  %v14494_v15 = vor.u32 %v19431_v62, %v14491_v2 }
 0x403   :  { %11311 = vmatpush.bf16.msrb.mxu0 %v14478_v38  ;;  %v11073_v18 = vadd.f32 %v11072_v13, %v11060_v11  ;;  %v11085_v47 = vpop.f32.mrf.mxu2  ;;  %v11061_v34 = vpop.f32.mrf.mxu0  ;;  %v14510_v38 = vor.u32 %v19435_v27, %v14507_v43  ;;  %v14638_v20 = vor.u32 %v19467_v41, %v14635_v46  ;;  %v19463_v3 = vld [vmem:[#allocation2 + $0xf84] sm:$0xf]  ;;  %v14619_v60 = vld [vmem:[#allocation2 + $0xf88] sm:$0xf0]  ;;  %v14739_v11 = vld [vmem:[#allocation2 + $0x1078] sm:$0xf0] }
 0x404   :  { %11324 = vmatpush.bf16.msrb.mxu1 %v14542_v21  ;;  %v11098_v53 = vpop.f32.mrf.mxu3  ;;  %v11074_v37 = vpop.f32.mrf.mxu1  ;;  %v14574_v21 = vor.u32 %v19451_v7, %v14571_v32  ;;  %v14622_v44 = vor.u32 %v19463_v3, %v14619_v60  ;;  %v14742_v35 = vor.u32 %v19493_v14, %v14739_v11  ;;  %v19523_v27 = vld [vmem:[#allocation2 + $0x1164] sm:$0xf]  ;;  %v14923_v43 = vld [vmem:[#allocation2 + $0x11e8] sm:$0xf0]  ;;  %v14723_v41 = vld [vmem:[#allocation2 + $0x1058] sm:$0xf0] }
 0x405   :  { %11337 = vmatpush.bf16.msrb.mxu2 %v14606_v59  ;;  %v11086_v33 = vadd.f32 %v11085_v47, %v11073_v18  ;;  %v19417_v59 = vld [vmem:[#allocation2 + $0xe14] sm:$0xf]  ;;  %v19539_v47 = vld [vmem:[#allocation2 + $0x11e4] sm:$0xf]  ;;  %v14907_v2 = vld [vmem:[#allocation2 + $0x11c8] sm:$0xf0] }
 0x406   :  { %11350 = vmatpush.bf16.msrb.mxu3 %v14670_v42  ;;  %v14499_v42 = vld [vmem:[#allocation2 + $0xe98] sm:$0xf0]  ;;  %v14438_v10 = vor.u32 %v19417_v59, %v14435_v40  ;;  %v19541_v18 = vld [vmem:[#allocation2 + $0x11f4] sm:$0xf]  ;;  %v14926_v34 = vor.u32 %v19539_v47, %v14923_v43  ;;  %v19535_v62 = vld [vmem:[#allocation2 + $0x11c4] sm:$0xf] }
 0x407   :  { %11312 = vmatpush.bf16.msrb.mxu0 %v14470_v57  ;;  %v21273_v56 = vadd.f32 %v11098_v53, %v11086_v33  ;;  %v19415_v57 = vld [vmem:[#allocation2 + $0xe04] sm:$0xf]  ;;  %v14934_v54 = vor.u32 %v19541_v18, %v14931_v49  ;;  %v19489_v53 = vld [vmem:[#allocation2 + $0x1054] sm:$0xf]  ;;  %v14707_v14 = vld [vmem:[#allocation2 + $0x1038] sm:$0xf0] }
 0x408   :  { %11325 = vmatpush.bf16.msrb.mxu1 %v14534_v36  ;;  %v14427_v36 = vld [vmem:[#allocation2 + $0xe08] sm:$0xf0]  ;;  %v19505_v46 = vld [vmem:[#allocation2 + $0x10d4] sm:$0xf]  ;;  %v19483_v49 = vld [vmem:[#allocation2 + $0x1024] sm:$0xf] }
 0x409   :  { %11338 = vmatpush.bf16.msrb.mxu2 %v14598_v58  ;;  %v14502_v58 = vor.u32 %v19433_v28, %v14499_v42  ;;  %v19521_v37 = vld [vmem:[#allocation2 + $0x1154] sm:$0xf]  ;;  %v14915_v28 = vld [vmem:[#allocation2 + $0x11d8] sm:$0xf0]  ;;  %v14726_v42 = vor.u32 %v19489_v53, %v14723_v41 }
 0x40a   :  { %11351 = vmatpush.bf16.msrb.mxu3 %v14662_v63  ;;  %v19447_v63 = vld [vmem:[#allocation2 + $0xf04] sm:$0xf]  ;;  %v21548_v59 = vld [vmem:[#allocation20_spill] sm:$0xff] }
 0x40b   :  { %11313 = vmatpush.bf16.msrb.mxu0 %v14462_v4  ;;  %v11087_v6 = vpop.f32.mrf.mxu2  ;;  %v19509_v4 = vld [vmem:[#allocation2 + $0x10f4] sm:$0xf] }
 0x40c   :  { %11326 = vmatpush.bf16.msrb.mxu1 %v14526_v5  ;;  %v11100_v13 = vpop.f32.mrf.mxu3  ;;  %v14430_v5 = vor.u32 %v19415_v57, %v14427_v36  ;;  %v19537_v40 = vld [vmem:[#allocation2 + $0x11d4] sm:$0xf]  ;;  %v14779_v57 = vld [vmem:[#allocation2 + $0x10c8] sm:$0xf0]  ;;  %v19519_v36 = vld [vmem:[#allocation2 + $0x1144] sm:$0xf] }
 0x40d   :  { %11339 = vmatpush.bf16.msrb.mxu2 %v14590_v30  ;;  %v14803_v30 = vld [vmem:[#allocation2 + $0x10f8] sm:$0xf0]  ;;  %v14782_v3 = vor.u32 %v19503_v61, %v14779_v57  ;;  %v19485_v6 = vld [vmem:[#allocation2 + $0x1034] sm:$0xf]  ;;  %v19511_v61 = vld [vmem:[#allocation2 + $0x1104] sm:$0xf] }
 0x40e   :  { %11352 = vmatpush.bf16.msrb.mxu3 %v14654_v8  ;;  %v14558_v8 = vor.u32 %v19447_v63, %v14555_v45  ;;  %v14806_v50 = vor.u32 %v19509_v4, %v14803_v30  ;;  %v19501_v11 = vld [vmem:[#allocation2 + $0x10b4] sm:$0xf]  ;;  %v14910_v4 = vor.u32 %v19535_v62, %v14907_v2  ;;  %v14811_v57 = vld [vmem:[#allocation2 + $0x1108] sm:$0xf0]  ;;  %v14995_v2 = vld [vmem:[#allocation2 + $0x1278] sm:$0xf0] }
 0x40f   :  { %11314 = vmatpush.bf16.msrb.mxu0 %v14454_v25  ;;  %v19491_v25 = vld [vmem:[#allocation2 + $0x1064] sm:$0xf]  ;;  %v19517_v30 = vld [vmem:[#allocation2 + $0x1134] sm:$0xf] }
 0x410   :  { %11327 = vmatpush.bf16.msrb.mxu1 %v14518_v24  ;;  %v14731_v24 = vld [vmem:[#allocation2 + $0x1068] sm:$0xf0]  ;;  %v14838_v18 = vor.u32 %v19517_v30, %v14835_v52  ;;  %v19481_v41 = vld [vmem:[#allocation2 + $0x1014] sm:$0xf] }
 0x411   :  { %11340 = vmatpush.bf16.msrb.mxu2 %v14582_v23  ;;  %v19507_v23 = vld [vmem:[#allocation2 + $0x10e4] sm:$0xf]  ;;  %v14734_v7 = vor.u32 %v19491_v25, %v14731_v24  ;;  %v14763_v25 = vld [vmem:[#allocation2 + $0x10a8] sm:$0xf0]  ;;  %v19557_v62 = vld [vmem:[#allocation2 + $0x1274] sm:$0xf] }
 0x412   :  { %11353 = vmatpush.bf16.msrb.mxu3 %v14646_v51  ;;  %v14859_v51 = vld [vmem:[#allocation2 + $0x1168] sm:$0xf0]  ;;  %v14798_v32 = vor.u32 %v19507_v23, %v14795_v26  ;;  %v19515_v24 = vld [vmem:[#allocation2 + $0x1124] sm:$0xf]  ;;  %v14998_v30 = vor.u32 %v19557_v62, %v14995_v2  ;;  %v19549_v62 = vld [vmem:[#allocation2 + $0x1234] sm:$0xf] }
 0x413   :  { %11315 = vmatpush.bf16.msrb.mxu0 %v14446_v16  ;;  %v14862_v33 = vor.u32 %v19523_v27, %v14859_v51  ;;  %v14787_v16 = vld [vmem:[#allocation2 + $0x10d8] sm:$0xf0]  ;;  %v14827_v23 = vld [vmem:[#allocation2 + $0x1128] sm:$0xf0]  ;;  %v19531_v27 = vld [vmem:[#allocation2 + $0x11a4] sm:$0xf] }
 0x414   :  { %11328 = vmatpush.bf16.msrb.mxu1 %v14510_v38  ;;  %v14851_v38 = vld [vmem:[#allocation2 + $0x1158] sm:$0xf0]  ;;  %v14790_v55 = vor.u32 %v19505_v46, %v14787_v16  ;;  %v14891_v51 = vld [vmem:[#allocation2 + $0x11a8] sm:$0xf0]  ;;  %v14830_v53 = vor.u32 %v19515_v24, %v14827_v23 }
 0x415   :  { %11341 = vmatpush.bf16.msrb.mxu2 %v14574_v21  ;;  %v21547_v21 = vld [vmem:[#allocation19_spill] sm:$0xff]  ;;  %v14854_v29 = vor.u32 %v19521_v37, %v14851_v38  ;;  %v14691_v46 = vld [vmem:[#allocation2 + $0x1018] sm:$0xf0]  ;;  %v14894_v16 = vor.u32 %v19531_v27, %v14891_v51  ;;  %v19513_v38 = vld [vmem:[#allocation2 + $0x1114] sm:$0xf] }
 0x416   :  { %11354 = vmatpush.bf16.msrb.mxu3 %v14638_v20  ;;  %v21549_v20 = vld [vmem:[#allocation21_spill] sm:$0xff]  ;;  %v19569_v27 = vld [vmem:[#allocation2 + $0x12d4] sm:$0xf]  ;;  %v21550_v51 = vld [vmem:[#allocation22_spill] sm:$0xff] }
 0x417   :  { %11316 = vmatpush.bf16.msrb.mxu0 %v14438_v10  ;;  %v14918_v10 = vor.u32 %v19537_v40, %v14915_v28  ;;  %v14755_v37 = vld [vmem:[#allocation2 + $0x1098] sm:$0xf0]  ;;  %v14694_v28 = vor.u32 %v19481_v41, %v14691_v46  ;;  %v21552_v41 = vld [vmem:[#allocation24_spill] sm:$0xff] }
 0x418   :  { %11329 = vmatpush.bf16.msrb.mxu1 %v14502_v58  ;;  %v14843_v58 = vld [vmem:[#allocation2 + $0x1148] sm:$0xf0]  ;;  %v14883_v40 = vld [vmem:[#allocation2 + $0x1198] sm:$0xf0]  ;;  %v19601_v46 = vld [vmem:[#allocation2 + $0x13d4] sm:$0xf] }
 0x419   :  { %11342 = vmatpush.bf16.msrb.mxu2 %v14566_v39  ;;  %v14846_v60 = vor.u32 %v19519_v36, %v14843_v58  ;;  %v19527_v36 = vld [vmem:[#allocation2 + $0x1184] sm:$0xf]  ;;  %v14875_v58 = vld [vmem:[#allocation2 + $0x1188] sm:$0xf0]  ;;  %v14963_v2 = vld [vmem:[#allocation2 + $0x1238] sm:$0xf0] }
 0x41a   :  { %11355 = vmatpush.bf16.msrb.mxu3 %v14630_v0 }
 0x41b   :  { %11317 = vmatpush.bf16.msrb.mxu0 %v14430_v5  ;;  %v11111_v39 = vpop.f32.mrf.mxu0  ;;  %v14771_v5 = vld [vmem:[#allocation2 + $0x10b8] sm:$0xf0] }
 0x41c   :  { %11330 = vmatpush.bf16.msrb.mxu1 %v14494_v15  ;;  %v11112_v63 = vadd.f32 %v11111_v39, %v21273_v56  ;;  %v11124_v45 = vpop.f32.mrf.mxu1  ;;  %v14899_v15 = vld [vmem:[#allocation2 + $0x11b8] sm:$0xf0]  ;;  %v14774_v56 = vor.u32 %v19501_v11, %v14771_v5  ;;  %v14814_v11 = vor.u32 %v19511_v61, %v14811_v57  ;;  %v14878_v5 = vor.u32 %v19527_v36, %v14875_v58  ;;  %v15163_v61 = vld [vmem:[#allocation2 + $0x13c8] sm:$0xf0] }
 0x41d   :  { %11343 = vmatpush.bf16.msrb.mxu2 %v14558_v8  ;;  %v14710_v8 = vor.u32 %v19485_v6, %v14707_v14  ;;  %v15123_v6 = vld [vmem:[#allocation2 + $0x1378] sm:$0xf0] }
 0x41e   :  { %11356 = vmatpush.bf16.msrb.mxu3 %v14622_v44  ;;  %11318 = vmatmul.bf16.vlgmr.msrb.gmra.mxu0 %v20927_v12  ;;  %v14715_v12 = vld [vmem:[#allocation2 + $0x1048] sm:$0xf0]  ;;  %v11125_v13 = vadd.f32 %v11124_v45, %v11112_v63  ;;  %v19573_v63 = vld [vmem:[#allocation2 + $0x12f4] sm:$0xf] }
 0x41f   :  { %11362 = vmatpush.bf16.msra.mxu0 %v14742_v35  ;;  %11331 = vmatmul.bf16.vlgmr.msrb.gmra.mxu1 %v21548_v59  ;;  %v14718_v0 = vor.u32 %v19487_v19, %v14715_v12  ;;  %v14699_v44 = vld [vmem:[#allocation2 + $0x1028] sm:$0xf0]  ;;  %v19499_v35 = vld [vmem:[#allocation2 + $0x10a4] sm:$0xf]  ;;  %v19529_v59 = vld [vmem:[#allocation2 + $0x1194] sm:$0xf] }
 0x420   :  { %11375 = vmatpush.bf16.msra.mxu1 %v14806_v50  ;;  %11344 = vmatmul.bf16.vlgmr.msrb.gmra.mxu2 %v21547_v21  ;;  %v14902_v50 = vor.u32 %v19533_v9, %v14899_v15  ;;  %v14702_v43 = vor.u32 %v19483_v49, %v14699_v44  ;;  %v14819_v21 = vld [vmem:[#allocation2 + $0x1118] sm:$0xf0]  ;;  %v19495_v19 = vld [vmem:[#allocation2 + $0x1084] sm:$0xf]  ;;  %v14747_v12 = vld [vmem:[#allocation2 + $0x1088] sm:$0xf0] }
 0x421   :  { %11388 = vmatpush.bf16.msra.mxu2 %v14870_v22  ;;  %11357 = vmatmul.bf16.vlgmr.msrb.gmra.mxu3 %v21549_v20  ;;  %v19479_v20 = vld [vmem:[#allocation2 + $0x1004] sm:$0xf]  ;;  %v14750_v14 = vor.u32 %v19495_v19, %v14747_v12  ;;  %v15051_v49 = vld [vmem:[#allocation2 + $0x12e8] sm:$0xf0] }
 0x422   :  { %11401 = vmatpush.bf16.msra.mxu3 %v14934_v54  ;;  %v19555_v15 = vld [vmem:[#allocation2 + $0x1264] sm:$0xf] }
 0x423   :  { %11363 = vmatpush.bf16.msra.mxu0 %v14734_v7  ;;  %v11137_v22 = vpop.f32.mrf.mxu2  ;;  %v11113_v47 = vpop.f32.mrf.mxu0  ;;  %v19587_v44 = vld [vmem:[#allocation2 + $0x1364] sm:$0xf] }
 0x424   :  { %11376 = vmatpush.bf16.msra.mxu1 %v14798_v32  ;;  %v11138_v54 = vadd.f32 %v11137_v22, %v11125_v13  ;;  %v11150_v26 = vpop.f32.mrf.mxu3  ;;  %v11126_v7 = vpop.f32.mrf.mxu1  ;;  %v15187_v13 = vld [vmem:[#allocation2 + $0x13f8] sm:$0xf0]  ;;  %v15179_v22 = vld [vmem:[#allocation2 + $0x13e8] sm:$0xf0]  ;;  %v19599_v12 = vld [vmem:[#allocation2 + $0x13c4] sm:$0xf] }
 0x425   :  { %11389 = vmatpush.bf16.msra.mxu2 %v14862_v33  ;;  %v14766_v33 = vor.u32 %v19499_v35, %v14763_v25  ;;  %v15115_v35 = vld [vmem:[#allocation2 + $0x1368] sm:$0xf0]  ;;  %v19585_v7 = vld [vmem:[#allocation2 + $0x1354] sm:$0xf] }
 0x426   :  { %11402 = vmatpush.bf16.msra.mxu3 %v14926_v34  ;;  %v21280_v32 = vadd.f32 %v11150_v26, %v11138_v54  ;;  %v19497_v34 = vld [vmem:[#allocation2 + $0x1094] sm:$0xf]  ;;  %v15118_v23 = vor.u32 %v19587_v44, %v15115_v35  ;;  %v14979_v26 = vld [vmem:[#allocation2 + $0x1258] sm:$0xf0]  ;;  %v19595_v35 = vld [vmem:[#allocation2 + $0x13a4] sm:$0xf] }
 0x427   :  { %11364 = vmatpush.bf16.msra.mxu0 %v14726_v42  ;;  %v14683_v42 = vld [vmem:[#allocation2 + $0x1008] sm:$0xf0]  ;;  %v19553_v54 = vld [vmem:[#allocation2 + $0x1254] sm:$0xf] }
 0x428   :  { %11377 = vmatpush.bf16.msra.mxu1 %v14790_v55  ;;  %v14758_v55 = vor.u32 %v19497_v34, %v14755_v37  ;;  %v14686_v45 = vor.u32 %v19479_v20, %v14683_v42  ;;  %v15171_v34 = vld [vmem:[#allocation2 + $0x13d8] sm:$0xf0]  ;;  %v14982_v37 = vor.u32 %v19553_v54, %v14979_v26  ;;  %v15035_v42 = vld [vmem:[#allocation2 + $0x12c8] sm:$0xf0] }
 0x429   :  { %11390 = vmatpush.bf16.msra.mxu2 %v14854_v29  ;;  %v14822_v29 = vor.u32 %v19513_v38, %v14819_v21  ;;  %v15174_v20 = vor.u32 %v19601_v46, %v15171_v34  ;;  %v15139_v46 = vld [vmem:[#allocation2 + $0x1398] sm:$0xf0] }
 0x42a   :  { %11403 = vmatpush.bf16.msra.mxu3 %v14918_v10  ;;  %v14886_v10 = vor.u32 %v19529_v59, %v14883_v40  ;;  %v19551_v59 = vld [vmem:[#allocation2 + $0x1244] sm:$0xf]  ;;  %v14971_v40 = vld [vmem:[#allocation2 + $0x1248] sm:$0xf0] }
 0x42b   :  { %11365 = vmatpush.bf16.msra.mxu0 %v14718_v0  ;;  %v11139_v39 = vpop.f32.mrf.mxu2  ;;  %v14974_v57 = vor.u32 %v19551_v59, %v14971_v40  ;;  %v19559_v59 = vld [vmem:[#allocation2 + $0x1284] sm:$0xf]  ;;  %v15003_v40 = vld [vmem:[#allocation2 + $0x1288] sm:$0xf0] }
 0x42c   :  { %11378 = vmatpush.bf16.msra.mxu1 %v14782_v3  ;;  %v11152_v0 = vpop.f32.mrf.mxu3  ;;  %v15059_v3 = vld [vmem:[#allocation2 + $0x12f8] sm:$0xf0] }
 0x42d   :  { %11391 = vmatpush.bf16.msra.mxu2 %v14846_v60  ;;  %v19589_v60 = vld [vmem:[#allocation2 + $0x1374] sm:$0xf]  ;;  %v15062_v52 = vor.u32 %v19573_v63, %v15059_v3  ;;  %v15166_v0 = vor.u32 %v19599_v12, %v15163_v61  ;;  %v15027_v3 = vld [vmem:[#allocation2 + $0x12b8] sm:$0xf0] }
 0x42e   :  { %11404 = vmatpush.bf16.msra.mxu3 %v14910_v4  ;;  %v19605_v4 = vld [vmem:[#allocation2 + $0x13f4] sm:$0xf]  ;;  %v15126_v9 = vor.u32 %v19589_v60, %v15123_v6  ;;  %v15091_v6 = vld [vmem:[#allocation2 + $0x1338] sm:$0xf0] }
 0x42f   :  { %11366 = vmatpush.bf16.msra.mxu0 %v14710_v8  ;;  %v14987_v8 = vld [vmem:[#allocation2 + $0x1268] sm:$0xf0]  ;;  %v19565_v63 = vld [vmem:[#allocation2 + $0x12b4] sm:$0xf]  ;;  %v15251_v61 = vld [vmem:[#allocation2 + $0x1478] sm:$0xf0] }
 0x430   :  { %11379 = vmatpush.bf16.msra.mxu1 %v14774_v56  ;;  %v19571_v56 = vld [vmem:[#allocation2 + $0x12e4] sm:$0xf]  ;;  %v14990_v25 = vor.u32 %v19555_v15, %v14987_v8  ;;  %v19581_v60 = vld [vmem:[#allocation2 + $0x1334] sm:$0xf]  ;;  %v15019_v8 = vld [vmem:[#allocation2 + $0x12a8] sm:$0xf0] }
 0x431   :  { %11392 = vmatpush.bf16.msra.mxu2 %v14838_v18  ;;  %v15190_v18 = vor.u32 %v19605_v4, %v15187_v13  ;;  %v15054_v24 = vor.u32 %v19571_v56, %v15051_v49  ;;  %v14966_v4 = vor.u32 %v19549_v62, %v14963_v2  ;;  %v15094_v13 = vor.u32 %v19581_v60, %v15091_v6  ;;  %v19579_v56 = vld [vmem:[#allocation2 + $0x1324] sm:$0xf]  ;;  %v19621_v12 = vld [vmem:[#allocation2 + $0x1474] sm:$0xf]  ;;  %v15379_v62 = vld [vmem:[#allocation2 + $0x1578] sm:$0xf0] }
 0x432   :  { %11405 = vmatpush.bf16.msra.mxu3 %v14902_v50  ;;  %v19603_v50 = vld [vmem:[#allocation2 + $0x13e4] sm:$0xf]  ;;  %v15006_v2 = vor.u32 %v19559_v59, %v15003_v40  ;;  %v15254_v60 = vor.u32 %v19621_v12, %v15251_v61  ;;  %v19613_v12 = vld [vmem:[#allocation2 + $0x1434] sm:$0xf]  ;;  %v15219_v61 = vld [vmem:[#allocation2 + $0x1438] sm:$0xf0] }
 0x433   :  { %11367 = vmatpush.bf16.msra.mxu0 %v14702_v43  ;;  %v15182_v47 = vor.u32 %v19603_v50, %v15179_v22  ;;  %v15043_v43 = vld [vmem:[#allocation2 + $0x12d8] sm:$0xf0]  ;;  %v15147_v50 = vld [vmem:[#allocation2 + $0x13a8] sm:$0xf0]  ;;  %v19663_v40 = vld [vmem:[#allocation2 + $0x15c4] sm:$0xf] }
 0x434   :  { %11380 = vmatpush.bf16.msra.mxu1 %v14766_v33  ;;  %v15107_v33 = vld [vmem:[#allocation2 + $0x1358] sm:$0xf0]  ;;  %v15046_v38 = vor.u32 %v19569_v27, %v15043_v43  ;;  %v19545_v27 = vld [vmem:[#allocation2 + $0x1214] sm:$0xf]  ;;  %v15150_v43 = vor.u32 %v19595_v35, %v15147_v50  ;;  %v21554_v50 = vld [vmem:[#allocation26_spill] sm:$0xff] }
 0x435   :  { %11393 = vmatpush.bf16.msra.mxu2 %v14830_v53  ;;  %v21551_v53 = vld [vmem:[#allocation23_spill] sm:$0xff]  ;;  %v15110_v21 = vor.u32 %v19585_v7, %v15107_v33  ;;  %v15011_v7 = vld [vmem:[#allocation2 + $0x1298] sm:$0xf0]  ;;  %v19577_v33 = vld [vmem:[#allocation2 + $0x1314] sm:$0xf] }
 0x436   :  { %11406 = vmatpush.bf16.msra.mxu3 %v14894_v16  ;;  %v21553_v16 = vld [vmem:[#allocation25_spill] sm:$0xff]  ;;  %v19633_v35 = vld [vmem:[#allocation2 + $0x14d4] sm:$0xf] }
 0x437   :  { %11368 = vmatpush.bf16.msra.mxu0 %v14694_v28  ;;  %v19567_v28 = vld [vmem:[#allocation2 + $0x12c4] sm:$0xf] }
 0x438   :  { %11381 = vmatpush.bf16.msra.mxu1 %v14758_v55  ;;  %v19583_v55 = vld [vmem:[#allocation2 + $0x1344] sm:$0xf]  ;;  %v15038_v58 = vor.u32 %v19567_v28, %v15035_v42  ;;  %v15067_v42 = vld [vmem:[#allocation2 + $0x1308] sm:$0xf0] }
 0x439   :  { %11394 = vmatpush.bf16.msra.mxu2 %v14822_v29  ;;  %v15099_v29 = vld [vmem:[#allocation2 + $0x1348] sm:$0xf0]  ;;  %v19575_v28 = vld [vmem:[#allocation2 + $0x1304] sm:$0xf] }
 0x43a   :  { %11407 = vmatpush.bf16.msra.mxu3 %v14886_v10  ;;  %v15102_v39 = vor.u32 %v19583_v55, %v15099_v29  ;;  %v19591_v55 = vld [vmem:[#allocation2 + $0x1384] sm:$0xf]  ;;  %v15131_v29 = vld [vmem:[#allocation2 + $0x1388] sm:$0xf0] }
 0x43b   :  { %11369 = vmatpush.bf16.msra.mxu0 %v14686_v45  ;;  %v11163_v19 = vpop.f32.mrf.mxu0 }
 0x43c   :  { %11382 = vmatpush.bf16.msra.mxu1 %v14750_v14  ;;  %v11164_v10 = vadd.f32 %v11163_v19, %v21280_v32  ;;  %v11176_v36 = vpop.f32.mrf.mxu1  ;;  %v19597_v14 = vld [vmem:[#allocation2 + $0x13b4] sm:$0xf]  ;;  %v15030_v32 = vor.u32 %v19565_v63, %v15027_v3  ;;  %v15070_v63 = vor.u32 %v19575_v28, %v15067_v42  ;;  %v15134_v3 = vor.u32 %v19591_v55, %v15131_v29  ;;  %v15419_v28 = vld [vmem:[#allocation2 + $0x15c8] sm:$0xf0] }
 0x43d   :  { %11395 = vmatpush.bf16.msra.mxu2 %v14814_v11  ;;  %v15155_v11 = vld [vmem:[#allocation2 + $0x13b8] sm:$0xf0] }
 0x43e   :  { %11408 = vmatpush.bf16.msra.mxu3 %v14878_v5  ;;  %11370 = vmatmul.bf16.vlgmr.msra.gmra.mxu0 %v21550_v51  ;;  %v11177_v45 = vadd.f32 %v11176_v36, %v11164_v10  ;;  %v19547_v5 = vld [vmem:[#allocation2 + $0x1224] sm:$0xf]  ;;  %v14947_v51 = vld [vmem:[#allocation2 + $0x1218] sm:$0xf0]  ;;  %v19637_v10 = vld [vmem:[#allocation2 + $0x14f4] sm:$0xf] }
 0x43f   :  { %11414 = vmatpush.bf16.msrb.mxu0 %v14998_v30  ;;  %11383 = vmatmul.bf16.vlgmr.msra.gmra.mxu1 %v21552_v41  ;;  %v14955_v30 = vld [vmem:[#allocation2 + $0x1228] sm:$0xf0]  ;;  %v19593_v41 = vld [vmem:[#allocation2 + $0x1394] sm:$0xf]  ;;  %v14950_v34 = vor.u32 %v19545_v27, %v14947_v51 }
 0x440   :  { %11427 = vmatpush.bf16.msrb.mxu1 %v15062_v52  ;;  %11396 = vmatmul.bf16.vlgmr.msra.gmra.mxu2 %v21551_v53  ;;  %v19563_v52 = vld [vmem:[#allocation2 + $0x12a4] sm:$0xf]  ;;  %v15075_v53 = vld [vmem:[#allocation2 + $0x1318] sm:$0xf0]  ;;  %v21556_v27 = vld [vmem:[#allocation28_spill] sm:$0xff] }
 0x441   :  { %11440 = vmatpush.bf16.msrb.mxu2 %v15126_v9  ;;  %11409 = vmatmul.bf16.vlgmr.msra.gmra.mxu3 %v21553_v16  ;;  %v15158_v9 = vor.u32 %v19597_v14, %v15155_v11  ;;  %v15022_v54 = vor.u32 %v19563_v52, %v15019_v8  ;;  %v19543_v16 = vld [vmem:[#allocation2 + $0x1204] sm:$0xf]  ;;  %v15371_v52 = vld [vmem:[#allocation2 + $0x1568] sm:$0xf0]  ;;  %v19665_v51 = vld [vmem:[#allocation2 + $0x15d4] sm:$0xf] }
 0x442   :  { %11453 = vmatpush.bf16.msrb.mxu3 %v15190_v18  ;;  %v15083_v18 = vld [vmem:[#allocation2 + $0x1328] sm:$0xf0]  ;;  %v19619_v11 = vld [vmem:[#allocation2 + $0x1464] sm:$0xf] }
 0x443   :  { %11415 = vmatpush.bf16.msrb.mxu0 %v14990_v25  ;;  %v11189_v15 = vpop.f32.mrf.mxu2  ;;  %v11165_v22 = vpop.f32.mrf.mxu0  ;;  %v14958_v25 = vor.u32 %v19547_v5, %v14955_v30  ;;  %v15086_v26 = vor.u32 %v19579_v56, %v15083_v18  ;;  %v15307_v5 = vld [vmem:[#allocation2 + $0x14e8] sm:$0xf0]  ;;  %v19651_v30 = vld [vmem:[#allocation2 + $0x1564] sm:$0xf] }
 0x444   :  { %11428 = vmatpush.bf16.msrb.mxu1 %v15054_v24  ;;  %v11190_v49 = vadd.f32 %v11189_v15, %v11177_v45  ;;  %v11202_v44 = vpop.f32.mrf.mxu3  ;;  %v11178_v24 = vpop.f32.mrf.mxu1  ;;  %v15443_v45 = vld [vmem:[#allocation2 + $0x15f8] sm:$0xf0]  ;;  %v15435_v15 = vld [vmem:[#allocation2 + $0x15e8] sm:$0xf0]  ;;  %v15374_v18 = vor.u32 %v19651_v30, %v15371_v52  ;;  %v19659_v52 = vld [vmem:[#allocation2 + $0x15a4] sm:$0xf] }
 0x445   :  { %11441 = vmatpush.bf16.msrb.mxu2 %v15118_v23  ;;  %v19649_v24 = vld [vmem:[#allocation2 + $0x1554] sm:$0xf] }
 0x446   :  { %11454 = vmatpush.bf16.msrb.mxu3 %v15182_v47  ;;  %v21287_v23 = vadd.f32 %v11202_v44, %v11190_v49  ;;  %v19561_v47 = vld [vmem:[#allocation2 + $0x1294] sm:$0xf]  ;;  %v15235_v44 = vld [vmem:[#allocation2 + $0x1458] sm:$0xf0] }
 0x447   :  { %11416 = vmatpush.bf16.msrb.mxu0 %v14982_v37  ;;  %v14939_v37 = vld [vmem:[#allocation2 + $0x1208] sm:$0xf0]  ;;  %v19617_v49 = vld [vmem:[#allocation2 + $0x1454] sm:$0xf] }
 0x448   :  { %11429 = vmatpush.bf16.msrb.mxu1 %v15046_v38  ;;  %v15014_v38 = vor.u32 %v19561_v47, %v15011_v7  ;;  %v14942_v36 = vor.u32 %v19543_v16, %v14939_v37  ;;  %v15427_v47 = vld [vmem:[#allocation2 + $0x15d8] sm:$0xf0]  ;;  %v15238_v7 = vor.u32 %v19617_v49, %v15235_v44  ;;  %v15291_v37 = vld [vmem:[#allocation2 + $0x14c8] sm:$0xf0] }
 0x449   :  { %11442 = vmatpush.bf16.msrb.mxu2 %v15110_v21  ;;  %v15078_v21 = vor.u32 %v19577_v33, %v15075_v53  ;;  %v15430_v16 = vor.u32 %v19665_v51, %v15427_v47  ;;  %v15395_v51 = vld [vmem:[#allocation2 + $0x1598] sm:$0xf0] }
 0x44a   :  { %11455 = vmatpush.bf16.msrb.mxu3 %v15174_v20  ;;  %v15142_v20 = vor.u32 %v19593_v41, %v15139_v46  ;;  %v19615_v41 = vld [vmem:[#allocation2 + $0x1444] sm:$0xf]  ;;  %v15227_v46 = vld [vmem:[#allocation2 + $0x1448] sm:$0xf0] }
 0x44b   :  { %11417 = vmatpush.bf16.msrb.mxu0 %v14974_v57  ;;  %v11191_v19 = vpop.f32.mrf.mxu2  ;;  %v15230_v42 = vor.u32 %v19615_v41, %v15227_v46  ;;  %v19623_v41 = vld [vmem:[#allocation2 + $0x1484] sm:$0xf]  ;;  %v15259_v46 = vld [vmem:[#allocation2 + $0x1488] sm:$0xf0] }
 0x44c   :  { %11430 = vmatpush.bf16.msrb.mxu1 %v15038_v58  ;;  %v11204_v57 = vpop.f32.mrf.mxu3  ;;  %v15315_v58 = vld [vmem:[#allocation2 + $0x14f8] sm:$0xf0] }
 0x44d   :  { %11443 = vmatpush.bf16.msrb.mxu2 %v15102_v39  ;;  %v19653_v39 = vld [vmem:[#allocation2 + $0x1574] sm:$0xf]  ;;  %v15318_v6 = vor.u32 %v19637_v10, %v15315_v58  ;;  %v15422_v57 = vor.u32 %v19663_v40, %v15419_v28  ;;  %v15283_v58 = vld [vmem:[#allocation2 + $0x14b8] sm:$0xf0] }
 0x44e   :  { %11456 = vmatpush.bf16.msrb.mxu3 %v15166_v0  ;;  %v19669_v0 = vld [vmem:[#allocation2 + $0x15f4] sm:$0xf]  ;;  %v15382_v14 = vor.u32 %v19653_v39, %v15379_v62  ;;  %v15347_v62 = vld [vmem:[#allocation2 + $0x1538] sm:$0xf0] }
 0x44f   :  { %11418 = vmatpush.bf16.msrb.mxu0 %v14966_v4  ;;  %v15243_v4 = vld [vmem:[#allocation2 + $0x1468] sm:$0xf0]  ;;  %v19629_v10 = vld [vmem:[#allocation2 + $0x14b4] sm:$0xf]  ;;  %v15507_v28 = vld [vmem:[#allocation2 + $0x1678] sm:$0xf0] }
 0x450   :  { %11431 = vmatpush.bf16.msrb.mxu1 %v15030_v32  ;;  %v19635_v32 = vld [vmem:[#allocation2 + $0x14e4] sm:$0xf]  ;;  %v15246_v8 = vor.u32 %v19619_v11, %v15243_v4  ;;  %v19645_v39 = vld [vmem:[#allocation2 + $0x1534] sm:$0xf]  ;;  %v15275_v4 = vld [vmem:[#allocation2 + $0x14a8] sm:$0xf0] }
 0x451   :  { %11444 = vmatpush.bf16.msrb.mxu2 %v15094_v13  ;;  %v15446_v13 = vor.u32 %v19669_v0, %v15443_v45  ;;  %v15310_v56 = vor.u32 %v19635_v32, %v15307_v5  ;;  %v15222_v0 = vor.u32 %v19613_v12, %v15219_v61  ;;  %v15350_v45 = vor.u32 %v19645_v39, %v15347_v62  ;;  %v19643_v32 = vld [vmem:[#allocation2 + $0x1524] sm:$0xf]  ;;  %v19685_v40 = vld [vmem:[#allocation2 + $0x1674] sm:$0xf]  ;;  %v15635_v12 = vld [vmem:[#allocation2 + $0x1778] sm:$0xf0] }
 0x452   :  { %11457 = vmatpush.bf16.msrb.mxu3 %v15158_v9  ;;  %v19667_v9 = vld [vmem:[#allocation2 + $0x15e4] sm:$0xf]  ;;  %v15262_v61 = vor.u32 %v19623_v41, %v15259_v46  ;;  %v15510_v39 = vor.u32 %v19685_v40, %v15507_v28  ;;  %v19677_v40 = vld [vmem:[#allocation2 + $0x1634] sm:$0xf]  ;;  %v15475_v28 = vld [vmem:[#allocation2 + $0x1638] sm:$0xf0] }
 0x453   :  { %11419 = vmatpush.bf16.msrb.mxu0 %v14958_v25  ;;  %v15438_v22 = vor.u32 %v19667_v9, %v15435_v15  ;;  %v15299_v25 = vld [vmem:[#allocation2 + $0x14d8] sm:$0xf0]  ;;  %v15403_v9 = vld [vmem:[#allocation2 + $0x15a8] sm:$0xf0]  ;;  %v19727_v46 = vld [vmem:[#allocation2 + $0x17c4] sm:$0xf] }
 0x454   :  { %11432 = vmatpush.bf16.msrb.mxu1 %v15022_v54  ;;  %v15363_v54 = vld [vmem:[#allocation2 + $0x1558] sm:$0xf0]  ;;  %v15302_v33 = vor.u32 %v19633_v35, %v15299_v25  ;;  %v19609_v35 = vld [vmem:[#allocation2 + $0x1414] sm:$0xf]  ;;  %v15406_v25 = vor.u32 %v19659_v52, %v15403_v9  ;;  %v21558_v9 = vld [vmem:[#allocation30_spill] sm:$0xff] }
 0x455   :  { %11445 = vmatpush.bf16.msrb.mxu2 %v15086_v26  ;;  %v21555_v26 = vld [vmem:[#allocation27_spill] sm:$0xff]  ;;  %v15366_v53 = vor.u32 %v19649_v24, %v15363_v54  ;;  %v15267_v24 = vld [vmem:[#allocation2 + $0x1498] sm:$0xf0]  ;;  %v19641_v54 = vld [vmem:[#allocation2 + $0x1514] sm:$0xf] }
 0x456   :  { %11458 = vmatpush.bf16.msrb.mxu3 %v15150_v43  ;;  %v21557_v43 = vld [vmem:[#allocation29_spill] sm:$0xff]  ;;  %v19697_v52 = vld [vmem:[#allocation2 + $0x16d4] sm:$0xf] }
 0x457   :  { %11420 = vmatpush.bf16.msrb.mxu0 %v14950_v34  ;;  %v19631_v34 = vld [vmem:[#allocation2 + $0x14c4] sm:$0xf] }
 0x458   :  { %11433 = vmatpush.bf16.msrb.mxu1 %v15014_v38  ;;  %v19647_v38 = vld [vmem:[#allocation2 + $0x1544] sm:$0xf]  ;;  %v15294_v29 = vor.u32 %v19631_v34, %v15291_v37  ;;  %v15323_v37 = vld [vmem:[#allocation2 + $0x1508] sm:$0xf0] }
 0x459   :  { %11446 = vmatpush.bf16.msrb.mxu2 %v15078_v21  ;;  %v15355_v21 = vld [vmem:[#allocation2 + $0x1548] sm:$0xf0]  ;;  %v19639_v34 = vld [vmem:[#allocation2 + $0x1504] sm:$0xf] }
 0x45a   :  { %11459 = vmatpush.bf16.msrb.mxu3 %v15142_v20  ;;  %v15358_v19 = vor.u32 %v19647_v38, %v15355_v21  ;;  %v19655_v38 = vld [vmem:[#allocation2 + $0x1584] sm:$0xf]  ;;  %v15387_v21 = vld [vmem:[#allocation2 + $0x1588] sm:$0xf0] }
 0x45b   :  { %11421 = vmatpush.bf16.msrb.mxu0 %v14942_v36  ;;  %v11215_v59 = vpop.f32.mrf.mxu0 }
 0x45c   :  { %11434 = vmatpush.bf16.msrb.mxu1 %v15006_v2  ;;  %v11216_v20 = vadd.f32 %v11215_v59, %v21287_v23  ;;  %v11228_v55 = vpop.f32.mrf.mxu1  ;;  %v19661_v2 = vld [vmem:[#allocation2 + $0x15b4] sm:$0xf]  ;;  %v15286_v23 = vor.u32 %v19629_v10, %v15283_v58  ;;  %v15326_v10 = vor.u32 %v19639_v34, %v15323_v37  ;;  %v15390_v58 = vor.u32 %v19655_v38, %v15387_v21  ;;  %v15675_v34 = vld [vmem:[#allocation2 + $0x17c8] sm:$0xf0] }
 0x45d   :  { %11447 = vmatpush.bf16.msrb.mxu2 %v15070_v63  ;;  %v15411_v63 = vld [vmem:[#allocation2 + $0x15b8] sm:$0xf0] }
 0x45e   :  { %11460 = vmatpush.bf16.msrb.mxu3 %v15134_v3  ;;  %11422 = vmatmul.bf16.vlgmr.msrb.gmra.mxu0 %v21554_v50  ;;  %v11229_v36 = vadd.f32 %v11228_v55, %v11216_v20  ;;  %v19611_v3 = vld [vmem:[#allocation2 + $0x1424] sm:$0xf]  ;;  %v15203_v50 = vld [vmem:[#allocation2 + $0x1418] sm:$0xf0]  ;;  %v19701_v20 = vld [vmem:[#allocation2 + $0x16f4] sm:$0xf] }
 0x45f   :  { %11466 = vmatpush.bf16.msra.mxu0 %v15254_v60  ;;  %11435 = vmatmul.bf16.vlgmr.msrb.gmra.mxu1 %v21556_v27  ;;  %v15211_v60 = vld [vmem:[#allocation2 + $0x1428] sm:$0xf0]  ;;  %v19657_v27 = vld [vmem:[#allocation2 + $0x1594] sm:$0xf]  ;;  %v15206_v47 = vor.u32 %v19609_v35, %v15203_v50 }
 0x460   :  { %11479 = vmatpush.bf16.msra.mxu1 %v15318_v6  ;;  %11448 = vmatmul.bf16.vlgmr.msrb.gmra.mxu2 %v21555_v26  ;;  %v19627_v6 = vld [vmem:[#allocation2 + $0x14a4] sm:$0xf]  ;;  %v15331_v26 = vld [vmem:[#allocation2 + $0x1518] sm:$0xf0]  ;;  %v21560_v35 = vld [vmem:[#allocation32_spill] sm:$0xff] }
 0x461   :  { %11492 = vmatpush.bf16.msra.mxu2 %v15382_v14  ;;  %11461 = vmatmul.bf16.vlgmr.msrb.gmra.mxu3 %v21557_v43  ;;  %v15414_v14 = vor.u32 %v19661_v2, %v15411_v63  ;;  %v15278_v49 = vor.u32 %v19627_v6, %v15275_v4  ;;  %v19607_v43 = vld [vmem:[#allocation2 + $0x1404] sm:$0xf]  ;;  %v15627_v6 = vld [vmem:[#allocation2 + $0x1768] sm:$0xf0]  ;;  %v19729_v50 = vld [vmem:[#allocation2 + $0x17d4] sm:$0xf] }
 0x462   :  { %11505 = vmatpush.bf16.msra.mxu3 %v15446_v13  ;;  %v15339_v13 = vld [vmem:[#allocation2 + $0x1528] sm:$0xf0]  ;;  %v19683_v63 = vld [vmem:[#allocation2 + $0x1664] sm:$0xf] }
 0x463   :  { %11467 = vmatpush.bf16.msra.mxu0 %v15246_v8  ;;  %v11241_v11 = vpop.f32.mrf.mxu2  ;;  %v11217_v15 = vpop.f32.mrf.mxu0  ;;  %v15214_v8 = vor.u32 %v19611_v3, %v15211_v60  ;;  %v15342_v44 = vor.u32 %v19643_v32, %v15339_v13  ;;  %v15563_v3 = vld [vmem:[#allocation2 + $0x16e8] sm:$0xf0]  ;;  %v19715_v60 = vld [vmem:[#allocation2 + $0x1764] sm:$0xf] }
 0x464   :  { %11480 = vmatpush.bf16.msra.mxu1 %v15310_v56  ;;  %v11242_v5 = vadd.f32 %v11241_v11, %v11229_v36  ;;  %v11254_v30 = vpop.f32.mrf.mxu3  ;;  %v11230_v56 = vpop.f32.mrf.mxu1  ;;  %v15699_v36 = vld [vmem:[#allocation2 + $0x17f8] sm:$0xf0]  ;;  %v15691_v11 = vld [vmem:[#allocation2 + $0x17e8] sm:$0xf0]  ;;  %v15630_v13 = vor.u32 %v19715_v60, %v15627_v6  ;;  %v19723_v6 = vld [vmem:[#allocation2 + $0x17a4] sm:$0xf] }
 0x465   :  { %11493 = vmatpush.bf16.msra.mxu2 %v15374_v18  ;;  %v19713_v56 = vld [vmem:[#allocation2 + $0x1754] sm:$0xf] }
 0x466   :  { %11506 = vmatpush.bf16.msra.mxu3 %v15438_v22  ;;  %v21294_v18 = vadd.f32 %v11254_v30, %v11242_v5  ;;  %v19625_v22 = vld [vmem:[#allocation2 + $0x1494] sm:$0xf]  ;;  %v15491_v30 = vld [vmem:[#allocation2 + $0x1658] sm:$0xf0] }
 0x467   :  { %11468 = vmatpush.bf16.msra.mxu0 %v15238_v7  ;;  %v15195_v7 = vld [vmem:[#allocation2 + $0x1408] sm:$0xf0]  ;;  %v19681_v5 = vld [vmem:[#allocation2 + $0x1654] sm:$0xf] }
 0x468   :  { %11481 = vmatpush.bf16.msra.mxu1 %v15302_v33  ;;  %v15270_v33 = vor.u32 %v19625_v22, %v15267_v24  ;;  %v15198_v55 = vor.u32 %v19607_v43, %v15195_v7  ;;  %v15683_v22 = vld [vmem:[#allocation2 + $0x17d8] sm:$0xf0]  ;;  %v15494_v24 = vor.u32 %v19681_v5, %v15491_v30  ;;  %v15547_v7 = vld [vmem:[#allocation2 + $0x16c8] sm:$0xf0] }
 0x469   :  { %11494 = vmatpush.bf16.msra.mxu2 %v15366_v53  ;;  %v15334_v53 = vor.u32 %v19641_v54, %v15331_v26  ;;  %v15686_v43 = vor.u32 %v19729_v50, %v15683_v22  ;;  %v15651_v50 = vld [vmem:[#allocation2 + $0x1798] sm:$0xf0] }
 0x46a   :  { %11507 = vmatpush.bf16.msra.mxu3 %v15430_v16  ;;  %v15398_v16 = vor.u32 %v19657_v27, %v15395_v51  ;;  %v19679_v27 = vld [vmem:[#allocation2 + $0x1644] sm:$0xf]  ;;  %v15483_v51 = vld [vmem:[#allocation2 + $0x1648] sm:$0xf0] }
 0x46b   :  { %11469 = vmatpush.bf16.msra.mxu0 %v15230_v42  ;;  %v11243_v59 = vpop.f32.mrf.mxu2  ;;  %v15486_v37 = vor.u32 %v19679_v27, %v15483_v51  ;;  %v19687_v27 = vld [vmem:[#allocation2 + $0x1684] sm:$0xf]  ;;  %v15515_v51 = vld [vmem:[#allocation2 + $0x1688] sm:$0xf0] }
 0x46c   :  { %11482 = vmatpush.bf16.msra.mxu1 %v15294_v29  ;;  %v11256_v42 = vpop.f32.mrf.mxu3  ;;  %v15571_v29 = vld [vmem:[#allocation2 + $0x16f8] sm:$0xf0] }
 0x46d   :  { %11495 = vmatpush.bf16.msra.mxu2 %v15358_v19  ;;  %v19717_v19 = vld [vmem:[#allocation2 + $0x1774] sm:$0xf]  ;;  %v15574_v62 = vor.u32 %v19701_v20, %v15571_v29  ;;  %v15678_v42 = vor.u32 %v19727_v46, %v15675_v34  ;;  %v15539_v29 = vld [vmem:[#allocation2 + $0x16b8] sm:$0xf0] }
 0x46e   :  { %11508 = vmatpush.bf16.msra.mxu3 %v15422_v57  ;;  %v19733_v57 = vld [vmem:[#allocation2 + $0x17f4] sm:$0xf]  ;;  %v15638_v2 = vor.u32 %v19717_v19, %v15635_v12  ;;  %v15603_v12 = vld [vmem:[#allocation2 + $0x1738] sm:$0xf0] }
 0x46f   :  { %11470 = vmatpush.bf16.msra.mxu0 %v15222_v0  ;;  %v15499_v0 = vld [vmem:[#allocation2 + $0x1668] sm:$0xf0]  ;;  %v19693_v20 = vld [vmem:[#allocation2 + $0x16b4] sm:$0xf]  ;;  %v15763_v34 = vld [vmem:[#allocation2 + $0x1878] sm:$0xf0] }
 0x470   :  { %11483 = vmatpush.bf16.msra.mxu1 %v15286_v23  ;;  %v19699_v23 = vld [vmem:[#allocation2 + $0x16e4] sm:$0xf]  ;;  %v15502_v4 = vor.u32 %v19683_v63, %v15499_v0  ;;  %v19709_v19 = vld [vmem:[#allocation2 + $0x1734] sm:$0xf]  ;;  %v15531_v0 = vld [vmem:[#allocation2 + $0x16a8] sm:$0xf0] }
 0x471   :  { %11496 = vmatpush.bf16.msra.mxu2 %v15350_v45  ;;  %v15702_v45 = vor.u32 %v19733_v57, %v15699_v36  ;;  %v15566_v32 = vor.u32 %v19699_v23, %v15563_v3  ;;  %v15478_v57 = vor.u32 %v19677_v40, %v15475_v28  ;;  %v15606_v36 = vor.u32 %v19709_v19, %v15603_v12  ;;  %v19707_v23 = vld [vmem:[#allocation2 + $0x1724] sm:$0xf]  ;;  %v19749_v46 = vld [vmem:[#allocation2 + $0x1874] sm:$0xf]  ;;  %v15891_v40 = vld [vmem:[#allocation2 + $0x1978] sm:$0xf0] }
 0x472   :  { %11509 = vmatpush.bf16.msra.mxu3 %v15414_v14  ;;  %v19731_v14 = vld [vmem:[#allocation2 + $0x17e4] sm:$0xf]  ;;  %v15518_v28 = vor.u32 %v19687_v27, %v15515_v51  ;;  %v15766_v19 = vor.u32 %v19749_v46, %v15763_v34  ;;  %v19741_v46 = vld [vmem:[#allocation2 + $0x1834] sm:$0xf]  ;;  %v15731_v34 = vld [vmem:[#allocation2 + $0x1838] sm:$0xf0] }
 0x473   :  { %11471 = vmatpush.bf16.msra.mxu0 %v15214_v8  ;;  %v15694_v15 = vor.u32 %v19731_v14, %v15691_v11  ;;  %v15555_v8 = vld [vmem:[#allocation2 + $0x16d8] sm:$0xf0]  ;;  %v15659_v14 = vld [vmem:[#allocation2 + $0x17a8] sm:$0xf0]  ;;  %v19791_v51 = vld [vmem:[#allocation2 + $0x19c4] sm:$0xf] }
 0x474   :  { %11484 = vmatpush.bf16.msra.mxu1 %v15278_v49  ;;  %v15619_v49 = vld [vmem:[#allocation2 + $0x1758] sm:$0xf0]  ;;  %v15558_v54 = vor.u32 %v19697_v52, %v15555_v8  ;;  %v19673_v52 = vld [vmem:[#allocation2 + $0x1614] sm:$0xf]  ;;  %v15662_v8 = vor.u32 %v19723_v6, %v15659_v14  ;;  %v21562_v14 = vld [vmem:[#allocation34_spill] sm:$0xff] }
 0x475   :  { %11497 = vmatpush.bf16.msra.mxu2 %v15342_v44  ;;  %v21559_v44 = vld [vmem:[#allocation31_spill] sm:$0xff]  ;;  %v15622_v26 = vor.u32 %v19713_v56, %v15619_v49  ;;  %v15523_v56 = vld [vmem:[#allocation2 + $0x1698] sm:$0xf0]  ;;  %v19705_v49 = vld [vmem:[#allocation2 + $0x1714] sm:$0xf] }
 0x476   :  { %11510 = vmatpush.bf16.msra.mxu3 %v15406_v25  ;;  %v21561_v25 = vld [vmem:[#allocation33_spill] sm:$0xff]  ;;  %v19761_v6 = vld [vmem:[#allocation2 + $0x18d4] sm:$0xf] }
 0x477   :  { %11472 = vmatpush.bf16.msra.mxu0 %v15206_v47  ;;  %v19695_v47 = vld [vmem:[#allocation2 + $0x16c4] sm:$0xf] }
 0x478   :  { %11485 = vmatpush.bf16.msra.mxu1 %v15270_v33  ;;  %v19711_v33 = vld [vmem:[#allocation2 + $0x1744] sm:$0xf]  ;;  %v15550_v21 = vor.u32 %v19695_v47, %v15547_v7  ;;  %v15579_v7 = vld [vmem:[#allocation2 + $0x1708] sm:$0xf0] }
 0x479   :  { %11498 = vmatpush.bf16.msra.mxu2 %v15334_v53  ;;  %v15611_v53 = vld [vmem:[#allocation2 + $0x1748] sm:$0xf0]  ;;  %v19703_v47 = vld [vmem:[#allocation2 + $0x1704] sm:$0xf] }
 0x47a   :  { %11511 = vmatpush.bf16.msra.mxu3 %v15398_v16  ;;  %v15614_v59 = vor.u32 %v19711_v33, %v15611_v53  ;;  %v19719_v33 = vld [vmem:[#allocation2 + $0x1784] sm:$0xf]  ;;  %v15643_v53 = vld [vmem:[#allocation2 + $0x1788] sm:$0xf0] }
 0x47b   :  { %11473 = vmatpush.bf16.msra.mxu0 %v15198_v55  ;;  %v11267_v41 = vpop.f32.mrf.mxu0 }
 0x47c   :  { %11486 = vmatpush.bf16.msra.mxu1 %v15262_v61  ;;  %v11268_v16 = vadd.f32 %v11267_v41, %v21294_v18  ;;  %v11280_v38 = vpop.f32.mrf.mxu1  ;;  %v19725_v61 = vld [vmem:[#allocation2 + $0x17b4] sm:$0xf]  ;;  %v15542_v18 = vor.u32 %v19693_v20, %v15539_v29  ;;  %v15582_v20 = vor.u32 %v19703_v47, %v15579_v7  ;;  %v15646_v29 = vor.u32 %v19719_v33, %v15643_v53  ;;  %v15931_v47 = vld [vmem:[#allocation2 + $0x19c8] sm:$0xf0] }
 0x47d   :  { %11499 = vmatpush.bf16.msra.mxu2 %v15326_v10  ;;  %v15667_v10 = vld [vmem:[#allocation2 + $0x17b8] sm:$0xf0] }
 0x47e   :  { %11512 = vmatpush.bf16.msra.mxu3 %v15390_v58  ;;  %11474 = vmatmul.bf16.vlgmr.msra.gmra.mxu0 %v21558_v9  ;;  %v11281_v55 = vadd.f32 %v11280_v38, %v11268_v16  ;;  %v19675_v58 = vld [vmem:[#allocation2 + $0x1624] sm:$0xf]  ;;  %v15459_v9 = vld [vmem:[#allocation2 + $0x1618] sm:$0xf0]  ;;  %v19765_v16 = vld [vmem:[#allocation2 + $0x18f4] sm:$0xf] }
 0x47f   :  { %11518 = vmatpush.bf16.msrb.mxu0 %v15510_v39  ;;  %11487 = vmatmul.bf16.vlgmr.msra.gmra.mxu1 %v21560_v35  ;;  %v15467_v39 = vld [vmem:[#allocation2 + $0x1628] sm:$0xf0]  ;;  %v19721_v35 = vld [vmem:[#allocation2 + $0x1794] sm:$0xf]  ;;  %v15462_v22 = vor.u32 %v19673_v52, %v15459_v9 }
 0x480   :  { %11531 = vmatpush.bf16.msrb.mxu1 %v15574_v62  ;;  %11500 = vmatmul.bf16.vlgmr.msra.gmra.mxu2 %v21559_v44  ;;  %v19691_v62 = vld [vmem:[#allocation2 + $0x16a4] sm:$0xf]  ;;  %v15587_v44 = vld [vmem:[#allocation2 + $0x1718] sm:$0xf0]  ;;  %v21564_v52 = vld [vmem:[#allocation36_spill] sm:$0xff] }
 0x481   :  { %11544 = vmatpush.bf16.msrb.mxu2 %v15638_v2  ;;  %11513 = vmatmul.bf16.vlgmr.msra.gmra.mxu3 %v21561_v25  ;;  %v15670_v2 = vor.u32 %v19725_v61, %v15667_v10  ;;  %v15534_v5 = vor.u32 %v19691_v62, %v15531_v0  ;;  %v19671_v25 = vld [vmem:[#allocation2 + $0x1604] sm:$0xf]  ;;  %v15883_v62 = vld [vmem:[#allocation2 + $0x1968] sm:$0xf0]  ;;  %v19793_v9 = vld [vmem:[#allocation2 + $0x19d4] sm:$0xf] }
 0x482   :  { %11557 = vmatpush.bf16.msrb.mxu3 %v15702_v45  ;;  %v15595_v45 = vld [vmem:[#allocation2 + $0x1728] sm:$0xf0]  ;;  %v19747_v10 = vld [vmem:[#allocation2 + $0x1864] sm:$0xf] }
 0x483   :  { %11519 = vmatpush.bf16.msrb.mxu0 %v15502_v4  ;;  %v11293_v63 = vpop.f32.mrf.mxu2  ;;  %v11269_v11 = vpop.f32.mrf.mxu0  ;;  %v15470_v4 = vor.u32 %v19675_v58, %v15467_v39  ;;  %v15598_v30 = vor.u32 %v19707_v23, %v15595_v45  ;;  %v15819_v58 = vld [vmem:[#allocation2 + $0x18e8] sm:$0xf0]  ;;  %v19779_v39 = vld [vmem:[#allocation2 + $0x1964] sm:$0xf] }
 0x484   :  { %11532 = vmatpush.bf16.msrb.mxu1 %v15566_v32  ;;  %v11294_v3 = vadd.f32 %v11293_v63, %v11281_v55  ;;  %v11306_v60 = vpop.f32.mrf.mxu3  ;;  %v11282_v32 = vpop.f32.mrf.mxu1  ;;  %v15955_v55 = vld [vmem:[#allocation2 + $0x19f8] sm:$0xf0]  ;;  %v15947_v63 = vld [vmem:[#allocation2 + $0x19e8] sm:$0xf0]  ;;  %v15886_v45 = vor.u32 %v19779_v39, %v15883_v62  ;;  %v19787_v62 = vld [vmem:[#allocation2 + $0x19a4] sm:$0xf] }
 0x485   :  { %11545 = vmatpush.bf16.msrb.mxu2 %v15630_v13  ;;  %v19777_v32 = vld [vmem:[#allocation2 + $0x1954] sm:$0xf] }
 0x486   :  { %11558 = vmatpush.bf16.msrb.mxu3 %v15694_v15  ;;  %v21301_v13 = vadd.f32 %v11306_v60, %v11294_v3  ;;  %v19689_v15 = vld [vmem:[#allocation2 + $0x1694] sm:$0xf]  ;;  %v15747_v60 = vld [vmem:[#allocation2 + $0x1858] sm:$0xf0] }
 0x487   :  { %11520 = vmatpush.bf16.msrb.mxu0 %v15494_v24  ;;  %v15451_v24 = vld [vmem:[#allocation2 + $0x1608] sm:$0xf0]  ;;  %v19745_v3 = vld [vmem:[#allocation2 + $0x1854] sm:$0xf] }
 0x488   :  { %11533 = vmatpush.bf16.msrb.mxu1 %v15558_v54  ;;  %v15526_v54 = vor.u32 %v19689_v15, %v15523_v56  ;;  %v15454_v38 = vor.u32 %v19671_v25, %v15451_v24  ;;  %v15939_v15 = vld [vmem:[#allocation2 + $0x19d8] sm:$0xf0]  ;;  %v15750_v56 = vor.u32 %v19745_v3, %v15747_v60  ;;  %v15803_v24 = vld [vmem:[#allocation2 + $0x18c8] sm:$0xf0] }
 0x489   :  { %11546 = vmatpush.bf16.msrb.mxu2 %v15622_v26  ;;  %v15590_v26 = vor.u32 %v19705_v49, %v15587_v44  ;;  %v15942_v25 = vor.u32 %v19793_v9, %v15939_v15  ;;  %v15907_v9 = vld [vmem:[#allocation2 + $0x1998] sm:$0xf0] }
 0x48a   :  { %11559 = vmatpush.bf16.msrb.mxu3 %v15686_v43  ;;  %v15654_v43 = vor.u32 %v19721_v35, %v15651_v50  ;;  %v19743_v35 = vld [vmem:[#allocation2 + $0x1844] sm:$0xf]  ;;  %v15739_v50 = vld [vmem:[#allocation2 + $0x1848] sm:$0xf0] }
 0x48b   :  { %11521 = vmatpush.bf16.msrb.mxu0 %v15486_v37  ;;  %v11295_v41 = vpop.f32.mrf.mxu2  ;;  %v15742_v7 = vor.u32 %v19743_v35, %v15739_v50  ;;  %v19751_v35 = vld [vmem:[#allocation2 + $0x1884] sm:$0xf]  ;;  %v15771_v50 = vld [vmem:[#allocation2 + $0x1888] sm:$0xf0] }
 0x48c   :  { %11534 = vmatpush.bf16.msrb.mxu1 %v15550_v21  ;;  %v11308_v37 = vpop.f32.mrf.mxu3  ;;  %v15827_v21 = vld [vmem:[#allocation2 + $0x18f8] sm:$0xf0] }
 0x48d   :  { %11547 = vmatpush.bf16.msrb.mxu2 %v15614_v59  ;;  %v19781_v59 = vld [vmem:[#allocation2 + $0x1974] sm:$0xf]  ;;  %v15830_v12 = vor.u32 %v19765_v16, %v15827_v21  ;;  %v15934_v37 = vor.u32 %v19791_v51, %v15931_v47  ;;  %v15795_v21 = vld [vmem:[#allocation2 + $0x18b8] sm:$0xf0] }
 0x48e   :  { %11560 = vmatpush.bf16.msrb.mxu3 %v15678_v42  ;;  %v19797_v42 = vld [vmem:[#allocation2 + $0x19f4] sm:$0xf]  ;;  %v15894_v61 = vor.u32 %v19781_v59, %v15891_v40  ;;  %v15859_v40 = vld [vmem:[#allocation2 + $0x1938] sm:$0xf0] }
 0x48f   :  { %11522 = vmatpush.bf16.msrb.mxu0 %v15478_v57  ;;  %v15755_v57 = vld [vmem:[#allocation2 + $0x1868] sm:$0xf0]  ;;  %v19757_v16 = vld [vmem:[#allocation2 + $0x18b4] sm:$0xf]  ;;  %v16019_v47 = vld [vmem:[#allocation2 + $0x1a78] sm:$0xf0] }
 0x490   :  { %11535 = vmatpush.bf16.msrb.mxu1 %v15542_v18  ;;  %v19763_v18 = vld [vmem:[#allocation2 + $0x18e4] sm:$0xf]  ;;  %v15758_v0 = vor.u32 %v19747_v10, %v15755_v57  ;;  %v19773_v59 = vld [vmem:[#allocation2 + $0x1934] sm:$0xf]  ;;  %v15787_v57 = vld [vmem:[#allocation2 + $0x18a8] sm:$0xf0] }
 0x491   :  { %11548 = vmatpush.bf16.msrb.mxu2 %v15606_v36  ;;  %v15958_v36 = vor.u32 %v19797_v42, %v15955_v55  ;;  %v15822_v23 = vor.u32 %v19763_v18, %v15819_v58  ;;  %v15734_v42 = vor.u32 %v19741_v46, %v15731_v34  ;;  %v15862_v55 = vor.u32 %v19773_v59, %v15859_v40  ;;  %v19771_v18 = vld [vmem:[#allocation2 + $0x1924] sm:$0xf]  ;;  %v19813_v51 = vld [vmem:[#allocation2 + $0x1a74] sm:$0xf]  ;;  %v16147_v46 = vld [vmem:[#allocation2 + $0x1b78] sm:$0xf0] }
 0x492   :  { %11561 = vmatpush.bf16.msrb.mxu3 %v15670_v2  ;;  %v19795_v2 = vld [vmem:[#allocation2 + $0x19e4] sm:$0xf]  ;;  %v15774_v34 = vor.u32 %v19751_v35, %v15771_v50  ;;  %v16022_v59 = vor.u32 %v19813_v51, %v16019_v47  ;;  %v19805_v51 = vld [vmem:[#allocation2 + $0x1a34] sm:$0xf]  ;;  %v15987_v47 = vld [vmem:[#allocation2 + $0x1a38] sm:$0xf0] }
 0x493   :  { %11523 = vmatpush.bf16.msrb.mxu0 %v15470_v4  ;;  %v15950_v11 = vor.u32 %v19795_v2, %v15947_v63  ;;  %v15811_v4 = vld [vmem:[#allocation2 + $0x18d8] sm:$0xf0]  ;;  %v15915_v2 = vld [vmem:[#allocation2 + $0x19a8] sm:$0xf0]  ;;  %v19855_v50 = vld [vmem:[#allocation2 + $0x1bc4] sm:$0xf] }
 0x494   :  { %11536 = vmatpush.bf16.msrb.mxu1 %v15534_v5  ;;  %v15875_v5 = vld [vmem:[#allocation2 + $0x1958] sm:$0xf0]  ;;  %v15814_v49 = vor.u32 %v19761_v6, %v15811_v4  ;;  %v19737_v6 = vld [vmem:[#allocation2 + $0x1814] sm:$0xf]  ;;  %v15918_v4 = vor.u32 %v19787_v62, %v15915_v2  ;;  %v21566_v2 = vld [vmem:[#allocation38_spill] sm:$0xff] }
 0x495   :  { %11549 = vmatpush.bf16.msrb.mxu2 %v15598_v30  ;;  %v21563_v30 = vld [vmem:[#allocation35_spill] sm:$0xff]  ;;  %v15878_v44 = vor.u32 %v19777_v32, %v15875_v5  ;;  %v15779_v32 = vld [vmem:[#allocation2 + $0x1898] sm:$0xf0]  ;;  %v19769_v5 = vld [vmem:[#allocation2 + $0x1914] sm:$0xf] }
 0x496   :  { %11562 = vmatpush.bf16.msrb.mxu3 %v15662_v8  ;;  %v21565_v8 = vld [vmem:[#allocation37_spill] sm:$0xff]  ;;  %v19825_v62 = vld [vmem:[#allocation2 + $0x1ad4] sm:$0xf] }
 0x497   :  { %11524 = vmatpush.bf16.msrb.mxu0 %v15462_v22  ;;  %v19759_v22 = vld [vmem:[#allocation2 + $0x18c4] sm:$0xf] }
 0x498   :  { %11537 = vmatpush.bf16.msrb.mxu1 %v15526_v54  ;;  %v19775_v54 = vld [vmem:[#allocation2 + $0x1944] sm:$0xf]  ;;  %v15806_v53 = vor.u32 %v19759_v22, %v15803_v24  ;;  %v15835_v24 = vld [vmem:[#allocation2 + $0x1908] sm:$0xf0] }
 0x499   :  { %11550 = vmatpush.bf16.msrb.mxu2 %v15590_v26  ;;  %v15867_v26 = vld [vmem:[#allocation2 + $0x1948] sm:$0xf0]  ;;  %v19767_v22 = vld [vmem:[#allocation2 + $0x1904] sm:$0xf] }
 0x49a   :  { %11563 = vmatpush.bf16.msrb.mxu3 %v15654_v43  ;;  %v15870_v41 = vor.u32 %v19775_v54, %v15867_v26  ;;  %v19783_v54 = vld [vmem:[#allocation2 + $0x1984] sm:$0xf]  ;;  %v15899_v26 = vld [vmem:[#allocation2 + $0x1988] sm:$0xf0] }
 0x49b   :  { %11525 = vmatpush.bf16.msrb.mxu0 %v15454_v38  ;;  %v11319_v27 = vpop.f32.mrf.mxu0 }
 0x49c   :  { %11538 = vmatpush.bf16.msrb.mxu1 %v15518_v28  ;;  %v11320_v43 = vadd.f32 %v11319_v27, %v21301_v13  ;;  %v11332_v33 = vpop.f32.mrf.mxu1  ;;  %v19789_v28 = vld [vmem:[#allocation2 + $0x19b4] sm:$0xf]  ;;  %v15798_v13 = vor.u32 %v19757_v16, %v15795_v21  ;;  %v15838_v16 = vor.u32 %v19767_v22, %v15835_v24  ;;  %v15902_v21 = vor.u32 %v19783_v54, %v15899_v26  ;;  %v16187_v22 = vld [vmem:[#allocation2 + $0x1bc8] sm:$0xf0] }
 0x49d   :  { %11551 = vmatpush.bf16.msrb.mxu2 %v15582_v20  ;;  %v15923_v20 = vld [vmem:[#allocation2 + $0x19b8] sm:$0xf0] }
 0x49e   :  { %11564 = vmatpush.bf16.msrb.mxu3 %v15646_v29  ;;  %11526 = vmatmul.bf16.vlgmr.msrb.gmra.mxu0 %v21562_v14  ;;  %v11333_v38 = vadd.f32 %v11332_v33, %v11320_v43  ;;  %v19739_v29 = vld [vmem:[#allocation2 + $0x1824] sm:$0xf]  ;;  %v15715_v14 = vld [vmem:[#allocation2 + $0x1818] sm:$0xf0]  ;;  %v19829_v43 = vld [vmem:[#allocation2 + $0x1af4] sm:$0xf] }
 0x49f   :  { %11570 = vmatpush.bf16.msra.mxu0 %v15766_v19  ;;  %11539 = vmatmul.bf16.vlgmr.msrb.gmra.mxu1 %v21564_v52  ;;  %v15723_v19 = vld [vmem:[#allocation2 + $0x1828] sm:$0xf0]  ;;  %v19785_v52 = vld [vmem:[#allocation2 + $0x1994] sm:$0xf]  ;;  %v15718_v15 = vor.u32 %v19737_v6, %v15715_v14 }
 0x4a0   :  { %11583 = vmatpush.bf16.msra.mxu1 %v15830_v12  ;;  %11552 = vmatmul.bf16.vlgmr.msrb.gmra.mxu2 %v21563_v30  ;;  %v19755_v12 = vld [vmem:[#allocation2 + $0x18a4] sm:$0xf]  ;;  %v15843_v30 = vld [vmem:[#allocation2 + $0x1918] sm:$0xf0]  ;;  %v21568_v6 = vld [vmem:[#allocation40_spill] sm:$0xff] }
 0x4a1   :  { %11596 = vmatpush.bf16.msra.mxu2 %v15894_v61  ;;  %11565 = vmatmul.bf16.vlgmr.msrb.gmra.mxu3 %v21565_v8  ;;  %v15926_v61 = vor.u32 %v19789_v28, %v15923_v20  ;;  %v15790_v3 = vor.u32 %v19755_v12, %v15787_v57  ;;  %v19735_v8 = vld [vmem:[#allocation2 + $0x1804] sm:$0xf]  ;;  %v16139_v12 = vld [vmem:[#allocation2 + $0x1b68] sm:$0xf0]  ;;  %v19857_v14 = vld [vmem:[#allocation2 + $0x1bd4] sm:$0xf] }
 0x4a2   :  { %11609 = vmatpush.bf16.msra.mxu3 %v15958_v36  ;;  %v15851_v36 = vld [vmem:[#allocation2 + $0x1928] sm:$0xf0]  ;;  %v19811_v20 = vld [vmem:[#allocation2 + $0x1a64] sm:$0xf] }
 0x4a3   :  { %11571 = vmatpush.bf16.msra.mxu0 %v15758_v0  ;;  %v11345_v10 = vpop.f32.mrf.mxu2  ;;  %v11321_v63 = vpop.f32.mrf.mxu0  ;;  %v15726_v0 = vor.u32 %v19739_v29, %v15723_v19  ;;  %v15854_v60 = vor.u32 %v19771_v18, %v15851_v36  ;;  %v16075_v29 = vld [vmem:[#allocation2 + $0x1ae8] sm:$0xf0]  ;;  %v19843_v19 = vld [vmem:[#allocation2 + $0x1b64] sm:$0xf] }
 0x4a4   :  { %11584 = vmatpush.bf16.msra.mxu1 %v15822_v23  ;;  %v11346_v58 = vadd.f32 %v11345_v10, %v11333_v38  ;;  %v11358_v39 = vpop.f32.mrf.mxu3  ;;  %v11334_v23 = vpop.f32.mrf.mxu1  ;;  %v16211_v38 = vld [vmem:[#allocation2 + $0x1bf8] sm:$0xf0]  ;;  %v16203_v10 = vld [vmem:[#allocation2 + $0x1be8] sm:$0xf0]  ;;  %v16142_v36 = vor.u32 %v19843_v19, %v16139_v12  ;;  %v19851_v12 = vld [vmem:[#allocation2 + $0x1ba4] sm:$0xf] }
 0x4a5   :  { %11597 = vmatpush.bf16.msra.mxu2 %v15886_v45  ;;  %v19841_v23 = vld [vmem:[#allocation2 + $0x1b54] sm:$0xf] }
 0x4a6   :  { %11610 = vmatpush.bf16.msra.mxu3 %v15950_v11  ;;  %v21308_v45 = vadd.f32 %v11358_v39, %v11346_v58  ;;  %v19753_v11 = vld [vmem:[#allocation2 + $0x1894] sm:$0xf]  ;;  %v16003_v39 = vld [vmem:[#allocation2 + $0x1a58] sm:$0xf0] }
 0x4a7   :  { %11572 = vmatpush.bf16.msra.mxu0 %v15750_v56  ;;  %v15707_v56 = vld [vmem:[#allocation2 + $0x1808] sm:$0xf0]  ;;  %v19809_v58 = vld [vmem:[#allocation2 + $0x1a54] sm:$0xf] }
 0x4a8   :  { %11585 = vmatpush.bf16.msra.mxu1 %v15814_v49  ;;  %v15782_v49 = vor.u32 %v19753_v11, %v15779_v32  ;;  %v15710_v33 = vor.u32 %v19735_v8, %v15707_v56  ;;  %v16195_v11 = vld [vmem:[#allocation2 + $0x1bd8] sm:$0xf0]  ;;  %v16006_v32 = vor.u32 %v19809_v58, %v16003_v39  ;;  %v16059_v56 = vld [vmem:[#allocation2 + $0x1ac8] sm:$0xf0] }
 0x4a9   :  { %11598 = vmatpush.bf16.msra.mxu2 %v15878_v44  ;;  %v15846_v44 = vor.u32 %v19769_v5, %v15843_v30  ;;  %v16198_v8 = vor.u32 %v19857_v14, %v16195_v11  ;;  %v16163_v14 = vld [vmem:[#allocation2 + $0x1b98] sm:$0xf0] }
 0x4aa   :  { %11611 = vmatpush.bf16.msra.mxu3 %v15942_v25  ;;  %v15910_v25 = vor.u32 %v19785_v52, %v15907_v9  ;;  %v19807_v52 = vld [vmem:[#allocation2 + $0x1a44] sm:$0xf]  ;;  %v15995_v9 = vld [vmem:[#allocation2 + $0x1a48] sm:$0xf0] }
 0x4ab   :  { %11573 = vmatpush.bf16.msra.mxu0 %v15742_v7  ;;  %v11347_v27 = vpop.f32.mrf.mxu2  ;;  %v15998_v24 = vor.u32 %v19807_v52, %v15995_v9  ;;  %v19815_v52 = vld [vmem:[#allocation2 + $0x1a84] sm:$0xf]  ;;  %v16027_v9 = vld [vmem:[#allocation2 + $0x1a88] sm:$0xf0] }
 0x4ac   :  { %11586 = vmatpush.bf16.msra.mxu1 %v15806_v53  ;;  %v11360_v7 = vpop.f32.mrf.mxu3  ;;  %v16083_v53 = vld [vmem:[#allocation2 + $0x1af8] sm:$0xf0] }
 0x4ad   :  { %11599 = vmatpush.bf16.msra.mxu2 %v15870_v41  ;;  %v19845_v41 = vld [vmem:[#allocation2 + $0x1b74] sm:$0xf]  ;;  %v16086_v40 = vor.u32 %v19829_v43, %v16083_v53  ;;  %v16190_v7 = vor.u32 %v19855_v50, %v16187_v22  ;;  %v16051_v53 = vld [vmem:[#allocation2 + $0x1ab8] sm:$0xf0] }
 0x4ae   :  { %11612 = vmatpush.bf16.msra.mxu3 %v15934_v37  ;;  %v19861_v37 = vld [vmem:[#allocation2 + $0x1bf4] sm:$0xf]  ;;  %v16150_v28 = vor.u32 %v19845_v41, %v16147_v46  ;;  %v16115_v46 = vld [vmem:[#allocation2 + $0x1b38] sm:$0xf0] }
 0x4af   :  { %11574 = vmatpush.bf16.msra.mxu0 %v15734_v42  ;;  %v16011_v42 = vld [vmem:[#allocation2 + $0x1a68] sm:$0xf0]  ;;  %v19821_v43 = vld [vmem:[#allocation2 + $0x1ab4] sm:$0xf]  ;;  %v16275_v22 = vld [vmem:[#allocation2 + $0x1c78] sm:$0xf0] }
 0x4b0   :  { %11587 = vmatpush.bf16.msra.mxu1 %v15798_v13  ;;  %v19827_v13 = vld [vmem:[#allocation2 + $0x1ae4] sm:$0xf]  ;;  %v16014_v57 = vor.u32 %v19811_v20, %v16011_v42  ;;  %v19837_v41 = vld [vmem:[#allocation2 + $0x1b34] sm:$0xf]  ;;  %v16043_v42 = vld [vmem:[#allocation2 + $0x1aa8] sm:$0xf0] }
 0x4b1   :  { %11600 = vmatpush.bf16.msra.mxu2 %v15862_v55  ;;  %v16214_v55 = vor.u32 %v19861_v37, %v16211_v38  ;;  %v16078_v18 = vor.u32 %v19827_v13, %v16075_v29  ;;  %v15990_v37 = vor.u32 %v19805_v51, %v15987_v47  ;;  %v16118_v38 = vor.u32 %v19837_v41, %v16115_v46  ;;  %v19835_v13 = vld [vmem:[#allocation2 + $0x1b24] sm:$0xf]  ;;  %v19877_v50 = vld [vmem:[#allocation2 + $0x1c74] sm:$0xf]  ;;  %v16403_v51 = vld [vmem:[#allocation2 + $0x1d78] sm:$0xf0] }
 0x4b2   :  { %11613 = vmatpush.bf16.msra.mxu3 %v15926_v61  ;;  %v19859_v61 = vld [vmem:[#allocation2 + $0x1be4] sm:$0xf]  ;;  %v16030_v47 = vor.u32 %v19815_v52, %v16027_v9  ;;  %v16278_v41 = vor.u32 %v19877_v50, %v16275_v22  ;;  %v19869_v50 = vld [vmem:[#allocation2 + $0x1c34] sm:$0xf]  ;;  %v16243_v22 = vld [vmem:[#allocation2 + $0x1c38] sm:$0xf0] }
 0x4b3   :  { %11575 = vmatpush.bf16.msra.mxu0 %v15726_v0  ;;  %v16206_v63 = vor.u32 %v19859_v61, %v16203_v10  ;;  %v16067_v0 = vld [vmem:[#allocation2 + $0x1ad8] sm:$0xf0]  ;;  %v16171_v61 = vld [vmem:[#allocation2 + $0x1ba8] sm:$0xf0]  ;;  %v19919_v9 = vld [vmem:[#allocation2 + $0x1dc4] sm:$0xf] }
 0x4b4   :  { %11588 = vmatpush.bf16.msra.mxu1 %v15790_v3  ;;  %v16131_v3 = vld [vmem:[#allocation2 + $0x1b58] sm:$0xf0]  ;;  %v16070_v5 = vor.u32 %v19825_v62, %v16067_v0  ;;  %v19801_v62 = vld [vmem:[#allocation2 + $0x1a14] sm:$0xf]  ;;  %v16174_v0 = vor.u32 %v19851_v12, %v16171_v61  ;;  %v21570_v61 = vld [vmem:[#allocation42_spill] sm:$0xff] }
 0x4b5   :  { %11601 = vmatpush.bf16.msra.mxu2 %v15854_v60  ;;  %v21567_v60 = vld [vmem:[#allocation39_spill] sm:$0xff]  ;;  %v16134_v30 = vor.u32 %v19841_v23, %v16131_v3  ;;  %v16035_v23 = vld [vmem:[#allocation2 + $0x1a98] sm:$0xf0]  ;;  %v19833_v3 = vld [vmem:[#allocation2 + $0x1b14] sm:$0xf] }
 0x4b6   :  { %11614 = vmatpush.bf16.msra.mxu3 %v15918_v4  ;;  %v21569_v4 = vld [vmem:[#allocation41_spill] sm:$0xff]  ;;  %v19889_v12 = vld [vmem:[#allocation2 + $0x1cd4] sm:$0xf] }
 0x4b7   :  { %11576 = vmatpush.bf16.msra.mxu0 %v15718_v15  ;;  %v19823_v15 = vld [vmem:[#allocation2 + $0x1ac4] sm:$0xf] }
 0x4b8   :  { %11589 = vmatpush.bf16.msra.mxu1 %v15782_v49  ;;  %v19839_v49 = vld [vmem:[#allocation2 + $0x1b44] sm:$0xf]  ;;  %v16062_v26 = vor.u32 %v19823_v15, %v16059_v56  ;;  %v16091_v56 = vld [vmem:[#allocation2 + $0x1b08] sm:$0xf0] }
 0x4b9   :  { %11602 = vmatpush.bf16.msra.mxu2 %v15846_v44  ;;  %v16123_v44 = vld [vmem:[#allocation2 + $0x1b48] sm:$0xf0]  ;;  %v19831_v15 = vld [vmem:[#allocation2 + $0x1b04] sm:$0xf] }
 0x4ba   :  { %11615 = vmatpush.bf16.msra.mxu3 %v15910_v25  ;;  %v16126_v27 = vor.u32 %v19839_v49, %v16123_v44  ;;  %v19847_v49 = vld [vmem:[#allocation2 + $0x1b84] sm:$0xf]  ;;  %v16155_v44 = vld [vmem:[#allocation2 + $0x1b88] sm:$0xf0] }
 0x4bb   :  { %11577 = vmatpush.bf16.msra.mxu0 %v15710_v33  ;;  %v11371_v35 = vpop.f32.mrf.mxu0 }
 0x4bc   :  { %11590 = vmatpush.bf16.msra.mxu1 %v15774_v34  ;;  %v11372_v25 = vadd.f32 %v11371_v35, %v21308_v45  ;;  %v11384_v54 = vpop.f32.mrf.mxu1  ;;  %v19853_v34 = vld [vmem:[#allocation2 + $0x1bb4] sm:$0xf]  ;;  %v16054_v45 = vor.u32 %v19821_v43, %v16051_v53  ;;  %v16094_v43 = vor.u32 %v19831_v15, %v16091_v56  ;;  %v16158_v53 = vor.u32 %v19847_v49, %v16155_v44  ;;  %v16443_v15 = vld [vmem:[#allocation2 + $0x1dc8] sm:$0xf0] }
 0x4bd   :  { %11603 = vmatpush.bf16.msra.mxu2 %v15838_v16  ;;  %v16179_v16 = vld [vmem:[#allocation2 + $0x1bb8] sm:$0xf0] }
 0x4be   :  { %11616 = vmatpush.bf16.msra.mxu3 %v15902_v21  ;;  %11578 = vmatmul.bf16.vlgmr.msra.gmra.mxu0 %v21566_v2  ;;  %v11385_v33 = vadd.f32 %v11384_v54, %v11372_v25  ;;  %v19803_v21 = vld [vmem:[#allocation2 + $0x1a24] sm:$0xf]  ;;  %v15971_v2 = vld [vmem:[#allocation2 + $0x1a18] sm:$0xf0]  ;;  %v19893_v25 = vld [vmem:[#allocation2 + $0x1cf4] sm:$0xf] }
 0x4bf   :  { %11622 = vmatpush.bf16.msrb.mxu0 %v16022_v59  ;;  %11591 = vmatmul.bf16.vlgmr.msra.gmra.mxu1 %v21568_v6  ;;  %v15979_v59 = vld [vmem:[#allocation2 + $0x1a28] sm:$0xf0]  ;;  %v19849_v6 = vld [vmem:[#allocation2 + $0x1b94] sm:$0xf]  ;;  %v15974_v11 = vor.u32 %v19801_v62, %v15971_v2 }
 0x4c0   :  { %11635 = vmatpush.bf16.msrb.mxu1 %v16086_v40  ;;  %11604 = vmatmul.bf16.vlgmr.msra.gmra.mxu2 %v21567_v60  ;;  %v19819_v40 = vld [vmem:[#allocation2 + $0x1aa4] sm:$0xf]  ;;  %v16099_v60 = vld [vmem:[#allocation2 + $0x1b18] sm:$0xf0]  ;;  %v21572_v62 = vld [vmem:[#allocation44_spill] sm:$0xff] }
 0x4c1   :  { %11648 = vmatpush.bf16.msrb.mxu2 %v16150_v28  ;;  %11617 = vmatmul.bf16.vlgmr.msra.gmra.mxu3 %v21569_v4  ;;  %v16182_v28 = vor.u32 %v19853_v34, %v16179_v16  ;;  %v16046_v58 = vor.u32 %v19819_v40, %v16043_v42  ;;  %v19799_v4 = vld [vmem:[#allocation2 + $0x1a04] sm:$0xf]  ;;  %v16395_v40 = vld [vmem:[#allocation2 + $0x1d68] sm:$0xf0]  ;;  %v19921_v2 = vld [vmem:[#allocation2 + $0x1dd4] sm:$0xf] }
 0x4c2   :  { %11661 = vmatpush.bf16.msrb.mxu3 %v16214_v55  ;;  %v16107_v55 = vld [vmem:[#allocation2 + $0x1b28] sm:$0xf0]  ;;  %v19875_v16 = vld [vmem:[#allocation2 + $0x1c64] sm:$0xf] }
 0x4c3   :  { %11623 = vmatpush.bf16.msrb.mxu0 %v16014_v57  ;;  %v11397_v20 = vpop.f32.mrf.mxu2  ;;  %v11373_v10 = vpop.f32.mrf.mxu0  ;;  %v15982_v57 = vor.u32 %v19803_v21, %v15979_v59  ;;  %v16110_v39 = vor.u32 %v19835_v13, %v16107_v55  ;;  %v16331_v21 = vld [vmem:[#allocation2 + $0x1ce8] sm:$0xf0]  ;;  %v19907_v59 = vld [vmem:[#allocation2 + $0x1d64] sm:$0xf] }
 0x4c4   :  { %11636 = vmatpush.bf16.msrb.mxu1 %v16078_v18  ;;  %v11398_v29 = vadd.f32 %v11397_v20, %v11385_v33  ;;  %v11410_v19 = vpop.f32.mrf.mxu3  ;;  %v11386_v18 = vpop.f32.mrf.mxu1  ;;  %v16467_v33 = vld [vmem:[#allocation2 + $0x1df8] sm:$0xf0]  ;;  %v16459_v20 = vld [vmem:[#allocation2 + $0x1de8] sm:$0xf0]  ;;  %v16398_v55 = vor.u32 %v19907_v59, %v16395_v40  ;;  %v19915_v40 = vld [vmem:[#allocation2 + $0x1da4] sm:$0xf] }
 0x4c5   :  { %11649 = vmatpush.bf16.msrb.mxu2 %v16142_v36  ;;  %v19905_v18 = vld [vmem:[#allocation2 + $0x1d54] sm:$0xf] }
 0x4c6   :  { %11662 = vmatpush.bf16.msrb.mxu3 %v16206_v63  ;;  %v21315_v36 = vadd.f32 %v11410_v19, %v11398_v29  ;;  %v19817_v63 = vld [vmem:[#allocation2 + $0x1a94] sm:$0xf]  ;;  %v16259_v19 = vld [vmem:[#allocation2 + $0x1c58] sm:$0xf0] }
 0x4c7   :  { %11624 = vmatpush.bf16.msrb.mxu0 %v16006_v32  ;;  %v15963_v32 = vld [vmem:[#allocation2 + $0x1a08] sm:$0xf0]  ;;  %v19873_v29 = vld [vmem:[#allocation2 + $0x1c54] sm:$0xf] }
 0x4c8   :  { %11637 = vmatpush.bf16.msrb.mxu1 %v16070_v5  ;;  %v16038_v5 = vor.u32 %v19817_v63, %v16035_v23  ;;  %v15966_v54 = vor.u32 %v19799_v4, %v15963_v32  ;;  %v16451_v63 = vld [vmem:[#allocation2 + $0x1dd8] sm:$0xf0]  ;;  %v16262_v23 = vor.u32 %v19873_v29, %v16259_v19  ;;  %v16315_v32 = vld [vmem:[#allocation2 + $0x1cc8] sm:$0xf0] }
 0x4c9   :  { %11650 = vmatpush.bf16.msrb.mxu2 %v16134_v30  ;;  %v16102_v30 = vor.u32 %v19833_v3, %v16099_v60  ;;  %v16454_v4 = vor.u32 %v19921_v2, %v16451_v63  ;;  %v16419_v2 = vld [vmem:[#allocation2 + $0x1d98] sm:$0xf0] }
 0x4ca   :  { %11663 = vmatpush.bf16.msrb.mxu3 %v16198_v8  ;;  %v16166_v8 = vor.u32 %v19849_v6, %v16163_v14  ;;  %v19871_v6 = vld [vmem:[#allocation2 + $0x1c44] sm:$0xf]  ;;  %v16251_v14 = vld [vmem:[#allocation2 + $0x1c48] sm:$0xf0] }
 0x4cb   :  { %11625 = vmatpush.bf16.msrb.mxu0 %v15998_v24  ;;  %v11399_v35 = vpop.f32.mrf.mxu2  ;;  %v16254_v56 = vor.u32 %v19871_v6, %v16251_v14  ;;  %v19879_v6 = vld [vmem:[#allocation2 + $0x1c84] sm:$0xf]  ;;  %v16283_v14 = vld [vmem:[#allocation2 + $0x1c88] sm:$0xf0] }
 0x4cc   :  { %11638 = vmatpush.bf16.msrb.mxu1 %v16062_v26  ;;  %v11412_v24 = vpop.f32.mrf.mxu3  ;;  %v16339_v26 = vld [vmem:[#allocation2 + $0x1cf8] sm:$0xf0] }
 0x4cd   :  { %11651 = vmatpush.bf16.msrb.mxu2 %v16126_v27  ;;  %v19909_v27 = vld [vmem:[#allocation2 + $0x1d74] sm:$0xf]  ;;  %v16342_v46 = vor.u32 %v19893_v25, %v16339_v26  ;;  %v16446_v24 = vor.u32 %v19919_v9, %v16443_v15  ;;  %v16307_v26 = vld [vmem:[#allocation2 + $0x1cb8] sm:$0xf0] }
 0x4ce   :  { %11664 = vmatpush.bf16.msrb.mxu3 %v16190_v7  ;;  %v19925_v7 = vld [vmem:[#allocation2 + $0x1df4] sm:$0xf]  ;;  %v16406_v34 = vor.u32 %v19909_v27, %v16403_v51  ;;  %v16371_v51 = vld [vmem:[#allocation2 + $0x1d38] sm:$0xf0] }
 0x4cf   :  { %11626 = vmatpush.bf16.msrb.mxu0 %v15990_v37  ;;  %v16267_v37 = vld [vmem:[#allocation2 + $0x1c68] sm:$0xf0]  ;;  %v19885_v25 = vld [vmem:[#allocation2 + $0x1cb4] sm:$0xf]  ;;  %v16531_v15 = vld [vmem:[#allocation2 + $0x1e78] sm:$0xf0] }
 0x4d0   :  { %11639 = vmatpush.bf16.msrb.mxu1 %v16054_v45  ;;  %v19891_v45 = vld [vmem:[#allocation2 + $0x1ce4] sm:$0xf]  ;;  %v16270_v42 = vor.u32 %v19875_v16, %v16267_v37  ;;  %v19901_v27 = vld [vmem:[#allocation2 + $0x1d34] sm:$0xf]  ;;  %v16299_v37 = vld [vmem:[#allocation2 + $0x1ca8] sm:$0xf0] }
 0x4d1   :  { %11652 = vmatpush.bf16.msrb.mxu2 %v16118_v38  ;;  %v16470_v38 = vor.u32 %v19925_v7, %v16467_v33  ;;  %v16334_v13 = vor.u32 %v19891_v45, %v16331_v21  ;;  %v16246_v7 = vor.u32 %v19869_v50, %v16243_v22  ;;  %v16374_v33 = vor.u32 %v19901_v27, %v16371_v51  ;;  %v19899_v45 = vld [vmem:[#allocation2 + $0x1d24] sm:$0xf]  ;;  %v19941_v9 = vld [vmem:[#allocation2 + $0x1e74] sm:$0xf]  ;;  %v16659_v50 = vld [vmem:[#allocation2 + $0x1f78] sm:$0xf0] }
 0x4d2   :  { %11665 = vmatpush.bf16.msrb.mxu3 %v16182_v28  ;;  %v19923_v28 = vld [vmem:[#allocation2 + $0x1de4] sm:$0xf]  ;;  %v16286_v22 = vor.u32 %v19879_v6, %v16283_v14  ;;  %v16534_v27 = vor.u32 %v19941_v9, %v16531_v15  ;;  %v19933_v9 = vld [vmem:[#allocation2 + $0x1e34] sm:$0xf]  ;;  %v16499_v15 = vld [vmem:[#allocation2 + $0x1e38] sm:$0xf0] }
 0x4d3   :  { %11627 = vmatpush.bf16.msrb.mxu0 %v15982_v57  ;;  %v16462_v10 = vor.u32 %v19923_v28, %v16459_v20  ;;  %v16323_v57 = vld [vmem:[#allocation2 + $0x1cd8] sm:$0xf0]  ;;  %v16427_v28 = vld [vmem:[#allocation2 + $0x1da8] sm:$0xf0]  ;;  %v19983_v14 = vld [vmem:[#allocation2 + $0x1fc4] sm:$0xf] }
 0x4d4   :  { %11640 = vmatpush.bf16.msrb.mxu1 %v16046_v58  ;;  %v16387_v58 = vld [vmem:[#allocation2 + $0x1d58] sm:$0xf0]  ;;  %v16326_v3 = vor.u32 %v19889_v12, %v16323_v57  ;;  %v19865_v12 = vld [vmem:[#allocation2 + $0x1c14] sm:$0xf]  ;;  %v16430_v57 = vor.u32 %v19915_v40, %v16427_v28  ;;  %v21574_v28 = vld [vmem:[#allocation46_spill] sm:$0xff] }
 0x4d5   :  { %11653 = vmatpush.bf16.msrb.mxu2 %v16110_v39  ;;  %v21571_v39 = vld [vmem:[#allocation43_spill] sm:$0xff]  ;;  %v16390_v60 = vor.u32 %v19905_v18, %v16387_v58  ;;  %v16291_v18 = vld [vmem:[#allocation2 + $0x1c98] sm:$0xf0]  ;;  %v19897_v58 = vld [vmem:[#allocation2 + $0x1d14] sm:$0xf] }
 0x4d6   :  { %11666 = vmatpush.bf16.msrb.mxu3 %v16174_v0  ;;  %v21573_v0 = vld [vmem:[#allocation45_spill] sm:$0xff]  ;;  %v19953_v40 = vld [vmem:[#allocation2 + $0x1ed4] sm:$0xf] }
 0x4d7   :  { %11628 = vmatpush.bf16.msrb.mxu0 %v15974_v11  ;;  %v19887_v11 = vld [vmem:[#allocation2 + $0x1cc4] sm:$0xf] }
 0x4d8   :  { %11641 = vmatpush.bf16.msrb.mxu1 %v16038_v5  ;;  %v19903_v5 = vld [vmem:[#allocation2 + $0x1d44] sm:$0xf]  ;;  %v16318_v44 = vor.u32 %v19887_v11, %v16315_v32  ;;  %v16347_v32 = vld [vmem:[#allocation2 + $0x1d08] sm:$0xf0] }
 0x4d9   :  { %11654 = vmatpush.bf16.msrb.mxu2 %v16102_v30  ;;  %v16379_v30 = vld [vmem:[#allocation2 + $0x1d48] sm:$0xf0]  ;;  %v19895_v11 = vld [vmem:[#allocation2 + $0x1d04] sm:$0xf] }
 0x4da   :  { %11667 = vmatpush.bf16.msrb.mxu3 %v16166_v8  ;;  %v16382_v35 = vor.u32 %v19903_v5, %v16379_v30  ;;  %v19911_v5 = vld [vmem:[#allocation2 + $0x1d84] sm:$0xf]  ;;  %v16411_v30 = vld [vmem:[#allocation2 + $0x1d88] sm:$0xf0] }
 0x4db   :  { %11629 = vmatpush.bf16.msrb.mxu0 %v15966_v54  ;;  %v11423_v52 = vpop.f32.mrf.mxu0 }
 0x4dc   :  { %11642 = vmatpush.bf16.msrb.mxu1 %v16030_v47  ;;  %v11424_v8 = vadd.f32 %v11423_v52, %v21315_v36  ;;  %v11436_v49 = vpop.f32.mrf.mxu1  ;;  %v19917_v47 = vld [vmem:[#allocation2 + $0x1db4] sm:$0xf]  ;;  %v16310_v36 = vor.u32 %v19885_v25, %v16307_v26  ;;  %v16350_v25 = vor.u32 %v19895_v11, %v16347_v32  ;;  %v16414_v26 = vor.u32 %v19911_v5, %v16411_v30  ;;  %v16699_v11 = vld [vmem:[#allocation2 + $0x1fc8] sm:$0xf0] }
 0x4dd   :  { %11655 = vmatpush.bf16.msrb.mxu2 %v16094_v43  ;;  %v16435_v43 = vld [vmem:[#allocation2 + $0x1db8] sm:$0xf0] }
 0x4de   :  { %11668 = vmatpush.bf16.msrb.mxu3 %v16158_v53  ;;  %11630 = vmatmul.bf16.vlgmr.msrb.gmra.mxu0 %v21570_v61  ;;  %v11437_v54 = vadd.f32 %v11436_v49, %v11424_v8  ;;  %v19867_v53 = vld [vmem:[#allocation2 + $0x1c24] sm:$0xf]  ;;  %v16227_v61 = vld [vmem:[#allocation2 + $0x1c18] sm:$0xf0]  ;;  %v19957_v8 = vld [vmem:[#allocation2 + $0x1ef4] sm:$0xf] }
 0x4df   :  { %11674 = vmatpush.bf16.msra.mxu0 %v16278_v41  ;;  %11643 = vmatmul.bf16.vlgmr.msrb.gmra.mxu1 %v21572_v62  ;;  %v16235_v41 = vld [vmem:[#allocation2 + $0x1c28] sm:$0xf0]  ;;  %v19913_v62 = vld [vmem:[#allocation2 + $0x1d94] sm:$0xf]  ;;  %v16230_v63 = vor.u32 %v19865_v12, %v16227_v61 }
 0x4e0   :  { %11687 = vmatpush.bf16.msra.mxu1 %v16342_v46  ;;  %11656 = vmatmul.bf16.vlgmr.msrb.gmra.mxu2 %v21571_v39  ;;  %v19883_v46 = vld [vmem:[#allocation2 + $0x1ca4] sm:$0xf]  ;;  %v16355_v39 = vld [vmem:[#allocation2 + $0x1d18] sm:$0xf0]  ;;  %v21576_v12 = vld [vmem:[#allocation48_spill] sm:$0xff] }
 0x4e1   :  { %11700 = vmatpush.bf16.msra.mxu2 %v16406_v34  ;;  %11669 = vmatmul.bf16.vlgmr.msrb.gmra.mxu3 %v21573_v0  ;;  %v16438_v34 = vor.u32 %v19917_v47, %v16435_v43  ;;  %v16302_v29 = vor.u32 %v19883_v46, %v16299_v37  ;;  %v19863_v0 = vld [vmem:[#allocation2 + $0x1c04] sm:$0xf]  ;;  %v16651_v46 = vld [vmem:[#allocation2 + $0x1f68] sm:$0xf0]  ;;  %v19985_v61 = vld [vmem:[#allocation2 + $0x1fd4] sm:$0xf] }
 0x4e2   :  { %11713 = vmatpush.bf16.msra.mxu3 %v16470_v38  ;;  %v16363_v38 = vld [vmem:[#allocation2 + $0x1d28] sm:$0xf0]  ;;  %v19939_v43 = vld [vmem:[#allocation2 + $0x1e64] sm:$0xf] }
 0x4e3   :  { %11675 = vmatpush.bf16.msra.mxu0 %v16270_v42  ;;  %v11449_v16 = vpop.f32.mrf.mxu2  ;;  %v11425_v20 = vpop.f32.mrf.mxu0  ;;  %v16238_v42 = vor.u32 %v19867_v53, %v16235_v41  ;;  %v16366_v19 = vor.u32 %v19899_v45, %v16363_v38  ;;  %v16587_v53 = vld [vmem:[#allocation2 + $0x1ee8] sm:$0xf0]  ;;  %v19971_v41 = vld [vmem:[#allocation2 + $0x1f64] sm:$0xf] }
 0x4e4   :  { %11688 = vmatpush.bf16.msra.mxu1 %v16334_v13  ;;  %v11450_v21 = vadd.f32 %v11449_v16, %v11437_v54  ;;  %v11462_v59 = vpop.f32.mrf.mxu3  ;;  %v11438_v13 = vpop.f32.mrf.mxu1  ;;  %v16723_v54 = vld [vmem:[#allocation2 + $0x1ff8] sm:$0xf0]  ;;  %v16715_v16 = vld [vmem:[#allocation2 + $0x1fe8] sm:$0xf0]  ;;  %v16654_v38 = vor.u32 %v19971_v41, %v16651_v46  ;;  %v19979_v46 = vld [vmem:[#allocation2 + $0x1fa4] sm:$0xf] }
 0x4e5   :  { %11701 = vmatpush.bf16.msra.mxu2 %v16398_v55  ;;  %v19969_v13 = vld [vmem:[#allocation2 + $0x1f54] sm:$0xf] }
 0x4e6   :  { %11714 = vmatpush.bf16.msra.mxu3 %v16462_v10  ;;  %v21322_v55 = vadd.f32 %v11462_v59, %v11450_v21  ;;  %v19881_v10 = vld [vmem:[#allocation2 + $0x1c94] sm:$0xf]  ;;  %v16515_v59 = vld [vmem:[#allocation2 + $0x1e58] sm:$0xf0] }
 0x4e7   :  { %11676 = vmatpush.bf16.msra.mxu0 %v16262_v23  ;;  %v16219_v23 = vld [vmem:[#allocation2 + $0x1c08] sm:$0xf0]  ;;  %v19937_v21 = vld [vmem:[#allocation2 + $0x1e54] sm:$0xf] }
 0x4e8   :  { %11689 = vmatpush.bf16.msra.mxu1 %v16326_v3  ;;  %v16294_v3 = vor.u32 %v19881_v10, %v16291_v18  ;;  %v16222_v49 = vor.u32 %v19863_v0, %v16219_v23  ;;  %v16707_v10 = vld [vmem:[#allocation2 + $0x1fd8] sm:$0xf0]  ;;  %v16518_v18 = vor.u32 %v19937_v21, %v16515_v59  ;;  %v16571_v23 = vld [vmem:[#allocation2 + $0x1ec8] sm:$0xf0] }
 0x4e9   :  { %11702 = vmatpush.bf16.msra.mxu2 %v16390_v60  ;;  %v16358_v60 = vor.u32 %v19897_v58, %v16355_v39  ;;  %v16710_v0 = vor.u32 %v19985_v61, %v16707_v10  ;;  %v16675_v61 = vld [vmem:[#allocation2 + $0x1f98] sm:$0xf0] }
 0x4ea   :  { %11715 = vmatpush.bf16.msra.mxu3 %v16454_v4  ;;  %v16422_v4 = vor.u32 %v19913_v62, %v16419_v2  ;;  %v19935_v62 = vld [vmem:[#allocation2 + $0x1e44] sm:$0xf]  ;;  %v16507_v2 = vld [vmem:[#allocation2 + $0x1e48] sm:$0xf0] }
 0x4eb   :  { %11677 = vmatpush.bf16.msra.mxu0 %v16254_v56  ;;  %v11451_v52 = vpop.f32.mrf.mxu2  ;;  %v16510_v32 = vor.u32 %v19935_v62, %v16507_v2  ;;  %v19943_v62 = vld [vmem:[#allocation2 + $0x1e84] sm:$0xf]  ;;  %v16539_v2 = vld [vmem:[#allocation2 + $0x1e88] sm:$0xf0] }
 0x4ec   :  { %11690 = vmatpush.bf16.msra.mxu1 %v16318_v44  ;;  %v11464_v56 = vpop.f32.mrf.mxu3  ;;  %v16595_v44 = vld [vmem:[#allocation2 + $0x1ef8] sm:$0xf0] }
 0x4ed   :  { %11703 = vmatpush.bf16.msra.mxu2 %v16382_v35  ;;  %v19973_v35 = vld [vmem:[#allocation2 + $0x1f74] sm:$0xf]  ;;  %v16598_v51 = vor.u32 %v19957_v8, %v16595_v44  ;;  %v16702_v56 = vor.u32 %v19983_v14, %v16699_v11  ;;  %v16563_v44 = vld [vmem:[#allocation2 + $0x1eb8] sm:$0xf0] }
 0x4ee   :  { %11716 = vmatpush.bf16.msra.mxu3 %v16446_v24  ;;  %v19989_v24 = vld [vmem:[#allocation2 + $0x1ff4] sm:$0xf]  ;;  %v16662_v47 = vor.u32 %v19973_v35, %v16659_v50  ;;  %v16627_v50 = vld [vmem:[#allocation2 + $0x1f38] sm:$0xf0] }
 0x4ef   :  { %11678 = vmatpush.bf16.msra.mxu0 %v16246_v7  ;;  %v16523_v7 = vld [vmem:[#allocation2 + $0x1e68] sm:$0xf0]  ;;  %v19949_v8 = vld [vmem:[#allocation2 + $0x1eb4] sm:$0xf]  ;;  %v16787_v11 = vld [vmem:[#allocation2 + $0x2078] sm:$0xf0] }
 0x4f0   :  { %11691 = vmatpush.bf16.msra.mxu1 %v16310_v36  ;;  %v19955_v36 = vld [vmem:[#allocation2 + $0x1ee4] sm:$0xf]  ;;  %v16526_v37 = vor.u32 %v19939_v43, %v16523_v7  ;;  %v19965_v35 = vld [vmem:[#allocation2 + $0x1f34] sm:$0xf]  ;;  %v16555_v7 = vld [vmem:[#allocation2 + $0x1ea8] sm:$0xf0] }
 0x4f1   :  { %11704 = vmatpush.bf16.msra.mxu2 %v16374_v33  ;;  %v16726_v33 = vor.u32 %v19989_v24, %v16723_v54  ;;  %v16590_v45 = vor.u32 %v19955_v36, %v16587_v53  ;;  %v16502_v24 = vor.u32 %v19933_v9, %v16499_v15  ;;  %v16630_v54 = vor.u32 %v19965_v35, %v16627_v50  ;;  %v19963_v36 = vld [vmem:[#allocation2 + $0x1f24] sm:$0xf]  ;;  %v20005_v14 = vld [vmem:[#allocation2 + $0x2074] sm:$0xf]  ;;  %v16915_v9 = vld [vmem:[#allocation2 + $0x2178] sm:$0xf0] }
 0x4f2   :  { %11717 = vmatpush.bf16.msra.mxu3 %v16438_v34  ;;  %v19987_v34 = vld [vmem:[#allocation2 + $0x1fe4] sm:$0xf]  ;;  %v16542_v15 = vor.u32 %v19943_v62, %v16539_v2  ;;  %v16790_v35 = vor.u32 %v20005_v14, %v16787_v11  ;;  %v19997_v14 = vld [vmem:[#allocation2 + $0x2034] sm:$0xf]  ;;  %v16755_v11 = vld [vmem:[#allocation2 + $0x2038] sm:$0xf0] }
 0x4f3   :  { %11679 = vmatpush.bf16.msra.mxu0 %v16238_v42  ;;  %v16718_v20 = vor.u32 %v19987_v34, %v16715_v16  ;;  %v16579_v42 = vld [vmem:[#allocation2 + $0x1ed8] sm:$0xf0]  ;;  %v16683_v34 = vld [vmem:[#allocation2 + $0x1fa8] sm:$0xf0]  ;;  %v20047_v2 = vld [vmem:[#allocation2 + $0x21c4] sm:$0xf] }
 0x4f4   :  { %11692 = vmatpush.bf16.msra.mxu1 %v16302_v29  ;;  %v16643_v29 = vld [vmem:[#allocation2 + $0x1f58] sm:$0xf0]  ;;  %v16582_v58 = vor.u32 %v19953_v40, %v16579_v42  ;;  %v19929_v40 = vld [vmem:[#allocation2 + $0x1e14] sm:$0xf]  ;;  %v16686_v42 = vor.u32 %v19979_v46, %v16683_v34  ;;  %v21578_v34 = vld [vmem:[#allocation50_spill] sm:$0xff] }
 0x4f5   :  { %11705 = vmatpush.bf16.msra.mxu2 %v16366_v19  ;;  %v21575_v19 = vld [vmem:[#allocation47_spill] sm:$0xff]  ;;  %v16646_v39 = vor.u32 %v19969_v13, %v16643_v29  ;;  %v16547_v13 = vld [vmem:[#allocation2 + $0x1e98] sm:$0xf0]  ;;  %v19961_v29 = vld [vmem:[#allocation2 + $0x1f14] sm:$0xf] }
 0x4f6   :  { %11718 = vmatpush.bf16.msra.mxu3 %v16430_v57  ;;  %v21577_v57 = vld [vmem:[#allocation49_spill] sm:$0xff]  ;;  %v20017_v46 = vld [vmem:[#allocation2 + $0x20d4] sm:$0xf] }
 0x4f7   :  { %11680 = vmatpush.bf16.msra.mxu0 %v16230_v63  ;;  %v19951_v63 = vld [vmem:[#allocation2 + $0x1ec4] sm:$0xf] }
 0x4f8   :  { %11693 = vmatpush.bf16.msra.mxu1 %v16294_v3  ;;  %v19967_v3 = vld [vmem:[#allocation2 + $0x1f44] sm:$0xf]  ;;  %v16574_v30 = vor.u32 %v19951_v63, %v16571_v23  ;;  %v16603_v23 = vld [vmem:[#allocation2 + $0x1f08] sm:$0xf0] }
 0x4f9   :  { %11706 = vmatpush.bf16.msra.mxu2 %v16358_v60  ;;  %v16635_v60 = vld [vmem:[#allocation2 + $0x1f48] sm:$0xf0]  ;;  %v19959_v63 = vld [vmem:[#allocation2 + $0x1f04] sm:$0xf] }
 0x4fa   :  { %11719 = vmatpush.bf16.msra.mxu3 %v16422_v4  ;;  %v16638_v52 = vor.u32 %v19967_v3, %v16635_v60  ;;  %v19975_v3 = vld [vmem:[#allocation2 + $0x1f84] sm:$0xf]  ;;  %v16667_v60 = vld [vmem:[#allocation2 + $0x1f88] sm:$0xf0] }
 0x4fb   :  { %11681 = vmatpush.bf16.msra.mxu0 %v16222_v49  ;;  %v11475_v6 = vpop.f32.mrf.mxu0 }
 0x4fc   :  { %11694 = vmatpush.bf16.msra.mxu1 %v16286_v22  ;;  %v11476_v4 = vadd.f32 %v11475_v6, %v21322_v55  ;;  %v11488_v5 = vpop.f32.mrf.mxu1  ;;  %v19981_v22 = vld [vmem:[#allocation2 + $0x1fb4] sm:$0xf]  ;;  %v16566_v55 = vor.u32 %v19949_v8, %v16563_v44  ;;  %v16606_v8 = vor.u32 %v19959_v63, %v16603_v23  ;;  %v16670_v44 = vor.u32 %v19975_v3, %v16667_v60  ;;  %v16955_v63 = vld [vmem:[#allocation2 + $0x21c8] sm:$0xf0] }
 0x4fd   :  { %11707 = vmatpush.bf16.msra.mxu2 %v16350_v25  ;;  %v16691_v25 = vld [vmem:[#allocation2 + $0x1fb8] sm:$0xf0] }
 0x4fe   :  { %11720 = vmatpush.bf16.msra.mxu3 %v16414_v26  ;;  %11682 = vmatmul.bf16.vlgmr.msra.gmra.mxu0 %v21574_v28  ;;  %v11489_v49 = vadd.f32 %v11488_v5, %v11476_v4  ;;  %v19931_v26 = vld [vmem:[#allocation2 + $0x1e24] sm:$0xf]  ;;  %v16483_v28 = vld [vmem:[#allocation2 + $0x1e18] sm:$0xf0]  ;;  %v20021_v4 = vld [vmem:[#allocation2 + $0x20f4] sm:$0xf] }
 0x4ff   :  { %11726 = vmatpush.bf16.msrb.mxu0 %v16534_v27  ;;  %11695 = vmatmul.bf16.vlgmr.msra.gmra.mxu1 %v21576_v12  ;;  %v16491_v27 = vld [vmem:[#allocation2 + $0x1e28] sm:$0xf0]  ;;  %v19977_v12 = vld [vmem:[#allocation2 + $0x1f94] sm:$0xf]  ;;  %v16486_v10 = vor.u32 %v19929_v40, %v16483_v28 }
 0x500   :  { %11739 = vmatpush.bf16.msrb.mxu1 %v16598_v51  ;;  %11708 = vmatmul.bf16.vlgmr.msra.gmra.mxu2 %v21575_v19  ;;  %v19947_v51 = vld [vmem:[#allocation2 + $0x1ea4] sm:$0xf]  ;;  %v16611_v19 = vld [vmem:[#allocation2 + $0x1f18] sm:$0xf0]  ;;  %v21580_v40 = vld [vmem:[#allocation52_spill] sm:$0xff] }
 0x501   :  { %11752 = vmatpush.bf16.msrb.mxu2 %v16662_v47  ;;  %11721 = vmatmul.bf16.vlgmr.msra.gmra.mxu3 %v21577_v57  ;;  %v16694_v47 = vor.u32 %v19981_v22, %v16691_v25  ;;  %v16558_v21 = vor.u32 %v19947_v51, %v16555_v7  ;;  %v19927_v57 = vld [vmem:[#allocation2 + $0x1e04] sm:$0xf]  ;;  %v16907_v51 = vld [vmem:[#allocation2 + $0x2168] sm:$0xf0]  ;;  %v20049_v28 = vld [vmem:[#allocation2 + $0x21d4] sm:$0xf] }
 0x502   :  { %11765 = vmatpush.bf16.msrb.mxu3 %v16726_v33  ;;  %v16619_v33 = vld [vmem:[#allocation2 + $0x1f28] sm:$0xf0]  ;;  %v20003_v25 = vld [vmem:[#allocation2 + $0x2064] sm:$0xf] }
 0x503   :  { %11727 = vmatpush.bf16.msrb.mxu0 %v16526_v37  ;;  %v11501_v43 = vpop.f32.mrf.mxu2  ;;  %v11477_v16 = vpop.f32.mrf.mxu0  ;;  %v16494_v37 = vor.u32 %v19931_v26, %v16491_v27  ;;  %v16622_v59 = vor.u32 %v19963_v36, %v16619_v33  ;;  %v16843_v26 = vld [vmem:[#allocation2 + $0x20e8] sm:$0xf0]  ;;  %v20035_v27 = vld [vmem:[#allocation2 + $0x2164] sm:$0xf] }
 0x504   :  { %11740 = vmatpush.bf16.msrb.mxu1 %v16590_v45  ;;  %v11502_v53 = vadd.f32 %v11501_v43, %v11489_v49  ;;  %v11514_v41 = vpop.f32.mrf.mxu3  ;;  %v11490_v45 = vpop.f32.mrf.mxu1  ;;  %v16979_v49 = vld [vmem:[#allocation2 + $0x21f8] sm:$0xf0]  ;;  %v16971_v43 = vld [vmem:[#allocation2 + $0x21e8] sm:$0xf0]  ;;  %v16910_v33 = vor.u32 %v20035_v27, %v16907_v51  ;;  %v20043_v51 = vld [vmem:[#allocation2 + $0x21a4] sm:$0xf] }
 0x505   :  { %11753 = vmatpush.bf16.msrb.mxu2 %v16654_v38  ;;  %v20033_v45 = vld [vmem:[#allocation2 + $0x2154] sm:$0xf] }
 0x506   :  { %11766 = vmatpush.bf16.msrb.mxu3 %v16718_v20  ;;  %v21329_v38 = vadd.f32 %v11514_v41, %v11502_v53  ;;  %v19945_v20 = vld [vmem:[#allocation2 + $0x1e94] sm:$0xf]  ;;  %v16771_v41 = vld [vmem:[#allocation2 + $0x2058] sm:$0xf0] }
 0x507   :  { %11728 = vmatpush.bf16.msrb.mxu0 %v16518_v18  ;;  %v16475_v18 = vld [vmem:[#allocation2 + $0x1e08] sm:$0xf0]  ;;  %v20001_v53 = vld [vmem:[#allocation2 + $0x2054] sm:$0xf] }
 0x508   :  { %11741 = vmatpush.bf16.msrb.mxu1 %v16582_v58  ;;  %v16550_v58 = vor.u32 %v19945_v20, %v16547_v13  ;;  %v16478_v5 = vor.u32 %v19927_v57, %v16475_v18  ;;  %v16963_v20 = vld [vmem:[#allocation2 + $0x21d8] sm:$0xf0]  ;;  %v16774_v13 = vor.u32 %v20001_v53, %v16771_v41  ;;  %v16827_v18 = vld [vmem:[#allocation2 + $0x20c8] sm:$0xf0] }
 0x509   :  { %11754 = vmatpush.bf16.msrb.mxu2 %v16646_v39  ;;  %v16614_v39 = vor.u32 %v19961_v29, %v16611_v19  ;;  %v16966_v57 = vor.u32 %v20049_v28, %v16963_v20  ;;  %v16931_v28 = vld [vmem:[#allocation2 + $0x2198] sm:$0xf0] }
 0x50a   :  { %11767 = vmatpush.bf16.msrb.mxu3 %v16710_v0  ;;  %v16678_v0 = vor.u32 %v19977_v12, %v16675_v61  ;;  %v19999_v12 = vld [vmem:[#allocation2 + $0x2044] sm:$0xf]  ;;  %v16763_v61 = vld [vmem:[#allocation2 + $0x2048] sm:$0xf0] }
 0x50b   :  { %11729 = vmatpush.bf16.msrb.mxu0 %v16510_v32  ;;  %v11503_v6 = vpop.f32.mrf.mxu2  ;;  %v16766_v23 = vor.u32 %v19999_v12, %v16763_v61  ;;  %v20007_v12 = vld [vmem:[#allocation2 + $0x2084] sm:$0xf]  ;;  %v16795_v61 = vld [vmem:[#allocation2 + $0x2088] sm:$0xf0] }
 0x50c   :  { %11742 = vmatpush.bf16.msrb.mxu1 %v16574_v30  ;;  %v11516_v32 = vpop.f32.mrf.mxu3  ;;  %v16851_v30 = vld [vmem:[#allocation2 + $0x20f8] sm:$0xf0] }
 0x50d   :  { %11755 = vmatpush.bf16.msrb.mxu2 %v16638_v52  ;;  %v20037_v52 = vld [vmem:[#allocation2 + $0x2174] sm:$0xf]  ;;  %v16854_v50 = vor.u32 %v20021_v4, %v16851_v30  ;;  %v16958_v32 = vor.u32 %v20047_v2, %v16955_v63  ;;  %v16819_v30 = vld [vmem:[#allocation2 + $0x20b8] sm:$0xf0] }
 0x50e   :  { %11768 = vmatpush.bf16.msrb.mxu3 %v16702_v56  ;;  %v20053_v56 = vld [vmem:[#allocation2 + $0x21f4] sm:$0xf]  ;;  %v16918_v22 = vor.u32 %v20037_v52, %v16915_v9  ;;  %v16883_v9 = vld [vmem:[#allocation2 + $0x2138] sm:$0xf0] }
 0x50f   :  { %11730 = vmatpush.bf16.msrb.mxu0 %v16502_v24  ;;  %v16779_v24 = vld [vmem:[#allocation2 + $0x2068] sm:$0xf0]  ;;  %v20013_v4 = vld [vmem:[#allocation2 + $0x20b4] sm:$0xf]  ;;  %v17043_v63 = vld [vmem:[#allocation2 + $0x2278] sm:$0xf0] }
 0x510   :  { %11743 = vmatpush.bf16.msrb.mxu1 %v16566_v55  ;;  %v20019_v55 = vld [vmem:[#allocation2 + $0x20e4] sm:$0xf]  ;;  %v16782_v7 = vor.u32 %v20003_v25, %v16779_v24  ;;  %v20029_v52 = vld [vmem:[#allocation2 + $0x2134] sm:$0xf]  ;;  %v16811_v24 = vld [vmem:[#allocation2 + $0x20a8] sm:$0xf0] }
 0x511   :  { %11756 = vmatpush.bf16.msrb.mxu2 %v16630_v54  ;;  %v16982_v54 = vor.u32 %v20053_v56, %v16979_v49  ;;  %v16846_v36 = vor.u32 %v20019_v55, %v16843_v26  ;;  %v16758_v56 = vor.u32 %v19997_v14, %v16755_v11  ;;  %v16886_v49 = vor.u32 %v20029_v52, %v16883_v9  ;;  %v20027_v55 = vld [vmem:[#allocation2 + $0x2124] sm:$0xf]  ;;  %v20069_v2 = vld [vmem:[#allocation2 + $0x2274] sm:$0xf]  ;;  %v17171_v14 = vld [vmem:[#allocation2 + $0x2378] sm:$0xf0] }
 0x512   :  { %11769 = vmatpush.bf16.msrb.mxu3 %v16694_v47  ;;  %v20051_v47 = vld [vmem:[#allocation2 + $0x21e4] sm:$0xf]  ;;  %v16798_v11 = vor.u32 %v20007_v12, %v16795_v61  ;;  %v17046_v52 = vor.u32 %v20069_v2, %v17043_v63  ;;  %v20061_v2 = vld [vmem:[#allocation2 + $0x2234] sm:$0xf]  ;;  %v17011_v63 = vld [vmem:[#allocation2 + $0x2238] sm:$0xf0] }
 0x513   :  { %11731 = vmatpush.bf16.msrb.mxu0 %v16494_v37  ;;  %v16974_v16 = vor.u32 %v20051_v47, %v16971_v43  ;;  %v16835_v37 = vld [vmem:[#allocation2 + $0x20d8] sm:$0xf0]  ;;  %v16939_v47 = vld [vmem:[#allocation2 + $0x21a8] sm:$0xf0]  ;;  %v20111_v61 = vld [vmem:[#allocation2 + $0x23c4] sm:$0xf] }
 0x514   :  { %11744 = vmatpush.bf16.msrb.mxu1 %v16558_v21  ;;  %v16899_v21 = vld [vmem:[#allocation2 + $0x2158] sm:$0xf0]  ;;  %v16838_v29 = vor.u32 %v20017_v46, %v16835_v37  ;;  %v19993_v46 = vld [vmem:[#allocation2 + $0x2014] sm:$0xf]  ;;  %v16942_v37 = vor.u32 %v20043_v51, %v16939_v47  ;;  %v21582_v47 = vld [vmem:[#allocation54_spill] sm:$0xff] }
 0x515   :  { %11757 = vmatpush.bf16.msrb.mxu2 %v16622_v59  ;;  %v21579_v59 = vld [vmem:[#allocation51_spill] sm:$0xff]  ;;  %v16902_v19 = vor.u32 %v20033_v45, %v16899_v21  ;;  %v16803_v45 = vld [vmem:[#allocation2 + $0x2098] sm:$0xf0]  ;;  %v20025_v21 = vld [vmem:[#allocation2 + $0x2114] sm:$0xf] }
 0x516   :  { %11770 = vmatpush.bf16.msrb.mxu3 %v16686_v42  ;;  %v21581_v42 = vld [vmem:[#allocation53_spill] sm:$0xff]  ;;  %v20081_v51 = vld [vmem:[#allocation2 + $0x22d4] sm:$0xf] }
 0x517   :  { %11732 = vmatpush.bf16.msrb.mxu0 %v16486_v10  ;;  %v20015_v10 = vld [vmem:[#allocation2 + $0x20c4] sm:$0xf] }
 0x518   :  { %11745 = vmatpush.bf16.msrb.mxu1 %v16550_v58  ;;  %v20031_v58 = vld [vmem:[#allocation2 + $0x2144] sm:$0xf]  ;;  %v16830_v60 = vor.u32 %v20015_v10, %v16827_v18  ;;  %v16859_v18 = vld [vmem:[#allocation2 + $0x2108] sm:$0xf0] }
 0x519   :  { %11758 = vmatpush.bf16.msrb.mxu2 %v16614_v39  ;;  %v16891_v39 = vld [vmem:[#allocation2 + $0x2148] sm:$0xf0]  ;;  %v20023_v10 = vld [vmem:[#allocation2 + $0x2104] sm:$0xf] }
 0x51a   :  { %11771 = vmatpush.bf16.msrb.mxu3 %v16678_v0  ;;  %v16894_v6 = vor.u32 %v20031_v58, %v16891_v39  ;;  %v20039_v58 = vld [vmem:[#allocation2 + $0x2184] sm:$0xf]  ;;  %v16923_v39 = vld [vmem:[#allocation2 + $0x2188] sm:$0xf0] }
 0x51b   :  { %11733 = vmatpush.bf16.msrb.mxu0 %v16478_v5  ;;  %v11527_v62 = vpop.f32.mrf.mxu0 }
 0x51c   :  { %11746 = vmatpush.bf16.msrb.mxu1 %v16542_v15  ;;  %v11528_v0 = vadd.f32 %v11527_v62, %v21329_v38  ;;  %v11540_v3 = vpop.f32.mrf.mxu1  ;;  %v20045_v15 = vld [vmem:[#allocation2 + $0x21b4] sm:$0xf]  ;;  %v16822_v38 = vor.u32 %v20013_v4, %v16819_v30  ;;  %v16862_v4 = vor.u32 %v20023_v10, %v16859_v18  ;;  %v16926_v30 = vor.u32 %v20039_v58, %v16923_v39  ;;  %v17211_v10 = vld [vmem:[#allocation2 + $0x23c8] sm:$0xf0] }
 0x51d   :  { %11759 = vmatpush.bf16.msrb.mxu2 %v16606_v8  ;;  %v16947_v8 = vld [vmem:[#allocation2 + $0x21b8] sm:$0xf0] }
 0x51e   :  { %11772 = vmatpush.bf16.msrb.mxu3 %v16670_v44  ;;  %11734 = vmatmul.bf16.vlgmr.msrb.gmra.mxu0 %v21578_v34  ;;  %v11541_v5 = vadd.f32 %v11540_v3, %v11528_v0  ;;  %v19995_v44 = vld [vmem:[#allocation2 + $0x2024] sm:$0xf]  ;;  %v16739_v34 = vld [vmem:[#allocation2 + $0x2018] sm:$0xf0]  ;;  %v20085_v0 = vld [vmem:[#allocation2 + $0x22f4] sm:$0xf] }
 0x51f   :  { %11778 = vmatpush.bf16.msra.mxu0 %v16790_v35  ;;  %11747 = vmatmul.bf16.vlgmr.msrb.gmra.mxu1 %v21580_v40  ;;  %v16747_v35 = vld [vmem:[#allocation2 + $0x2028] sm:$0xf0]  ;;  %v20041_v40 = vld [vmem:[#allocation2 + $0x2194] sm:$0xf]  ;;  %v16742_v20 = vor.u32 %v19993_v46, %v16739_v34 }
 0x520   :  { %11791 = vmatpush.bf16.msra.mxu1 %v16854_v50  ;;  %11760 = vmatmul.bf16.vlgmr.msrb.gmra.mxu2 %v21579_v59  ;;  %v20011_v50 = vld [vmem:[#allocation2 + $0x20a4] sm:$0xf]  ;;  %v16867_v59 = vld [vmem:[#allocation2 + $0x2118] sm:$0xf0]  ;;  %v21584_v46 = vld [vmem:[#allocation56_spill] sm:$0xff] }
 0x521   :  { %11804 = vmatpush.bf16.msra.mxu2 %v16918_v22  ;;  %11773 = vmatmul.bf16.vlgmr.msrb.gmra.mxu3 %v21581_v42  ;;  %v16950_v22 = vor.u32 %v20045_v15, %v16947_v8  ;;  %v16814_v53 = vor.u32 %v20011_v50, %v16811_v24  ;;  %v19991_v42 = vld [vmem:[#allocation2 + $0x2004] sm:$0xf]  ;;  %v17163_v50 = vld [vmem:[#allocation2 + $0x2368] sm:$0xf0]  ;;  %v20113_v34 = vld [vmem:[#allocation2 + $0x23d4] sm:$0xf] }
 0x522   :  { %11817 = vmatpush.bf16.msra.mxu3 %v16982_v54  ;;  %v16875_v54 = vld [vmem:[#allocation2 + $0x2128] sm:$0xf0]  ;;  %v20067_v8 = vld [vmem:[#allocation2 + $0x2264] sm:$0xf] }
 0x523   :  { %11779 = vmatpush.bf16.msra.mxu0 %v16782_v7  ;;  %v11553_v25 = vpop.f32.mrf.mxu2  ;;  %v11529_v43 = vpop.f32.mrf.mxu0  ;;  %v16750_v7 = vor.u32 %v19995_v44, %v16747_v35  ;;  %v16878_v41 = vor.u32 %v20027_v55, %v16875_v54  ;;  %v17099_v44 = vld [vmem:[#allocation2 + $0x22e8] sm:$0xf0]  ;;  %v20099_v35 = vld [vmem:[#allocation2 + $0x2364] sm:$0xf] }
 0x524   :  { %11792 = vmatpush.bf16.msra.mxu1 %v16846_v36  ;;  %v11554_v26 = vadd.f32 %v11553_v25, %v11541_v5  ;;  %v11566_v27 = vpop.f32.mrf.mxu3  ;;  %v11542_v36 = vpop.f32.mrf.mxu1  ;;  %v17235_v5 = vld [vmem:[#allocation2 + $0x23f8] sm:$0xf0]  ;;  %v17227_v25 = vld [vmem:[#allocation2 + $0x23e8] sm:$0xf0]  ;;  %v17166_v54 = vor.u32 %v20099_v35, %v17163_v50  ;;  %v20107_v50 = vld [vmem:[#allocation2 + $0x23a4] sm:$0xf] }
 0x525   :  { %11805 = vmatpush.bf16.msra.mxu2 %v16910_v33  ;;  %v20097_v36 = vld [vmem:[#allocation2 + $0x2354] sm:$0xf] }
 0x526   :  { %11818 = vmatpush.bf16.msra.mxu3 %v16974_v16  ;;  %v21336_v33 = vadd.f32 %v11566_v27, %v11554_v26  ;;  %v20009_v16 = vld [vmem:[#allocation2 + $0x2094] sm:$0xf]  ;;  %v17027_v27 = vld [vmem:[#allocation2 + $0x2258] sm:$0xf0] }
 0x527   :  { %11780 = vmatpush.bf16.msra.mxu0 %v16774_v13  ;;  %v16731_v13 = vld [vmem:[#allocation2 + $0x2008] sm:$0xf0]  ;;  %v20065_v26 = vld [vmem:[#allocation2 + $0x2254] sm:$0xf] }
 0x528   :  { %11793 = vmatpush.bf16.msra.mxu1 %v16838_v29  ;;  %v16806_v29 = vor.u32 %v20009_v16, %v16803_v45  ;;  %v16734_v3 = vor.u32 %v19991_v42, %v16731_v13  ;;  %v17219_v16 = vld [vmem:[#allocation2 + $0x23d8] sm:$0xf0]  ;;  %v17030_v45 = vor.u32 %v20065_v26, %v17027_v27  ;;  %v17083_v13 = vld [vmem:[#allocation2 + $0x22c8] sm:$0xf0] }
 0x529   :  { %11806 = vmatpush.bf16.msra.mxu2 %v16902_v19  ;;  %v16870_v19 = vor.u32 %v20025_v21, %v16867_v59  ;;  %v17222_v42 = vor.u32 %v20113_v34, %v17219_v16  ;;  %v17187_v34 = vld [vmem:[#allocation2 + $0x2398] sm:$0xf0] }
 0x52a   :  { %11819 = vmatpush.bf16.msra.mxu3 %v16966_v57  ;;  %v16934_v57 = vor.u32 %v20041_v40, %v16931_v28  ;;  %v20063_v40 = vld [vmem:[#allocation2 + $0x2244] sm:$0xf]  ;;  %v17019_v28 = vld [vmem:[#allocation2 + $0x2248] sm:$0xf0] }
 0x52b   :  { %11781 = vmatpush.bf16.msra.mxu0 %v16766_v23  ;;  %v11555_v62 = vpop.f32.mrf.mxu2  ;;  %v17022_v18 = vor.u32 %v20063_v40, %v17019_v28  ;;  %v20071_v40 = vld [vmem:[#allocation2 + $0x2284] sm:$0xf]  ;;  %v17051_v28 = vld [vmem:[#allocation2 + $0x2288] sm:$0xf0] }
 0x52c   :  { %11794 = vmatpush.bf16.msra.mxu1 %v16830_v60  ;;  %v11568_v23 = vpop.f32.mrf.mxu3  ;;  %v17107_v60 = vld [vmem:[#allocation2 + $0x22f8] sm:$0xf0] }
 0x52d   :  { %11807 = vmatpush.bf16.msra.mxu2 %v16894_v6  ;;  %v20101_v6 = vld [vmem:[#allocation2 + $0x2374] sm:$0xf]  ;;  %v17110_v9 = vor.u32 %v20085_v0, %v17107_v60  ;;  %v17214_v23 = vor.u32 %v20111_v61, %v17211_v10  ;;  %v17075_v60 = vld [vmem:[#allocation2 + $0x22b8] sm:$0xf0] }
 0x52e   :  { %11820 = vmatpush.bf16.msra.mxu3 %v16958_v32  ;;  %v20117_v32 = vld [vmem:[#allocation2 + $0x23f4] sm:$0xf]  ;;  %v17174_v15 = vor.u32 %v20101_v6, %v17171_v14  ;;  %v17139_v14 = vld [vmem:[#allocation2 + $0x2338] sm:$0xf0] }
 0x52f   :  { %11782 = vmatpush.bf16.msra.mxu0 %v16758_v56  ;;  %v17035_v56 = vld [vmem:[#allocation2 + $0x2268] sm:$0xf0]  ;;  %v20077_v0 = vld [vmem:[#allocation2 + $0x22b4] sm:$0xf]  ;;  %v17299_v10 = vld [vmem:[#allocation2 + $0x2478] sm:$0xf0] }
 0x530   :  { %11795 = vmatpush.bf16.msra.mxu1 %v16822_v38  ;;  %v20083_v38 = vld [vmem:[#allocation2 + $0x22e4] sm:$0xf]  ;;  %v17038_v24 = vor.u32 %v20067_v8, %v17035_v56  ;;  %v20093_v6 = vld [vmem:[#allocation2 + $0x2334] sm:$0xf]  ;;  %v17067_v56 = vld [vmem:[#allocation2 + $0x22a8] sm:$0xf0] }
 0x531   :  { %11808 = vmatpush.bf16.msra.mxu2 %v16886_v49  ;;  %v17238_v49 = vor.u32 %v20117_v32, %v17235_v5  ;;  %v17102_v55 = vor.u32 %v20083_v38, %v17099_v44  ;;  %v17014_v32 = vor.u32 %v20061_v2, %v17011_v63  ;;  %v17142_v5 = vor.u32 %v20093_v6, %v17139_v14  ;;  %v20091_v38 = vld [vmem:[#allocation2 + $0x2324] sm:$0xf]  ;;  %v20133_v61 = vld [vmem:[#allocation2 + $0x2474] sm:$0xf]  ;;  %v17427_v2 = vld [vmem:[#allocation2 + $0x2578] sm:$0xf0] }
 0x532   :  { %11821 = vmatpush.bf16.msra.mxu3 %v16950_v22  ;;  %v20115_v22 = vld [vmem:[#allocation2 + $0x23e4] sm:$0xf]  ;;  %v17054_v63 = vor.u32 %v20071_v40, %v17051_v28  ;;  %v17302_v6 = vor.u32 %v20133_v61, %v17299_v10  ;;  %v20125_v61 = vld [vmem:[#allocation2 + $0x2434] sm:$0xf]  ;;  %v17267_v10 = vld [vmem:[#allocation2 + $0x2438] sm:$0xf0] }
 0x533   :  { %11783 = vmatpush.bf16.msra.mxu0 %v16750_v7  ;;  %v17230_v43 = vor.u32 %v20115_v22, %v17227_v25  ;;  %v17091_v7 = vld [vmem:[#allocation2 + $0x22d8] sm:$0xf0]  ;;  %v17195_v22 = vld [vmem:[#allocation2 + $0x23a8] sm:$0xf0]  ;;  %v20175_v28 = vld [vmem:[#allocation2 + $0x25c4] sm:$0xf] }
 0x534   :  { %11796 = vmatpush.bf16.msra.mxu1 %v16814_v53  ;;  %v17155_v53 = vld [vmem:[#allocation2 + $0x2358] sm:$0xf0]  ;;  %v17094_v21 = vor.u32 %v20081_v51, %v17091_v7  ;;  %v20057_v51 = vld [vmem:[#allocation2 + $0x2214] sm:$0xf]  ;;  %v17198_v7 = vor.u32 %v20107_v50, %v17195_v22  ;;  %v21586_v22 = vld [vmem:[#allocation58_spill] sm:$0xff] }
 0x535   :  { %11809 = vmatpush.bf16.msra.mxu2 %v16878_v41  ;;  %v21583_v41 = vld [vmem:[#allocation55_spill] sm:$0xff]  ;;  %v17158_v59 = vor.u32 %v20097_v36, %v17155_v53  ;;  %v17059_v36 = vld [vmem:[#allocation2 + $0x2298] sm:$0xf0]  ;;  %v20089_v53 = vld [vmem:[#allocation2 + $0x2314] sm:$0xf] }
 0x536   :  { %11822 = vmatpush.bf16.msra.mxu3 %v16942_v37  ;;  %v21585_v37 = vld [vmem:[#allocation57_spill] sm:$0xff]  ;;  %v20145_v50 = vld [vmem:[#allocation2 + $0x24d4] sm:$0xf] }
 0x537   :  { %11784 = vmatpush.bf16.msra.mxu0 %v16742_v20  ;;  %v20079_v20 = vld [vmem:[#allocation2 + $0x22c4] sm:$0xf] }
 0x538   :  { %11797 = vmatpush.bf16.msra.mxu1 %v16806_v29  ;;  %v20095_v29 = vld [vmem:[#allocation2 + $0x2344] sm:$0xf]  ;;  %v17086_v39 = vor.u32 %v20079_v20, %v17083_v13  ;;  %v17115_v13 = vld [vmem:[#allocation2 + $0x2308] sm:$0xf0] }
 0x539   :  { %11810 = vmatpush.bf16.msra.mxu2 %v16870_v19  ;;  %v17147_v19 = vld [vmem:[#allocation2 + $0x2348] sm:$0xf0]  ;;  %v20087_v20 = vld [vmem:[#allocation2 + $0x2304] sm:$0xf] }
 0x53a   :  { %11823 = vmatpush.bf16.msra.mxu3 %v16934_v57  ;;  %v17150_v62 = vor.u32 %v20095_v29, %v17147_v19  ;;  %v20103_v29 = vld [vmem:[#allocation2 + $0x2384] sm:$0xf]  ;;  %v17179_v19 = vld [vmem:[#allocation2 + $0x2388] sm:$0xf0] }
 0x53b   :  { %11785 = vmatpush.bf16.msra.mxu0 %v16734_v3  ;;  %v11579_v12 = vpop.f32.mrf.mxu0 }
 0x53c   :  { %11798 = vmatpush.bf16.msra.mxu1 %v16798_v11  ;;  %v11580_v57 = vadd.f32 %v11579_v12, %v21336_v33  ;;  %v11592_v58 = vpop.f32.mrf.mxu1  ;;  %v20109_v11 = vld [vmem:[#allocation2 + $0x23b4] sm:$0xf]  ;;  %v17078_v33 = vor.u32 %v20077_v0, %v17075_v60  ;;  %v17118_v0 = vor.u32 %v20087_v20, %v17115_v13  ;;  %v17182_v60 = vor.u32 %v20103_v29, %v17179_v19  ;;  %v17467_v20 = vld [vmem:[#allocation2 + $0x25c8] sm:$0xf0] }
 0x53d   :  { %11811 = vmatpush.bf16.msra.mxu2 %v16862_v4  ;;  %v17203_v4 = vld [vmem:[#allocation2 + $0x23b8] sm:$0xf0] }
 0x53e   :  { %11824 = vmatpush.bf16.msra.mxu3 %v16926_v30  ;;  %11786 = vmatmul.bf16.vlgmr.msra.gmra.mxu0 %v21582_v47  ;;  %v11593_v3 = vadd.f32 %v11592_v58, %v11580_v57  ;;  %v20059_v30 = vld [vmem:[#allocation2 + $0x2224] sm:$0xf]  ;;  %v16995_v47 = vld [vmem:[#allocation2 + $0x2218] sm:$0xf0]  ;;  %v20149_v57 = vld [vmem:[#allocation2 + $0x24f4] sm:$0xf] }
 0x53f   :  { %11830 = vmatpush.bf16.msrb.mxu0 %v17046_v52  ;;  %11799 = vmatmul.bf16.vlgmr.msra.gmra.mxu1 %v21584_v46  ;;  %v17003_v52 = vld [vmem:[#allocation2 + $0x2228] sm:$0xf0]  ;;  %v20105_v46 = vld [vmem:[#allocation2 + $0x2394] sm:$0xf]  ;;  %v16998_v16 = vor.u32 %v20057_v51, %v16995_v47 }
 0x540   :  { %11843 = vmatpush.bf16.msrb.mxu1 %v17110_v9  ;;  %11812 = vmatmul.bf16.vlgmr.msra.gmra.mxu2 %v21583_v41  ;;  %v20075_v9 = vld [vmem:[#allocation2 + $0x22a4] sm:$0xf]  ;;  %v17123_v41 = vld [vmem:[#allocation2 + $0x2318] sm:$0xf0]  ;;  %v21588_v51 = vld [vmem:[#allocation60_spill] sm:$0xff] }
 0x541   :  { %11856 = vmatpush.bf16.msrb.mxu2 %v17174_v15  ;;  %11825 = vmatmul.bf16.vlgmr.msra.gmra.mxu3 %v21585_v37  ;;  %v17206_v15 = vor.u32 %v20109_v11, %v17203_v4  ;;  %v17070_v26 = vor.u32 %v20075_v9, %v17067_v56  ;;  %v20055_v37 = vld [vmem:[#allocation2 + $0x2204] sm:$0xf]  ;;  %v17419_v9 = vld [vmem:[#allocation2 + $0x2568] sm:$0xf0]  ;;  %v20177_v47 = vld [vmem:[#allocation2 + $0x25d4] sm:$0xf] }
 0x542   :  { %11869 = vmatpush.bf16.msrb.mxu3 %v17238_v49  ;;  %v17131_v49 = vld [vmem:[#allocation2 + $0x2328] sm:$0xf0]  ;;  %v20131_v4 = vld [vmem:[#allocation2 + $0x2464] sm:$0xf] }
 0x543   :  { %11831 = vmatpush.bf16.msrb.mxu0 %v17038_v24  ;;  %v11605_v8 = vpop.f32.mrf.mxu2  ;;  %v11581_v25 = vpop.f32.mrf.mxu0  ;;  %v17006_v24 = vor.u32 %v20059_v30, %v17003_v52  ;;  %v17134_v27 = vor.u32 %v20091_v38, %v17131_v49  ;;  %v17355_v30 = vld [vmem:[#allocation2 + $0x24e8] sm:$0xf0]  ;;  %v20163_v52 = vld [vmem:[#allocation2 + $0x2564] sm:$0xf] }
 0x544   :  { %11844 = vmatpush.bf16.msrb.mxu1 %v17102_v55  ;;  %v11606_v44 = vadd.f32 %v11605_v8, %v11593_v3  ;;  %v11618_v35 = vpop.f32.mrf.mxu3  ;;  %v11594_v55 = vpop.f32.mrf.mxu1  ;;  %v17491_v3 = vld [vmem:[#allocation2 + $0x25f8] sm:$0xf0]  ;;  %v17483_v8 = vld [vmem:[#allocation2 + $0x25e8] sm:$0xf0]  ;;  %v17422_v49 = vor.u32 %v20163_v52, %v17419_v9  ;;  %v20171_v9 = vld [vmem:[#allocation2 + $0x25a4] sm:$0xf] }
 0x545   :  { %11857 = vmatpush.bf16.msrb.mxu2 %v17166_v54  ;;  %v20161_v55 = vld [vmem:[#allocation2 + $0x2554] sm:$0xf] }
 0x546   :  { %11870 = vmatpush.bf16.msrb.mxu3 %v17230_v43  ;;  %v21343_v54 = vadd.f32 %v11618_v35, %v11606_v44  ;;  %v20073_v43 = vld [vmem:[#allocation2 + $0x2294] sm:$0xf]  ;;  %v17283_v35 = vld [vmem:[#allocation2 + $0x2458] sm:$0xf0] }
 0x547   :  { %11832 = vmatpush.bf16.msrb.mxu0 %v17030_v45  ;;  %v16987_v45 = vld [vmem:[#allocation2 + $0x2208] sm:$0xf0]  ;;  %v20129_v44 = vld [vmem:[#allocation2 + $0x2454] sm:$0xf] }
 0x548   :  { %11845 = vmatpush.bf16.msrb.mxu1 %v17094_v21  ;;  %v17062_v21 = vor.u32 %v20073_v43, %v17059_v36  ;;  %v16990_v58 = vor.u32 %v20055_v37, %v16987_v45  ;;  %v17475_v43 = vld [vmem:[#allocation2 + $0x25d8] sm:$0xf0]  ;;  %v17286_v36 = vor.u32 %v20129_v44, %v17283_v35  ;;  %v17339_v45 = vld [vmem:[#allocation2 + $0x24c8] sm:$0xf0] }
 0x549   :  { %11858 = vmatpush.bf16.msrb.mxu2 %v17158_v59  ;;  %v17126_v59 = vor.u32 %v20089_v53, %v17123_v41  ;;  %v17478_v37 = vor.u32 %v20177_v47, %v17475_v43  ;;  %v17443_v47 = vld [vmem:[#allocation2 + $0x2598] sm:$0xf0] }
 0x54a   :  { %11871 = vmatpush.bf16.msrb.mxu3 %v17222_v42  ;;  %v17190_v42 = vor.u32 %v20105_v46, %v17187_v34  ;;  %v20127_v46 = vld [vmem:[#allocation2 + $0x2444] sm:$0xf]  ;;  %v17275_v34 = vld [vmem:[#allocation2 + $0x2448] sm:$0xf0] }
 0x54b   :  { %11833 = vmatpush.bf16.msrb.mxu0 %v17022_v18  ;;  %v11607_v12 = vpop.f32.mrf.mxu2  ;;  %v17278_v13 = vor.u32 %v20127_v46, %v17275_v34  ;;  %v20135_v46 = vld [vmem:[#allocation2 + $0x2484] sm:$0xf]  ;;  %v17307_v34 = vld [vmem:[#allocation2 + $0x2488] sm:$0xf0] }
 0x54c   :  { %11846 = vmatpush.bf16.msrb.mxu1 %v17086_v39  ;;  %v11620_v18 = vpop.f32.mrf.mxu3  ;;  %v17363_v39 = vld [vmem:[#allocation2 + $0x24f8] sm:$0xf0] }
 0x54d   :  { %11859 = vmatpush.bf16.msrb.mxu2 %v17150_v62  ;;  %v20165_v62 = vld [vmem:[#allocation2 + $0x2574] sm:$0xf]  ;;  %v17366_v14 = vor.u32 %v20149_v57, %v17363_v39  ;;  %v17470_v18 = vor.u32 %v20175_v28, %v17467_v20  ;;  %v17331_v39 = vld [vmem:[#allocation2 + $0x24b8] sm:$0xf0] }
 0x54e   :  { %11872 = vmatpush.bf16.msrb.mxu3 %v17214_v23  ;;  %v20181_v23 = vld [vmem:[#allocation2 + $0x25f4] sm:$0xf]  ;;  %v17430_v11 = vor.u32 %v20165_v62, %v17427_v2  ;;  %v17395_v2 = vld [vmem:[#allocation2 + $0x2538] sm:$0xf0] }
 0x54f   :  { %11834 = vmatpush.bf16.msrb.mxu0 %v17014_v32  ;;  %v17291_v32 = vld [vmem:[#allocation2 + $0x2468] sm:$0xf0]  ;;  %v20141_v57 = vld [vmem:[#allocation2 + $0x24b4] sm:$0xf]  ;;  %v17555_v20 = vld [vmem:[#allocation2 + $0x2678] sm:$0xf0] }
 0x550   :  { %11847 = vmatpush.bf16.msrb.mxu1 %v17078_v33  ;;  %v20147_v33 = vld [vmem:[#allocation2 + $0x24e4] sm:$0xf]  ;;  %v17294_v56 = vor.u32 %v20131_v4, %v17291_v32  ;;  %v20157_v62 = vld [vmem:[#allocation2 + $0x2534] sm:$0xf]  ;;  %v17323_v32 = vld [vmem:[#allocation2 + $0x24a8] sm:$0xf0] }
 0x551   :  { %11860 = vmatpush.bf16.msrb.mxu2 %v17142_v5  ;;  %v17494_v5 = vor.u32 %v20181_v23, %v17491_v3  ;;  %v17358_v38 = vor.u32 %v20147_v33, %v17355_v30  ;;  %v17270_v23 = vor.u32 %v20125_v61, %v17267_v10  ;;  %v17398_v3 = vor.u32 %v20157_v62, %v17395_v2  ;;  %v20155_v33 = vld [vmem:[#allocation2 + $0x2524] sm:$0xf]  ;;  %v20197_v28 = vld [vmem:[#allocation2 + $0x2674] sm:$0xf]  ;;  %v17683_v61 = vld [vmem:[#allocation2 + $0x2778] sm:$0xf0] }
 0x552   :  { %11873 = vmatpush.bf16.msrb.mxu3 %v17206_v15  ;;  %v20179_v15 = vld [vmem:[#allocation2 + $0x25e4] sm:$0xf]  ;;  %v17310_v10 = vor.u32 %v20135_v46, %v17307_v34  ;;  %v17558_v62 = vor.u32 %v20197_v28, %v17555_v20  ;;  %v20189_v28 = vld [vmem:[#allocation2 + $0x2634] sm:$0xf]  ;;  %v17523_v20 = vld [vmem:[#allocation2 + $0x2638] sm:$0xf0] }
 0x553   :  { %11835 = vmatpush.bf16.msrb.mxu0 %v17006_v24  ;;  %v17486_v25 = vor.u32 %v20179_v15, %v17483_v8  ;;  %v17347_v24 = vld [vmem:[#allocation2 + $0x24d8] sm:$0xf0]  ;;  %v17451_v15 = vld [vmem:[#allocation2 + $0x25a8] sm:$0xf0]  ;;  %v20239_v34 = vld [vmem:[#allocation2 + $0x27c4] sm:$0xf] }
 0x554   :  { %11848 = vmatpush.bf16.msrb.mxu1 %v17070_v26  ;;  %v17411_v26 = vld [vmem:[#allocation2 + $0x2558] sm:$0xf0]  ;;  %v17350_v53 = vor.u32 %v20145_v50, %v17347_v24  ;;  %v20121_v50 = vld [vmem:[#allocation2 + $0x2414] sm:$0xf]  ;;  %v17454_v24 = vor.u32 %v20171_v9, %v17451_v15  ;;  %v21590_v15 = vld [vmem:[#allocation62_spill] sm:$0xff] }
 0x555   :  { %11861 = vmatpush.bf16.msrb.mxu2 %v17134_v27  ;;  %v21587_v27 = vld [vmem:[#allocation59_spill] sm:$0xff]  ;;  %v17414_v41 = vor.u32 %v20161_v55, %v17411_v26  ;;  %v17315_v55 = vld [vmem:[#allocation2 + $0x2498] sm:$0xf0]  ;;  %v20153_v26 = vld [vmem:[#allocation2 + $0x2514] sm:$0xf] }
 0x556   :  { %11874 = vmatpush.bf16.msrb.mxu3 %v17198_v7  ;;  %v21589_v7 = vld [vmem:[#allocation61_spill] sm:$0xff]  ;;  %v20209_v9 = vld [vmem:[#allocation2 + $0x26d4] sm:$0xf] }
 0x557   :  { %11836 = vmatpush.bf16.msrb.mxu0 %v16998_v16  ;;  %v20143_v16 = vld [vmem:[#allocation2 + $0x24c4] sm:$0xf] }
 0x558   :  { %11849 = vmatpush.bf16.msrb.mxu1 %v17062_v21  ;;  %v20159_v21 = vld [vmem:[#allocation2 + $0x2544] sm:$0xf]  ;;  %v17342_v19 = vor.u32 %v20143_v16, %v17339_v45  ;;  %v17371_v45 = vld [vmem:[#allocation2 + $0x2508] sm:$0xf0] }
 0x559   :  { %11862 = vmatpush.bf16.msrb.mxu2 %v17126_v59  ;;  %v17403_v59 = vld [vmem:[#allocation2 + $0x2548] sm:$0xf0]  ;;  %v20151_v16 = vld [vmem:[#allocation2 + $0x2504] sm:$0xf] }
 0x55a   :  { %11875 = vmatpush.bf16.msrb.mxu3 %v17190_v42  ;;  %v17406_v12 = vor.u32 %v20159_v21, %v17403_v59  ;;  %v20167_v21 = vld [vmem:[#allocation2 + $0x2584] sm:$0xf]  ;;  %v17435_v59 = vld [vmem:[#allocation2 + $0x2588] sm:$0xf0] }
 0x55b   :  { %11837 = vmatpush.bf16.msrb.mxu0 %v16990_v58  ;;  %v11631_v40 = vpop.f32.mrf.mxu0 }
 0x55c   :  { %11850 = vmatpush.bf16.msrb.mxu1 %v17054_v63  ;;  %v11632_v42 = vadd.f32 %v11631_v40, %v21343_v54  ;;  %v11644_v29 = vpop.f32.mrf.mxu1  ;;  %v20173_v63 = vld [vmem:[#allocation2 + $0x25b4] sm:$0xf]  ;;  %v17334_v54 = vor.u32 %v20141_v57, %v17331_v39  ;;  %v17374_v57 = vor.u32 %v20151_v16, %v17371_v45  ;;  %v17438_v39 = vor.u32 %v20167_v21, %v17435_v59  ;;  %v17723_v16 = vld [vmem:[#allocation2 + $0x27c8] sm:$0xf0] }
 0x55d   :  { %11863 = vmatpush.bf16.msrb.mxu2 %v17118_v0  ;;  %v17459_v0 = vld [vmem:[#allocation2 + $0x25b8] sm:$0xf0] }
 0x55e   :  { %11876 = vmatpush.bf16.msrb.mxu3 %v17182_v60  ;;  %11838 = vmatmul.bf16.vlgmr.msrb.gmra.mxu0 %v21586_v22  ;;  %v11645_v58 = vadd.f32 %v11644_v29, %v11632_v42  ;;  %v20123_v60 = vld [vmem:[#allocation2 + $0x2424] sm:$0xf]  ;;  %v17251_v22 = vld [vmem:[#allocation2 + $0x2418] sm:$0xf0]  ;;  %v20213_v42 = vld [vmem:[#allocation2 + $0x26f4] sm:$0xf] }
 0x55f   :  { %11882 = vmatpush.bf16.msra.mxu0 %v17302_v6  ;;  %11851 = vmatmul.bf16.vlgmr.msrb.gmra.mxu1 %v21588_v51  ;;  %v17259_v6 = vld [vmem:[#allocation2 + $0x2428] sm:$0xf0]  ;;  %v20169_v51 = vld [vmem:[#allocation2 + $0x2594] sm:$0xf]  ;;  %v17254_v43 = vor.u32 %v20121_v50, %v17251_v22 }
 0x560   :  { %11895 = vmatpush.bf16.msra.mxu1 %v17366_v14  ;;  %11864 = vmatmul.bf16.vlgmr.msrb.gmra.mxu2 %v21587_v27  ;;  %v20139_v14 = vld [vmem:[#allocation2 + $0x24a4] sm:$0xf]  ;;  %v17379_v27 = vld [vmem:[#allocation2 + $0x2518] sm:$0xf0]  ;;  %v21592_v50 = vld [vmem:[#allocation64_spill] sm:$0xff] }
 0x561   :  { %11908 = vmatpush.bf16.msra.mxu2 %v17430_v11  ;;  %11877 = vmatmul.bf16.vlgmr.msrb.gmra.mxu3 %v21589_v7  ;;  %v17462_v11 = vor.u32 %v20173_v63, %v17459_v0  ;;  %v17326_v44 = vor.u32 %v20139_v14, %v17323_v32  ;;  %v20119_v7 = vld [vmem:[#allocation2 + $0x2404] sm:$0xf]  ;;  %v17675_v14 = vld [vmem:[#allocation2 + $0x2768] sm:$0xf0]  ;;  %v20241_v22 = vld [vmem:[#allocation2 + $0x27d4] sm:$0xf] }
 0x562   :  { %11921 = vmatpush.bf16.msra.mxu3 %v17494_v5  ;;  %v17387_v5 = vld [vmem:[#allocation2 + $0x2528] sm:$0xf0]  ;;  %v20195_v0 = vld [vmem:[#allocation2 + $0x2664] sm:$0xf] }
 0x563   :  { %11883 = vmatpush.bf16.msra.mxu0 %v17294_v56  ;;  %v11657_v4 = vpop.f32.mrf.mxu2  ;;  %v11633_v8 = vpop.f32.mrf.mxu0  ;;  %v17262_v56 = vor.u32 %v20123_v60, %v17259_v6  ;;  %v17390_v35 = vor.u32 %v20155_v33, %v17387_v5  ;;  %v17611_v60 = vld [vmem:[#allocation2 + $0x26e8] sm:$0xf0]  ;;  %v20227_v6 = vld [vmem:[#allocation2 + $0x2764] sm:$0xf] }
 0x564   :  { %11896 = vmatpush.bf16.msra.mxu1 %v17358_v38  ;;  %v11658_v30 = vadd.f32 %v11657_v4, %v11645_v58  ;;  %v11670_v52 = vpop.f32.mrf.mxu3  ;;  %v11646_v38 = vpop.f32.mrf.mxu1  ;;  %v17747_v58 = vld [vmem:[#allocation2 + $0x27f8] sm:$0xf0]  ;;  %v17739_v4 = vld [vmem:[#allocation2 + $0x27e8] sm:$0xf0]  ;;  %v17678_v5 = vor.u32 %v20227_v6, %v17675_v14  ;;  %v20235_v14 = vld [vmem:[#allocation2 + $0x27a4] sm:$0xf] }
 0x565   :  { %11909 = vmatpush.bf16.msra.mxu2 %v17422_v49  ;;  %v20225_v38 = vld [vmem:[#allocation2 + $0x2754] sm:$0xf] }
 0x566   :  { %11922 = vmatpush.bf16.msra.mxu3 %v17486_v25  ;;  %v21350_v49 = vadd.f32 %v11670_v52, %v11658_v30  ;;  %v20137_v25 = vld [vmem:[#allocation2 + $0x2494] sm:$0xf]  ;;  %v17539_v52 = vld [vmem:[#allocation2 + $0x2658] sm:$0xf0] }
 0x567   :  { %11884 = vmatpush.bf16.msra.mxu0 %v17286_v36  ;;  %v17243_v36 = vld [vmem:[#allocation2 + $0x2408] sm:$0xf0]  ;;  %v20193_v30 = vld [vmem:[#allocation2 + $0x2654] sm:$0xf] }
 0x568   :  { %11897 = vmatpush.bf16.msra.mxu1 %v17350_v53  ;;  %v17318_v53 = vor.u32 %v20137_v25, %v17315_v55  ;;  %v17246_v29 = vor.u32 %v20119_v7, %v17243_v36  ;;  %v17731_v25 = vld [vmem:[#allocation2 + $0x27d8] sm:$0xf0]  ;;  %v17542_v55 = vor.u32 %v20193_v30, %v17539_v52  ;;  %v17595_v36 = vld [vmem:[#allocation2 + $0x26c8] sm:$0xf0] }
 0x569   :  { %11910 = vmatpush.bf16.msra.mxu2 %v17414_v41  ;;  %v17382_v41 = vor.u32 %v20153_v26, %v17379_v27  ;;  %v17734_v7 = vor.u32 %v20241_v22, %v17731_v25  ;;  %v17699_v22 = vld [vmem:[#allocation2 + $0x2798] sm:$0xf0] }
 0x56a   :  { %11923 = vmatpush.bf16.msra.mxu3 %v17478_v37  ;;  %v17446_v37 = vor.u32 %v20169_v51, %v17443_v47  ;;  %v20191_v51 = vld [vmem:[#allocation2 + $0x2644] sm:$0xf]  ;;  %v17531_v47 = vld [vmem:[#allocation2 + $0x2648] sm:$0xf0] }
 0x56b   :  { %11885 = vmatpush.bf16.msra.mxu0 %v17278_v13  ;;  %v11659_v40 = vpop.f32.mrf.mxu2  ;;  %v17534_v45 = vor.u32 %v20191_v51, %v17531_v47  ;;  %v20199_v51 = vld [vmem:[#allocation2 + $0x2684] sm:$0xf]  ;;  %v17563_v47 = vld [vmem:[#allocation2 + $0x2688] sm:$0xf0] }
 0x56c   :  { %11898 = vmatpush.bf16.msra.mxu1 %v17342_v19  ;;  %v11672_v13 = vpop.f32.mrf.mxu3  ;;  %v17619_v19 = vld [vmem:[#allocation2 + $0x26f8] sm:$0xf0] }
 0x56d   :  { %11911 = vmatpush.bf16.msra.mxu2 %v17406_v12  ;;  %v20229_v12 = vld [vmem:[#allocation2 + $0x2774] sm:$0xf]  ;;  %v17622_v2 = vor.u32 %v20213_v42, %v17619_v19  ;;  %v17726_v13 = vor.u32 %v20239_v34, %v17723_v16  ;;  %v17587_v19 = vld [vmem:[#allocation2 + $0x26b8] sm:$0xf0] }
 0x56e   :  { %11924 = vmatpush.bf16.msra.mxu3 %v17470_v18  ;;  %v20245_v18 = vld [vmem:[#allocation2 + $0x27f4] sm:$0xf]  ;;  %v17686_v63 = vor.u32 %v20229_v12, %v17683_v61  ;;  %v17651_v61 = vld [vmem:[#allocation2 + $0x2738] sm:$0xf0] }
 0x56f   :  { %11886 = vmatpush.bf16.msra.mxu0 %v17270_v23  ;;  %v17547_v23 = vld [vmem:[#allocation2 + $0x2668] sm:$0xf0]  ;;  %v20205_v42 = vld [vmem:[#allocation2 + $0x26b4] sm:$0xf]  ;;  %v17811_v16 = vld [vmem:[#allocation2 + $0x2878] sm:$0xf0] }
 0x570   :  { %11899 = vmatpush.bf16.msra.mxu1 %v17334_v54  ;;  %v20211_v54 = vld [vmem:[#allocation2 + $0x26e4] sm:$0xf]  ;;  %v17550_v32 = vor.u32 %v20195_v0, %v17547_v23  ;;  %v20221_v12 = vld [vmem:[#allocation2 + $0x2734] sm:$0xf]  ;;  %v17579_v23 = vld [vmem:[#allocation2 + $0x26a8] sm:$0xf0] }
 0x571   :  { %11912 = vmatpush.bf16.msra.mxu2 %v17398_v3  ;;  %v17750_v3 = vor.u32 %v20245_v18, %v17747_v58  ;;  %v17614_v33 = vor.u32 %v20211_v54, %v17611_v60  ;;  %v17526_v18 = vor.u32 %v20189_v28, %v17523_v20  ;;  %v17654_v58 = vor.u32 %v20221_v12, %v17651_v61  ;;  %v20219_v54 = vld [vmem:[#allocation2 + $0x2724] sm:$0xf]  ;;  %v20261_v34 = vld [vmem:[#allocation2 + $0x2874] sm:$0xf]  ;;  %v17939_v28 = vld [vmem:[#allocation2 + $0x2978] sm:$0xf0] }
 0x572   :  { %11925 = vmatpush.bf16.msra.mxu3 %v17462_v11  ;;  %v20243_v11 = vld [vmem:[#allocation2 + $0x27e4] sm:$0xf]  ;;  %v17566_v20 = vor.u32 %v20199_v51, %v17563_v47  ;;  %v17814_v12 = vor.u32 %v20261_v34, %v17811_v16  ;;  %v20253_v34 = vld [vmem:[#allocation2 + $0x2834] sm:$0xf]  ;;  %v17779_v16 = vld [vmem:[#allocation2 + $0x2838] sm:$0xf0] }
 0x573   :  { %11887 = vmatpush.bf16.msra.mxu0 %v17262_v56  ;;  %v17742_v8 = vor.u32 %v20243_v11, %v17739_v4  ;;  %v17603_v56 = vld [vmem:[#allocation2 + $0x26d8] sm:$0xf0]  ;;  %v17707_v11 = vld [vmem:[#allocation2 + $0x27a8] sm:$0xf0]  ;;  %v20303_v47 = vld [vmem:[#allocation2 + $0x29c4] sm:$0xf] }
 0x574   :  { %11900 = vmatpush.bf16.msra.mxu1 %v17326_v44  ;;  %v17667_v44 = vld [vmem:[#allocation2 + $0x2758] sm:$0xf0]  ;;  %v17606_v26 = vor.u32 %v20209_v9, %v17603_v56  ;;  %v20185_v9 = vld [vmem:[#allocation2 + $0x2614] sm:$0xf]  ;;  %v17710_v56 = vor.u32 %v20235_v14, %v17707_v11  ;;  %v21594_v11 = vld [vmem:[#allocation66_spill] sm:$0xff] }
 0x575   :  { %11913 = vmatpush.bf16.msra.mxu2 %v17390_v35  ;;  %v21591_v35 = vld [vmem:[#allocation63_spill] sm:$0xff]  ;;  %v17670_v27 = vor.u32 %v20225_v38, %v17667_v44  ;;  %v17571_v38 = vld [vmem:[#allocation2 + $0x2698] sm:$0xf0]  ;;  %v20217_v44 = vld [vmem:[#allocation2 + $0x2714] sm:$0xf] }
 0x576   :  { %11926 = vmatpush.bf16.msra.mxu3 %v17454_v24  ;;  %v21593_v24 = vld [vmem:[#allocation65_spill] sm:$0xff]  ;;  %v20273_v14 = vld [vmem:[#allocation2 + $0x28d4] sm:$0xf] }
 0x577   :  { %11888 = vmatpush.bf16.msra.mxu0 %v17254_v43  ;;  %v20207_v43 = vld [vmem:[#allocation2 + $0x26c4] sm:$0xf] }
 0x578   :  { %11901 = vmatpush.bf16.msra.mxu1 %v17318_v53  ;;  %v20223_v53 = vld [vmem:[#allocation2 + $0x2744] sm:$0xf]  ;;  %v17598_v59 = vor.u32 %v20207_v43, %v17595_v36  ;;  %v17627_v36 = vld [vmem:[#allocation2 + $0x2708] sm:$0xf0] }
 0x579   :  { %11914 = vmatpush.bf16.msra.mxu2 %v17382_v41  ;;  %v17659_v41 = vld [vmem:[#allocation2 + $0x2748] sm:$0xf0]  ;;  %v20215_v43 = vld [vmem:[#allocation2 + $0x2704] sm:$0xf] }
 0x57a   :  { %11927 = vmatpush.bf16.msra.mxu3 %v17446_v37  ;;  %v17662_v40 = vor.u32 %v20223_v53, %v17659_v41  ;;  %v20231_v53 = vld [vmem:[#allocation2 + $0x2784] sm:$0xf]  ;;  %v17691_v41 = vld [vmem:[#allocation2 + $0x2788] sm:$0xf0] }
 0x57b   :  { %11889 = vmatpush.bf16.msra.mxu0 %v17246_v29  ;;  %v11683_v46 = vpop.f32.mrf.mxu0 }
 0x57c   :  { %11902 = vmatpush.bf16.msra.mxu1 %v17310_v10  ;;  %v11684_v37 = vadd.f32 %v11683_v46, %v21350_v49  ;;  %v11696_v21 = vpop.f32.mrf.mxu1  ;;  %v20237_v10 = vld [vmem:[#allocation2 + $0x27b4] sm:$0xf]  ;;  %v17590_v49 = vor.u32 %v20205_v42, %v17587_v19  ;;  %v17630_v42 = vor.u32 %v20215_v43, %v17627_v36  ;;  %v17694_v19 = vor.u32 %v20231_v53, %v17691_v41  ;;  %v17979_v43 = vld [vmem:[#allocation2 + $0x29c8] sm:$0xf0] }
 0x57d   :  { %11915 = vmatpush.bf16.msra.mxu2 %v17374_v57  ;;  %v17715_v57 = vld [vmem:[#allocation2 + $0x27b8] sm:$0xf0] }
 0x57e   :  { %11928 = vmatpush.bf16.msra.mxu3 %v17438_v39  ;;  %11890 = vmatmul.bf16.vlgmr.msra.gmra.mxu0 %v21590_v15  ;;  %v11697_v29 = vadd.f32 %v11696_v21, %v11684_v37  ;;  %v20187_v39 = vld [vmem:[#allocation2 + $0x2624] sm:$0xf]  ;;  %v17507_v15 = vld [vmem:[#allocation2 + $0x2618] sm:$0xf0]  ;;  %v20277_v37 = vld [vmem:[#allocation2 + $0x28f4] sm:$0xf] }
 0x57f   :  { %11934 = vmatpush.bf16.msrb.mxu0 %v17558_v62  ;;  %11903 = vmatmul.bf16.vlgmr.msra.gmra.mxu1 %v21592_v50  ;;  %v17515_v62 = vld [vmem:[#allocation2 + $0x2628] sm:$0xf0]  ;;  %v20233_v50 = vld [vmem:[#allocation2 + $0x2794] sm:$0xf]  ;;  %v17510_v25 = vor.u32 %v20185_v9, %v17507_v15 }
 0x580   :  { %11947 = vmatpush.bf16.msrb.mxu1 %v17622_v2  ;;  %11916 = vmatmul.bf16.vlgmr.msra.gmra.mxu2 %v21591_v35  ;;  %v20203_v2 = vld [vmem:[#allocation2 + $0x26a4] sm:$0xf]  ;;  %v17635_v35 = vld [vmem:[#allocation2 + $0x2718] sm:$0xf0]  ;;  %v21596_v9 = vld [vmem:[#allocation68_spill] sm:$0xff] }
 0x581   :  { %11960 = vmatpush.bf16.msrb.mxu2 %v17686_v63  ;;  %11929 = vmatmul.bf16.vlgmr.msra.gmra.mxu3 %v21593_v24  ;;  %v17718_v63 = vor.u32 %v20237_v10, %v17715_v57  ;;  %v17582_v30 = vor.u32 %v20203_v2, %v17579_v23  ;;  %v20183_v24 = vld [vmem:[#allocation2 + $0x2604] sm:$0xf]  ;;  %v17931_v2 = vld [vmem:[#allocation2 + $0x2968] sm:$0xf0]  ;;  %v20305_v15 = vld [vmem:[#allocation2 + $0x29d4] sm:$0xf] }
 0x582   :  { %11973 = vmatpush.bf16.msrb.mxu3 %v17750_v3  ;;  %v17643_v3 = vld [vmem:[#allocation2 + $0x2728] sm:$0xf0]  ;;  %v20259_v57 = vld [vmem:[#allocation2 + $0x2864] sm:$0xf] }
 0x583   :  { %11935 = vmatpush.bf16.msrb.mxu0 %v17550_v32  ;;  %v11709_v0 = vpop.f32.mrf.mxu2  ;;  %v11685_v4 = vpop.f32.mrf.mxu0  ;;  %v17518_v32 = vor.u32 %v20187_v39, %v17515_v62  ;;  %v17646_v52 = vor.u32 %v20219_v54, %v17643_v3  ;;  %v17867_v39 = vld [vmem:[#allocation2 + $0x28e8] sm:$0xf0]  ;;  %v20291_v62 = vld [vmem:[#allocation2 + $0x2964] sm:$0xf] }
 0x584   :  { %11948 = vmatpush.bf16.msrb.mxu1 %v17614_v33  ;;  %v11710_v60 = vadd.f32 %v11709_v0, %v11697_v29  ;;  %v11722_v6 = vpop.f32.mrf.mxu3  ;;  %v11698_v33 = vpop.f32.mrf.mxu1  ;;  %v18003_v29 = vld [vmem:[#allocation2 + $0x29f8] sm:$0xf0]  ;;  %v17995_v0 = vld [vmem:[#allocation2 + $0x29e8] sm:$0xf0]  ;;  %v17934_v3 = vor.u32 %v20291_v62, %v17931_v2  ;;  %v20299_v2 = vld [vmem:[#allocation2 + $0x29a4] sm:$0xf] }
 0x585   :  { %11961 = vmatpush.bf16.msrb.mxu2 %v17678_v5  ;;  %v20289_v33 = vld [vmem:[#allocation2 + $0x2954] sm:$0xf] }
 0x586   :  { %11974 = vmatpush.bf16.msrb.mxu3 %v17742_v8  ;;  %v21357_v5 = vadd.f32 %v11722_v6, %v11710_v60  ;;  %v20201_v8 = vld [vmem:[#allocation2 + $0x2694] sm:$0xf]  ;;  %v17795_v6 = vld [vmem:[#allocation2 + $0x2858] sm:$0xf0] }
 0x587   :  { %11936 = vmatpush.bf16.msrb.mxu0 %v17542_v55  ;;  %v17499_v55 = vld [vmem:[#allocation2 + $0x2608] sm:$0xf0]  ;;  %v20257_v60 = vld [vmem:[#allocation2 + $0x2854] sm:$0xf] }
 0x588   :  { %11949 = vmatpush.bf16.msrb.mxu1 %v17606_v26  ;;  %v17574_v26 = vor.u32 %v20201_v8, %v17571_v38  ;;  %v17502_v21 = vor.u32 %v20183_v24, %v17499_v55  ;;  %v17987_v8 = vld [vmem:[#allocation2 + $0x29d8] sm:$0xf0]  ;;  %v17798_v38 = vor.u32 %v20257_v60, %v17795_v6  ;;  %v17851_v55 = vld [vmem:[#allocation2 + $0x28c8] sm:$0xf0] }
 0x589   :  { %11962 = vmatpush.bf16.msrb.mxu2 %v17670_v27  ;;  %v17638_v27 = vor.u32 %v20217_v44, %v17635_v35  ;;  %v17990_v24 = vor.u32 %v20305_v15, %v17987_v8  ;;  %v17955_v15 = vld [vmem:[#allocation2 + $0x2998] sm:$0xf0] }
 0x58a   :  { %11975 = vmatpush.bf16.msrb.mxu3 %v17734_v7  ;;  %v17702_v7 = vor.u32 %v20233_v50, %v17699_v22  ;;  %v20255_v50 = vld [vmem:[#allocation2 + $0x2844] sm:$0xf]  ;;  %v17787_v22 = vld [vmem:[#allocation2 + $0x2848] sm:$0xf0] }
 0x58b   :  { %11937 = vmatpush.bf16.msrb.mxu0 %v17534_v45  ;;  %v11711_v46 = vpop.f32.mrf.mxu2  ;;  %v17790_v36 = vor.u32 %v20255_v50, %v17787_v22  ;;  %v20263_v50 = vld [vmem:[#allocation2 + $0x2884] sm:$0xf]  ;;  %v17819_v22 = vld [vmem:[#allocation2 + $0x2888] sm:$0xf0] }
 0x58c   :  { %11950 = vmatpush.bf16.msrb.mxu1 %v17598_v59  ;;  %v11724_v45 = vpop.f32.mrf.mxu3  ;;  %v17875_v59 = vld [vmem:[#allocation2 + $0x28f8] sm:$0xf0] }
 0x58d   :  { %11963 = vmatpush.bf16.msrb.mxu2 %v17662_v40  ;;  %v20293_v40 = vld [vmem:[#allocation2 + $0x2974] sm:$0xf]  ;;  %v17878_v61 = vor.u32 %v20277_v37, %v17875_v59  ;;  %v17982_v45 = vor.u32 %v20303_v47, %v17979_v43  ;;  %v17843_v59 = vld [vmem:[#allocation2 + $0x28b8] sm:$0xf0] }
 0x58e   :  { %11976 = vmatpush.bf16.msrb.mxu3 %v17726_v13  ;;  %v20309_v13 = vld [vmem:[#allocation2 + $0x29f4] sm:$0xf]  ;;  %v17942_v10 = vor.u32 %v20293_v40, %v17939_v28  ;;  %v17907_v28 = vld [vmem:[#allocation2 + $0x2938] sm:$0xf0] }
 0x58f   :  { %11938 = vmatpush.bf16.msrb.mxu0 %v17526_v18  ;;  %v17803_v18 = vld [vmem:[#allocation2 + $0x2868] sm:$0xf0]  ;;  %v20269_v37 = vld [vmem:[#allocation2 + $0x28b4] sm:$0xf]  ;;  %v18067_v43 = vld [vmem:[#allocation2 + $0x2a78] sm:$0xf0] }
 0x590   :  { %11951 = vmatpush.bf16.msrb.mxu1 %v17590_v49  ;;  %v20275_v49 = vld [vmem:[#allocation2 + $0x28e4] sm:$0xf]  ;;  %v17806_v23 = vor.u32 %v20259_v57, %v17803_v18  ;;  %v20285_v40 = vld [vmem:[#allocation2 + $0x2934] sm:$0xf]  ;;  %v17835_v18 = vld [vmem:[#allocation2 + $0x28a8] sm:$0xf0] }
 0x591   :  { %11964 = vmatpush.bf16.msrb.mxu2 %v17654_v58  ;;  %v18006_v58 = vor.u32 %v20309_v13, %v18003_v29  ;;  %v17870_v54 = vor.u32 %v20275_v49, %v17867_v39  ;;  %v17782_v13 = vor.u32 %v20253_v34, %v17779_v16  ;;  %v17910_v29 = vor.u32 %v20285_v40, %v17907_v28  ;;  %v20283_v49 = vld [vmem:[#allocation2 + $0x2924] sm:$0xf]  ;;  %v20325_v47 = vld [vmem:[#allocation2 + $0x2a74] sm:$0xf]  ;;  %v18195_v34 = vld [vmem:[#allocation2 + $0x2b78] sm:$0xf0] }
 0x592   :  { %11977 = vmatpush.bf16.msrb.mxu3 %v17718_v63  ;;  %v20307_v63 = vld [vmem:[#allocation2 + $0x29e4] sm:$0xf]  ;;  %v17822_v16 = vor.u32 %v20263_v50, %v17819_v22  ;;  %v18070_v40 = vor.u32 %v20325_v47, %v18067_v43  ;;  %v20317_v47 = vld [vmem:[#allocation2 + $0x2a34] sm:$0xf]  ;;  %v18035_v43 = vld [vmem:[#allocation2 + $0x2a38] sm:$0xf0] }
 0x593   :  { %11939 = vmatpush.bf16.msrb.mxu0 %v17518_v32  ;;  %v17998_v4 = vor.u32 %v20307_v63, %v17995_v0  ;;  %v17859_v32 = vld [vmem:[#allocation2 + $0x28d8] sm:$0xf0]  ;;  %v17963_v63 = vld [vmem:[#allocation2 + $0x29a8] sm:$0xf0]  ;;  %v20367_v22 = vld [vmem:[#allocation2 + $0x2bc4] sm:$0xf] }
 0x594   :  { %11952 = vmatpush.bf16.msrb.mxu1 %v17582_v30  ;;  %v17923_v30 = vld [vmem:[#allocation2 + $0x2958] sm:$0xf0]  ;;  %v17862_v44 = vor.u32 %v20273_v14, %v17859_v32  ;;  %v20249_v14 = vld [vmem:[#allocation2 + $0x2814] sm:$0xf]  ;;  %v17966_v32 = vor.u32 %v20299_v2, %v17963_v63  ;;  %v21598_v63 = vld [vmem:[#allocation70_spill] sm:$0xff] }
 0x595   :  { %11965 = vmatpush.bf16.msrb.mxu2 %v17646_v52  ;;  %v21595_v52 = vld [vmem:[#allocation67_spill] sm:$0xff]  ;;  %v17926_v35 = vor.u32 %v20289_v33, %v17923_v30  ;;  %v17827_v33 = vld [vmem:[#allocation2 + $0x2898] sm:$0xf0]  ;;  %v20281_v30 = vld [vmem:[#allocation2 + $0x2914] sm:$0xf] }
 0x596   :  { %11978 = vmatpush.bf16.msrb.mxu3 %v17710_v56  ;;  %v21597_v56 = vld [vmem:[#allocation69_spill] sm:$0xff]  ;;  %v20337_v2 = vld [vmem:[#allocation2 + $0x2ad4] sm:$0xf] }
 0x597   :  { %11940 = vmatpush.bf16.msrb.mxu0 %v17510_v25  ;;  %v20271_v25 = vld [vmem:[#allocation2 + $0x28c4] sm:$0xf] }
 0x598   :  { %11953 = vmatpush.bf16.msrb.mxu1 %v17574_v26  ;;  %v20287_v26 = vld [vmem:[#allocation2 + $0x2944] sm:$0xf]  ;;  %v17854_v41 = vor.u32 %v20271_v25, %v17851_v55  ;;  %v17883_v55 = vld [vmem:[#allocation2 + $0x2908] sm:$0xf0] }
 0x599   :  { %11966 = vmatpush.bf16.msrb.mxu2 %v17638_v27  ;;  %v17915_v27 = vld [vmem:[#allocation2 + $0x2948] sm:$0xf0]  ;;  %v20279_v25 = vld [vmem:[#allocation2 + $0x2904] sm:$0xf] }
 0x59a   :  { %11979 = vmatpush.bf16.msrb.mxu3 %v17702_v7  ;;  %v17918_v46 = vor.u32 %v20287_v26, %v17915_v27  ;;  %v20295_v26 = vld [vmem:[#allocation2 + $0x2984] sm:$0xf]  ;;  %v17947_v27 = vld [vmem:[#allocation2 + $0x2988] sm:$0xf0] }
 0x59b   :  { %11941 = vmatpush.bf16.msrb.mxu0 %v17502_v21  ;;  %v11735_v51 = vpop.f32.mrf.mxu0 }
 0x59c   :  { %11954 = vmatpush.bf16.msrb.mxu1 %v17566_v20  ;;  %v11736_v7 = vadd.f32 %v11735_v51, %v21357_v5  ;;  %v11748_v53 = vpop.f32.mrf.mxu1  ;;  %v20301_v20 = vld [vmem:[#allocation2 + $0x29b4] sm:$0xf]  ;;  %v17846_v5 = vor.u32 %v20269_v37, %v17843_v59  ;;  %v17886_v37 = vor.u32 %v20279_v25, %v17883_v55  ;;  %v17950_v59 = vor.u32 %v20295_v26, %v17947_v27  ;;  %v18235_v25 = vld [vmem:[#allocation2 + $0x2bc8] sm:$0xf0] }
 0x59d   :  { %11967 = vmatpush.bf16.msrb.mxu2 %v17630_v42  ;;  %v17971_v42 = vld [vmem:[#allocation2 + $0x29b8] sm:$0xf0] }
 0x59e   :  { %11980 = vmatpush.bf16.msrb.mxu3 %v17694_v19  ;;  %11942 = vmatmul.bf16.vlgmr.msrb.gmra.mxu0 %v21594_v11  ;;  %v11749_v21 = vadd.f32 %v11748_v53, %v11736_v7  ;;  %v20251_v19 = vld [vmem:[#allocation2 + $0x2824] sm:$0xf]  ;;  %v17763_v11 = vld [vmem:[#allocation2 + $0x2818] sm:$0xf0]  ;;  %v20341_v7 = vld [vmem:[#allocation2 + $0x2af4] sm:$0xf] }
 0x59f   :  { %11986 = vmatpush.bf16.msra.mxu0 %v17814_v12  ;;  %11955 = vmatmul.bf16.vlgmr.msrb.gmra.mxu1 %v21596_v9  ;;  %v17771_v12 = vld [vmem:[#allocation2 + $0x2828] sm:$0xf0]  ;;  %v20297_v9 = vld [vmem:[#allocation2 + $0x2994] sm:$0xf]  ;;  %v17766_v8 = vor.u32 %v20249_v14, %v17763_v11 }
 0x5a0   :  { %11999 = vmatpush.bf16.msra.mxu1 %v17878_v61  ;;  %11968 = vmatmul.bf16.vlgmr.msrb.gmra.mxu2 %v21595_v52  ;;  %v20267_v61 = vld [vmem:[#allocation2 + $0x28a4] sm:$0xf]  ;;  %v17891_v52 = vld [vmem:[#allocation2 + $0x2918] sm:$0xf0]  ;;  %v21600_v14 = vld [vmem:[#allocation72_spill] sm:$0xff] }
 0x5a1   :  { %12012 = vmatpush.bf16.msra.mxu2 %v17942_v10  ;;  %11981 = vmatmul.bf16.vlgmr.msrb.gmra.mxu3 %v21597_v56  ;;  %v17974_v10 = vor.u32 %v20301_v20, %v17971_v42  ;;  %v17838_v60 = vor.u32 %v20267_v61, %v17835_v18  ;;  %v20247_v56 = vld [vmem:[#allocation2 + $0x2804] sm:$0xf]  ;;  %v18187_v61 = vld [vmem:[#allocation2 + $0x2b68] sm:$0xf0]  ;;  %v20369_v11 = vld [vmem:[#allocation2 + $0x2bd4] sm:$0xf] }
 0x5a2   :  { %12025 = vmatpush.bf16.msra.mxu3 %v18006_v58  ;;  %v17899_v58 = vld [vmem:[#allocation2 + $0x2928] sm:$0xf0]  ;;  %v20323_v42 = vld [vmem:[#allocation2 + $0x2a64] sm:$0xf] }
 0x5a3   :  { %11987 = vmatpush.bf16.msra.mxu0 %v17806_v23  ;;  %v11761_v57 = vpop.f32.mrf.mxu2  ;;  %v11737_v0 = vpop.f32.mrf.mxu0  ;;  %v17774_v23 = vor.u32 %v20251_v19, %v17771_v12  ;;  %v17902_v6 = vor.u32 %v20283_v49, %v17899_v58  ;;  %v18123_v19 = vld [vmem:[#allocation2 + $0x2ae8] sm:$0xf0]  ;;  %v20355_v12 = vld [vmem:[#allocation2 + $0x2b64] sm:$0xf] }
 0x5a4   :  { %12000 = vmatpush.bf16.msra.mxu1 %v17870_v54  ;;  %v11762_v39 = vadd.f32 %v11761_v57, %v11749_v21  ;;  %v11774_v62 = vpop.f32.mrf.mxu3  ;;  %v11750_v54 = vpop.f32.mrf.mxu1  ;;  %v18259_v21 = vld [vmem:[#allocation2 + $0x2bf8] sm:$0xf0]  ;;  %v18251_v57 = vld [vmem:[#allocation2 + $0x2be8] sm:$0xf0]  ;;  %v18190_v58 = vor.u32 %v20355_v12, %v18187_v61  ;;  %v20363_v61 = vld [vmem:[#allocation2 + $0x2ba4] sm:$0xf] }
 0x5a5   :  { %12013 = vmatpush.bf16.msra.mxu2 %v17934_v3  ;;  %v20353_v54 = vld [vmem:[#allocation2 + $0x2b54] sm:$0xf] }
 0x5a6   :  { %12026 = vmatpush.bf16.msra.mxu3 %v17998_v4  ;;  %v21364_v3 = vadd.f32 %v11774_v62, %v11762_v39  ;;  %v20265_v4 = vld [vmem:[#allocation2 + $0x2894] sm:$0xf]  ;;  %v18051_v62 = vld [vmem:[#allocation2 + $0x2a58] sm:$0xf0] }
 0x5a7   :  { %11988 = vmatpush.bf16.msra.mxu0 %v17798_v38  ;;  %v17755_v38 = vld [vmem:[#allocation2 + $0x2808] sm:$0xf0]  ;;  %v20321_v39 = vld [vmem:[#allocation2 + $0x2a54] sm:$0xf] }
 0x5a8   :  { %12001 = vmatpush.bf16.msra.mxu1 %v17862_v44  ;;  %v17830_v44 = vor.u32 %v20265_v4, %v17827_v33  ;;  %v17758_v53 = vor.u32 %v20247_v56, %v17755_v38  ;;  %v18243_v4 = vld [vmem:[#allocation2 + $0x2bd8] sm:$0xf0]  ;;  %v18054_v33 = vor.u32 %v20321_v39, %v18051_v62  ;;  %v18107_v38 = vld [vmem:[#allocation2 + $0x2ac8] sm:$0xf0] }
 0x5a9   :  { %12014 = vmatpush.bf16.msra.mxu2 %v17926_v35  ;;  %v17894_v35 = vor.u32 %v20281_v30, %v17891_v52  ;;  %v18246_v56 = vor.u32 %v20369_v11, %v18243_v4  ;;  %v18211_v11 = vld [vmem:[#allocation2 + $0x2b98] sm:$0xf0] }
 0x5aa   :  { %12027 = vmatpush.bf16.msra.mxu3 %v17990_v24  ;;  %v17958_v24 = vor.u32 %v20297_v9, %v17955_v15  ;;  %v20319_v9 = vld [vmem:[#allocation2 + $0x2a44] sm:$0xf]  ;;  %v18043_v15 = vld [vmem:[#allocation2 + $0x2a48] sm:$0xf0] }
 0x5ab   :  { %11989 = vmatpush.bf16.msra.mxu0 %v17790_v36  ;;  %v11763_v51 = vpop.f32.mrf.mxu2  ;;  %v18046_v55 = vor.u32 %v20319_v9, %v18043_v15  ;;  %v20327_v9 = vld [vmem:[#allocation2 + $0x2a84] sm:$0xf]  ;;  %v18075_v15 = vld [vmem:[#allocation2 + $0x2a88] sm:$0xf0] }
 0x5ac   :  { %12002 = vmatpush.bf16.msra.mxu1 %v17854_v41  ;;  %v11776_v36 = vpop.f32.mrf.mxu3  ;;  %v18131_v41 = vld [vmem:[#allocation2 + $0x2af8] sm:$0xf0] }
 0x5ad   :  { %12015 = vmatpush.bf16.msra.mxu2 %v17918_v46  ;;  %v20357_v46 = vld [vmem:[#allocation2 + $0x2b74] sm:$0xf]  ;;  %v18134_v28 = vor.u32 %v20341_v7, %v18131_v41  ;;  %v18238_v36 = vor.u32 %v20367_v22, %v18235_v25  ;;  %v18099_v41 = vld [vmem:[#allocation2 + $0x2ab8] sm:$0xf0] }
 0x5ae   :  { %12028 = vmatpush.bf16.msra.mxu3 %v17982_v45  ;;  %v20373_v45 = vld [vmem:[#allocation2 + $0x2bf4] sm:$0xf]  ;;  %v18198_v20 = vor.u32 %v20357_v46, %v18195_v34  ;;  %v18163_v34 = vld [vmem:[#allocation2 + $0x2b38] sm:$0xf0] }
 0x5af   :  { %11990 = vmatpush.bf16.msra.mxu0 %v17782_v13  ;;  %v18059_v13 = vld [vmem:[#allocation2 + $0x2a68] sm:$0xf0]  ;;  %v20333_v7 = vld [vmem:[#allocation2 + $0x2ab4] sm:$0xf]  ;;  %v18323_v25 = vld [vmem:[#allocation2 + $0x2c78] sm:$0xf0] }
 0x5b0   :  { %12003 = vmatpush.bf16.msra.mxu1 %v17846_v5  ;;  %v20339_v5 = vld [vmem:[#allocation2 + $0x2ae4] sm:$0xf]  ;;  %v18062_v18 = vor.u32 %v20323_v42, %v18059_v13  ;;  %v20349_v46 = vld [vmem:[#allocation2 + $0x2b34] sm:$0xf]  ;;  %v18091_v13 = vld [vmem:[#allocation2 + $0x2aa8] sm:$0xf0] }
 0x5b1   :  { %12016 = vmatpush.bf16.msra.mxu2 %v17910_v29  ;;  %v18262_v29 = vor.u32 %v20373_v45, %v18259_v21  ;;  %v18126_v49 = vor.u32 %v20339_v5, %v18123_v19  ;;  %v18038_v45 = vor.u32 %v20317_v47, %v18035_v43  ;;  %v18166_v21 = vor.u32 %v20349_v46, %v18163_v34  ;;  %v20347_v5 = vld [vmem:[#allocation2 + $0x2b24] sm:$0xf]  ;;  %v20389_v22 = vld [vmem:[#allocation2 + $0x2c74] sm:$0xf]  ;;  %v18451_v47 = vld [vmem:[#allocation2 + $0x2d78] sm:$0xf0] }
 0x5b2   :  { %12029 = vmatpush.bf16.msra.mxu3 %v17974_v10  ;;  %v20371_v10 = vld [vmem:[#allocation2 + $0x2be4] sm:$0xf]  ;;  %v18078_v43 = vor.u32 %v20327_v9, %v18075_v15  ;;  %v18326_v46 = vor.u32 %v20389_v22, %v18323_v25  ;;  %v20381_v22 = vld [vmem:[#allocation2 + $0x2c34] sm:$0xf]  ;;  %v18291_v25 = vld [vmem:[#allocation2 + $0x2c38] sm:$0xf0] }
 0x5b3   :  { %11991 = vmatpush.bf16.msra.mxu0 %v17774_v23  ;;  %v18254_v0 = vor.u32 %v20371_v10, %v18251_v57  ;;  %v18115_v23 = vld [vmem:[#allocation2 + $0x2ad8] sm:$0xf0]  ;;  %v18219_v10 = vld [vmem:[#allocation2 + $0x2ba8] sm:$0xf0]  ;;  %v20431_v15 = vld [vmem:[#allocation2 + $0x2dc4] sm:$0xf] }
 0x5b4   :  { %12004 = vmatpush.bf16.msra.mxu1 %v17838_v60  ;;  %v18179_v60 = vld [vmem:[#allocation2 + $0x2b58] sm:$0xf0]  ;;  %v18118_v30 = vor.u32 %v20337_v2, %v18115_v23  ;;  %v20313_v2 = vld [vmem:[#allocation2 + $0x2a14] sm:$0xf]  ;;  %v18222_v23 = vor.u32 %v20363_v61, %v18219_v10  ;;  %v21602_v10 = vld [vmem:[#allocation74_spill] sm:$0xff] }
 0x5b5   :  { %12017 = vmatpush.bf16.msra.mxu2 %v17902_v6  ;;  %v21599_v6 = vld [vmem:[#allocation71_spill] sm:$0xff]  ;;  %v18182_v52 = vor.u32 %v20353_v54, %v18179_v60  ;;  %v18083_v54 = vld [vmem:[#allocation2 + $0x2a98] sm:$0xf0]  ;;  %v20345_v60 = vld [vmem:[#allocation2 + $0x2b14] sm:$0xf] }
 0x5b6   :  { %12030 = vmatpush.bf16.msra.mxu3 %v17966_v32  ;;  %v21601_v32 = vld [vmem:[#allocation73_spill] sm:$0xff]  ;;  %v20401_v61 = vld [vmem:[#allocation2 + $0x2cd4] sm:$0xf] }
 0x5b7   :  { %11992 = vmatpush.bf16.msra.mxu0 %v17766_v8  ;;  %v20335_v8 = vld [vmem:[#allocation2 + $0x2ac4] sm:$0xf] }
 0x5b8   :  { %12005 = vmatpush.bf16.msra.mxu1 %v17830_v44  ;;  %v20351_v44 = vld [vmem:[#allocation2 + $0x2b44] sm:$0xf]  ;;  %v18110_v27 = vor.u32 %v20335_v8, %v18107_v38  ;;  %v18139_v38 = vld [vmem:[#allocation2 + $0x2b08] sm:$0xf0] }
 0x5b9   :  { %12018 = vmatpush.bf16.msra.mxu2 %v17894_v35  ;;  %v18171_v35 = vld [vmem:[#allocation2 + $0x2b48] sm:$0xf0]  ;;  %v20343_v8 = vld [vmem:[#allocation2 + $0x2b04] sm:$0xf] }
 0x5ba   :  { %12031 = vmatpush.bf16.msra.mxu3 %v17958_v24  ;;  %v18174_v51 = vor.u32 %v20351_v44, %v18171_v35  ;;  %v20359_v44 = vld [vmem:[#allocation2 + $0x2b84] sm:$0xf]  ;;  %v18203_v35 = vld [vmem:[#allocation2 + $0x2b88] sm:$0xf0] }
 0x5bb   :  { %11993 = vmatpush.bf16.msra.mxu0 %v17758_v53  ;;  %v11787_v50 = vpop.f32.mrf.mxu0 }
 0x5bc   :  { %12006 = vmatpush.bf16.msra.mxu1 %v17822_v16  ;;  %v11788_v24 = vadd.f32 %v11787_v50, %v21364_v3  ;;  %v11800_v26 = vpop.f32.mrf.mxu1  ;;  %v20365_v16 = vld [vmem:[#allocation2 + $0x2bb4] sm:$0xf]  ;;  %v18102_v3 = vor.u32 %v20333_v7, %v18099_v41  ;;  %v18142_v7 = vor.u32 %v20343_v8, %v18139_v38  ;;  %v18206_v41 = vor.u32 %v20359_v44, %v18203_v35  ;;  %v18491_v8 = vld [vmem:[#allocation2 + $0x2dc8] sm:$0xf0] }
 0x5bd   :  { %12019 = vmatpush.bf16.msra.mxu2 %v17886_v37  ;;  %v18227_v37 = vld [vmem:[#allocation2 + $0x2bb8] sm:$0xf0] }
 0x5be   :  { %12032 = vmatpush.bf16.msra.mxu3 %v17950_v59  ;;  %11994 = vmatmul.bf16.vlgmr.msra.gmra.mxu0 %v21598_v63  ;;  %v11801_v53 = vadd.f32 %v11800_v26, %v11788_v24  ;;  %v20315_v59 = vld [vmem:[#allocation2 + $0x2a24] sm:$0xf]  ;;  %v18019_v63 = vld [vmem:[#allocation2 + $0x2a18] sm:$0xf0]  ;;  %v20405_v24 = vld [vmem:[#allocation2 + $0x2cf4] sm:$0xf] }
 0x5bf   :  { %12038 = vmatpush.bf16.msrb.mxu0 %v18070_v40  ;;  %12007 = vmatmul.bf16.vlgmr.msra.gmra.mxu1 %v21600_v14  ;;  %v18027_v40 = vld [vmem:[#allocation2 + $0x2a28] sm:$0xf0]  ;;  %v20361_v14 = vld [vmem:[#allocation2 + $0x2b94] sm:$0xf]  ;;  %v18022_v4 = vor.u32 %v20313_v2, %v18019_v63 }
 0x5c0   :  { %12051 = vmatpush.bf16.msrb.mxu1 %v18134_v28  ;;  %12020 = vmatmul.bf16.vlgmr.msra.gmra.mxu2 %v21599_v6  ;;  %v20331_v28 = vld [vmem:[#allocation2 + $0x2aa4] sm:$0xf]  ;;  %v18147_v6 = vld [vmem:[#allocation2 + $0x2b18] sm:$0xf0]  ;;  %v21604_v2 = vld [vmem:[#allocation76_spill] sm:$0xff] }
 0x5c1   :  { %12064 = vmatpush.bf16.msrb.mxu2 %v18198_v20  ;;  %12033 = vmatmul.bf16.vlgmr.msra.gmra.mxu3 %v21601_v32  ;;  %v18230_v20 = vor.u32 %v20365_v16, %v18227_v37  ;;  %v18094_v39 = vor.u32 %v20331_v28, %v18091_v13  ;;  %v20311_v32 = vld [vmem:[#allocation2 + $0x2a04] sm:$0xf]  ;;  %v18443_v28 = vld [vmem:[#allocation2 + $0x2d68] sm:$0xf0]  ;;  %v20433_v63 = vld [vmem:[#allocation2 + $0x2dd4] sm:$0xf] }
 0x5c2   :  { %12077 = vmatpush.bf16.msrb.mxu3 %v18262_v29  ;;  %v18155_v29 = vld [vmem:[#allocation2 + $0x2b28] sm:$0xf0]  ;;  %v20387_v37 = vld [vmem:[#allocation2 + $0x2c64] sm:$0xf] }
 0x5c3   :  { %12039 = vmatpush.bf16.msrb.mxu0 %v18062_v18  ;;  %v11813_v42 = vpop.f32.mrf.mxu2  ;;  %v11789_v57 = vpop.f32.mrf.mxu0  ;;  %v18030_v18 = vor.u32 %v20315_v59, %v18027_v40  ;;  %v18158_v62 = vor.u32 %v20347_v5, %v18155_v29  ;;  %v18379_v59 = vld [vmem:[#allocation2 + $0x2ce8] sm:$0xf0]  ;;  %v20419_v40 = vld [vmem:[#allocation2 + $0x2d64] sm:$0xf] }
 0x5c4   :  { %12052 = vmatpush.bf16.msrb.mxu1 %v18126_v49  ;;  %v11814_v19 = vadd.f32 %v11813_v42, %v11801_v53  ;;  %v11826_v12 = vpop.f32.mrf.mxu3  ;;  %v11802_v49 = vpop.f32.mrf.mxu1  ;;  %v18515_v53 = vld [vmem:[#allocation2 + $0x2df8] sm:$0xf0]  ;;  %v18507_v42 = vld [vmem:[#allocation2 + $0x2de8] sm:$0xf0]  ;;  %v18446_v29 = vor.u32 %v20419_v40, %v18443_v28  ;;  %v20427_v28 = vld [vmem:[#allocation2 + $0x2da4] sm:$0xf] }
 0x5c5   :  { %12065 = vmatpush.bf16.msrb.mxu2 %v18190_v58  ;;  %v20417_v49 = vld [vmem:[#allocation2 + $0x2d54] sm:$0xf] }
 0x5c6   :  { %12078 = vmatpush.bf16.msrb.mxu3 %v18254_v0  ;;  %v21371_v58 = vadd.f32 %v11826_v12, %v11814_v19  ;;  %v20329_v0 = vld [vmem:[#allocation2 + $0x2a94] sm:$0xf]  ;;  %v18307_v12 = vld [vmem:[#allocation2 + $0x2c58] sm:$0xf0] }
 0x5c7   :  { %12040 = vmatpush.bf16.msrb.mxu0 %v18054_v33  ;;  %v18011_v33 = vld [vmem:[#allocation2 + $0x2a08] sm:$0xf0]  ;;  %v20385_v19 = vld [vmem:[#allocation2 + $0x2c54] sm:$0xf] }
 0x5c8   :  { %12053 = vmatpush.bf16.msrb.mxu1 %v18118_v30  ;;  %v18086_v30 = vor.u32 %v20329_v0, %v18083_v54  ;;  %v18014_v26 = vor.u32 %v20311_v32, %v18011_v33  ;;  %v18499_v0 = vld [vmem:[#allocation2 + $0x2dd8] sm:$0xf0]  ;;  %v18310_v54 = vor.u32 %v20385_v19, %v18307_v12  ;;  %v18363_v33 = vld [vmem:[#allocation2 + $0x2cc8] sm:$0xf0] }
 0x5c9   :  { %12066 = vmatpush.bf16.msrb.mxu2 %v18182_v52  ;;  %v18150_v52 = vor.u32 %v20345_v60, %v18147_v6  ;;  %v18502_v32 = vor.u32 %v20433_v63, %v18499_v0  ;;  %v18467_v63 = vld [vmem:[#allocation2 + $0x2d98] sm:$0xf0] }
 0x5ca   :  { %12079 = vmatpush.bf16.msrb.mxu3 %v18246_v56  ;;  %v18214_v56 = vor.u32 %v20361_v14, %v18211_v11  ;;  %v20383_v14 = vld [vmem:[#allocation2 + $0x2c44] sm:$0xf]  ;;  %v18299_v11 = vld [vmem:[#allocation2 + $0x2c48] sm:$0xf0] }
 0x5cb   :  { %12041 = vmatpush.bf16.msrb.mxu0 %v18046_v55  ;;  %v11815_v50 = vpop.f32.mrf.mxu2  ;;  %v18302_v38 = vor.u32 %v20383_v14, %v18299_v11  ;;  %v20391_v14 = vld [vmem:[#allocation2 + $0x2c84] sm:$0xf]  ;;  %v18331_v11 = vld [vmem:[#allocation2 + $0x2c88] sm:$0xf0] }
 0x5cc   :  { %12054 = vmatpush.bf16.msrb.mxu1 %v18110_v27  ;;  %v11828_v55 = vpop.f32.mrf.mxu3  ;;  %v18387_v27 = vld [vmem:[#allocation2 + $0x2cf8] sm:$0xf0] }
 0x5cd   :  { %12067 = vmatpush.bf16.msrb.mxu2 %v18174_v51  ;;  %v20421_v51 = vld [vmem:[#allocation2 + $0x2d74] sm:$0xf]  ;;  %v18390_v34 = vor.u32 %v20405_v24, %v18387_v27  ;;  %v18494_v55 = vor.u32 %v20431_v15, %v18491_v8  ;;  %v18355_v27 = vld [vmem:[#allocation2 + $0x2cb8] sm:$0xf0] }
 0x5ce   :  { %12080 = vmatpush.bf16.msrb.mxu3 %v18238_v36  ;;  %v20437_v36 = vld [vmem:[#allocation2 + $0x2df4] sm:$0xf]  ;;  %v18454_v16 = vor.u32 %v20421_v51, %v18451_v47  ;;  %v18419_v47 = vld [vmem:[#allocation2 + $0x2d38] sm:$0xf0] }
 0x5cf   :  { %12042 = vmatpush.bf16.msrb.mxu0 %v18038_v45  ;;  %v18315_v45 = vld [vmem:[#allocation2 + $0x2c68] sm:$0xf0]  ;;  %v20397_v24 = vld [vmem:[#allocation2 + $0x2cb4] sm:$0xf]  ;;  %v18579_v8 = vld [vmem:[#allocation2 + $0x2e78] sm:$0xf0] }
 0x5d0   :  { %12055 = vmatpush.bf16.msrb.mxu1 %v18102_v3  ;;  %v20403_v3 = vld [vmem:[#allocation2 + $0x2ce4] sm:$0xf]  ;;  %v18318_v13 = vor.u32 %v20387_v37, %v18315_v45  ;;  %v20413_v51 = vld [vmem:[#allocation2 + $0x2d34] sm:$0xf]  ;;  %v18347_v45 = vld [vmem:[#allocation2 + $0x2ca8] sm:$0xf0] }
 0x5d1   :  { %12068 = vmatpush.bf16.msrb.mxu2 %v18166_v21  ;;  %v18518_v21 = vor.u32 %v20437_v36, %v18515_v53  ;;  %v18382_v5 = vor.u32 %v20403_v3, %v18379_v59  ;;  %v18294_v36 = vor.u32 %v20381_v22, %v18291_v25  ;;  %v18422_v53 = vor.u32 %v20413_v51, %v18419_v47  ;;  %v20411_v3 = vld [vmem:[#allocation2 + $0x2d24] sm:$0xf]  ;;  %v20453_v15 = vld [vmem:[#allocation2 + $0x2e74] sm:$0xf]  ;;  %v18707_v22 = vld [vmem:[#allocation2 + $0x2f78] sm:$0xf0] }
 0x5d2   :  { %12081 = vmatpush.bf16.msrb.mxu3 %v18230_v20  ;;  %v20435_v20 = vld [vmem:[#allocation2 + $0x2de4] sm:$0xf]  ;;  %v18334_v25 = vor.u32 %v20391_v14, %v18331_v11  ;;  %v18582_v51 = vor.u32 %v20453_v15, %v18579_v8  ;;  %v18747_v14 = vld [vmem:[#allocation2 + $0x2fc8] sm:$0xf0]  ;;  %v20461_v15 = vld [vmem:[#allocation2 + $0x2eb4] sm:$0xf] }
 0x5d3   :  { %12043 = vmatpush.bf16.msrb.mxu0 %v18030_v18  ;;  %v18510_v57 = vor.u32 %v20435_v20, %v18507_v42  ;;  %v18371_v18 = vld [vmem:[#allocation2 + $0x2cd8] sm:$0xf0]  ;;  %v18475_v20 = vld [vmem:[#allocation2 + $0x2da8] sm:$0xf0] }
 0x5d4   :  { %12056 = vmatpush.bf16.msrb.mxu1 %v18094_v39  ;;  %v18435_v39 = vld [vmem:[#allocation2 + $0x2d58] sm:$0xf0]  ;;  %v18374_v60 = vor.u32 %v20401_v61, %v18371_v18  ;;  %v20377_v61 = vld [vmem:[#allocation2 + $0x2c14] sm:$0xf]  ;;  %v18478_v18 = vor.u32 %v20427_v28, %v18475_v20 }
 0x5d5   :  { %12069 = vmatpush.bf16.msrb.mxu2 %v18158_v62  ;;  %v21603_v62 = vld [vmem:[#allocation75_spill] sm:$0xff]  ;;  %v18438_v6 = vor.u32 %v20417_v49, %v18435_v39  ;;  %v18339_v49 = vld [vmem:[#allocation2 + $0x2c98] sm:$0xf0]  ;;  %v20409_v39 = vld [vmem:[#allocation2 + $0x2d14] sm:$0xf] }
 0x5d6   :  { %12082 = vmatpush.bf16.msrb.mxu3 %v18222_v23  ;;  %v21605_v23 = vld [vmem:[#allocation77_spill] sm:$0xff]  ;;  %v20465_v28 = vld [vmem:[#allocation2 + $0x2ed4] sm:$0xf] }
 0x5d7   :  { %12044 = vmatpush.bf16.msrb.mxu0 %v18022_v4  ;;  %v20399_v4 = vld [vmem:[#allocation2 + $0x2cc4] sm:$0xf] }
 0x5d8   :  { %12057 = vmatpush.bf16.msrb.mxu1 %v18086_v30  ;;  %v20415_v30 = vld [vmem:[#allocation2 + $0x2d44] sm:$0xf]  ;;  %v18366_v35 = vor.u32 %v20399_v4, %v18363_v33  ;;  %v18395_v33 = vld [vmem:[#allocation2 + $0x2d08] sm:$0xf0] }
 0x5d9   :  { %12070 = vmatpush.bf16.msrb.mxu2 %v18150_v52  ;;  %v18427_v52 = vld [vmem:[#allocation2 + $0x2d48] sm:$0xf0]  ;;  %v20407_v4 = vld [vmem:[#allocation2 + $0x2d04] sm:$0xf] }
 0x5da   :  { %12083 = vmatpush.bf16.msrb.mxu3 %v18214_v56  ;;  %v18430_v50 = vor.u32 %v20415_v30, %v18427_v52  ;;  %v20423_v30 = vld [vmem:[#allocation2 + $0x2d84] sm:$0xf]  ;;  %v18459_v52 = vld [vmem:[#allocation2 + $0x2d88] sm:$0xf0] }
 0x5db   :  { %12045 = vmatpush.bf16.msrb.mxu0 %v18014_v26  ;;  %v11839_v9 = vpop.f32.mrf.mxu0 }
 0x5dc   :  { %12058 = vmatpush.bf16.msrb.mxu1 %v18078_v43  ;;  %v11840_v56 = vadd.f32 %v11839_v9, %v21371_v58  ;;  %v11852_v44 = vpop.f32.mrf.mxu1  ;;  %v20429_v43 = vld [vmem:[#allocation2 + $0x2db4] sm:$0xf]  ;;  %v18358_v58 = vor.u32 %v20397_v24, %v18355_v27  ;;  %v18398_v24 = vor.u32 %v20407_v4, %v18395_v33  ;;  %v18462_v27 = vor.u32 %v20423_v30, %v18459_v52 }
 0x5dd   :  { %12071 = vmatpush.bf16.msrb.mxu2 %v18142_v7  ;;  %v18483_v7 = vld [vmem:[#allocation2 + $0x2db8] sm:$0xf0]  ;;  %v20445_v52 = vld [vmem:[#allocation2 + $0x2e34] sm:$0xf] }
 0x5de   :  { %12084 = vmatpush.bf16.msrb.mxu3 %v18206_v41  ;;  %12046 = vmatmul.bf16.vlgmr.msrb.gmra.mxu0 %v21602_v10  ;;  %v11853_v26 = vadd.f32 %v11852_v44, %v11840_v56  ;;  %v20379_v41 = vld [vmem:[#allocation2 + $0x2c24] sm:$0xf]  ;;  %v18275_v10 = vld [vmem:[#allocation2 + $0x2c18] sm:$0xf0]  ;;  %v20469_v56 = vld [vmem:[#allocation2 + $0x2ef4] sm:$0xf] }
 0x5df   :  { %12090 = vmatpush.bf16.msra.mxu0 %v18326_v46  ;;  %12059 = vmatmul.bf16.vlgmr.msrb.gmra.mxu1 %v21604_v2  ;;  %v18283_v46 = vld [vmem:[#allocation2 + $0x2c28] sm:$0xf0]  ;;  %v20425_v2 = vld [vmem:[#allocation2 + $0x2d94] sm:$0xf]  ;;  %v18278_v0 = vor.u32 %v20377_v61, %v18275_v10  ;;  %v18755_v10 = vld [vmem:[#allocation2 + $0x2fd8] sm:$0xf0] }
 0x5e0   :  { %12103 = vmatpush.bf16.msra.mxu1 %v18390_v34  ;;  %12072 = vmatmul.bf16.vlgmr.msrb.gmra.mxu2 %v21603_v62  ;;  %v20395_v34 = vld [vmem:[#allocation2 + $0x2ca4] sm:$0xf]  ;;  %v18403_v62 = vld [vmem:[#allocation2 + $0x2d18] sm:$0xf0]  ;;  %v20497_v61 = vld [vmem:[#allocation2 + $0x2fd4] sm:$0xf] }
 0x5e1   :  { %12116 = vmatpush.bf16.msra.mxu2 %v18454_v16  ;;  %12085 = vmatmul.bf16.vlgmr.msrb.gmra.mxu3 %v21605_v23  ;;  %v18486_v16 = vor.u32 %v20429_v43, %v18483_v7  ;;  %v18350_v19 = vor.u32 %v20395_v34, %v18347_v45  ;;  %v20375_v23 = vld [vmem:[#allocation2 + $0x2c04] sm:$0xf]  ;;  %v18699_v34 = vld [vmem:[#allocation2 + $0x2f68] sm:$0xf0] }
 0x5e2   :  { %12129 = vmatpush.bf16.msra.mxu3 %v18518_v21  ;;  %v18411_v21 = vld [vmem:[#allocation2 + $0x2d28] sm:$0xf0]  ;;  %v20451_v7 = vld [vmem:[#allocation2 + $0x2e64] sm:$0xf] }
 0x5e3   :  { %12091 = vmatpush.bf16.msra.mxu0 %v18318_v13  ;;  %v11865_v37 = vpop.f32.mrf.mxu2  ;;  %v11841_v42 = vpop.f32.mrf.mxu0  ;;  %v18286_v13 = vor.u32 %v20379_v41, %v18283_v46  ;;  %v18414_v12 = vor.u32 %v20411_v3, %v18411_v21  ;;  %v18635_v41 = vld [vmem:[#allocation2 + $0x2ee8] sm:$0xf0]  ;;  %v20483_v46 = vld [vmem:[#allocation2 + $0x2f64] sm:$0xf] }
 0x5e4   :  { %12104 = vmatpush.bf16.msra.mxu1 %v18382_v5  ;;  %v11866_v59 = vadd.f32 %v11865_v37, %v11853_v26  ;;  %v11878_v40 = vpop.f32.mrf.mxu3  ;;  %v11854_v5 = vpop.f32.mrf.mxu1  ;;  %v18771_v26 = vld [vmem:[#allocation2 + $0x2ff8] sm:$0xf0]  ;;  %v18763_v37 = vld [vmem:[#allocation2 + $0x2fe8] sm:$0xf0]  ;;  %v18702_v21 = vor.u32 %v20483_v46, %v18699_v34 }
 0x5e5   :  { %12117 = vmatpush.bf16.msra.mxu2 %v18446_v29  ;;  %v18627_v42 = vld [vmem:[#allocation2 + $0x2ed8] sm:$0xf0]  ;;  %v18731_v46 = vld [vmem:[#allocation2 + $0x2fa8] sm:$0xf0] }
 0x5e6   :  { %12130 = vmatpush.bf16.msra.mxu3 %v18510_v57  ;;  %v21378_v29 = vadd.f32 %v11878_v40, %v11866_v59  ;;  %v20393_v57 = vld [vmem:[#allocation2 + $0x2c94] sm:$0xf]  ;;  %v18563_v40 = vld [vmem:[#allocation2 + $0x2e58] sm:$0xf0] }
 0x5e7   :  { %12092 = vmatpush.bf16.msra.mxu0 %v18310_v54  ;;  %v18267_v54 = vld [vmem:[#allocation2 + $0x2c08] sm:$0xf0]  ;;  %v20449_v59 = vld [vmem:[#allocation2 + $0x2e54] sm:$0xf]  ;;  %v18691_v5 = vld [vmem:[#allocation2 + $0x2f58] sm:$0xf0] }
 0x5e8   :  { %12105 = vmatpush.bf16.msra.mxu1 %v18374_v60  ;;  %v18342_v60 = vor.u32 %v20393_v57, %v18339_v49  ;;  %v18270_v44 = vor.u32 %v20375_v23, %v18267_v54  ;;  %v21608_v57 = vld [vmem:[#allocation80_spill] sm:$0xff]  ;;  %v18630_v49 = vor.u32 %v20465_v28, %v18627_v42  ;;  %v20479_v23 = vld [vmem:[#allocation2 + $0x2f44] sm:$0xf]  ;;  %v18683_v54 = vld [vmem:[#allocation2 + $0x2f48] sm:$0xf0] }
 0x5e9   :  { %12118 = vmatpush.bf16.msra.mxu2 %v18438_v6  ;;  %v18406_v6 = vor.u32 %v20409_v39, %v18403_v62  ;;  %v20447_v62 = vld [vmem:[#allocation2 + $0x2e44] sm:$0xf]  ;;  %v18686_v30 = vor.u32 %v20479_v23, %v18683_v54  ;;  %v20457_v28 = vld [vmem:[#allocation2 + $0x2e94] sm:$0xf]  ;;  %v18595_v42 = vld [vmem:[#allocation2 + $0x2e98] sm:$0xf0] }
 0x5ea   :  { %12131 = vmatpush.bf16.msra.mxu3 %v18502_v32  ;;  %v18470_v32 = vor.u32 %v20425_v2, %v18467_v63  ;;  %v20463_v2 = vld [vmem:[#allocation2 + $0x2ec4] sm:$0xf]  ;;  %v18758_v63 = vor.u32 %v20497_v61, %v18755_v10  ;;  %v18715_v54 = vld [vmem:[#allocation2 + $0x2f88] sm:$0xf0] }
 0x5eb   :  { %12093 = vmatpush.bf16.msra.mxu0 %v18302_v38  ;;  %v11867_v9 = vpop.f32.mrf.mxu2  ;;  %v20439_v10 = vld [vmem:[#allocation2 + $0x2e04] sm:$0xf] }
 0x5ec   :  { %12106 = vmatpush.bf16.msra.mxu1 %v18366_v35  ;;  %v11880_v38 = vpop.f32.mrf.mxu3  ;;  %v18643_v35 = vld [vmem:[#allocation2 + $0x2ef8] sm:$0xf0] }
 0x5ed   :  { %12119 = vmatpush.bf16.msra.mxu2 %v18430_v50  ;;  %v20485_v50 = vld [vmem:[#allocation2 + $0x2f74] sm:$0xf]  ;;  %v18646_v47 = vor.u32 %v20469_v56, %v18643_v35  ;;  %v18547_v9 = vld [vmem:[#allocation2 + $0x2e38] sm:$0xf0] }
 0x5ee   :  { %12132 = vmatpush.bf16.msra.mxu3 %v18494_v55  ;;  %v20501_v55 = vld [vmem:[#allocation2 + $0x2ff4] sm:$0xf]  ;;  %v18710_v43 = vor.u32 %v20485_v50, %v18707_v22  ;;  %v18611_v38 = vld [vmem:[#allocation2 + $0x2eb8] sm:$0xf0] }
 0x5ef   :  { %12094 = vmatpush.bf16.msra.mxu0 %v18294_v36  ;;  %v18571_v36 = vld [vmem:[#allocation2 + $0x2e68] sm:$0xf0]  ;;  %v18675_v35 = vld [vmem:[#allocation2 + $0x2f38] sm:$0xf0]  ;;  %v20493_v50 = vld [vmem:[#allocation2 + $0x2fb4] sm:$0xf] }
 0x5f0   :  { %12107 = vmatpush.bf16.msra.mxu1 %v18358_v58  ;;  %v20467_v58 = vld [vmem:[#allocation2 + $0x2ee4] sm:$0xf]  ;;  %v18574_v45 = vor.u32 %v20451_v7, %v18571_v36  ;;  %v18739_v22 = vld [vmem:[#allocation2 + $0x2fb8] sm:$0xf0]  ;;  %v18667_v36 = vld [vmem:[#allocation2 + $0x2f28] sm:$0xf0] }
 0x5f1   :  { %12120 = vmatpush.bf16.msra.mxu2 %v18422_v53  ;;  %v18774_v53 = vor.u32 %v20501_v55, %v18771_v26  ;;  %v18638_v3 = vor.u32 %v20467_v58, %v18635_v41  ;;  %v20443_v55 = vld [vmem:[#allocation2 + $0x2e24] sm:$0xf]  ;;  %v18539_v26 = vld [vmem:[#allocation2 + $0x2e28] sm:$0xf0] }
 0x5f2   :  { %12133 = vmatpush.bf16.msra.mxu3 %v18486_v16  ;;  %v20499_v16 = vld [vmem:[#allocation2 + $0x2fe4] sm:$0xf] }
 0x5f3   :  { %12095 = vmatpush.bf16.msra.mxu0 %v18286_v13  ;;  %v18766_v20 = vor.u32 %v20499_v16, %v18763_v37  ;;  %v20481_v13 = vld [vmem:[#allocation2 + $0x2f54] sm:$0xf]  ;;  %v20475_v7 = vld [vmem:[#allocation2 + $0x2f24] sm:$0xf]  ;;  %v18542_v16 = vor.u32 %v20443_v55, %v18539_v26  ;;  %v18819_v55 = vld [vmem:[#allocation7 + $0x58] sm:$0xf0] }
 0x5f4   :  { %12108 = vmatpush.bf16.msra.mxu1 %v18350_v19  ;;  %v21606_v19 = vld [vmem:[#allocation78_spill] sm:$0xff]  ;;  %v18694_v39 = vor.u32 %v20481_v13, %v18691_v5  ;;  %v20473_v13 = vld [vmem:[#allocation2 + $0x2f14] sm:$0xf]  ;;  %v18659_v5 = vld [vmem:[#allocation2 + $0x2f18] sm:$0xf0] }
 0x5f5   :  { %12121 = vmatpush.bf16.msra.mxu2 %v18414_v12  ;;  %v21607_v12 = vld [vmem:[#allocation79_spill] sm:$0xff]  ;;  %v20491_v41 = vld [vmem:[#allocation2 + $0x2fa4] sm:$0xf] }
 0x5f6   :  { %12134 = vmatpush.bf16.msra.mxu3 %v18478_v18  ;;  %v18566_v18 = vor.u32 %v20449_v59, %v18563_v40  ;;  %v20441_v59 = vld [vmem:[#allocation2 + $0x2e14] sm:$0xf]  ;;  %v18531_v40 = vld [vmem:[#allocation2 + $0x2e18] sm:$0xf0]  ;;  %v21610_v26 = vld [vmem:[#allocation82_spill] sm:$0xff] }
 0x5f7   :  { %12096 = vmatpush.bf16.msra.mxu0 %v18278_v0  ;;  %v18619_v0 = vld [vmem:[#allocation2 + $0x2ec8] sm:$0xf0]  ;;  %v18534_v61 = vor.u32 %v20441_v59, %v18531_v40  ;;  %v18793_v40 = vld [vmem:[#allocation7 + $0x20] sm:$0xf] }
 0x5f8   :  { %12109 = vmatpush.bf16.msra.mxu1 %v18342_v60  ;;  %v18622_v33 = vor.u32 %v20463_v2, %v18619_v0  ;;  %v20471_v2 = vld [vmem:[#allocation2 + $0x2f04] sm:$0xf] }
 0x5f9   :  { %12122 = vmatpush.bf16.msra.mxu2 %v18406_v6  ;;  %v20495_v6 = vld [vmem:[#allocation2 + $0x2fc4] sm:$0xf] }
 0x5fa   :  { %12135 = vmatpush.bf16.msra.mxu3 %v18470_v32  ;;  %v18750_v8 = vor.u32 %v20495_v6, %v18747_v14  ;;  %v20487_v0 = vld [vmem:[#allocation2 + $0x2f84] sm:$0xf]  ;;  %v20518_v6 = vld [vmem:[#allocation7 + $0x74] sm:$0xf0] }
 0x5fb   :  { %12097 = vmatpush.bf16.msra.mxu0 %v18270_v44  ;;  %v11891_v60 = vpop.f32.mrf.mxu0  ;;  %v20477_v44 = vld [vmem:[#allocation2 + $0x2f34] sm:$0xf] }
 0x5fc   :  { %12110 = vmatpush.bf16.msra.mxu1 %v18334_v25  ;;  %v11892_v11 = vadd.f32 %v11891_v60, %v21378_v29  ;;  %v11904_v32 = vpop.f32.mrf.mxu1  ;;  %v18550_v25 = vor.u32 %v20445_v52, %v18547_v9  ;;  %v18614_v29 = vor.u32 %v20461_v15, %v18611_v38  ;;  %v18833_v60 = vld [vmem:[#allocation7 + $0x70] sm:$0xf]  ;;  %v18718_v52 = vor.u32 %v20487_v0, %v18715_v54  ;;  %v20515_v38 = vld [vmem:[#allocation7 + $0x64] sm:$0xf]  ;;  %v20504_v0 = vld [vmem:[#allocation7 + $0x4] sm:$0xf0] }
 0x5fd   :  { %12123 = vmatpush.bf16.msra.mxu2 %v18398_v24  ;;  %v18678_v24 = vor.u32 %v20477_v44, %v18675_v35  ;;  %v18834_v9 = vor.u32 %v20518_v6, %v18833_v60  ;;  %v18827_v44 = vld [vmem:[#allocation7 + $0x68] sm:$0xf0] }
 0x5fe   :  { %12136 = vmatpush.bf16.msra.mxu3 %v18462_v27  ;;  %12098 = vmatmul.bf16.vlgmr.msra.gmra.mxu0 %v21197_v17  ;;  %v18555_v17 = vld [vmem:[#allocation2 + $0x2e48] sm:$0xf0]  ;;  %v11905_v56 = vadd.f32 %v11904_v32, %v11892_v11  ;;  %v20459_v27 = vld [vmem:[#allocation2 + $0x2ea4] sm:$0xf]  ;;  %v18835_v32 = vld [vmem:[#allocation7 + $0x78] sm:$0xf0] }
 0x5ff   :  { %12142 = vmatpush.bf16.msrb.mxu0 %v18582_v51  ;;  %12111 = vmatmul.bf16.vlgmr.msra.gmra.mxu1 %v21607_v12  ;;  %v18558_v4 = vor.u32 %v20447_v62, %v18555_v17  ;;  %v18742_v51 = vor.u32 %v20493_v50, %v18739_v22  ;;  %v18723_v12 = vld [vmem:[#allocation2 + $0x2f98] sm:$0xf0]  ;;  %v18587_v62 = vld [vmem:[#allocation2 + $0x2e88] sm:$0xf0]  ;;  %v18830_v50 = vor.u32 %v20515_v38, %v18827_v44  ;;  %v18817_v22 = vld [vmem:[#allocation7 + $0x50] sm:$0xf] }
 0x600   :  { %12155 = vmatpush.bf16.msrb.mxu1 %v18646_v47  ;;  %12124 = vmatmul.bf16.vlgmr.msra.gmra.mxu2 %v21606_v19  ;;  %v20489_v19 = vld [vmem:[#allocation2 + $0x2f94] sm:$0xf]  ;;  %v18779_v54 = vld [vmem:[#allocation7 + $0x8] sm:$0xf0] }
 0x601   :  { %12168 = vmatpush.bf16.msrb.mxu2 %v18710_v43  ;;  %12137 = vmatmul.bf16.vlgmr.msra.gmra.mxu3 %v21608_v57  ;;  %v18603_v43 = vld [vmem:[#allocation2 + $0x2ea8] sm:$0xf0]  ;;  %v18598_v57 = vor.u32 %v20457_v28, %v18595_v42  ;;  %v18726_v17 = vor.u32 %v20489_v19, %v18723_v12  ;;  %v20507_v42 = vld [vmem:[#allocation7 + $0x24] sm:$0xf] }
 0x602   :  { %12181 = vmatpush.bf16.msrb.mxu3 %v18774_v53  ;;  %v20508_v28 = vld [vmem:[#allocation7 + $0x24] sm:$0xf0] }
 0x603   :  { %12143 = vmatpush.bf16.msrb.mxu0 %v18574_v45  ;;  %v11917_v47 = vpop.f32.mrf.mxu2  ;;  %v11893_v34 = vpop.f32.mrf.mxu0  ;;  %v18794_v12 = vor.u32 %v20508_v28, %v18793_v40 }
 0x604   :  { %12156 = vmatpush.bf16.msrb.mxu1 %v18638_v3  ;;  %v11918_v58 = vadd.f32 %v11917_v47, %v11905_v56  ;;  %v11930_v53 = vpop.f32.mrf.mxu3  ;;  %v11906_v37 = vpop.f32.mrf.mxu1  ;;  %v18606_v3 = vor.u32 %v20459_v27, %v18603_v43  ;;  %v20516_v56 = vld [vmem:[#allocation7 + $0x64] sm:$0xf0]  ;;  %v18809_v47 = vld [vmem:[#allocation7 + $0x40] sm:$0xf]  ;;  %v20510_v34 = vld [vmem:[#allocation7 + $0x34] sm:$0xf0] }
 0x605   :  { %12169 = vmatpush.bf16.msrb.mxu2 %v18702_v21  ;;  %v18670_v21 = vor.u32 %v20475_v7, %v18667_v36  ;;  %v20512_v43 = vld [vmem:[#allocation7 + $0x44] sm:$0xf0]  ;;  %v20511_v7 = vld [vmem:[#allocation7 + $0x44] sm:$0xf]  ;;  %v18811_v36 = vld [vmem:[#allocation7 + $0x48] sm:$0xf0] }
 0x606   :  { %12182 = vmatpush.bf16.msrb.mxu3 %v18766_v20  ;;  %v21385_v45 = vadd.f32 %v11930_v53, %v11918_v58  ;;  %v18734_v20 = vor.u32 %v20491_v41, %v18731_v46  ;;  %v18810_v53 = vor.u32 %v20512_v43, %v18809_v47  ;;  %v18814_v41 = vor.u32 %v20511_v7, %v18811_v36  ;;  %v18801_v46 = vld [vmem:[#allocation7 + $0x30] sm:$0xf]  ;;  %v20509_v37 = vld [vmem:[#allocation7 + $0x34] sm:$0xf]  ;;  %v18899_v7 = vld [vmem:[#allocation7 + $0xf8] sm:$0xf0] }
 0x607   :  { %12144 = vmatpush.bf16.msrb.mxu0 %v18566_v18  ;;  %v18662_v18 = vor.u32 %v20473_v13, %v18659_v5  ;;  %v18795_v13 = vld [vmem:[#allocation7 + $0x28] sm:$0xf0]  ;;  %v18889_v36 = vld [vmem:[#allocation7 + $0xe0] sm:$0xf] }
 0x608   :  { %12157 = vmatpush.bf16.msrb.mxu1 %v18630_v49  ;;  %v18523_v49 = vld [vmem:[#allocation2 + $0x2e08] sm:$0xf0] }
 0x609   :  { %12170 = vmatpush.bf16.msrb.mxu2 %v18694_v39  ;;  %v20455_v39 = vld [vmem:[#allocation2 + $0x2e84] sm:$0xf]  ;;  %v18526_v11 = vor.u32 %v20439_v10, %v18523_v49  ;;  %v20506_v49 = vld [vmem:[#allocation7 + $0x14] sm:$0xf0] }
 0x60a   :  { %12183 = vmatpush.bf16.msrb.mxu3 %v18758_v63  ;;  %v18651_v63 = vld [vmem:[#allocation2 + $0x2f08] sm:$0xf0] }
 0x60b   :  { %12145 = vmatpush.bf16.msrb.mxu0 %v18558_v4  ;;  %v11919_v23 = vpop.f32.mrf.mxu2  ;;  %v20517_v4 = vld [vmem:[#allocation7 + $0x74] sm:$0xf] }
 0x60c   :  { %12158 = vmatpush.bf16.msrb.mxu1 %v18622_v33  ;;  %v11932_v14 = vpop.f32.mrf.mxu3  ;;  %v18590_v33 = vor.u32 %v20455_v39, %v18587_v62  ;;  %v18838_v15 = vor.u32 %v20517_v4, %v18835_v32  ;;  %v20505_v39 = vld [vmem:[#allocation7 + $0x14] sm:$0xf]  ;;  %v18787_v62 = vld [vmem:[#allocation7 + $0x18] sm:$0xf0]  ;;  %v20503_v23 = vld [vmem:[#allocation7 + $0x4] sm:$0xf] }
 0x60d   :  { %12171 = vmatpush.bf16.msrb.mxu2 %v18686_v30  ;;  %v18654_v30 = vor.u32 %v20471_v2, %v18651_v63  ;;  %v18790_v2 = vor.u32 %v20505_v39, %v18787_v62  ;;  %v18777_v63 = vld [vmem:[#allocation7] sm:$0xf]  ;;  %v18782_v4 = vor.u32 %v20503_v23, %v18779_v54  ;;  %v18859_v23 = vld [vmem:[#allocation7 + $0xa8] sm:$0xf0] }
 0x60e   :  { %12184 = vmatpush.bf16.msrb.mxu3 %v18750_v8  ;;  %v18825_v8 = vld [vmem:[#allocation7 + $0x60] sm:$0xf]  ;;  %v18778_v14 = vor.u32 %v20504_v0, %v18777_v63 }
 0x60f   :  { %12146 = vmatpush.bf16.msrb.mxu0 %v18550_v25  ;;  %v18826_v35 = vor.u32 %v20516_v56, %v18825_v8  ;;  %v20514_v25 = vld [vmem:[#allocation7 + $0x54] sm:$0xf0]  ;;  %v18857_v62 = vld [vmem:[#allocation7 + $0xa0] sm:$0xf] }
 0x610   :  { %12159 = vmatpush.bf16.msrb.mxu1 %v18614_v29  ;;  %v21609_v29 = vld [vmem:[#allocation81_spill] sm:$0xff]  ;;  %v18818_v27 = vor.u32 %v20514_v25, %v18817_v22 }
 0x611   :  { %12172 = vmatpush.bf16.msrb.mxu2 %v18678_v24  ;;  %v20513_v24 = vld [vmem:[#allocation7 + $0x54] sm:$0xf] }
 0x612   :  { %12185 = vmatpush.bf16.msrb.mxu3 %v18742_v51  ;;  %v18822_v51 = vor.u32 %v20513_v24, %v18819_v55 }
 0x613   :  { %12147 = vmatpush.bf16.msrb.mxu0 %v18542_v16 }
 0x614   :  { %12160 = vmatpush.bf16.msrb.mxu1 %v18606_v3  ;;  %v18803_v3 = vld [vmem:[#allocation7 + $0x38] sm:$0xf0] }
 0x615   :  { %12173 = vmatpush.bf16.msrb.mxu2 %v18670_v21  ;;  %v18802_v21 = vor.u32 %v20510_v34, %v18801_v46  ;;  %v18806_v59 = vor.u32 %v20509_v37, %v18803_v3  ;;  %v18881_v34 = vld [vmem:[#allocation7 + $0xd0] sm:$0xf]  ;;  %v20529_v37 = vld [vmem:[#allocation7 + $0xd4] sm:$0xf] }
 0x616   :  { %12186 = vmatpush.bf16.msrb.mxu3 %v18734_v20 }
 0x617   :  { %12148 = vmatpush.bf16.msrb.mxu0 %v18534_v61 }
 0x618   :  { %12161 = vmatpush.bf16.msrb.mxu1 %v18598_v57  ;;  %v18798_v57 = vor.u32 %v20507_v42, %v18795_v13  ;;  %v20528_v42 = vld [vmem:[#allocation7 + $0xc4] sm:$0xf0]  ;;  %v20527_v13 = vld [vmem:[#allocation7 + $0xc4] sm:$0xf] }
 0x619   :  { %12174 = vmatpush.bf16.msrb.mxu2 %v18662_v18  ;;  %v18785_v18 = vld [vmem:[#allocation7 + $0x10] sm:$0xf] }
 0x61a   :  { %12187 = vmatpush.bf16.msrb.mxu3 %v18726_v17  ;;  %v18786_v17 = vor.u32 %v20506_v49, %v18785_v18  ;;  %v18867_v18 = vld [vmem:[#allocation7 + $0xb8] sm:$0xf0] }
 0x61b   :  { %12149 = vmatpush.bf16.msrb.mxu0 %v18526_v11  ;;  %v12194_v11 = vmax.f32 %v21253_v31, 0.0 }
 0x61c   :  { %12162 = vmatpush.bf16.msrb.mxu1 %v18590_v33 }
 0x61d   :  { %12175 = vmatpush.bf16.msrb.mxu2 %v18654_v30  ;;  %v12196_v32 = vpack.c.bf16 %v12194_v11, %v12194_v11 }
 0x61e   :  { %12188 = vmatpush.bf16.msrb.mxu3 %v18718_v52  ;;  %12150 = vmatmul.bf16.vlgmr.msrb.gmra.mxu0 %v21212_v48  ;;  %v11943_v48 = vpop.f32.mrf.mxu0 }
 0x61f   :  { %12396 = vmatpush.bf16.msra.mxu0 %v18834_v9  ;;  %12163 = vmatmul.bf16.vlgmr.msrb.gmra.mxu1 %v21216_v1  ;;  %v11944_v58 = vadd.f32 %v11943_v48, %v21385_v45  ;;  %v11956_v1 = vpop.f32.mrf.mxu1  ;;  %v20532_v48 = vld [vmem:[#allocation7 + $0xe4] sm:$0xf0] }
 0x620   :  { %12176 = vmatmul.bf16.vlgmr.msrb.gmra.mxu2 %v21609_v29 }
 0x621   :  { %12422 = vmatpush.bf16.msra.mxu2 %v18838_v15  ;;  %12189 = vmatmul.bf16.vlgmr.msrb.gmra.mxu3 %v21610_v26  ;;  %v11957_v16 = vadd.f32 %v11956_v1, %v11944_v58  ;;  %v18897_v26 = vld [vmem:[#allocation7 + $0xf0] sm:$0xf]  ;;  %v18891_v1 = vld [vmem:[#allocation7 + $0xe8] sm:$0xf0] }
 0x623   :  { %12397 = vmatpush.bf16.msra.mxu0 %v18826_v35  ;;  %v11969_v20 = vpop.f32.mrf.mxu2 }
 0x624   :  { %v11970_v5 = vadd.f32 %v11969_v20, %v11957_v16  ;;  %v11982_v45 = vpop.f32.mrf.mxu3  ;;  %v20530_v16 = vld [vmem:[#allocation7 + $0xd4] sm:$0xf0]  ;;  %v18873_v20 = vld [vmem:[#allocation7 + $0xc0] sm:$0xf] }
 0x625   :  { %12423 = vmatpush.bf16.msra.mxu2 %v18830_v50 }
 0x626   :  { %v11945_v19 = vpop.f32.mrf.mxu0  ;;  %v11983_v10 = vadd.f32 %v11982_v45, %v11970_v5  ;;  %v18875_v5 = vld [vmem:[#allocation7 + $0xc8] sm:$0xf0]  ;;  %v18874_v45 = vor.u32 %v20528_v42, %v18873_v20 }
 0x627   :  { %12398 = vmatpush.bf16.msra.mxu0 %v18818_v27  ;;  %v11958_v61 = vpop.f32.mrf.mxu1  ;;  %v20534_v27 = vld [vmem:[#allocation7 + $0xf4] sm:$0xf0]  ;;  %v18878_v19 = vor.u32 %v20527_v13, %v18875_v5  ;;  %v20540_v20 = vld [vmem:[#allocation10 + $0x28] sm:$0xff]  ;;  %v20539_v13 = vld [vmem:[#allocation10 + $0x20] sm:$0xff] }
 0x628   :  { %v18898_v43 = vor.u32 %v20534_v27, %v18897_v26  ;;  %v20526_v61 = vld [vmem:[#allocation7 + $0xb4] sm:$0xf0]  ;;  %v20548_v42 = vld [vmem:[#allocation10 + $0x68] sm:$0xff]  ;;  %v20547_v5 = vld [vmem:[#allocation10 + $0x60] sm:$0xff] }
 0x629   :  { %12424 = vmatpush.bf16.msra.mxu2 %v18822_v51  ;;  %v20533_v51 = vld [vmem:[#allocation7 + $0xf4] sm:$0xf] }
 0x62a   :  { %v18902_v58 = vor.u32 %v20533_v51, %v18899_v7  ;;  %12409 = vmatpush.bf16.msra.mxu1 %v18898_v43 }
 0x62b   :  { %12399 = vmatpush.bf16.msra.mxu0 %v18810_v53  ;;  %v11971_v60 = vpop.f32.mrf.mxu2  ;;  %v20531_v53 = vld [vmem:[#allocation7 + $0xe4] sm:$0xf] }
 0x62c   :  { %v11984_v6 = vpop.f32.mrf.mxu3  ;;  %12435 = vmatpush.bf16.msra.mxu3 %v18902_v58  ;;  %v18894_v46 = vor.u32 %v20531_v53, %v18891_v1  ;;  %v18849_v60 = vld [vmem:[#allocation7 + $0x90] sm:$0xf] }
 0x62d   :  { %12425 = vmatpush.bf16.msra.mxu2 %v18814_v41  ;;  %v18890_v41 = vor.u32 %v20532_v48, %v18889_v36  ;;  %v20522_v6 = vld [vmem:[#allocation7 + $0x94] sm:$0xf0] }
 0x62e   :  { %v18850_v11 = vor.u32 %v20522_v6, %v18849_v60 }
 0x62f   :  { %12400 = vmatpush.bf16.msra.mxu0 %v18802_v21  ;;  %12410 = vmatpush.bf16.msra.mxu1 %v18890_v41  ;;  %v18882_v21 = vor.u32 %v20530_v16, %v18881_v34 }
 0x630   :  { %12436 = vmatpush.bf16.msra.mxu3 %v18894_v46 }
 0x631   :  { %12426 = vmatpush.bf16.msra.mxu2 %v18806_v59  ;;  %v18883_v59 = vld [vmem:[#allocation7 + $0xd8] sm:$0xf0] }
 0x632   :  { %v18886_v28 = vor.u32 %v20529_v37, %v18883_v59 }
 0x633   :  { %12401 = vmatpush.bf16.msra.mxu0 %v18794_v12  ;;  %12411 = vmatpush.bf16.msra.mxu1 %v18882_v21  ;;  %v18865_v12 = vld [vmem:[#allocation7 + $0xb0] sm:$0xf] }
 0x634   :  { %12437 = vmatpush.bf16.msra.mxu3 %v18886_v28 }
 0x635   :  { %12427 = vmatpush.bf16.msra.mxu2 %v18798_v57  ;;  %v18866_v57 = vor.u32 %v20526_v61, %v18865_v12  ;;  %v20537_v61 = vld [vmem:[#allocation10 + $0x10] sm:$0xff] }
 0x637   :  { %12402 = vmatpush.bf16.msra.mxu0 %v18786_v17  ;;  %12412 = vmatpush.bf16.msra.mxu1 %v18874_v45  ;;  %v20524_v17 = vld [vmem:[#allocation7 + $0xa4] sm:$0xf0]  ;;  %v20538_v45 = vld [vmem:[#allocation10 + $0x18] sm:$0xff] }
 0x638   :  { %12438 = vmatpush.bf16.msra.mxu3 %v18878_v19  ;;  %v18858_v0 = vor.u32 %v20524_v17, %v18857_v62  ;;  %v20546_v19 = vld [vmem:[#allocation10 + $0x58] sm:$0xff]  ;;  %v20535_v62 = vld [vmem:[#allocation10] sm:$0xff]  ;;  %v20544_v17 = vld [vmem:[#allocation10 + $0x48] sm:$0xff] }
 0x639   :  { %12428 = vmatpush.bf16.msra.mxu2 %v18790_v2  ;;  %v20523_v2 = vld [vmem:[#allocation7 + $0xa4] sm:$0xf] }
 0x63a   :  { %v18862_v54 = vor.u32 %v20523_v2, %v18859_v23  ;;  %v20543_v2 = vld [vmem:[#allocation10 + $0x40] sm:$0xff] }
 0x63b   :  { %12403 = vmatpush.bf16.msra.mxu0 %v18778_v14  ;;  %v11995_v33 = vpop.f32.mrf.mxu0  ;;  %12413 = vmatpush.bf16.msra.mxu1 %v18866_v57  ;;  %v20521_v14 = vld [vmem:[#allocation7 + $0x94] sm:$0xf] }
 0x63c   :  { %v11996_v30 = vadd.f32 %v11995_v33, %v11983_v10  ;;  %v12008_v52 = vpop.f32.mrf.mxu1  ;;  %v20525_v10 = vld [vmem:[#allocation7 + $0xb4] sm:$0xf] }
 0x63d   :  { %12429 = vmatpush.bf16.msra.mxu2 %v18782_v4  ;;  %v18870_v49 = vor.u32 %v20525_v10, %v18867_v18  ;;  %v18851_v4 = vld [vmem:[#allocation7 + $0x98] sm:$0xf0] }
 0x63e   :  { %12404 = vmatmul.bf16.vlgmr.msra.gmra.mxu0 %v12196_v32  ;;  %v12009_v9 = vadd.f32 %v12008_v52, %v11996_v30 }
 0x63f   :  { %12439 = vmatpush.bf16.msra.mxu3 %v18870_v49  ;;  %12414 = vmatpush.bf16.msra.mxu1 %v18858_v0  ;;  %v20536_v49 = vld [vmem:[#allocation10 + $0x8] sm:$0xff] }
 0x640   :  { %12430 = vmatmul.bf16.vlgmr.msra.gmra.mxu2 %v12196_v32  ;;  %v18854_v32 = vor.u32 %v20521_v14, %v18851_v4 }
 0x643   :  { %v12021_v15 = vpop.f32.mrf.mxu2  ;;  %v11997_v38 = vpop.f32.mrf.mxu0  ;;  %12440 = vmatpush.bf16.msra.mxu3 %v18862_v54  ;;  %12415 = vmatpush.bf16.msra.mxu1 %v18850_v11 }
 0x644   :  { %v12022_v8 = vadd.f32 %v12021_v15, %v12009_v9  ;;  %v12034_v56 = vpop.f32.mrf.mxu3  ;;  %v12010_v44 = vpop.f32.mrf.mxu1  ;;  %v18841_v15 = vld [vmem:[#allocation7 + $0x80] sm:$0xf] }
 0x646   :  { %v21393_v35 = vadd.f32 %v12034_v56, %v12022_v8  ;;  %v20520_v8 = vld [vmem:[#allocation7 + $0x84] sm:$0xf0]  ;;  %v20519_v56 = vld [vmem:[#allocation7 + $0x84] sm:$0xf] }
 0x647   :  { %12441 = vmatpush.bf16.msra.mxu3 %v18854_v32  ;;  %v18842_v44 = vor.u32 %v20520_v8, %v18841_v15 }
 0x649   :  { %12416 = vmatpush.bf16.msra.mxu1 %v18842_v44 }
 0x64b   :  { %v12023_v50 = vpop.f32.mrf.mxu2 }
 0x64c   :  { %v12036_v31 = vpop.f32.mrf.mxu3  ;;  %v18843_v50 = vld [vmem:[#allocation7 + $0x88] sm:$0xf0] }
 0x64d   :  { %v18846_v31 = vor.u32 %v20519_v56, %v18843_v50  ;;  %v20562_v56 = vld [vmem:[#allocation11] ss:$0 sm:$0xff] }
 0x64f   :  { %12442 = vmatpush.bf16.msra.mxu3 %v18846_v31 }
 0x65b   :  { %v21395_v22 = vpop.f32.mrf.mxu0 }
 0x65c   :  { %v21397_v25 = vpop.f32.mrf.mxu1  ;;  %v12048_v33 = vadd.f32 %v21395_v22, %v21393_v35 }
 0x663   :  { %v21399_v29 = vpop.f32.mrf.mxu2  ;;  %v12049_v55 = vpop.f32.mrf.mxu0 }
 0x664   :  { %v21401_v24 = vpop.f32.mrf.mxu3  ;;  %v12062_v47 = vpop.f32.mrf.mxu1  ;;  %v12061_v55 = vadd.f32 %v21397_v25, %v12048_v33 }
 0x666   :  { %v12074_v26 = vadd.f32 %v21399_v29, %v12061_v55  ;;  %v20542_v29 = vld [vmem:[#allocation10 + $0x38] sm:$0xff] }
 0x667   :  { %12584 = vmatpush.bf16.msrb.mxu0 %v20542_v29 }
 0x668   :  { %v12087_v22 = vadd.f32 %v21401_v24, %v12074_v26  ;;  %v20541_v24 = vld [vmem:[#allocation10 + $0x30] sm:$0xff] }
 0x66b   :  { %v12075_v3 = vpop.f32.mrf.mxu2  ;;  %12585 = vmatpush.bf16.msrb.mxu0 %v20541_v24 }
 0x66c   :  { %v12088_v40 = vpop.f32.mrf.mxu3  ;;  %v20550_v3 = vld [vmem:[#allocation10 + $0x78] sm:$0xff] }
 0x66d   :  { %12597 = vmatpush.bf16.msrb.mxu1 %v20550_v3  ;;  %v20549_v40 = vld [vmem:[#allocation10 + $0x70] sm:$0xff] }
 0x66f   :  { %12586 = vmatpush.bf16.msrb.mxu0 %v20540_v20 }
 0x671   :  { %12598 = vmatpush.bf16.msrb.mxu1 %v20549_v40 }
 0x673   :  { %12587 = vmatpush.bf16.msrb.mxu0 %v20539_v13 }
 0x675   :  { %12599 = vmatpush.bf16.msrb.mxu1 %v20548_v42 }
 0x677   :  { %12588 = vmatpush.bf16.msrb.mxu0 %v20538_v45 }
 0x679   :  { %12600 = vmatpush.bf16.msrb.mxu1 %v20547_v5 }
 0x67b   :  { %v12099_v39 = vpop.f32.mrf.mxu0  ;;  %12589 = vmatpush.bf16.msrb.mxu0 %v20537_v61 }
 0x67c   :  { %v12112_v63 = vpop.f32.mrf.mxu1  ;;  %v12100_v51 = vadd.f32 %v12099_v39, %v12087_v22  ;;  %v20545_v39 = vld [vmem:[#allocation10 + $0x50] sm:$0xff] }
 0x67d   :  { %12601 = vmatpush.bf16.msrb.mxu1 %v20546_v19 }
 0x67e   :  { %v12113_v47 = vadd.f32 %v12112_v63, %v12100_v51  ;;  %v12230_v63 = vld [vmem:[#allocation8] sm:$0x3] }
 0x67f   :  { %12590 = vmatpush.bf16.msrb.mxu0 %v20536_v49  ;;  %v12232_v0 = vperm.slane %v12230_v63, 0  ;;  %v12233_v60 = vperm.slane %v12230_v63, 1 }
 0x681   :  { %12602 = vmatpush.bf16.msrb.mxu1 %v20545_v39 }
 0x683   :  { %v12125_v30 = vpop.f32.mrf.mxu2  ;;  %v12101_v9 = vpop.f32.mrf.mxu0  ;;  %12591 = vmatpush.bf16.msrb.mxu0 %v20535_v62 }
 0x684   :  { %v12138_v52 = vpop.f32.mrf.mxu3  ;;  %v12114_v38 = vpop.f32.mrf.mxu1  ;;  %v12126_v43 = vadd.f32 %v12125_v30, %v12113_v47 }
 0x685   :  { %12603 = vmatpush.bf16.msrb.mxu1 %v20544_v17 }
 0x686   :  { %v12139_v7 = vadd.f32 %v12138_v52, %v12126_v43 }
 0x689   :  { %12604 = vmatpush.bf16.msrb.mxu1 %v20543_v2 }
 0x68b   :  { %v12127_v27 = vpop.f32.mrf.mxu2 }
 0x68c   :  { %v12140_v35 = vpop.f32.mrf.mxu3 }
 0x69b   :  { %v12151_v36 = vpop.f32.mrf.mxu0 }
 0x69c   :  { %v12164_v48 = vpop.f32.mrf.mxu1  ;;  %v12152_v58 = vadd.f32 %v12151_v36, %v12139_v7 }
 0x69e   :  { %v12165_v53 = vadd.f32 %v12164_v48, %v12152_v58 }
 0x6a3   :  { %v12177_v1 = vpop.f32.mrf.mxu2  ;;  %v12153_v25 = vpop.f32.mrf.mxu0 }
 0x6a4   :  { %v12178_v41 = vadd.f32 %v12177_v1, %v12165_v53  ;;  %v12190_v46 = vpop.f32.mrf.mxu3  ;;  %v12166_v34 = vpop.f32.mrf.mxu1 }
 0x6a6   :  { %v12191_v16 = vadd.f32 %v12190_v46, %v12178_v41 }
 0x6a8   :  { %v12195_v37 = vmax.f32 %v12191_v16, 0.0 }
 0x6aa   :  { %v12197_v21 = vpack.c.bf16 %v12195_v37, %v12195_v37 }
 0x6ab   :  { %v12179_v59 = vpop.f32.mrf.mxu2 }
 0x6ac   :  { %v12192_v28 = vpop.f32.mrf.mxu3  ;;  %12417 = vmatmul.bf16.vlgmr.msra.gmra.mxu1 %v12197_v21  ;;  %12443 = vmatmul.bf16.vlgmr.msra.gmra.mxu3 %v12197_v21 }
 0x6bb   :  { %v12405_v12 = vpop.f32.mrf.mxu0 }
 0x6bc   :  { %v12406_v23 = vadd.f32 %v12405_v12, %v12232_v0 }
 0x6c3   :  { %v12431_v10 = vpop.f32.mrf.mxu2  ;;  %v12407_v57 = vpop.f32.mrf.mxu0 }
 0x6c4   :  { %v12432_v11 = vadd.f32 %v12431_v10, %v12233_v60 }
 0x6cb   :  { %v12433_v18 = vpop.f32.mrf.mxu2 }
 0x729   :  { %v12418_v54 = vpop.f32.mrf.mxu1 }
 0x72a   :  { %v12419_v6 = vadd.f32 %v12418_v54, %v12406_v23 }
 0x72c   :  { %v12448_v14 = vmax.f32 %v12419_v6, 0.0 }
 0x72e   :  { %v12450_v4 = vpack.c.bf16 %v12448_v14, %v12448_v14 }
 0x72f   :  { %v12444_v32 = vpop.f32.mrf.mxu3 }
 0x730   :  { %v12445_v33 = vadd.f32 %v12444_v32, %v12432_v11  ;;  %12592 = vmatmul.bf16.vlgmr.msrb.gmra.mxu0 %v12450_v4 }
 0x731   :  { %v12420_v30 = vpop.f32.mrf.mxu1 }
 0x732   :  { %v12449_v52 = vmax.f32 %v12445_v33, 0.0 }
 0x734   :  { %v12451_v9 = vpack.c.bf16 %v12449_v52, %v12449_v52 }
 0x736   :  { %12605 = vmatmul.bf16.vlgmr.msrb.gmra.mxu1 %v12451_v9 }
 0x737   :  { %v12446_v15 = vpop.f32.mrf.mxu3 }
 0x7ad   :  { %v12593_v8 = vpop.f32.mrf.mxu0 }
 0x7ae   :  { %v12594_v38 = vadd.f32 %v20562_v56, %v12593_v8 }
 0x7b3   :  { %v12606_v44 = vpop.f32.mrf.mxu1 }
 0x7b4   :  { %v12607_v50 = vadd.f32 %v12606_v44, %v12594_v38 }
 0x7b5   :  { %v12595_v31 = vpop.f32.mrf.mxu0 }
 0x7b6   :  { %12610 = vst [vmem:[#allocation13] sm:$0x3] %v12607_v50 }
 0x7b7   :  { %12621 = dma.vmem_to_hbm [thread:$0]  %s12617_s1, 32, %s12619_s25, [#allocation4]  }
 0x7bb   :  { %v12608_v55 = vpop.f32.mrf.mxu1 }
 0x7bc   :  { %20740 = dma.done.wait [#allocation4], 32  }
 0x7bd   :  { %20741 = vsyncadd [#allocation4], 4294967264 }
 0x7be   :  { %12626 = vsyncpa [#allocation3], 1 }
 0x7bf   :  { %12627 = vsyncpa [#allocation6], 1 }
 0x7c0   :  { %12628 = vsyncpa [#allocation9], 1 }
 0x7c1   :  { %12629 = vsyncpa [#allocation12], 1 }
 0x7c2   :  { %12630 = vsyncpa [#allocation4], 1 }

</bundles_post_ra>
